<compile_context>
chip_gen: v6e
topology: v6e:2x2x1
jax: 0.10.0
libtpu: 0.0.40
codegen_flags: <defaults>
</compile_context>

<pallas_src>
import functools
import math

import jax
import jax.numpy as jnp
from jax.experimental import pallas as pl
from jax.experimental.pallas import tpu as pltpu

LANE = 128                       # channel padding / lane width
TM_ROWS = 256                    # row-tile cap (bounded VMEM, v7x-safe)
VMEM_LIMIT = 32 * 1024 * 1024    # explicit scoped-VMEM limit (safe on v5e/v6e/v7x)


def _cpad(c):
    return max(LANE, ((c + LANE - 1) // LANE) * LANE)


def _round_up(x, m):
    return ((x + m - 1) // m) * m


# ------------------------------ Pallas kernels ------------------------------

def _mm_bn_relu_kernel(x_ref, w_ref, s_ref, b_ref, o_ref):
    # out = relu((x @ w) * scale + shift)         (stem conv -> BN -> ReLU)
    y = jnp.dot(x_ref[...], w_ref[...], preferred_element_type=jnp.float32)
    o_ref[...] = jnp.maximum(y * s_ref[...] + b_ref[...], 0.0).astype(o_ref.dtype)


def _bn_relu_mm_bn_relu_kernel(x_ref, s1_ref, b1_ref, w_ref, s2_ref, b2_ref, o_ref):
    # out = relu((relu(x*s1+b1) @ w) * s2 + b2)   (BN-ReLU-1x1conv-BN-ReLU, lane-dense)
    h = jnp.maximum(x_ref[...].astype(jnp.float32) * s1_ref[...] + b1_ref[...], 0.0)
    y = jnp.dot(h.astype(jnp.bfloat16), w_ref[...], preferred_element_type=jnp.float32)
    o_ref[...] = jnp.maximum(y * s2_ref[...] + b2_ref[...], 0.0).astype(o_ref.dtype)


def _conv3x3_res_kernel(hflat_ref, x_ref, w_ref, o_ref, *, H, W, Wg):
    # 3x3 conv (pad=1, stride=1) by 9-tap accumulation over shifted row windows of the
    # row-flattened, spatially padded hidden activation (width padded to Wg), fused with
    # the DenseNet residual/concat:  out = conv3x3(hidden) (placed in its channel slot
    # via the zero-padded weight columns) + x.
    C = o_ref.shape[-1]
    M = H * Wg                                   # rows of the "garbage-column" grid
    acc = jnp.zeros((M, C), jnp.float32)
    for t in range(9):
        di, dj = t // 3, t % 3
        off = di * Wg + dj                       # static flat-row offset of this tap
        acc = acc + jnp.dot(hflat_ref[0, off:off + M, :], w_ref[t],
                            preferred_element_type=jnp.float32)
    for i in range(H):                           # drop garbage columns, add residual
        res = x_ref[0, i * W:(i + 1) * W, :].astype(jnp.float32)
        o_ref[0, i * W:(i + 1) * W, :] = (acc[i * Wg:i * Wg + W, :] + res).astype(o_ref.dtype)


def _maxpool_kernel(xph_ref, o_ref, *, Ho, Wo):
    # 3x3/s2/p1 max pool as an elementwise max over 9 shifted slices of the 4
    # stride-2 phase slabs (no patch tensor, pure VPU work).
    m = None
    for t in range(9):
        di, dj = t // 3, t % 3
        p = (di % 2) * 2 + (dj % 2)
        qi, qj = di // 2, dj // 2
        sl = xph_ref[0, p, qi:qi + Ho, qj:qj + Wo, :]
        m = sl if m is None else jnp.maximum(m, sl)
    o_ref[0] = m


def _transition_kernel(xph_ref, s_ref, b_ref, w_ref, o_ref):
    # BN -> ReLU -> 2x2 avg pool -> 1x1 conv, pooling done BEFORE the matmul
    # (commutes with the bias-free conv) so the matmul sees 4x fewer rows.
    x = xph_ref[0].astype(jnp.float32)                  # (4, M2, C) phase slabs
    y = jnp.maximum(x * s_ref[...] + b_ref[...], 0.0)
    pooled = jnp.mean(y, axis=0)                        # (M2, C)
    o_ref[0] = jnp.dot(pooled.astype(jnp.bfloat16), w_ref[...],
                       preferred_element_type=jnp.float32).astype(o_ref.dtype)


def _head_kernel(x_ref, s_ref, b_ref, w_ref, fb_ref, o_ref):
    # Final BN + ReLU + adaptive avg pool (1,1) + flatten + Linear.
    h = jnp.maximum(x_ref[...].astype(jnp.float32) * s_ref[...] + b_ref[...], 0.0)
    pooled = jnp.mean(h, axis=1)                        # (N, C)
    o_ref[...] = (jnp.dot(pooled, w_ref[...], preferred_element_type=jnp.float32)
                  + fb_ref[...])


# ------------------------------ Pallas wrappers ------------------------------

def _row_call(kernel, x, others, out_cols, out_dtype=jnp.bfloat16):
    """Row-tiled pallas_call: x (M, K) tiled over rows with a capped tile; weights /
    BN vectors broadcast (block index constant -> stay resident). Tail rows padded."""
    m, kdim = x.shape
    if m <= TM_ROWS:
        tm, grid_m, m_pad = m, 1, m
    else:
        tm = TM_ROWS
        grid_m = pl.cdiv(m, tm)
        m_pad = grid_m * tm
        if m_pad != m:
            x = jnp.pad(x, ((0, m_pad - m), (0, 0)))
    out = pl.pallas_call(
        kernel,
        grid=(grid_m,),
        in_specs=[pl.BlockSpec((tm, kdim), lambda i: (i, 0))]
                 + [pl.BlockSpec(a.shape, lambda i, nd=a.ndim: (0,) * nd) for a in others],
        out_specs=pl.BlockSpec((tm, out_cols), lambda i: (i, 0)),
        out_shape=jax.ShapeDtypeStruct((m_pad, out_cols), out_dtype),
        compiler_params=pltpu.CompilerParams(dimension_semantics=("parallel",),
                                             vmem_limit_bytes=VMEM_LIMIT),
    )(x, *others)
    return out[:m] if m_pad != m else out


def _per_batch_call(kernel, batched, shared, out_tail, out_dtype):
    """Grid over the batch dimension (parallel -> both TCs on v7x); each grid step
    sees one image's block plus the broadcast (resident) weights."""
    n = batched[0].shape[0]
    in_specs = [pl.BlockSpec((1,) + a.shape[1:],
                             lambda i, nd=a.ndim: (i,) + (0,) * (nd - 1))
                for a in batched]
    in_specs += [pl.BlockSpec(a.shape, lambda i, nd=a.ndim: (0,) * nd) for a in shared]
    out_spec = pl.BlockSpec((1,) + out_tail,
                            lambda i, nz=len(out_tail): (i,) + (0,) * nz)
    return pl.pallas_call(
        kernel,
        grid=(n,),
        in_specs=in_specs,
        out_specs=out_spec,
        out_shape=jax.ShapeDtypeStruct((n,) + out_tail, out_dtype),
        compiler_params=pltpu.CompilerParams(dimension_semantics=("parallel",),
                                             vmem_limit_bytes=VMEM_LIMIT),
    )(*batched, *shared)


# ------------------------------ JAX glue ------------------------------

def _extract_patches(x, kh, kw, stride, pad):
    """x: (N,H,W,C) -> (N,Ho,Wo,kh*kw,C).  Only used for the one-off 7x7 stem conv."""
    if pad:
        x = jnp.pad(x, ((0, 0), (pad, pad), (pad, pad), (0, 0)))
    n, hp, wp, c = x.shape
    ho = (hp - kh) // stride + 1
    wo = (wp - kw) // stride + 1
    pieces = []
    for i in range(kh):
        for j in range(kw):
            pieces.append(x[:, i:i + (ho - 1) * stride + 1:stride,
                            j:j + (wo - 1) * stride + 1:stride, :])
    return jnp.stack(pieces, axis=3), ho, wo


def _space_to_phases(x, pad, pad_value=0.0):
    """(N,H,W,C) -> (N,4,(H+2p)/2,(W+2p)/2,C) stride-2 phase slabs (pure re-layout,
    no duplication); phase p = (row%2)*2 + col%2."""
    if pad:
        x = jnp.pad(x, ((0, 0), (pad, pad), (pad, pad), (0, 0)),
                    constant_values=pad_value)
    n, hp, wp, c = x.shape
    assert hp % 2 == 0 and wp % 2 == 0
    x = x.reshape(n, hp // 2, 2, wp // 2, 2, c)
    x = jnp.transpose(x, (0, 2, 4, 1, 3, 5))
    return x.reshape(n, 4, hp // 2, wp // 2, c)


def _maxpool_3x3_s2_p1(x):
    n, h, w, cp = x.shape
    # Zero spatial padding is equivalent to -inf here: the pool input is post-ReLU (>=0).
    ph = _space_to_phases(x, pad=1, pad_value=0.0)
    ho, wo = h // 2, w // 2
    return _per_batch_call(functools.partial(_maxpool_kernel, Ho=ho, Wo=wo),
                           batched=[ph], shared=[],
                           out_tail=(ho, wo, cp), out_dtype=x.dtype)


def _bottleneck(x, layer):
    n, h, w, cp = x.shape
    m = n * h * w
    xf = x.reshape(m, cp)
    hid_p = layer['w1'].shape[1]
    # BN -> ReLU -> 1x1 conv -> BN -> ReLU, fused, row-tiled, lane-dense in/out.
    hid = _row_call(_bn_relu_mm_bn_relu_kernel, xf,
                    [layer['s1'], layer['b1'], layer['w1'], layer['s2'], layer['b2']],
                    hid_p)
    hid = hid.reshape(n, h, w, hid_p)
    # 3x3 conv (pad=1) + fused residual/concat, no im2col: spatially pad the hidden
    # activation once (width rounded up for aligned row strides) and flatten rows.
    wg = _round_up(w + 2, 8)
    hp = jnp.pad(hid, ((0, 0), (1, 2), (1, wg - 1 - w), (0, 0)))
    hflat = hp.reshape(n, (h + 3) * wg, hid_p)
    out = _per_batch_call(
        functools.partial(_conv3x3_res_kernel, H=h, W=w, Wg=wg),
        batched=[hflat, x.reshape(n, h * w, cp)],
        shared=[layer['w3']],
        out_tail=(h * w, cp), out_dtype=x.dtype)
    return out.reshape(n, h, w, cp)


def _transition(x, tp):
    n, h, w, cp = x.shape
    m2 = (h // 2) * (w // 2)
    ph = _space_to_phases(x, pad=0).reshape(n, 4, m2, cp)
    cout_p = tp['w'].shape[1]
    out = _per_batch_call(_transition_kernel,
                          batched=[ph], shared=[tp['s'], tp['b'], tp['w']],
                          out_tail=(m2, cout_p), out_dtype=x.dtype)
    return out.reshape(n, h // 2, w // 2, cout_p)


def _head(x, fb, fc_w, fc_b):
    n, h, w, cp = x.shape
    xr = x.reshape(n, h * w, cp)
    ncls = fc_w.shape[1]
    return pl.pallas_call(
        _head_kernel,
        out_shape=jax.ShapeDtypeStruct((n, ncls), jnp.float32),
        compiler_params=pltpu.CompilerParams(vmem_limit_bytes=VMEM_LIMIT),
    )(xr, fb['s'], fb['b'], fc_w, fc_b)


def densenet_forward(params, x_nchw):
    x = jnp.transpose(x_nchw, (0, 2, 3, 1)).astype(jnp.float32)   # NCHW -> NHWC
    n = x.shape[0]
    # Stem: Conv 7x7/s2/p3 -> BN -> ReLU (one-off; JAX-side im2col, 3-channel input).
    pt, ho, wo = _extract_patches(x, 7, 7, 2, 3)
    pf = pt.reshape(n * ho * wo, 7 * 7 * 3).astype(jnp.bfloat16)
    cp0 = params['stem_w'].shape[1]
    x = _row_call(_mm_bn_relu_kernel, pf,
                  [params['stem_w'], params['stem_s'], params['stem_b']], cp0)
    x = x.reshape(n, ho, wo, cp0)
    x = _maxpool_3x3_s2_p1(x)
    for stage in params['stages']:
        stage_pad = stage['stage_pad']
        if x.shape[-1] < stage_pad:   # reserve zeroed channel slots for this stage
            x = jnp.pad(x, ((0, 0), (0, 0), (0, 0), (0, stage_pad - x.shape[-1])))
        for layer in stage['layers']:
            x = _bottleneck(x, layer)
        if stage['trans'] is not None:
            x = _transition(x, stage['trans'])
    logits = _head(x, params['final_bn'], params['fc_w'], params['fc_b'])
    return logits


# ------------------------------ Parameter init ------------------------------

def init_params(key, block_list, k, n_classes):
    assert len(block_list) == 4
    keys = iter(jax.random.split(key, 512))

    def bn_folded(c, cp):
        k1, k2, k3, k4 = jax.random.split(next(keys), 4)
        gamma = jax.random.uniform(k1, (c,), minval=0.5, maxval=1.5)
        beta = 0.1 * jax.random.normal(k2, (c,))
        mean = 0.1 * jax.random.normal(k3, (c,))
        var = jax.random.uniform(k4, (c,), minval=0.5, maxval=1.5)
        scale = gamma * jax.lax.rsqrt(var + 1e-5)
        shift = beta - mean * scale
        scale = jnp.pad(scale, (0, cp - c)).astype(jnp.float32)
        shift = jnp.pad(shift, (0, cp - c)).astype(jnp.float32)
        return scale, shift

    def conv1x1(cin, cin_p, cout, cout_p, col_off=0):
        w = jax.random.normal(next(keys), (cin, cout)) / math.sqrt(cin)
        wp = jnp.zeros((cin_p, cout_p), jnp.float32)
        wp = wp.at[:cin, col_off:col_off + cout].set(w)
        return wp.astype(jnp.bfloat16)

    def conv3x3(cin, cin_p, cout, cout_p, col_off):
        w = jax.random.normal(next(keys), (9, cin, cout)) / math.sqrt(9 * cin)
        wp = jnp.zeros((9, cin_p, cout_p), jnp.float32)
        wp = wp.at[:, :cin, col_off:col_off + cout].set(w)
        return wp.astype(jnp.bfloat16)

    def conv_stem(cout, cout_p):
        w = jax.random.normal(next(keys), (7 * 7 * 3, cout)) / math.sqrt(7 * 7 * 3)
        wp = jnp.zeros((7 * 7 * 3, cout_p), jnp.float32).at[:, :cout].set(w)
        return wp.astype(jnp.bfloat16)

    params = {'k': k}
    cp0 = _cpad(2 * k)
    params['stem_w'] = conv_stem(2 * k, cp0)
    s, b = bn_folded(2 * k, cp0)
    params['stem_s'], params['stem_b'] = s.reshape(1, cp0), b.reshape(1, cp0)

    hid_p = _cpad(4 * k)
    dense_channels = 2 * k
    stages = []
    for stage_idx, nb in enumerate(block_list):
        stage_pad = _cpad(dense_channels + nb * k)
        layers = []
        c = dense_channels
        for _ in range(nb):
            s1, b1 = bn_folded(c, stage_pad)
            s2, b2 = bn_folded(4 * k, hid_p)
            layers.append({
                's1': s1.reshape(1, stage_pad), 'b1': b1.reshape(1, stage_pad),
                'w1': conv1x1(c, stage_pad, 4 * k, hid_p),
                's2': s2.reshape(1, hid_p), 'b2': b2.reshape(1, hid_p),
                # output columns placed at this layer's channel slot -> concat for free
                'w3': conv3x3(4 * k, hid_p, k, stage_pad, col_off=c),
            })
            c += k
        dense_channels = c
        if stage_idx < 3:
            s, b = bn_folded(dense_channels, stage_pad)
            assert dense_channels % 2 == 0
            out_pad = _cpad(dense_channels // 2)
            trans = {'s': s.reshape(1, 1, stage_pad), 'b': b.reshape(1, 1, stage_pad),
                     'w': conv1x1(dense_channels, stage_pad, dense_channels // 2, out_pad)}
            dense_channels //= 2
        else:
            s, b = bn_folded(dense_channels, stage_pad)
            params['final_bn'] = {'s': s.reshape(1, 1, stage_pad),
                                  'b': b.reshape(1, 1, stage_pad)}
            trans = None
        stages.append({'layers': layers, 'trans': trans, 'stage_pad': stage_pad})
    params['stages'] = stages

    fc_in = dense_channels
    fc_in_pad = _cpad(fc_in)
    w = jax.random.normal(next(keys), (fc_in, n_classes)) / math.sqrt(fc_in)
    params['fc_w'] = jnp.zeros((fc_in_pad, n_classes), jnp.float32).at[:fc_in, :].set(w)
    params['fc_b'] = (0.01 * jax.random.normal(next(keys), (n_classes,))
                      ).astype(jnp.float32).reshape(1, n_classes)
    return params


# ------------------------------ Main ------------------------------

if __name__ == "__main__":
    key = jax.random.PRNGKey(0)
    pkey, xkey = jax.random.split(key)

    block_list = [2, 2, 2, 2]   # small DenseNet (keeps transition channel parity)
    growth_rate = 4
    n_classes = 10

    params = init_params(pkey, block_list, growth_rate, n_classes)
    x = jax.random.normal(xkey, (2, 3, 32, 32), dtype=jnp.float32)   # NCHW like PyTorch

    fwd = jax.jit(functools.partial(densenet_forward, params))
    out = jax.block_until_ready(fwd(x))

    assert out.shape == (2, n_classes), out.shape
    assert bool(jnp.all(jnp.isfinite(out)))
    print("KERNEL_OK")
</pallas_src>

<mosaic_0001>
module attributes {stable_mosaic.version = 11 : i64} {
  func.func @_mm_bn_relu_kernel(%arg0: i32, %arg1: memref<256x147xbf16, #tpu.memory_space<vmem>>, %arg2: memref<147x128xbf16, #tpu.memory_space<vmem>>, %arg3: memref<1x128xf32, #tpu.memory_space<vmem>>, %arg4: memref<1x128xf32, #tpu.memory_space<vmem>>, %arg5: memref<256x128xbf16, #tpu.memory_space<vmem>>) attributes {dimension_semantics = [#tpu.dimension_semantics<parallel>], iteration_bounds = array<i64: 2>, scalar_prefetch = 0 : i64, scratch_operands = 0 : i64, tpu.core_type = #tpu.core_type<tc>, window_params = [{transform_indices = @transform_0, window_bounds = array<i64: 256, 147>}, {pipeline_mode = #tpu.pipeline_mode<synchronous>, transform_indices = @transform_1, window_bounds = array<i64: 147, 128>}, {pipeline_mode = #tpu.pipeline_mode<synchronous>, transform_indices = @transform_2, window_bounds = array<i64: 1, 128>}, {pipeline_mode = #tpu.pipeline_mode<synchronous>, transform_indices = @transform_3, window_bounds = array<i64: 1, 128>}, {transform_indices = @transform_4, window_bounds = array<i64: 256, 128>}]} {
    %c0 = arith.constant 0 : index
    %c0_0 = arith.constant 0 : index
    %0 = vector.load %arg1[%c0, %c0_0] : memref<256x147xbf16, #tpu.memory_space<vmem>>, vector<256x147xbf16>
    %c0_1 = arith.constant 0 : index
    %c0_2 = arith.constant 0 : index
    %1 = vector.load %arg2[%c0_1, %c0_2] : memref<147x128xbf16, #tpu.memory_space<vmem>>, vector<147x128xbf16>
    %cst = arith.constant dense<0.000000e+00> : vector<256x128xf32>
    %2 = tpu.matmul %0, %1, %cst {dimension_numbers = #tpu.dot_dimension_numbers<[1], [0], [0], [1], [0, 0, 1, 1], [], []>} : vector<256x147xbf16>, vector<147x128xbf16>, vector<256x128xf32> -> vector<256x128xf32>
    %c0_3 = arith.constant 0 : index
    %c0_4 = arith.constant 0 : index
    %3 = vector.load %arg3[%c0_3, %c0_4] : memref<1x128xf32, #tpu.memory_space<vmem>>, vector<1x128xf32>
    %4 = vector.broadcast %3 : vector<1x128xf32> to vector<256x128xf32>
    %5 = arith.mulf %2, %4 : vector<256x128xf32>
    %c0_5 = arith.constant 0 : index
    %c0_6 = arith.constant 0 : index
    %6 = vector.load %arg4[%c0_5, %c0_6] : memref<1x128xf32, #tpu.memory_space<vmem>>, vector<1x128xf32>
    %7 = vector.broadcast %6 : vector<1x128xf32> to vector<256x128xf32>
    %8 = arith.addf %5, %7 : vector<256x128xf32>
    %cst_7 = arith.constant 0.000000e+00 : f32
    %9 = vector.broadcast %cst_7 : f32 to vector<256x128xf32>
    %10 = arith.maximumf %8, %9 : vector<256x128xf32>
    %11 = arith.truncf %10 : vector<256x128xf32> to vector<256x128xbf16>
    %c0_8 = arith.constant 0 : index
    %c0_9 = arith.constant 0 : index
    %12 = vector.load %arg5[%c0_8, %c0_9] : memref<256x128xbf16, #tpu.memory_space<vmem>>, vector<256x128xbf16>
    tpu.vector_store %arg5[%c0_8, %c0_9], %11 {strides = array<i32>} : memref<256x128xbf16, #tpu.memory_space<vmem>>, vector<256x128xbf16>,
    return
  }
  func.func @transform_0(%arg0: i32) -> (i32, i32) {
    %c0_i32 = arith.constant 0 : i32
    %c0_i32_0 = arith.constant 0 : i32
    return %arg0, %c0_i32 : i32, i32
  }
  func.func @transform_1(%arg0: i32) -> (i32, i32) {
    %c0_i32 = arith.constant 0 : i32
    %c0_i32_0 = arith.constant 0 : i32
    %c0_i32_1 = arith.constant 0 : i32
    return %c0_i32, %c0_i32_0 : i32, i32
  }
  func.func @transform_2(%arg0: i32) -> (i32, i32) {
    %c0_i32 = arith.constant 0 : i32
    %c0_i32_0 = arith.constant 0 : i32
    %c0_i32_1 = arith.constant 0 : i32
    return %c0_i32, %c0_i32_0 : i32, i32
  }
  func.func @transform_3(%arg0: i32) -> (i32, i32) {
    %c0_i32 = arith.constant 0 : i32
    %c0_i32_0 = arith.constant 0 : i32
    %c0_i32_1 = arith.constant 0 : i32
    return %c0_i32, %c0_i32_0 : i32, i32
  }
  func.func @transform_4(%arg0: i32) -> (i32, i32) {
    %c0_i32 = arith.constant 0 : i32
    %c0_i32_0 = arith.constant 0 : i32
    return %arg0, %c0_i32 : i32, i32
  }
}

module attributes {stable_mosaic.version = 11 : i64} {
  func.func @_maxpool_kernel(%arg0: i32, %arg1: memref<1x4x9x9x128xbf16, #tpu.memory_space<vmem>>, %arg2: memref<1x8x8x128xbf16, #tpu.memory_space<vmem>>) attributes {dimension_semantics = [#tpu.dimension_semantics<parallel>], iteration_bounds = array<i64: 2>, scalar_prefetch = 0 : i64, scratch_operands = 0 : i64, tpu.core_type = #tpu.core_type<tc>, window_params = [{transform_indices = @transform_0, window_bounds = array<i64: 1, 4, 9, 9, 128>}, {transform_indices = @transform_1, window_bounds = array<i64: 1, 8, 8, 128>}]} {
    %c0 = arith.constant 0 : index
    %c0_0 = arith.constant 0 : index
    %c0_1 = arith.constant 0 : index
    %c0_2 = arith.constant 0 : index
    %c0_3 = arith.constant 0 : index
    %0 = vector.load %arg1[%c0, %c0_0, %c0_1, %c0_2, %c0_3] : memref<1x4x9x9x128xbf16, #tpu.memory_space<vmem>>, vector<1x1x8x8x128xbf16>
    %1 = vector.shape_cast %0 : vector<1x1x8x8x128xbf16> to vector<8x8x128xbf16>
    %c0_4 = arith.constant 0 : index
    %c1 = arith.constant 1 : index
    %c0_5 = arith.constant 0 : index
    %c0_6 = arith.constant 0 : index
    %c0_7 = arith.constant 0 : index
    %2 = vector.load %arg1[%c0_4, %c1, %c0_5, %c0_6, %c0_7] : memref<1x4x9x9x128xbf16, #tpu.memory_space<vmem>>, vector<1x1x8x8x128xbf16>
    %3 = vector.shape_cast %2 : vector<1x1x8x8x128xbf16> to vector<8x8x128xbf16>
    %4 = arith.maximumf %1, %3 : vector<8x8x128xbf16>
    %c0_8 = arith.constant 0 : index
    %c0_9 = arith.constant 0 : index
    %c0_10 = arith.constant 0 : index
    %c1_11 = arith.constant 1 : index
    %c0_12 = arith.constant 0 : index
    %5 = vector.load %arg1[%c0_8, %c0_9, %c0_10, %c1_11, %c0_12] : memref<1x4x9x9x128xbf16, #tpu.memory_space<vmem>>, vector<1x1x8x8x128xbf16>
    %6 = vector.shape_cast %5 : vector<1x1x8x8x128xbf16> to vector<8x8x128xbf16>
    %7 = arith.maximumf %4, %6 : vector<8x8x128xbf16>
    %c0_13 = arith.constant 0 : index
    %c2 = arith.constant 2 : index
    %c0_14 = arith.constant 0 : index
    %c0_15 = arith.constant 0 : index
    %c0_16 = arith.constant 0 : index
    %8 = vector.load %arg1[%c0_13, %c2, %c0_14, %c0_15, %c0_16] : memref<1x4x9x9x128xbf16, #tpu.memory_space<vmem>>, vector<1x1x8x8x128xbf16>
    %9 = vector.shape_cast %8 : vector<1x1x8x8x128xbf16> to vector<8x8x128xbf16>
    %10 = arith.maximumf %7, %9 : vector<8x8x128xbf16>
    %c0_17 = arith.constant 0 : index
    %c3 = arith.constant 3 : index
    %c0_18 = arith.constant 0 : index
    %c0_19 = arith.constant 0 : index
    %c0_20 = arith.constant 0 : index
    %11 = vector.load %arg1[%c0_17, %c3, %c0_18, %c0_19, %c0_20] : memref<1x4x9x9x128xbf16, #tpu.memory_space<vmem>>, vector<1x1x8x8x128xbf16>
    %12 = vector.shape_cast %11 : vector<1x1x8x8x128xbf16> to vector<8x8x128xbf16>
    %13 = arith.maximumf %10, %12 : vector<8x8x128xbf16>
    %c0_21 = arith.constant 0 : index
    %c2_22 = arith.constant 2 : index
    %c0_23 = arith.constant 0 : index
    %c1_24 = arith.constant 1 : index
    %c0_25 = arith.constant 0 : index
    %14 = vector.load %arg1[%c0_21, %c2_22, %c0_23, %c1_24, %c0_25] : memref<1x4x9x9x128xbf16, #tpu.memory_space<vmem>>, vector<1x1x8x8x128xbf16>
    %15 = vector.shape_cast %14 : vector<1x1x8x8x128xbf16> to vector<8x8x128xbf16>
    %16 = arith.maximumf %13, %15 : vector<8x8x128xbf16>
    %c0_26 = arith.constant 0 : index
    %c0_27 = arith.constant 0 : index
    %c1_28 = arith.constant 1 : index
    %c0_29 = arith.constant 0 : index
    %c0_30 = arith.constant 0 : index
    %17 = vector.load %arg1[%c0_26, %c0_27, %c1_28, %c0_29, %c0_30] : memref<1x4x9x9x128xbf16, #tpu.memory_space<vmem>>, vector<1x1x8x8x128xbf16>
    %18 = vector.shape_cast %17 : vector<1x1x8x8x128xbf16> to vector<8x8x128xbf16>
    %19 = arith.maximumf %16, %18 : vector<8x8x128xbf16>
    %c0_31 = arith.constant 0 : index
    %c1_32 = arith.constant 1 : index
    %c1_33 = arith.constant 1 : index
    %c0_34 = arith.constant 0 : index
    %c0_35 = arith.constant 0 : index
    %20 = vector.load %arg1[%c0_31, %c1_32, %c1_33, %c0_34, %c0_35] : memref<1x4x9x9x128xbf16, #tpu.memory_space<vmem>>, vector<1x1x8x8x128xbf16>
    %21 = vector.shape_cast %20 : vector<1x1x8x8x128xbf16> to vector<8x8x128xbf16>
    %22 = arith.maximumf %19, %21 : vector<8x8x128xbf16>
    %c0_36 = arith.constant 0 : index
    %c0_37 = arith.constant 0 : index
    %c1_38 = arith.constant 1 : index
    %c1_39 = arith.constant 1 : index
    %c0_40 = arith.constant 0 : index
    %23 = vector.load %arg1[%c0_36, %c0_37, %c1_38, %c1_39, %c0_40] : memref<1x4x9x9x128xbf16, #tpu.memory_space<vmem>>, vector<1x1x8x8x128xbf16>
    %24 = vector.shape_cast %23 : vector<1x1x8x8x128xbf16> to vector<8x8x128xbf16>
    %25 = arith.maximumf %22, %24 : vector<8x8x128xbf16>
    %c0_41 = arith.constant 0 : index
    %c0_42 = arith.constant 0 : index
    %c0_43 = arith.constant 0 : index
    %c0_44 = arith.constant 0 : index
    %26 = vector.load %arg2[%c0_41, %c0_42, %c0_43, %c0_44] : memref<1x8x8x128xbf16, #tpu.memory_space<vmem>>, vector<1x8x8x128xbf16>
    %27 = vector.shape_cast %26 : vector<1x8x8x128xbf16> to vector<8x8x128xbf16>
    %28 = vector.shape_cast %25 : vector<8x8x128xbf16> to vector<1x8x8x128xbf16>
    tpu.vector_store %arg2[%c0_41, %c0_42, %c0_43, %c0_44], %28 {strides = array<i32>} : memref<1x8x8x128xbf16, #tpu.memory_space<vmem>>, vector<1x8x8x128xbf16>,
    return
  }
  func.func @transform_0(%arg0: i32) -> (i32, i32, i32, i32, i32) {
    %c0_i32 = arith.constant 0 : i32
    %c0_i32_0 = arith.constant 0 : i32
    %c0_i32_1 = arith.constant 0 : i32
    %c0_i32_2 = arith.constant 0 : i32
    %c0_i32_3 = arith.constant 0 : i32
    return %arg0, %c0_i32, %c0_i32_0, %c0_i32_1, %c0_i32_2 : i32, i32, i32, i32, i32
  }
  func.func @transform_1(%arg0: i32) -> (i32, i32, i32, i32) {
    %c0_i32 = arith.constant 0 : i32
    %c0_i32_0 = arith.constant 0 : i32
    %c0_i32_1 = arith.constant 0 : i32
    %c0_i32_2 = arith.constant 0 : i32
    return %arg0, %c0_i32, %c0_i32_0, %c0_i32_1 : i32, i32, i32, i32
  }
}

module attributes {stable_mosaic.version = 11 : i64} {
  func.func @_bn_relu_mm_bn_relu_kernel(%arg0: i32, %arg1: memref<128x128xbf16, #tpu.memory_space<vmem>>, %arg2: memref<1x128xf32, #tpu.memory_space<vmem>>, %arg3: memref<1x128xf32, #tpu.memory_space<vmem>>, %arg4: memref<128x128xbf16, #tpu.memory_space<vmem>>, %arg5: memref<1x128xf32, #tpu.memory_space<vmem>>, %arg6: memref<1x128xf32, #tpu.memory_space<vmem>>, %arg7: memref<128x128xbf16, #tpu.memory_space<vmem>>) attributes {dimension_semantics = [#tpu.dimension_semantics<parallel>], iteration_bounds = array<i64: 1>, scalar_prefetch = 0 : i64, scratch_operands = 0 : i64, tpu.core_type = #tpu.core_type<tc>, window_params = [{transform_indices = @transform_0, window_bounds = array<i64: 128, 128>}, {pipeline_mode = #tpu.pipeline_mode<synchronous>, transform_indices = @transform_1, window_bounds = array<i64: 1, 128>}, {pipeline_mode = #tpu.pipeline_mode<synchronous>, transform_indices = @transform_2, window_bounds = array<i64: 1, 128>}, {pipeline_mode = #tpu.pipeline_mode<synchronous>, transform_indices = @transform_3, window_bounds = array<i64: 128, 128>}, {pipeline_mode = #tpu.pipeline_mode<synchronous>, transform_indices = @transform_4, window_bounds = array<i64: 1, 128>}, {pipeline_mode = #tpu.pipeline_mode<synchronous>, transform_indices = @transform_5, window_bounds = array<i64: 1, 128>}, {transform_indices = @transform_6, window_bounds = array<i64: 128, 128>}]} {
    %c0 = arith.constant 0 : index
    %c0_0 = arith.constant 0 : index
    %0 = vector.load %arg1[%c0, %c0_0] : memref<128x128xbf16, #tpu.memory_space<vmem>>, vector<128x128xbf16>
    %1 = arith.extf %0 : vector<128x128xbf16> to vector<128x128xf32>
    %c0_1 = arith.constant 0 : index
    %c0_2 = arith.constant 0 : index
    %2 = vector.load %arg2[%c0_1, %c0_2] : memref<1x128xf32, #tpu.memory_space<vmem>>, vector<1x128xf32>
    %3 = vector.broadcast %2 : vector<1x128xf32> to vector<128x128xf32>
    %4 = arith.mulf %1, %3 : vector<128x128xf32>
    %c0_3 = arith.constant 0 : index
    %c0_4 = arith.constant 0 : index
    %5 = vector.load %arg3[%c0_3, %c0_4] : memref<1x128xf32, #tpu.memory_space<vmem>>, vector<1x128xf32>
    %6 = vector.broadcast %5 : vector<1x128xf32> to vector<128x128xf32>
    %7 = arith.addf %4, %6 : vector<128x128xf32>
    %cst = arith.constant 0.000000e+00 : f32
    %8 = vector.broadcast %cst : f32 to vector<128x128xf32>
    %9 = arith.maximumf %7, %8 : vector<128x128xf32>
    %10 = arith.truncf %9 : vector<128x128xf32> to vector<128x128xbf16>
    %c0_5 = arith.constant 0 : index
    %c0_6 = arith.constant 0 : index
    %11 = vector.load %arg4[%c0_5, %c0_6] : memref<128x128xbf16, #tpu.memory_space<vmem>>, vector<128x128xbf16>
    %cst_7 = arith.constant dense<0.000000e+00> : vector<128x128xf32>
    %12 = tpu.matmul %10, %11, %cst_7 {dimension_numbers = #tpu.dot_dimension_numbers<[1], [0], [0], [1], [0, 0, 1, 1], [], []>} : vector<128x128xbf16>, vector<128x128xbf16>, vector<128x128xf32> -> vector<128x128xf32>
    %c0_8 = arith.constant 0 : index
    %c0_9 = arith.constant 0 : index
    %13 = vector.load %arg5[%c0_8, %c0_9] : memref<1x128xf32, #tpu.memory_space<vmem>>, vector<1x128xf32>
    %14 = vector.broadcast %13 : vector<1x128xf32> to vector<128x128xf32>
    %15 = arith.mulf %12, %14 : vector<128x128xf32>
    %c0_10 = arith.constant 0 : index
    %c0_11 = arith.constant 0 : index
    %16 = vector.load %arg6[%c0_10, %c0_11] : memref<1x128xf32, #tpu.memory_space<vmem>>, vector<1x128xf32>
    %17 = vector.broadcast %16 : vector<1x128xf32> to vector<128x128xf32>
    %18 = arith.addf %15, %17 : vector<128x128xf32>
    %cst_12 = arith.constant 0.000000e+00 : f32
    %19 = vector.broadcast %cst_12 : f32 to vector<128x128xf32>
    %20 = arith.maximumf %18, %19 : vector<128x128xf32>
    %21 = arith.truncf %20 : vector<128x128xf32> to vector<128x128xbf16>
    %c0_13 = arith.constant 0 : index
    %c0_14 = arith.constant 0 : index
    %22 = vector.load %arg7[%c0_13, %c0_14] : memref<128x128xbf16, #tpu.memory_space<vmem>>, vector<128x128xbf16>
    tpu.vector_store %arg7[%c0_13, %c0_14], %21 {strides = array<i32>} : memref<128x128xbf16, #tpu.memory_space<vmem>>, vector<128x128xbf16>,
    return
  }
  func.func @transform_0(%arg0: i32) -> (i32, i32) {
    %c0_i32 = arith.constant 0 : i32
    %c0_i32_0 = arith.constant 0 : i32
    return %arg0, %c0_i32 : i32, i32
  }
  func.func @transform_1(%arg0: i32) -> (i32, i32) {
    %c0_i32 = arith.constant 0 : i32
    %c0_i32_0 = arith.constant 0 : i32
    %c0_i32_1 = arith.constant 0 : i32
    return %c0_i32, %c0_i32_0 : i32, i32
  }
  func.func @transform_2(%arg0: i32) -> (i32, i32) {
    %c0_i32 = arith.constant 0 : i32
    %c0_i32_0 = arith.constant 0 : i32
    %c0_i32_1 = arith.constant 0 : i32
    return %c0_i32, %c0_i32_0 : i32, i32
  }
  func.func @transform_3(%arg0: i32) -> (i32, i32) {
    %c0_i32 = arith.constant 0 : i32
    %c0_i32_0 = arith.constant 0 : i32
    %c0_i32_1 = arith.constant 0 : i32
    return %c0_i32, %c0_i32_0 : i32, i32
  }
  func.func @transform_4(%arg0: i32) -> (i32, i32) {
    %c0_i32 = arith.constant 0 : i32
    %c0_i32_0 = arith.constant 0 : i32
    %c0_i32_1 = arith.constant 0 : i32
    return %c0_i32, %c0_i32_0 : i32, i32
  }
  func.func @transform_5(%arg0: i32) -> (i32, i32) {
    %c0_i32 = arith.constant 0 : i32
    %c0_i32_0 = arith.constant 0 : i32
    %c0_i32_1 = arith.constant 0 : i32
    return %c0_i32, %c0_i32_0 : i32, i32
  }
  func.func @transform_6(%arg0: i32) -> (i32, i32) {
    %c0_i32 = arith.constant 0 : i32
    %c0_i32_0 = arith.constant 0 : i32
    return %arg0, %c0_i32 : i32, i32
  }
}

module attributes {stable_mosaic.version = 11 : i64} {
  func.func @_conv3x3_res_kernel(%arg0: i32, %arg1: memref<1x176x128xbf16, #tpu.memory_space<vmem>>, %arg2: memref<1x64x128xbf16, #tpu.memory_space<vmem>>, %arg3: memref<9x128x128xbf16, #tpu.memory_space<vmem>>, %arg4: memref<1x64x128xbf16, #tpu.memory_space<vmem>>) attributes {dimension_semantics = [#tpu.dimension_semantics<parallel>], iteration_bounds = array<i64: 2>, scalar_prefetch = 0 : i64, scratch_operands = 0 : i64, tpu.core_type = #tpu.core_type<tc>, window_params = [{transform_indices = @transform_0, window_bounds = array<i64: 1, 176, 128>}, {transform_indices = @transform_1, window_bounds = array<i64: 1, 64, 128>}, {pipeline_mode = #tpu.pipeline_mode<synchronous>, transform_indices = @transform_2, window_bounds = array<i64: 9, 128, 128>}, {transform_indices = @transform_3, window_bounds = array<i64: 1, 64, 128>}]} {
    %cst = arith.constant 0.000000e+00 : f32
    %0 = vector.broadcast %cst : f32 to vector<128x128xf32>
    %c0 = arith.constant 0 : index
    %c0_0 = arith.constant 0 : index
    %c0_1 = arith.constant 0 : index
    %1 = vector.load %arg1[%c0, %c0_0, %c0_1] : memref<1x176x128xbf16, #tpu.memory_space<vmem>>, vector<1x128x128xbf16>
    %2 = vector.shape_cast %1 : vector<1x128x128xbf16> to vector<128x128xbf16>
    %c0_2 = arith.constant 0 : index
    %c0_3 = arith.constant 0 : index
    %c0_4 = arith.constant 0 : index
    %3 = vector.load %arg3[%c0_2, %c0_3, %c0_4] : memref<9x128x128xbf16, #tpu.memory_space<vmem>>, vector<1x128x128xbf16>
    %4 = vector.shape_cast %3 : vector<1x128x128xbf16> to vector<128x128xbf16>
    %cst_5 = arith.constant dense<0.000000e+00> : vector<128x128xf32>
    %5 = tpu.matmul %2, %4, %cst_5 {dimension_numbers = #tpu.dot_dimension_numbers<[1], [0], [0], [1], [0, 0, 1, 1], [], []>} : vector<128x128xbf16>, vector<128x128xbf16>, vector<128x128xf32> -> vector<128x128xf32>
    %6 = arith.addf %0, %5 : vector<128x128xf32>
    %c0_6 = arith.constant 0 : index
    %c1 = arith.constant 1 : index
    %c0_7 = arith.constant 0 : index
    %7 = vector.load %arg1[%c0_6, %c1, %c0_7] : memref<1x176x128xbf16, #tpu.memory_space<vmem>>, vector<1x128x128xbf16>
    %8 = vector.shape_cast %7 : vector<1x128x128xbf16> to vector<128x128xbf16>
    %c1_8 = arith.constant 1 : index
    %c0_9 = arith.constant 0 : index
    %c0_10 = arith.constant 0 : index
    %9 = vector.load %arg3[%c1_8, %c0_9, %c0_10] : memref<9x128x128xbf16, #tpu.memory_space<vmem>>, vector<1x128x128xbf16>
    %10 = vector.shape_cast %9 : vector<1x128x128xbf16> to vector<128x128xbf16>
    %cst_11 = arith.constant dense<0.000000e+00> : vector<128x128xf32>
    %11 = tpu.matmul %8, %10, %cst_11 {dimension_numbers = #tpu.dot_dimension_numbers<[1], [0], [0], [1], [0, 0, 1, 1], [], []>} : vector<128x128xbf16>, vector<128x128xbf16>, vector<128x128xf32> -> vector<128x128xf32>
    %12 = arith.addf %6, %11 : vector<128x128xf32>
    %c0_12 = arith.constant 0 : index
    %c2 = arith.constant 2 : index
    %c0_13 = arith.constant 0 : index
    %13 = vector.load %arg1[%c0_12, %c2, %c0_13] : memref<1x176x128xbf16, #tpu.memory_space<vmem>>, vector<1x128x128xbf16>
    %14 = vector.shape_cast %13 : vector<1x128x128xbf16> to vector<128x128xbf16>
    %c2_14 = arith.constant 2 : index
    %c0_15 = arith.constant 0 : index
    %c0_16 = arith.constant 0 : index
    %15 = vector.load %arg3[%c2_14, %c0_15, %c0_16] : memref<9x128x128xbf16, #tpu.memory_space<vmem>>, vector<1x128x128xbf16>
    %16 = vector.shape_cast %15 : vector<1x128x128xbf16> to vector<128x128xbf16>
    %cst_17 = arith.constant dense<0.000000e+00> : vector<128x128xf32>
    %17 = tpu.matmul %14, %16, %cst_17 {dimension_numbers = #tpu.dot_dimension_numbers<[1], [0], [0], [1], [0, 0, 1, 1], [], []>} : vector<128x128xbf16>, vector<128x128xbf16>, vector<128x128xf32> -> vector<128x128xf32>
    %18 = arith.addf %12, %17 : vector<128x128xf32>
    %c0_18 = arith.constant 0 : index
    %c16 = arith.constant 16 : index
    %c0_19 = arith.constant 0 : index
    %19 = vector.load %arg1[%c0_18, %c16, %c0_19] : memref<1x176x128xbf16, #tpu.memory_space<vmem>>, vector<1x128x128xbf16>
    %20 = vector.shape_cast %19 : vector<1x128x128xbf16> to vector<128x128xbf16>
    %c3 = arith.constant 3 : index
    %c0_20 = arith.constant 0 : index
    %c0_21 = arith.constant 0 : index
    %21 = vector.load %arg3[%c3, %c0_20, %c0_21] : memref<9x128x128xbf16, #tpu.memory_space<vmem>>, vector<1x128x128xbf16>
    %22 = vector.shape_cast %21 : vector<1x128x128xbf16> to vector<128x128xbf16>
    %cst_22 = arith.constant dense<0.000000e+00> : vector<128x128xf32>
    %23 = tpu.matmul %20, %22, %cst_22 {dimension_numbers = #tpu.dot_dimension_numbers<[1], [0], [0], [1], [0, 0, 1, 1], [], []>} : vector<128x128xbf16>, vector<128x128xbf16>, vector<128x128xf32> -> vector<128x128xf32>
    %24 = arith.addf %18, %23 : vector<128x128xf32>
    %c0_23 = arith.constant 0 : index
    %c17 = arith.constant 17 : index
    %c0_24 = arith.constant 0 : index
    %25 = vector.load %arg1[%c0_23, %c17, %c0_24] : memref<1x176x128xbf16, #tpu.memory_space<vmem>>, vector<1x128x128xbf16>
    %26 = vector.shape_cast %25 : vector<1x128x128xbf16> to vector<128x128xbf16>
    %c4 = arith.constant 4 : index
    %c0_25 = arith.constant 0 : index
    %c0_26 = arith.constant 0 : index
    %27 = vector.load %arg3[%c4, %c0_25, %c0_26] : memref<9x128x128xbf16, #tpu.memory_space<vmem>>, vector<1x128x128xbf16>
    %28 = vector.shape_cast %27 : vector<1x128x128xbf16> to vector<128x128xbf16>
    %cst_27 = arith.constant dense<0.000000e+00> : vector<128x128xf32>
    %29 = tpu.matmul %26, %28, %cst_27 {dimension_numbers = #tpu.dot_dimension_numbers<[1], [0], [0], [1], [0, 0, 1, 1], [], []>} : vector<128x128xbf16>, vector<128x128xbf16>, vector<128x128xf32> -> vector<128x128xf32>
    %30 = arith.addf %24, %29 : vector<128x128xf32>
    %c0_28 = arith.constant 0 : index
    %c18 = arith.constant 18 : index
    %c0_29 = arith.constant 0 : index
    %31 = vector.load %arg1[%c0_28, %c18, %c0_29] : memref<1x176x128xbf16, #tpu.memory_space<vmem>>, vector<1x128x128xbf16>
    %32 = vector.shape_cast %31 : vector<1x128x128xbf16> to vector<128x128xbf16>
    %c5 = arith.constant 5 : index
    %c0_30 = arith.constant 0 : index
    %c0_31 = arith.constant 0 : index
    %33 = vector.load %arg3[%c5, %c0_30, %c0_31] : memref<9x128x128xbf16, #tpu.memory_space<vmem>>, vector<1x128x128xbf16>
    %34 = vector.shape_cast %33 : vector<1x128x128xbf16> to vector<128x128xbf16>
    %cst_32 = arith.constant dense<0.000000e+00> : vector<128x128xf32>
    %35 = tpu.matmul %32, %34, %cst_32 {dimension_numbers = #tpu.dot_dimension_numbers<[1], [0], [0], [1], [0, 0, 1, 1], [], []>} : vector<128x128xbf16>, vector<128x128xbf16>, vector<128x128xf32> -> vector<128x128xf32>
    %36 = arith.addf %30, %35 : vector<128x128xf32>
    %c0_33 = arith.constant 0 : index
    %c32 = arith.constant 32 : index
    %c0_34 = arith.constant 0 : index
    %37 = vector.load %arg1[%c0_33, %c32, %c0_34] : memref<1x176x128xbf16, #tpu.memory_space<vmem>>, vector<1x128x128xbf16>
    %38 = vector.shape_cast %37 : vector<1x128x128xbf16> to vector<128x128xbf16>
    %c6 = arith.constant 6 : index
    %c0_35 = arith.constant 0 : index
    %c0_36 = arith.constant 0 : index
    %39 = vector.load %arg3[%c6, %c0_35, %c0_36] : memref<9x128x128xbf16, #tpu.memory_space<vmem>>, vector<1x128x128xbf16>
    %40 = vector.shape_cast %39 : vector<1x128x128xbf16> to vector<128x128xbf16>
    %cst_37 = arith.constant dense<0.000000e+00> : vector<128x128xf32>
    %41 = tpu.matmul %38, %40, %cst_37 {dimension_numbers = #tpu.dot_dimension_numbers<[1], [0], [0], [1], [0, 0, 1, 1], [], []>} : vector<128x128xbf16>, vector<128x128xbf16>, vector<128x128xf32> -> vector<128x128xf32>
    %42 = arith.addf %36, %41 : vector<128x128xf32>
    %c0_38 = arith.constant 0 : index
    %c33 = arith.constant 33 : index
    %c0_39 = arith.constant 0 : index
    %43 = vector.load %arg1[%c0_38, %c33, %c0_39] : memref<1x176x128xbf16, #tpu.memory_space<vmem>>, vector<1x128x128xbf16>
    %44 = vector.shape_cast %43 : vector<1x128x128xbf16> to vector<128x128xbf16>
    %c7 = arith.constant 7 : index
    %c0_40 = arith.constant 0 : index
    %c0_41 = arith.constant 0 : index
    %45 = vector.load %arg3[%c7, %c0_40, %c0_41] : memref<9x128x128xbf16, #tpu.memory_space<vmem>>, vector<1x128x128xbf16>
    %46 = vector.shape_cast %45 : vector<1x128x128xbf16> to vector<128x128xbf16>
    %cst_42 = arith.constant dense<0.000000e+00> : vector<128x128xf32>
    %47 = tpu.matmul %44, %46, %cst_42 {dimension_numbers = #tpu.dot_dimension_numbers<[1], [0], [0], [1], [0, 0, 1, 1], [], []>} : vector<128x128xbf16>, vector<128x128xbf16>, vector<128x128xf32> -> vector<128x128xf32>
    %48 = arith.addf %42, %47 : vector<128x128xf32>
    %c0_43 = arith.constant 0 : index
    %c34 = arith.constant 34 : index
    %c0_44 = arith.constant 0 : index
    %49 = vector.load %arg1[%c0_43, %c34, %c0_44] : memref<1x176x128xbf16, #tpu.memory_space<vmem>>, vector<1x128x128xbf16>
    %50 = vector.shape_cast %49 : vector<1x128x128xbf16> to vector<128x128xbf16>
    %c8 = arith.constant 8 : index
    %c0_45 = arith.constant 0 : index
    %c0_46 = arith.constant 0 : index
    %51 = vector.load %arg3[%c8, %c0_45, %c0_46] : memref<9x128x128xbf16, #tpu.memory_space<vmem>>, vector<1x128x128xbf16>
    %52 = vector.shape_cast %51 : vector<1x128x128xbf16> to vector<128x128xbf16>
    %cst_47 = arith.constant dense<0.000000e+00> : vector<128x128xf32>
    %53 = tpu.matmul %50, %52, %cst_47 {dimension_numbers = #tpu.dot_dimension_numbers<[1], [0], [0], [1], [0, 0, 1, 1], [], []>} : vector<128x128xbf16>, vector<128x128xbf16>, vector<128x128xf32> -> vector<128x128xf32>
    %54 = arith.addf %48, %53 : vector<128x128xf32>
    %c0_48 = arith.constant 0 : index
    %c0_49 = arith.constant 0 : index
    %c0_50 = arith.constant 0 : index
    %55 = vector.load %arg2[%c0_48, %c0_49, %c0_50] : memref<1x64x128xbf16, #tpu.memory_space<vmem>>, vector<1x8x128xbf16>
    %56 = vector.shape_cast %55 : vector<1x8x128xbf16> to vector<8x128xbf16>
    %57 = arith.extf %56 : vector<8x128xbf16> to vector<8x128xf32>
    %58 = vector.extract_strided_slice %54 {offsets = [0, 0], sizes = [8, 128], strides = [1, 1]} : vector<128x128xf32> to vector<8x128xf32>
    %59 = arith.addf %58, %57 : vector<8x128xf32>
    %60 = arith.truncf %59 : vector<8x128xf32> to vector<8x128xbf16>
    %c0_51 = arith.constant 0 : index
    %c0_52 = arith.constant 0 : index
    %c0_53 = arith.constant 0 : index
    %61 = vector.load %arg4[%c0_51, %c0_52, %c0_53] : memref<1x64x128xbf16, #tpu.memory_space<vmem>>, vector<1x8x128xbf16>
    %62 = vector.shape_cast %61 : vector<1x8x128xbf16> to vector<8x128xbf16>
    %63 = vector.shape_cast %60 : vector<8x128xbf16> to vector<1x8x128xbf16>
    tpu.vector_store %arg4[%c0_51, %c0_52, %c0_53], %63 {strides = array<i32>} : memref<1x64x128xbf16, #tpu.memory_space<vmem>>, vector<1x8x128xbf16>,
    %c0_54 = arith.constant 0 : index
    %c8_55 = arith.constant 8 : index
    %c0_56 = arith.constant 0 : index
    %64 = vector.load %arg2[%c0_54, %c8_55, %c0_56] : memref<1x64x128xbf16, #tpu.memory_space<vmem>>, vector<1x8x128xbf16>
    %65 = vector.shape_cast %64 : vector<1x8x128xbf16> to vector<8x128xbf16>
    %66 = arith.extf %65 : vector<8x128xbf16> to vector<8x128xf32>
    %67 = vector.extract_strided_slice %54 {offsets = [16, 0], sizes = [8, 128], strides = [1, 1]} : vector<128x128xf32> to vector<8x128xf32>
    %68 = arith.addf %67, %66 : vector<8x128xf32>
    %69 = arith.truncf %68 : vector<8x128xf32> to vector<8x128xbf16>
    %c0_57 = arith.constant 0 : index
    %c8_58 = arith.constant 8 : index
    %c0_59 = arith.constant 0 : index
    %70 = vector.load %arg4[%c0_57, %c8_58, %c0_59] : memref<1x64x128xbf16, #tpu.memory_space<vmem>>, vector<1x8x128xbf16>
    %71 = vector.shape_cast %70 : vector<1x8x128xbf16> to vector<8x128xbf16>
    %72 = vector.shape_cast %69 : vector<8x128xbf16> to vector<1x8x128xbf16>
    tpu.vector_store %arg4[%c0_57, %c8_58, %c0_59], %72 {strides = array<i32>} : memref<1x64x128xbf16, #tpu.memory_space<vmem>>, vector<1x8x128xbf16>,
    %c0_60 = arith.constant 0 : index
    %c16_61 = arith.constant 16 : index
    %c0_62 = arith.constant 0 : index
    %73 = vector.load %arg2[%c0_60, %c16_61, %c0_62] : memref<1x64x128xbf16, #tpu.memory_space<vmem>>, vector<1x8x128xbf16>
    %74 = vector.shape_cast %73 : vector<1x8x128xbf16> to vector<8x128xbf16>
    %75 = arith.extf %74 : vector<8x128xbf16> to vector<8x128xf32>
    %76 = vector.extract_strided_slice %54 {offsets = [32, 0], sizes = [8, 128], strides = [1, 1]} : vector<128x128xf32> to vector<8x128xf32>
    %77 = arith.addf %76, %75 : vector<8x128xf32>
    %78 = arith.truncf %77 : vector<8x128xf32> to vector<8x128xbf16>
    %c0_63 = arith.constant 0 : index
    %c16_64 = arith.constant 16 : index
    %c0_65 = arith.constant 0 : index
    %79 = vector.load %arg4[%c0_63, %c16_64, %c0_65] : memref<1x64x128xbf16, #tpu.memory_space<vmem>>, vector<1x8x128xbf16>
    %80 = vector.shape_cast %79 : vector<1x8x128xbf16> to vector<8x128xbf16>
    %81 = vector.shape_cast %78 : vector<8x128xbf16> to vector<1x8x128xbf16>
    tpu.vector_store %arg4[%c0_63, %c16_64, %c0_65], %81 {strides = array<i32>} : memref<1x64x128xbf16, #tpu.memory_space<vmem>>, vector<1x8x128xbf16>,
    %c0_66 = arith.constant 0 : index
    %c24 = arith.constant 24 : index
    %c0_67 = arith.constant 0 : index
    %82 = vector.load %arg2[%c0_66, %c24, %c0_67] : memref<1x64x128xbf16, #tpu.memory_space<vmem>>, vector<1x8x128xbf16>
    %83 = vector.shape_cast %82 : vector<1x8x128xbf16> to vector<8x128xbf16>
    %84 = arith.extf %83 : vector<8x128xbf16> to vector<8x128xf32>
    %85 = vector.extract_strided_slice %54 {offsets = [48, 0], sizes = [8, 128], strides = [1, 1]} : vector<128x128xf32> to vector<8x128xf32>
    %86 = arith.addf %85, %84 : vector<8x128xf32>
    %87 = arith.truncf %86 : vector<8x128xf32> to vector<8x128xbf16>
    %c0_68 = arith.constant 0 : index
    %c24_69 = arith.constant 24 : index
    %c0_70 = arith.constant 0 : index
    %88 = vector.load %arg4[%c0_68, %c24_69, %c0_70] : memref<1x64x128xbf16, #tpu.memory_space<vmem>>, vector<1x8x128xbf16>
    %89 = vector.shape_cast %88 : vector<1x8x128xbf16> to vector<8x128xbf16>
    %90 = vector.shape_cast %87 : vector<8x128xbf16> to vector<1x8x128xbf16>
    tpu.vector_store %arg4[%c0_68, %c24_69, %c0_70], %90 {strides = array<i32>} : memref<1x64x128xbf16, #tpu.memory_space<vmem>>, vector<1x8x128xbf16>,
    %c0_71 = arith.constant 0 : index
    %c32_72 = arith.constant 32 : index
    %c0_73 = arith.constant 0 : index
    %91 = vector.load %arg2[%c0_71, %c32_72, %c0_73] : memref<1x64x128xbf16, #tpu.memory_space<vmem>>, vector<1x8x128xbf16>
    %92 = vector.shape_cast %91 : vector<1x8x128xbf16> to vector<8x128xbf16>
    %93 = arith.extf %92 : vector<8x128xbf16> to vector<8x128xf32>
    %94 = vector.extract_strided_slice %54 {offsets = [64, 0], sizes = [8, 128], strides = [1, 1]} : vector<128x128xf32> to vector<8x128xf32>
    %95 = arith.addf %94, %93 : vector<8x128xf32>
    %96 = arith.truncf %95 : vector<8x128xf32> to vector<8x128xbf16>
    %c0_74 = arith.constant 0 : index
    %c32_75 = arith.constant 32 : index
    %c0_76 = arith.constant 0 : index
    %97 = vector.load %arg4[%c0_74, %c32_75, %c0_76] : memref<1x64x128xbf16, #tpu.memory_space<vmem>>, vector<1x8x128xbf16>
    %98 = vector.shape_cast %97 : vector<1x8x128xbf16> to vector<8x128xbf16>
    %99 = vector.shape_cast %96 : vector<8x128xbf16> to vector<1x8x128xbf16>
    tpu.vector_store %arg4[%c0_74, %c32_75, %c0_76], %99 {strides = array<i32>} : memref<1x64x128xbf16, #tpu.memory_space<vmem>>, vector<1x8x128xbf16>,
    %c0_77 = arith.constant 0 : index
    %c40 = arith.constant 40 : index
    %c0_78 = arith.constant 0 : index
    %100 = vector.load %arg2[%c0_77, %c40, %c0_78] : memref<1x64x128xbf16, #tpu.memory_space<vmem>>, vector<1x8x128xbf16>
    %101 = vector.shape_cast %100 : vector<1x8x128xbf16> to vector<8x128xbf16>
    %102 = arith.extf %101 : vector<8x128xbf16> to vector<8x128xf32>
    %103 = vector.extract_strided_slice %54 {offsets = [80, 0], sizes = [8, 128], strides = [1, 1]} : vector<128x128xf32> to vector<8x128xf32>
    %104 = arith.addf %103, %102 : vector<8x128xf32>
    %105 = arith.truncf %104 : vector<8x128xf32> to vector<8x128xbf16>
    %c0_79 = arith.constant 0 : index
    %c40_80 = arith.constant 40 : index
    %c0_81 = arith.constant 0 : index
    %106 = vector.load %arg4[%c0_79, %c40_80, %c0_81] : memref<1x64x128xbf16, #tpu.memory_space<vmem>>, vector<1x8x128xbf16>
    %107 = vector.shape_cast %106 : vector<1x8x128xbf16> to vector<8x128xbf16>
    %108 = vector.shape_cast %105 : vector<8x128xbf16> to vector<1x8x128xbf16>
    tpu.vector_store %arg4[%c0_79, %c40_80, %c0_81], %108 {strides = array<i32>} : memref<1x64x128xbf16, #tpu.memory_space<vmem>>, vector<1x8x128xbf16>,
    %c0_82 = arith.constant 0 : index
    %c48 = arith.constant 48 : index
    %c0_83 = arith.constant 0 : index
    %109 = vector.load %arg2[%c0_82, %c48, %c0_83] : memref<1x64x128xbf16, #tpu.memory_space<vmem>>, vector<1x8x128xbf16>
    %110 = vector.shape_cast %109 : vector<1x8x128xbf16> to vector<8x128xbf16>
    %111 = arith.extf %110 : vector<8x128xbf16> to vector<8x128xf32>
    %112 = vector.extract_strided_slice %54 {offsets = [96, 0], sizes = [8, 128], strides = [1, 1]} : vector<128x128xf32> to vector<8x128xf32>
    %113 = arith.addf %112, %111 : vector<8x128xf32>
    %114 = arith.truncf %113 : vector<8x128xf32> to vector<8x128xbf16>
    %c0_84 = arith.constant 0 : index
    %c48_85 = arith.constant 48 : index
    %c0_86 = arith.constant 0 : index
    %115 = vector.load %arg4[%c0_84, %c48_85, %c0_86] : memref<1x64x128xbf16, #tpu.memory_space<vmem>>, vector<1x8x128xbf16>
    %116 = vector.shape_cast %115 : vector<1x8x128xbf16> to vector<8x128xbf16>
    %117 = vector.shape_cast %114 : vector<8x128xbf16> to vector<1x8x128xbf16>
    tpu.vector_store %arg4[%c0_84, %c48_85, %c0_86], %117 {strides = array<i32>} : memref<1x64x128xbf16, #tpu.memory_space<vmem>>, vector<1x8x128xbf16>,
    %c0_87 = arith.constant 0 : index
    %c56 = arith.constant 56 : index
    %c0_88 = arith.constant 0 : index
    %118 = vector.load %arg2[%c0_87, %c56, %c0_88] : memref<1x64x128xbf16, #tpu.memory_space<vmem>>, vector<1x8x128xbf16>
    %119 = vector.shape_cast %118 : vector<1x8x128xbf16> to vector<8x128xbf16>
    %120 = arith.extf %119 : vector<8x128xbf16> to vector<8x128xf32>
    %121 = vector.extract_strided_slice %54 {offsets = [112, 0], sizes = [8, 128], strides = [1, 1]} : vector<128x128xf32> to vector<8x128xf32>
    %122 = arith.addf %121, %120 : vector<8x128xf32>
    %123 = arith.truncf %122 : vector<8x128xf32> to vector<8x128xbf16>
    %c0_89 = arith.constant 0 : index
    %c56_90 = arith.constant 56 : index
    %c0_91 = arith.constant 0 : index
    %124 = vector.load %arg4[%c0_89, %c56_90, %c0_91] : memref<1x64x128xbf16, #tpu.memory_space<vmem>>, vector<1x8x128xbf16>
    %125 = vector.shape_cast %124 : vector<1x8x128xbf16> to vector<8x128xbf16>
    %126 = vector.shape_cast %123 : vector<8x128xbf16> to vector<1x8x128xbf16>
    tpu.vector_store %arg4[%c0_89, %c56_90, %c0_91], %126 {strides = array<i32>} : memref<1x64x128xbf16, #tpu.memory_space<vmem>>, vector<1x8x128xbf16>,
    return
  }
  func.func @transform_0(%arg0: i32) -> (i32, i32, i32) {
    %c0_i32 = arith.constant 0 : i32
    %c0_i32_0 = arith.constant 0 : i32
    %c0_i32_1 = arith.constant 0 : i32
    return %arg0, %c0_i32, %c0_i32_0 : i32, i32, i32
  }
  func.func @transform_1(%arg0: i32) -> (i32, i32, i32) {
    %c0_i32 = arith.constant 0 : i32
    %c0_i32_0 = arith.constant 0 : i32
    %c0_i32_1 = arith.constant 0 : i32
    return %arg0, %c0_i32, %c0_i32_0 : i32, i32, i32
  }
  func.func @transform_2(%arg0: i32) -> (i32, i32, i32) {
    %c0_i32 = arith.constant 0 : i32
    %c0_i32_0 = arith.constant 0 : i32
    %c0_i32_1 = arith.constant 0 : i32
    %c0_i32_2 = arith.constant 0 : i32
    return %c0_i32, %c0_i32_0, %c0_i32_1 : i32, i32, i32
  }
  func.func @transform_3(%arg0: i32) -> (i32, i32, i32) {
    %c0_i32 = arith.constant 0 : i32
    %c0_i32_0 = arith.constant 0 : i32
    %c0_i32_1 = arith.constant 0 : i32
    return %arg0, %c0_i32, %c0_i32_0 : i32, i32, i32
  }
}

module attributes {stable_mosaic.version = 11 : i64} {
  func.func @_transition_kernel(%arg0: i32, %arg1: memref<1x4x16x128xbf16, #tpu.memory_space<vmem>>, %arg2: memref<1x1x128xf32, #tpu.memory_space<vmem>>, %arg3: memref<1x1x128xf32, #tpu.memory_space<vmem>>, %arg4: memref<128x128xbf16, #tpu.memory_space<vmem>>, %arg5: memref<1x16x128xbf16, #tpu.memory_space<vmem>>) attributes {dimension_semantics = [#tpu.dimension_semantics<parallel>], iteration_bounds = array<i64: 2>, scalar_prefetch = 0 : i64, scratch_operands = 0 : i64, tpu.core_type = #tpu.core_type<tc>, window_params = [{transform_indices = @transform_0, window_bounds = array<i64: 1, 4, 16, 128>}, {pipeline_mode = #tpu.pipeline_mode<synchronous>, transform_indices = @transform_1, window_bounds = array<i64: 1, 1, 128>}, {pipeline_mode = #tpu.pipeline_mode<synchronous>, transform_indices = @transform_2, window_bounds = array<i64: 1, 1, 128>}, {pipeline_mode = #tpu.pipeline_mode<synchronous>, transform_indices = @transform_3, window_bounds = array<i64: 128, 128>}, {transform_indices = @transform_4, window_bounds = array<i64: 1, 16, 128>}]} {
    %c0 = arith.constant 0 : index
    %c0_0 = arith.constant 0 : index
    %c0_1 = arith.constant 0 : index
    %c0_2 = arith.constant 0 : index
    %0 = vector.load %arg1[%c0, %c0_0, %c0_1, %c0_2] : memref<1x4x16x128xbf16, #tpu.memory_space<vmem>>, vector<1x4x16x128xbf16>
    %1 = vector.shape_cast %0 : vector<1x4x16x128xbf16> to vector<4x16x128xbf16>
    %2 = arith.extf %1 : vector<4x16x128xbf16> to vector<4x16x128xf32>
    %c0_3 = arith.constant 0 : index
    %c0_4 = arith.constant 0 : index
    %c0_5 = arith.constant 0 : index
    %3 = vector.load %arg2[%c0_3, %c0_4, %c0_5] : memref<1x1x128xf32, #tpu.memory_space<vmem>>, vector<1x1x128xf32>
    %4 = vector.broadcast %3 : vector<1x1x128xf32> to vector<4x16x128xf32>
    %5 = arith.mulf %2, %4 : vector<4x16x128xf32>
    %c0_6 = arith.constant 0 : index
    %c0_7 = arith.constant 0 : index
    %c0_8 = arith.constant 0 : index
    %6 = vector.load %arg3[%c0_6, %c0_7, %c0_8] : memref<1x1x128xf32, #tpu.memory_space<vmem>>, vector<1x1x128xf32>
    %7 = vector.broadcast %6 : vector<1x1x128xf32> to vector<4x16x128xf32>
    %8 = arith.addf %5, %7 : vector<4x16x128xf32>
    %cst = arith.constant 0.000000e+00 : f32
    %9 = vector.broadcast %cst : f32 to vector<4x16x128xf32>
    %10 = arith.maximumf %8, %9 : vector<4x16x128xf32>
    %cst_9 = arith.constant dense<0.000000e+00> : vector<16x128xf32>
    %11 = vector.multi_reduction <add>, %10, %cst_9 [0] : vector<4x16x128xf32> to vector<16x128xf32>
    %cst_10 = arith.constant 4.000000e+00 : f32
    %12 = vector.broadcast %cst_10 : f32 to vector<16x128xf32>
    %13 = arith.divf %11, %12 : vector<16x128xf32>
    %14 = arith.truncf %13 : vector<16x128xf32> to vector<16x128xbf16>
    %c0_11 = arith.constant 0 : index
    %c0_12 = arith.constant 0 : index
    %15 = vector.load %arg4[%c0_11, %c0_12] : memref<128x128xbf16, #tpu.memory_space<vmem>>, vector<128x128xbf16>
    %cst_13 = arith.constant dense<0.000000e+00> : vector<16x128xf32>
    %16 = tpu.matmul %14, %15, %cst_13 {dimension_numbers = #tpu.dot_dimension_numbers<[1], [0], [0], [1], [0, 0, 1, 1], [], []>} : vector<16x128xbf16>, vector<128x128xbf16>, vector<16x128xf32> -> vector<16x128xf32>
    %17 = arith.truncf %16 : vector<16x128xf32> to vector<16x128xbf16>
    %c0_14 = arith.constant 0 : index
    %c0_15 = arith.constant 0 : index
    %c0_16 = arith.constant 0 : index
    %18 = vector.load %arg5[%c0_14, %c0_15, %c0_16] : memref<1x16x128xbf16, #tpu.memory_space<vmem>>, vector<1x16x128xbf16>
    %19 = vector.shape_cast %18 : vector<1x16x128xbf16> to vector<16x128xbf16>
    %20 = vector.shape_cast %17 : vector<16x128xbf16> to vector<1x16x128xbf16>
    tpu.vector_store %arg5[%c0_14, %c0_15, %c0_16], %20 {strides = array<i32>} : memref<1x16x128xbf16, #tpu.memory_space<vmem>>, vector<1x16x128xbf16>,
    return
  }
  func.func @transform_0(%arg0: i32) -> (i32, i32, i32, i32) {
    %c0_i32 = arith.constant 0 : i32
    %c0_i32_0 = arith.constant 0 : i32
    %c0_i32_1 = arith.constant 0 : i32
    %c0_i32_2 = arith.constant 0 : i32
    return %arg0, %c0_i32, %c0_i32_0, %c0_i32_1 : i32, i32, i32, i32
  }
  func.func @transform_1(%arg0: i32) -> (i32, i32, i32) {
    %c0_i32 = arith.constant 0 : i32
    %c0_i32_0 = arith.constant 0 : i32
    %c0_i32_1 = arith.constant 0 : i32
    %c0_i32_2 = arith.constant 0 : i32
    return %c0_i32, %c0_i32_0, %c0_i32_1 : i32, i32, i32
  }
  func.func @transform_2(%arg0: i32) -> (i32, i32, i32) {
    %c0_i32 = arith.constant 0 : i32
    %c0_i32_0 = arith.constant 0 : i32
    %c0_i32_1 = arith.constant 0 : i32
    %c0_i32_2 = arith.constant 0 : i32
    return %c0_i32, %c0_i32_0, %c0_i32_1 : i32, i32, i32
  }
  func.func @transform_3(%arg0: i32) -> (i32, i32) {
    %c0_i32 = arith.constant 0 : i32
    %c0_i32_0 = arith.constant 0 : i32
    %c0_i32_1 = arith.constant 0 : i32
    return %c0_i32, %c0_i32_0 : i32, i32
  }
  func.func @transform_4(%arg0: i32) -> (i32, i32, i32) {
    %c0_i32 = arith.constant 0 : i32
    %c0_i32_0 = arith.constant 0 : i32
    %c0_i32_1 = arith.constant 0 : i32
    return %arg0, %c0_i32, %c0_i32_0 : i32, i32, i32
  }
}

module attributes {stable_mosaic.version = 11 : i64} {
  func.func @_bn_relu_mm_bn_relu_kernel(%arg0: i32, %arg1: memref<32x128xbf16, #tpu.memory_space<vmem>>, %arg2: memref<1x128xf32, #tpu.memory_space<vmem>>, %arg3: memref<1x128xf32, #tpu.memory_space<vmem>>, %arg4: memref<128x128xbf16, #tpu.memory_space<vmem>>, %arg5: memref<1x128xf32, #tpu.memory_space<vmem>>, %arg6: memref<1x128xf32, #tpu.memory_space<vmem>>, %arg7: memref<32x128xbf16, #tpu.memory_space<vmem>>) attributes {dimension_semantics = [#tpu.dimension_semantics<parallel>], iteration_bounds = array<i64: 1>, scalar_prefetch = 0 : i64, scratch_operands = 0 : i64, tpu.core_type = #tpu.core_type<tc>, window_params = [{transform_indices = @transform_0, window_bounds = array<i64: 32, 128>}, {pipeline_mode = #tpu.pipeline_mode<synchronous>, transform_indices = @transform_1, window_bounds = array<i64: 1, 128>}, {pipeline_mode = #tpu.pipeline_mode<synchronous>, transform_indices = @transform_2, window_bounds = array<i64: 1, 128>}, {pipeline_mode = #tpu.pipeline_mode<synchronous>, transform_indices = @transform_3, window_bounds = array<i64: 128, 128>}, {pipeline_mode = #tpu.pipeline_mode<synchronous>, transform_indices = @transform_4, window_bounds = array<i64: 1, 128>}, {pipeline_mode = #tpu.pipeline_mode<synchronous>, transform_indices = @transform_5, window_bounds = array<i64: 1, 128>}, {transform_indices = @transform_6, window_bounds = array<i64: 32, 128>}]} {
    %c0 = arith.constant 0 : index
    %c0_0 = arith.constant 0 : index
    %0 = vector.load %arg1[%c0, %c0_0] : memref<32x128xbf16, #tpu.memory_space<vmem>>, vector<32x128xbf16>
    %1 = arith.extf %0 : vector<32x128xbf16> to vector<32x128xf32>
    %c0_1 = arith.constant 0 : index
    %c0_2 = arith.constant 0 : index
    %2 = vector.load %arg2[%c0_1, %c0_2] : memref<1x128xf32, #tpu.memory_space<vmem>>, vector<1x128xf32>
    %3 = vector.broadcast %2 : vector<1x128xf32> to vector<32x128xf32>
    %4 = arith.mulf %1, %3 : vector<32x128xf32>
    %c0_3 = arith.constant 0 : index
    %c0_4 = arith.constant 0 : index
    %5 = vector.load %arg3[%c0_3, %c0_4] : memref<1x128xf32, #tpu.memory_space<vmem>>, vector<1x128xf32>
    %6 = vector.broadcast %5 : vector<1x128xf32> to vector<32x128xf32>
    %7 = arith.addf %4, %6 : vector<32x128xf32>
    %cst = arith.constant 0.000000e+00 : f32
    %8 = vector.broadcast %cst : f32 to vector<32x128xf32>
    %9 = arith.maximumf %7, %8 : vector<32x128xf32>
    %10 = arith.truncf %9 : vector<32x128xf32> to vector<32x128xbf16>
    %c0_5 = arith.constant 0 : index
    %c0_6 = arith.constant 0 : index
    %11 = vector.load %arg4[%c0_5, %c0_6] : memref<128x128xbf16, #tpu.memory_space<vmem>>, vector<128x128xbf16>
    %cst_7 = arith.constant dense<0.000000e+00> : vector<32x128xf32>
    %12 = tpu.matmul %10, %11, %cst_7 {dimension_numbers = #tpu.dot_dimension_numbers<[1], [0], [0], [1], [0, 0, 1, 1], [], []>} : vector<32x128xbf16>, vector<128x128xbf16>, vector<32x128xf32> -> vector<32x128xf32>
    %c0_8 = arith.constant 0 : index
    %c0_9 = arith.constant 0 : index
    %13 = vector.load %arg5[%c0_8, %c0_9] : memref<1x128xf32, #tpu.memory_space<vmem>>, vector<1x128xf32>
    %14 = vector.broadcast %13 : vector<1x128xf32> to vector<32x128xf32>
    %15 = arith.mulf %12, %14 : vector<32x128xf32>
    %c0_10 = arith.constant 0 : index
    %c0_11 = arith.constant 0 : index
    %16 = vector.load %arg6[%c0_10, %c0_11] : memref<1x128xf32, #tpu.memory_space<vmem>>, vector<1x128xf32>
    %17 = vector.broadcast %16 : vector<1x128xf32> to vector<32x128xf32>
    %18 = arith.addf %15, %17 : vector<32x128xf32>
    %cst_12 = arith.constant 0.000000e+00 : f32
    %19 = vector.broadcast %cst_12 : f32 to vector<32x128xf32>
    %20 = arith.maximumf %18, %19 : vector<32x128xf32>
    %21 = arith.truncf %20 : vector<32x128xf32> to vector<32x128xbf16>
    %c0_13 = arith.constant 0 : index
    %c0_14 = arith.constant 0 : index
    %22 = vector.load %arg7[%c0_13, %c0_14] : memref<32x128xbf16, #tpu.memory_space<vmem>>, vector<32x128xbf16>
    tpu.vector_store %arg7[%c0_13, %c0_14], %21 {strides = array<i32>} : memref<32x128xbf16, #tpu.memory_space<vmem>>, vector<32x128xbf16>,
    return
  }
  func.func @transform_0(%arg0: i32) -> (i32, i32) {
    %c0_i32 = arith.constant 0 : i32
    %c0_i32_0 = arith.constant 0 : i32
    return %arg0, %c0_i32 : i32, i32
  }
  func.func @transform_1(%arg0: i32) -> (i32, i32) {
    %c0_i32 = arith.constant 0 : i32
    %c0_i32_0 = arith.constant 0 : i32
    %c0_i32_1 = arith.constant 0 : i32
    return %c0_i32, %c0_i32_0 : i32, i32
  }
  func.func @transform_2(%arg0: i32) -> (i32, i32) {
    %c0_i32 = arith.constant 0 : i32
    %c0_i32_0 = arith.constant 0 : i32
    %c0_i32_1 = arith.constant 0 : i32
    return %c0_i32, %c0_i32_0 : i32, i32
  }
  func.func @transform_3(%arg0: i32) -> (i32, i32) {
    %c0_i32 = arith.constant 0 : i32
    %c0_i32_0 = arith.constant 0 : i32
    %c0_i32_1 = arith.constant 0 : i32
    return %c0_i32, %c0_i32_0 : i32, i32
  }
  func.func @transform_4(%arg0: i32) -> (i32, i32) {
    %c0_i32 = arith.constant 0 : i32
    %c0_i32_0 = arith.constant 0 : i32
    %c0_i32_1 = arith.constant 0 : i32
    return %c0_i32, %c0_i32_0 : i32, i32
  }
  func.func @transform_5(%arg0: i32) -> (i32, i32) {
    %c0_i32 = arith.constant 0 : i32
    %c0_i32_0 = arith.constant 0 : i32
    %c0_i32_1 = arith.constant 0 : i32
    return %c0_i32, %c0_i32_0 : i32, i32
  }
  func.func @transform_6(%arg0: i32) -> (i32, i32) {
    %c0_i32 = arith.constant 0 : i32
    %c0_i32_0 = arith.constant 0 : i32
    return %arg0, %c0_i32 : i32, i32
  }
}

module attributes {stable_mosaic.version = 11 : i64} {
  func.func @_conv3x3_res_kernel(%arg0: i32, %arg1: memref<1x56x128xbf16, #tpu.memory_space<vmem>>, %arg2: memref<1x16x128xbf16, #tpu.memory_space<vmem>>, %arg3: memref<9x128x128xbf16, #tpu.memory_space<vmem>>, %arg4: memref<1x16x128xbf16, #tpu.memory_space<vmem>>) attributes {dimension_semantics = [#tpu.dimension_semantics<parallel>], iteration_bounds = array<i64: 2>, scalar_prefetch = 0 : i64, scratch_operands = 0 : i64, tpu.core_type = #tpu.core_type<tc>, window_params = [{transform_indices = @transform_0, window_bounds = array<i64: 1, 56, 128>}, {transform_indices = @transform_1, window_bounds = array<i64: 1, 16, 128>}, {pipeline_mode = #tpu.pipeline_mode<synchronous>, transform_indices = @transform_2, window_bounds = array<i64: 9, 128, 128>}, {transform_indices = @transform_3, window_bounds = array<i64: 1, 16, 128>}]} {
    %cst = arith.constant 0.000000e+00 : f32
    %0 = vector.broadcast %cst : f32 to vector<32x128xf32>
    %c0 = arith.constant 0 : index
    %c0_0 = arith.constant 0 : index
    %c0_1 = arith.constant 0 : index
    %1 = vector.load %arg1[%c0, %c0_0, %c0_1] : memref<1x56x128xbf16, #tpu.memory_space<vmem>>, vector<1x32x128xbf16>
    %2 = vector.shape_cast %1 : vector<1x32x128xbf16> to vector<32x128xbf16>
    %c0_2 = arith.constant 0 : index
    %c0_3 = arith.constant 0 : index
    %c0_4 = arith.constant 0 : index
    %3 = vector.load %arg3[%c0_2, %c0_3, %c0_4] : memref<9x128x128xbf16, #tpu.memory_space<vmem>>, vector<1x128x128xbf16>
    %4 = vector.shape_cast %3 : vector<1x128x128xbf16> to vector<128x128xbf16>
    %cst_5 = arith.constant dense<0.000000e+00> : vector<32x128xf32>
    %5 = tpu.matmul %2, %4, %cst_5 {dimension_numbers = #tpu.dot_dimension_numbers<[1], [0], [0], [1], [0, 0, 1, 1], [], []>} : vector<32x128xbf16>, vector<128x128xbf16>, vector<32x128xf32> -> vector<32x128xf32>
    %6 = arith.addf %0, %5 : vector<32x128xf32>
    %c0_6 = arith.constant 0 : index
    %c1 = arith.constant 1 : index
    %c0_7 = arith.constant 0 : index
    %7 = vector.load %arg1[%c0_6, %c1, %c0_7] : memref<1x56x128xbf16, #tpu.memory_space<vmem>>, vector<1x32x128xbf16>
    %8 = vector.shape_cast %7 : vector<1x32x128xbf16> to vector<32x128xbf16>
    %c1_8 = arith.constant 1 : index
    %c0_9 = arith.constant 0 : index
    %c0_10 = arith.constant 0 : index
    %9 = vector.load %arg3[%c1_8, %c0_9, %c0_10] : memref<9x128x128xbf16, #tpu.memory_space<vmem>>, vector<1x128x128xbf16>
    %10 = vector.shape_cast %9 : vector<1x128x128xbf16> to vector<128x128xbf16>
    %cst_11 = arith.constant dense<0.000000e+00> : vector<32x128xf32>
    %11 = tpu.matmul %8, %10, %cst_11 {dimension_numbers = #tpu.dot_dimension_numbers<[1], [0], [0], [1], [0, 0, 1, 1], [], []>} : vector<32x128xbf16>, vector<128x128xbf16>, vector<32x128xf32> -> vector<32x128xf32>
    %12 = arith.addf %6, %11 : vector<32x128xf32>
    %c0_12 = arith.constant 0 : index
    %c2 = arith.constant 2 : index
    %c0_13 = arith.constant 0 : index
    %13 = vector.load %arg1[%c0_12, %c2, %c0_13] : memref<1x56x128xbf16, #tpu.memory_space<vmem>>, vector<1x32x128xbf16>
    %14 = vector.shape_cast %13 : vector<1x32x128xbf16> to vector<32x128xbf16>
    %c2_14 = arith.constant 2 : index
    %c0_15 = arith.constant 0 : index
    %c0_16 = arith.constant 0 : index
    %15 = vector.load %arg3[%c2_14, %c0_15, %c0_16] : memref<9x128x128xbf16, #tpu.memory_space<vmem>>, vector<1x128x128xbf16>
    %16 = vector.shape_cast %15 : vector<1x128x128xbf16> to vector<128x128xbf16>
    %cst_17 = arith.constant dense<0.000000e+00> : vector<32x128xf32>
    %17 = tpu.matmul %14, %16, %cst_17 {dimension_numbers = #tpu.dot_dimension_numbers<[1], [0], [0], [1], [0, 0, 1, 1], [], []>} : vector<32x128xbf16>, vector<128x128xbf16>, vector<32x128xf32> -> vector<32x128xf32>
    %18 = arith.addf %12, %17 : vector<32x128xf32>
    %c0_18 = arith.constant 0 : index
    %c8 = arith.constant 8 : index
    %c0_19 = arith.constant 0 : index
    %19 = vector.load %arg1[%c0_18, %c8, %c0_19] : memref<1x56x128xbf16, #tpu.memory_space<vmem>>, vector<1x32x128xbf16>
    %20 = vector.shape_cast %19 : vector<1x32x128xbf16> to vector<32x128xbf16>
    %c3 = arith.constant 3 : index
    %c0_20 = arith.constant 0 : index
    %c0_21 = arith.constant 0 : index
    %21 = vector.load %arg3[%c3, %c0_20, %c0_21] : memref<9x128x128xbf16, #tpu.memory_space<vmem>>, vector<1x128x128xbf16>
    %22 = vector.shape_cast %21 : vector<1x128x128xbf16> to vector<128x128xbf16>
    %cst_22 = arith.constant dense<0.000000e+00> : vector<32x128xf32>
    %23 = tpu.matmul %20, %22, %cst_22 {dimension_numbers = #tpu.dot_dimension_numbers<[1], [0], [0], [1], [0, 0, 1, 1], [], []>} : vector<32x128xbf16>, vector<128x128xbf16>, vector<32x128xf32> -> vector<32x128xf32>
    %24 = arith.addf %18, %23 : vector<32x128xf32>
    %c0_23 = arith.constant 0 : index
    %c9 = arith.constant 9 : index
    %c0_24 = arith.constant 0 : index
    %25 = vector.load %arg1[%c0_23, %c9, %c0_24] : memref<1x56x128xbf16, #tpu.memory_space<vmem>>, vector<1x32x128xbf16>
    %26 = vector.shape_cast %25 : vector<1x32x128xbf16> to vector<32x128xbf16>
    %c4 = arith.constant 4 : index
    %c0_25 = arith.constant 0 : index
    %c0_26 = arith.constant 0 : index
    %27 = vector.load %arg3[%c4, %c0_25, %c0_26] : memref<9x128x128xbf16, #tpu.memory_space<vmem>>, vector<1x128x128xbf16>
    %28 = vector.shape_cast %27 : vector<1x128x128xbf16> to vector<128x128xbf16>
    %cst_27 = arith.constant dense<0.000000e+00> : vector<32x128xf32>
    %29 = tpu.matmul %26, %28, %cst_27 {dimension_numbers = #tpu.dot_dimension_numbers<[1], [0], [0], [1], [0, 0, 1, 1], [], []>} : vector<32x128xbf16>, vector<128x128xbf16>, vector<32x128xf32> -> vector<32x128xf32>
    %30 = arith.addf %24, %29 : vector<32x128xf32>
    %c0_28 = arith.constant 0 : index
    %c10 = arith.constant 10 : index
    %c0_29 = arith.constant 0 : index
    %31 = vector.load %arg1[%c0_28, %c10, %c0_29] : memref<1x56x128xbf16, #tpu.memory_space<vmem>>, vector<1x32x128xbf16>
    %32 = vector.shape_cast %31 : vector<1x32x128xbf16> to vector<32x128xbf16>
    %c5 = arith.constant 5 : index
    %c0_30 = arith.constant 0 : index
    %c0_31 = arith.constant 0 : index
    %33 = vector.load %arg3[%c5, %c0_30, %c0_31] : memref<9x128x128xbf16, #tpu.memory_space<vmem>>, vector<1x128x128xbf16>
    %34 = vector.shape_cast %33 : vector<1x128x128xbf16> to vector<128x128xbf16>
    %cst_32 = arith.constant dense<0.000000e+00> : vector<32x128xf32>
    %35 = tpu.matmul %32, %34, %cst_32 {dimension_numbers = #tpu.dot_dimension_numbers<[1], [0], [0], [1], [0, 0, 1, 1], [], []>} : vector<32x128xbf16>, vector<128x128xbf16>, vector<32x128xf32> -> vector<32x128xf32>
    %36 = arith.addf %30, %35 : vector<32x128xf32>
    %c0_33 = arith.constant 0 : index
    %c16 = arith.constant 16 : index
    %c0_34 = arith.constant 0 : index
    %37 = vector.load %arg1[%c0_33, %c16, %c0_34] : memref<1x56x128xbf16, #tpu.memory_space<vmem>>, vector<1x32x128xbf16>
    %38 = vector.shape_cast %37 : vector<1x32x128xbf16> to vector<32x128xbf16>
    %c6 = arith.constant 6 : index
    %c0_35 = arith.constant 0 : index
    %c0_36 = arith.constant 0 : index
    %39 = vector.load %arg3[%c6, %c0_35, %c0_36] : memref<9x128x128xbf16, #tpu.memory_space<vmem>>, vector<1x128x128xbf16>
    %40 = vector.shape_cast %39 : vector<1x128x128xbf16> to vector<128x128xbf16>
    %cst_37 = arith.constant dense<0.000000e+00> : vector<32x128xf32>
    %41 = tpu.matmul %38, %40, %cst_37 {dimension_numbers = #tpu.dot_dimension_numbers<[1], [0], [0], [1], [0, 0, 1, 1], [], []>} : vector<32x128xbf16>, vector<128x128xbf16>, vector<32x128xf32> -> vector<32x128xf32>
    %42 = arith.addf %36, %41 : vector<32x128xf32>
    %c0_38 = arith.constant 0 : index
    %c17 = arith.constant 17 : index
    %c0_39 = arith.constant 0 : index
    %43 = vector.load %arg1[%c0_38, %c17, %c0_39] : memref<1x56x128xbf16, #tpu.memory_space<vmem>>, vector<1x32x128xbf16>
    %44 = vector.shape_cast %43 : vector<1x32x128xbf16> to vector<32x128xbf16>
    %c7 = arith.constant 7 : index
    %c0_40 = arith.constant 0 : index
    %c0_41 = arith.constant 0 : index
    %45 = vector.load %arg3[%c7, %c0_40, %c0_41] : memref<9x128x128xbf16, #tpu.memory_space<vmem>>, vector<1x128x128xbf16>
    %46 = vector.shape_cast %45 : vector<1x128x128xbf16> to vector<128x128xbf16>
    %cst_42 = arith.constant dense<0.000000e+00> : vector<32x128xf32>
    %47 = tpu.matmul %44, %46, %cst_42 {dimension_numbers = #tpu.dot_dimension_numbers<[1], [0], [0], [1], [0, 0, 1, 1], [], []>} : vector<32x128xbf16>, vector<128x128xbf16>, vector<32x128xf32> -> vector<32x128xf32>
    %48 = arith.addf %42, %47 : vector<32x128xf32>
    %c0_43 = arith.constant 0 : index
    %c18 = arith.constant 18 : index
    %c0_44 = arith.constant 0 : index
    %49 = vector.load %arg1[%c0_43, %c18, %c0_44] : memref<1x56x128xbf16, #tpu.memory_space<vmem>>, vector<1x32x128xbf16>
    %50 = vector.shape_cast %49 : vector<1x32x128xbf16> to vector<32x128xbf16>
    %c8_45 = arith.constant 8 : index
    %c0_46 = arith.constant 0 : index
    %c0_47 = arith.constant 0 : index
    %51 = vector.load %arg3[%c8_45, %c0_46, %c0_47] : memref<9x128x128xbf16, #tpu.memory_space<vmem>>, vector<1x128x128xbf16>
    %52 = vector.shape_cast %51 : vector<1x128x128xbf16> to vector<128x128xbf16>
    %cst_48 = arith.constant dense<0.000000e+00> : vector<32x128xf32>
    %53 = tpu.matmul %50, %52, %cst_48 {dimension_numbers = #tpu.dot_dimension_numbers<[1], [0], [0], [1], [0, 0, 1, 1], [], []>} : vector<32x128xbf16>, vector<128x128xbf16>, vector<32x128xf32> -> vector<32x128xf32>
    %54 = arith.addf %48, %53 : vector<32x128xf32>
    %c0_49 = arith.constant 0 : index
    %c0_50 = arith.constant 0 : index
    %c0_51 = arith.constant 0 : index
    %55 = vector.load %arg2[%c0_49, %c0_50, %c0_51] : memref<1x16x128xbf16, #tpu.memory_space<vmem>>, vector<1x4x128xbf16>
    %56 = vector.shape_cast %55 : vector<1x4x128xbf16> to vector<4x128xbf16>
    %57 = arith.extf %56 : vector<4x128xbf16> to vector<4x128xf32>
    %58 = vector.extract_strided_slice %54 {offsets = [0, 0], sizes = [4, 128], strides = [1, 1]} : vector<32x128xf32> to vector<4x128xf32>
    %59 = arith.addf %58, %57 : vector<4x128xf32>
    %60 = arith.truncf %59 : vector<4x128xf32> to vector<4x128xbf16>
    %c0_52 = arith.constant 0 : index
    %c0_53 = arith.constant 0 : index
    %c0_54 = arith.constant 0 : index
    %61 = vector.load %arg4[%c0_52, %c0_53, %c0_54] : memref<1x16x128xbf16, #tpu.memory_space<vmem>>, vector<1x4x128xbf16>
    %62 = vector.shape_cast %61 : vector<1x4x128xbf16> to vector<4x128xbf16>
    %63 = vector.shape_cast %60 : vector<4x128xbf16> to vector<1x4x128xbf16>
    tpu.vector_store %arg4[%c0_52, %c0_53, %c0_54], %63 {strides = array<i32>} : memref<1x16x128xbf16, #tpu.memory_space<vmem>>, vector<1x4x128xbf16>,
    %c0_55 = arith.constant 0 : index
    %c4_56 = arith.constant 4 : index
    %c0_57 = arith.constant 0 : index
    %64 = vector.load %arg2[%c0_55, %c4_56, %c0_57] : memref<1x16x128xbf16, #tpu.memory_space<vmem>>, vector<1x4x128xbf16>
    %65 = vector.shape_cast %64 : vector<1x4x128xbf16> to vector<4x128xbf16>
    %66 = arith.extf %65 : vector<4x128xbf16> to vector<4x128xf32>
    %67 = vector.extract_strided_slice %54 {offsets = [8, 0], sizes = [4, 128], strides = [1, 1]} : vector<32x128xf32> to vector<4x128xf32>
    %68 = arith.addf %67, %66 : vector<4x128xf32>
    %69 = arith.truncf %68 : vector<4x128xf32> to vector<4x128xbf16>
    %c0_58 = arith.constant 0 : index
    %c4_59 = arith.constant 4 : index
    %c0_60 = arith.constant 0 : index
    %70 = vector.load %arg4[%c0_58, %c4_59, %c0_60] : memref<1x16x128xbf16, #tpu.memory_space<vmem>>, vector<1x4x128xbf16>
    %71 = vector.shape_cast %70 : vector<1x4x128xbf16> to vector<4x128xbf16>
    %72 = vector.shape_cast %69 : vector<4x128xbf16> to vector<1x4x128xbf16>
    tpu.vector_store %arg4[%c0_58, %c4_59, %c0_60], %72 {strides = array<i32>} : memref<1x16x128xbf16, #tpu.memory_space<vmem>>, vector<1x4x128xbf16>,
    %c0_61 = arith.constant 0 : index
    %c8_62 = arith.constant 8 : index
    %c0_63 = arith.constant 0 : index
    %73 = vector.load %arg2[%c0_61, %c8_62, %c0_63] : memref<1x16x128xbf16, #tpu.memory_space<vmem>>, vector<1x4x128xbf16>
    %74 = vector.shape_cast %73 : vector<1x4x128xbf16> to vector<4x128xbf16>
    %75 = arith.extf %74 : vector<4x128xbf16> to vector<4x128xf32>
    %76 = vector.extract_strided_slice %54 {offsets = [16, 0], sizes = [4, 128], strides = [1, 1]} : vector<32x128xf32> to vector<4x128xf32>
    %77 = arith.addf %76, %75 : vector<4x128xf32>
    %78 = arith.truncf %77 : vector<4x128xf32> to vector<4x128xbf16>
    %c0_64 = arith.constant 0 : index
    %c8_65 = arith.constant 8 : index
    %c0_66 = arith.constant 0 : index
    %79 = vector.load %arg4[%c0_64, %c8_65, %c0_66] : memref<1x16x128xbf16, #tpu.memory_space<vmem>>, vector<1x4x128xbf16>
    %80 = vector.shape_cast %79 : vector<1x4x128xbf16> to vector<4x128xbf16>
    %81 = vector.shape_cast %78 : vector<4x128xbf16> to vector<1x4x128xbf16>
    tpu.vector_store %arg4[%c0_64, %c8_65, %c0_66], %81 {strides = array<i32>} : memref<1x16x128xbf16, #tpu.memory_space<vmem>>, vector<1x4x128xbf16>,
    %c0_67 = arith.constant 0 : index
    %c12 = arith.constant 12 : index
    %c0_68 = arith.constant 0 : index
    %82 = vector.load %arg2[%c0_67, %c12, %c0_68] : memref<1x16x128xbf16, #tpu.memory_space<vmem>>, vector<1x4x128xbf16>
    %83 = vector.shape_cast %82 : vector<1x4x128xbf16> to vector<4x128xbf16>
    %84 = arith.extf %83 : vector<4x128xbf16> to vector<4x128xf32>
    %85 = vector.extract_strided_slice %54 {offsets = [24, 0], sizes = [4, 128], strides = [1, 1]} : vector<32x128xf32> to vector<4x128xf32>
    %86 = arith.addf %85, %84 : vector<4x128xf32>
    %87 = arith.truncf %86 : vector<4x128xf32> to vector<4x128xbf16>
    %c0_69 = arith.constant 0 : index
    %c12_70 = arith.constant 12 : index
    %c0_71 = arith.constant 0 : index
    %88 = vector.load %arg4[%c0_69, %c12_70, %c0_71] : memref<1x16x128xbf16, #tpu.memory_space<vmem>>, vector<1x4x128xbf16>
    %89 = vector.shape_cast %88 : vector<1x4x128xbf16> to vector<4x128xbf16>
    %90 = vector.shape_cast %87 : vector<4x128xbf16> to vector<1x4x128xbf16>
    tpu.vector_store %arg4[%c0_69, %c12_70, %c0_71], %90 {strides = array<i32>} : memref<1x16x128xbf16, #tpu.memory_space<vmem>>, vector<1x4x128xbf16>,
    return
  }
  func.func @transform_0(%arg0: i32) -> (i32, i32, i32) {
    %c0_i32 = arith.constant 0 : i32
    %c0_i32_0 = arith.constant 0 : i32
    %c0_i32_1 = arith.constant 0 : i32
    return %arg0, %c0_i32, %c0_i32_0 : i32, i32, i32
  }
  func.func @transform_1(%arg0: i32) -> (i32, i32, i32) {
    %c0_i32 = arith.constant 0 : i32
    %c0_i32_0 = arith.constant 0 : i32
    %c0_i32_1 = arith.constant 0 : i32
    return %arg0, %c0_i32, %c0_i32_0 : i32, i32, i32
  }
  func.func @transform_2(%arg0: i32) -> (i32, i32, i32) {
    %c0_i32 = arith.constant 0 : i32
    %c0_i32_0 = arith.constant 0 : i32
    %c0_i32_1 = arith.constant 0 : i32
    %c0_i32_2 = arith.constant 0 : i32
    return %c0_i32, %c0_i32_0, %c0_i32_1 : i32, i32, i32
  }
  func.func @transform_3(%arg0: i32) -> (i32, i32, i32) {
    %c0_i32 = arith.constant 0 : i32
    %c0_i32_0 = arith.constant 0 : i32
    %c0_i32_1 = arith.constant 0 : i32
    return %arg0, %c0_i32, %c0_i32_0 : i32, i32, i32
  }
}

module attributes {stable_mosaic.version = 11 : i64} {
  func.func @_bn_relu_mm_bn_relu_kernel(%arg0: i32, %arg1: memref<32x128xbf16, #tpu.memory_space<vmem>>, %arg2: memref<1x128xf32, #tpu.memory_space<vmem>>, %arg3: memref<1x128xf32, #tpu.memory_space<vmem>>, %arg4: memref<128x128xbf16, #tpu.memory_space<vmem>>, %arg5: memref<1x128xf32, #tpu.memory_space<vmem>>, %arg6: memref<1x128xf32, #tpu.memory_space<vmem>>, %arg7: memref<32x128xbf16, #tpu.memory_space<vmem>>) attributes {dimension_semantics = [#tpu.dimension_semantics<parallel>], iteration_bounds = array<i64: 1>, scalar_prefetch = 0 : i64, scratch_operands = 0 : i64, tpu.core_type = #tpu.core_type<tc>, window_params = [{transform_indices = @transform_0, window_bounds = array<i64: 32, 128>}, {pipeline_mode = #tpu.pipeline_mode<synchronous>, transform_indices = @transform_1, window_bounds = array<i64: 1, 128>}, {pipeline_mode = #tpu.pipeline_mode<synchronous>, transform_indices = @transform_2, window_bounds = array<i64: 1, 128>}, {pipeline_mode = #tpu.pipeline_mode<synchronous>, transform_indices = @transform_3, window_bounds = array<i64: 128, 128>}, {pipeline_mode = #tpu.pipeline_mode<synchronous>, transform_indices = @transform_4, window_bounds = array<i64: 1, 128>}, {pipeline_mode = #tpu.pipeline_mode<synchronous>, transform_indices = @transform_5, window_bounds = array<i64: 1, 128>}, {transform_indices = @transform_6, window_bounds = array<i64: 32, 128>}]} {
    %c0 = arith.constant 0 : index
    %c0_0 = arith.constant 0 : index
    %0 = vector.load %arg1[%c0, %c0_0] : memref<32x128xbf16, #tpu.memory_space<vmem>>, vector<32x128xbf16>
    %1 = arith.extf %0 : vector<32x128xbf16> to vector<32x128xf32>
    %c0_1 = arith.constant 0 : index
    %c0_2 = arith.constant 0 : index
    %2 = vector.load %arg2[%c0_1, %c0_2] : memref<1x128xf32, #tpu.memory_space<vmem>>, vector<1x128xf32>
    %3 = vector.broadcast %2 : vector<1x128xf32> to vector<32x128xf32>
    %4 = arith.mulf %1, %3 : vector<32x128xf32>
    %c0_3 = arith.constant 0 : index
    %c0_4 = arith.constant 0 : index
    %5 = vector.load %arg3[%c0_3, %c0_4] : memref<1x128xf32, #tpu.memory_space<vmem>>, vector<1x128xf32>
    %6 = vector.broadcast %5 : vector<1x128xf32> to vector<32x128xf32>
    %7 = arith.addf %4, %6 : vector<32x128xf32>
    %cst = arith.constant 0.000000e+00 : f32
    %8 = vector.broadcast %cst : f32 to vector<32x128xf32>
    %9 = arith.maximumf %7, %8 : vector<32x128xf32>
    %10 = arith.truncf %9 : vector<32x128xf32> to vector<32x128xbf16>
    %c0_5 = arith.constant 0 : index
    %c0_6 = arith.constant 0 : index
    %11 = vector.load %arg4[%c0_5, %c0_6] : memref<128x128xbf16, #tpu.memory_space<vmem>>, vector<128x128xbf16>
    %cst_7 = arith.constant dense<0.000000e+00> : vector<32x128xf32>
    %12 = tpu.matmul %10, %11, %cst_7 {dimension_numbers = #tpu.dot_dimension_numbers<[1], [0], [0], [1], [0, 0, 1, 1], [], []>} : vector<32x128xbf16>, vector<128x128xbf16>, vector<32x128xf32> -> vector<32x128xf32>
    %c0_8 = arith.constant 0 : index
    %c0_9 = arith.constant 0 : index
    %13 = vector.load %arg5[%c0_8, %c0_9] : memref<1x128xf32, #tpu.memory_space<vmem>>, vector<1x128xf32>
    %14 = vector.broadcast %13 : vector<1x128xf32> to vector<32x128xf32>
    %15 = arith.mulf %12, %14 : vector<32x128xf32>
    %c0_10 = arith.constant 0 : index
    %c0_11 = arith.constant 0 : index
    %16 = vector.load %arg6[%c0_10, %c0_11] : memref<1x128xf32, #tpu.memory_space<vmem>>, vector<1x128xf32>
    %17 = vector.broadcast %16 : vector<1x128xf32> to vector<32x128xf32>
    %18 = arith.addf %15, %17 : vector<32x128xf32>
    %cst_12 = arith.constant 0.000000e+00 : f32
    %19 = vector.broadcast %cst_12 : f32 to vector<32x128xf32>
    %20 = arith.maximumf %18, %19 : vector<32x128xf32>
    %21 = arith.truncf %20 : vector<32x128xf32> to vector<32x128xbf16>
    %c0_13 = arith.constant 0 : index
    %c0_14 = arith.constant 0 : index
    %22 = vector.load %arg7[%c0_13, %c0_14] : memref<32x128xbf16, #tpu.memory_space<vmem>>, vector<32x128xbf16>
    tpu.vector_store %arg7[%c0_13, %c0_14], %21 {strides = array<i32>} : memref<32x128xbf16, #tpu.memory_space<vmem>>, vector<32x128xbf16>,
    return
  }
  func.func @transform_0(%arg0: i32) -> (i32, i32) {
    %c0_i32 = arith.constant 0 : i32
    %c0_i32_0 = arith.constant 0 : i32
    return %arg0, %c0_i32 : i32, i32
  }
  func.func @transform_1(%arg0: i32) -> (i32, i32) {
    %c0_i32 = arith.constant 0 : i32
    %c0_i32_0 = arith.constant 0 : i32
    %c0_i32_1 = arith.constant 0 : i32
    return %c0_i32, %c0_i32_0 : i32, i32
  }
  func.func @transform_2(%arg0: i32) -> (i32, i32) {
    %c0_i32 = arith.constant 0 : i32
    %c0_i32_0 = arith.constant 0 : i32
    %c0_i32_1 = arith.constant 0 : i32
    return %c0_i32, %c0_i32_0 : i32, i32
  }
  func.func @transform_3(%arg0: i32) -> (i32, i32) {
    %c0_i32 = arith.constant 0 : i32
    %c0_i32_0 = arith.constant 0 : i32
    %c0_i32_1 = arith.constant 0 : i32
    return %c0_i32, %c0_i32_0 : i32, i32
  }
  func.func @transform_4(%arg0: i32) -> (i32, i32) {
    %c0_i32 = arith.constant 0 : i32
    %c0_i32_0 = arith.constant 0 : i32
    %c0_i32_1 = arith.constant 0 : i32
    return %c0_i32, %c0_i32_0 : i32, i32
  }
  func.func @transform_5(%arg0: i32) -> (i32, i32) {
    %c0_i32 = arith.constant 0 : i32
    %c0_i32_0 = arith.constant 0 : i32
    %c0_i32_1 = arith.constant 0 : i32
    return %c0_i32, %c0_i32_0 : i32, i32
  }
  func.func @transform_6(%arg0: i32) -> (i32, i32) {
    %c0_i32 = arith.constant 0 : i32
    %c0_i32_0 = arith.constant 0 : i32
    return %arg0, %c0_i32 : i32, i32
  }
}

module attributes {stable_mosaic.version = 11 : i64} {
  func.func @_bn_relu_mm_bn_relu_kernel(%arg0: i32, %arg1: memref<8x128xbf16, #tpu.memory_space<vmem>>, %arg2: memref<1x128xf32, #tpu.memory_space<vmem>>, %arg3: memref<1x128xf32, #tpu.memory_space<vmem>>, %arg4: memref<128x128xbf16, #tpu.memory_space<vmem>>, %arg5: memref<1x128xf32, #tpu.memory_space<vmem>>, %arg6: memref<1x128xf32, #tpu.memory_space<vmem>>, %arg7: memref<8x128xbf16, #tpu.memory_space<vmem>>) attributes {dimension_semantics = [#tpu.dimension_semantics<parallel>], iteration_bounds = array<i64: 1>, scalar_prefetch = 0 : i64, scratch_operands = 0 : i64, tpu.core_type = #tpu.core_type<tc>, window_params = [{transform_indices = @transform_0, window_bounds = array<i64: 8, 128>}, {pipeline_mode = #tpu.pipeline_mode<synchronous>, transform_indices = @transform_1, window_bounds = array<i64: 1, 128>}, {pipeline_mode = #tpu.pipeline_mode<synchronous>, transform_indices = @transform_2, window_bounds = array<i64: 1, 128>}, {pipeline_mode = #tpu.pipeline_mode<synchronous>, transform_indices = @transform_3, window_bounds = array<i64: 128, 128>}, {pipeline_mode = #tpu.pipeline_mode<synchronous>, transform_indices = @transform_4, window_bounds = array<i64: 1, 128>}, {pipeline_mode = #tpu.pipeline_mode<synchronous>, transform_indices = @transform_5, window_bounds = array<i64: 1, 128>}, {transform_indices = @transform_6, window_bounds = array<i64: 8, 128>}]} {
    %c0 = arith.constant 0 : index
    %c0_0 = arith.constant 0 : index
    %0 = vector.load %arg1[%c0, %c0_0] : memref<8x128xbf16, #tpu.memory_space<vmem>>, vector<8x128xbf16>
    %1 = arith.extf %0 : vector<8x128xbf16> to vector<8x128xf32>
    %c0_1 = arith.constant 0 : index
    %c0_2 = arith.constant 0 : index
    %2 = vector.load %arg2[%c0_1, %c0_2] : memref<1x128xf32, #tpu.memory_space<vmem>>, vector<1x128xf32>
    %3 = vector.broadcast %2 : vector<1x128xf32> to vector<8x128xf32>
    %4 = arith.mulf %1, %3 : vector<8x128xf32>
    %c0_3 = arith.constant 0 : index
    %c0_4 = arith.constant 0 : index
    %5 = vector.load %arg3[%c0_3, %c0_4] : memref<1x128xf32, #tpu.memory_space<vmem>>, vector<1x128xf32>
    %6 = vector.broadcast %5 : vector<1x128xf32> to vector<8x128xf32>
    %7 = arith.addf %4, %6 : vector<8x128xf32>
    %cst = arith.constant 0.000000e+00 : f32
    %8 = vector.broadcast %cst : f32 to vector<8x128xf32>
    %9 = arith.maximumf %7, %8 : vector<8x128xf32>
    %10 = arith.truncf %9 : vector<8x128xf32> to vector<8x128xbf16>
    %c0_5 = arith.constant 0 : index
    %c0_6 = arith.constant 0 : index
    %11 = vector.load %arg4[%c0_5, %c0_6] : memref<128x128xbf16, #tpu.memory_space<vmem>>, vector<128x128xbf16>
    %cst_7 = arith.constant dense<0.000000e+00> : vector<8x128xf32>
    %12 = tpu.matmul %10, %11, %cst_7 {dimension_numbers = #tpu.dot_dimension_numbers<[1], [0], [0], [1], [0, 0, 1, 1], [], []>} : vector<8x128xbf16>, vector<128x128xbf16>, vector<8x128xf32> -> vector<8x128xf32>
    %c0_8 = arith.constant 0 : index
    %c0_9 = arith.constant 0 : index
    %13 = vector.load %arg5[%c0_8, %c0_9] : memref<1x128xf32, #tpu.memory_space<vmem>>, vector<1x128xf32>
    %14 = vector.broadcast %13 : vector<1x128xf32> to vector<8x128xf32>
    %15 = arith.mulf %12, %14 : vector<8x128xf32>
    %c0_10 = arith.constant 0 : index
    %c0_11 = arith.constant 0 : index
    %16 = vector.load %arg6[%c0_10, %c0_11] : memref<1x128xf32, #tpu.memory_space<vmem>>, vector<1x128xf32>
    %17 = vector.broadcast %16 : vector<1x128xf32> to vector<8x128xf32>
    %18 = arith.addf %15, %17 : vector<8x128xf32>
    %cst_12 = arith.constant 0.000000e+00 : f32
    %19 = vector.broadcast %cst_12 : f32 to vector<8x128xf32>
    %20 = arith.maximumf %18, %19 : vector<8x128xf32>
    %21 = arith.truncf %20 : vector<8x128xf32> to vector<8x128xbf16>
    %c0_13 = arith.constant 0 : index
    %c0_14 = arith.constant 0 : index
    %22 = vector.load %arg7[%c0_13, %c0_14] : memref<8x128xbf16, #tpu.memory_space<vmem>>, vector<8x128xbf16>
    tpu.vector_store %arg7[%c0_13, %c0_14], %21 {strides = array<i32>} : memref<8x128xbf16, #tpu.memory_space<vmem>>, vector<8x128xbf16>,
    return
  }
  func.func @transform_0(%arg0: i32) -> (i32, i32) {
    %c0_i32 = arith.constant 0 : i32
    %c0_i32_0 = arith.constant 0 : i32
    return %arg0, %c0_i32 : i32, i32
  }
  func.func @transform_1(%arg0: i32) -> (i32, i32) {
    %c0_i32 = arith.constant 0 : i32
    %c0_i32_0 = arith.constant 0 : i32
    %c0_i32_1 = arith.constant 0 : i32
    return %c0_i32, %c0_i32_0 : i32, i32
  }
  func.func @transform_2(%arg0: i32) -> (i32, i32) {
    %c0_i32 = arith.constant 0 : i32
    %c0_i32_0 = arith.constant 0 : i32
    %c0_i32_1 = arith.constant 0 : i32
    return %c0_i32, %c0_i32_0 : i32, i32
  }
  func.func @transform_3(%arg0: i32) -> (i32, i32) {
    %c0_i32 = arith.constant 0 : i32
    %c0_i32_0 = arith.constant 0 : i32
    %c0_i32_1 = arith.constant 0 : i32
    return %c0_i32, %c0_i32_0 : i32, i32
  }
  func.func @transform_4(%arg0: i32) -> (i32, i32) {
    %c0_i32 = arith.constant 0 : i32
    %c0_i32_0 = arith.constant 0 : i32
    %c0_i32_1 = arith.constant 0 : i32
    return %c0_i32, %c0_i32_0 : i32, i32
  }
  func.func @transform_5(%arg0: i32) -> (i32, i32) {
    %c0_i32 = arith.constant 0 : i32
    %c0_i32_0 = arith.constant 0 : i32
    %c0_i32_1 = arith.constant 0 : i32
    return %c0_i32, %c0_i32_0 : i32, i32
  }
  func.func @transform_6(%arg0: i32) -> (i32, i32) {
    %c0_i32 = arith.constant 0 : i32
    %c0_i32_0 = arith.constant 0 : i32
    return %arg0, %c0_i32 : i32, i32
  }
}

module attributes {stable_mosaic.version = 11 : i64} {
  func.func @_transition_kernel(%arg0: i32, %arg1: memref<1x4x4x128xbf16, #tpu.memory_space<vmem>>, %arg2: memref<1x1x128xf32, #tpu.memory_space<vmem>>, %arg3: memref<1x1x128xf32, #tpu.memory_space<vmem>>, %arg4: memref<128x128xbf16, #tpu.memory_space<vmem>>, %arg5: memref<1x4x128xbf16, #tpu.memory_space<vmem>>) attributes {dimension_semantics = [#tpu.dimension_semantics<parallel>], iteration_bounds = array<i64: 2>, scalar_prefetch = 0 : i64, scratch_operands = 0 : i64, tpu.core_type = #tpu.core_type<tc>, window_params = [{transform_indices = @transform_0, window_bounds = array<i64: 1, 4, 4, 128>}, {pipeline_mode = #tpu.pipeline_mode<synchronous>, transform_indices = @transform_1, window_bounds = array<i64: 1, 1, 128>}, {pipeline_mode = #tpu.pipeline_mode<synchronous>, transform_indices = @transform_2, window_bounds = array<i64: 1, 1, 128>}, {pipeline_mode = #tpu.pipeline_mode<synchronous>, transform_indices = @transform_3, window_bounds = array<i64: 128, 128>}, {transform_indices = @transform_4, window_bounds = array<i64: 1, 4, 128>}]} {
    %c0 = arith.constant 0 : index
    %c0_0 = arith.constant 0 : index
    %c0_1 = arith.constant 0 : index
    %c0_2 = arith.constant 0 : index
    %0 = vector.load %arg1[%c0, %c0_0, %c0_1, %c0_2] : memref<1x4x4x128xbf16, #tpu.memory_space<vmem>>, vector<1x4x4x128xbf16>
    %1 = vector.shape_cast %0 : vector<1x4x4x128xbf16> to vector<4x4x128xbf16>
    %2 = arith.extf %1 : vector<4x4x128xbf16> to vector<4x4x128xf32>
    %c0_3 = arith.constant 0 : index
    %c0_4 = arith.constant 0 : index
    %c0_5 = arith.constant 0 : index
    %3 = vector.load %arg2[%c0_3, %c0_4, %c0_5] : memref<1x1x128xf32, #tpu.memory_space<vmem>>, vector<1x1x128xf32>
    %4 = vector.broadcast %3 : vector<1x1x128xf32> to vector<4x4x128xf32>
    %5 = arith.mulf %2, %4 : vector<4x4x128xf32>
    %c0_6 = arith.constant 0 : index
    %c0_7 = arith.constant 0 : index
    %c0_8 = arith.constant 0 : index
    %6 = vector.load %arg3[%c0_6, %c0_7, %c0_8] : memref<1x1x128xf32, #tpu.memory_space<vmem>>, vector<1x1x128xf32>
    %7 = vector.broadcast %6 : vector<1x1x128xf32> to vector<4x4x128xf32>
    %8 = arith.addf %5, %7 : vector<4x4x128xf32>
    %cst = arith.constant 0.000000e+00 : f32
    %9 = vector.broadcast %cst : f32 to vector<4x4x128xf32>
    %10 = arith.maximumf %8, %9 : vector<4x4x128xf32>
    %cst_9 = arith.constant dense<0.000000e+00> : vector<4x128xf32>
    %11 = vector.multi_reduction <add>, %10, %cst_9 [0] : vector<4x4x128xf32> to vector<4x128xf32>
    %cst_10 = arith.constant 4.000000e+00 : f32
    %12 = vector.broadcast %cst_10 : f32 to vector<4x128xf32>
    %13 = arith.divf %11, %12 : vector<4x128xf32>
    %14 = arith.truncf %13 : vector<4x128xf32> to vector<4x128xbf16>
    %c0_11 = arith.constant 0 : index
    %c0_12 = arith.constant 0 : index
    %15 = vector.load %arg4[%c0_11, %c0_12] : memref<128x128xbf16, #tpu.memory_space<vmem>>, vector<128x128xbf16>
    %cst_13 = arith.constant dense<0.000000e+00> : vector<4x128xf32>
    %16 = tpu.matmul %14, %15, %cst_13 {dimension_numbers = #tpu.dot_dimension_numbers<[1], [0], [0], [1], [0, 0, 1, 1], [], []>} : vector<4x128xbf16>, vector<128x128xbf16>, vector<4x128xf32> -> vector<4x128xf32>
    %17 = arith.truncf %16 : vector<4x128xf32> to vector<4x128xbf16>
    %c0_14 = arith.constant 0 : index
    %c0_15 = arith.constant 0 : index
    %c0_16 = arith.constant 0 : index
    %18 = vector.load %arg5[%c0_14, %c0_15, %c0_16] : memref<1x4x128xbf16, #tpu.memory_space<vmem>>, vector<1x4x128xbf16>
    %19 = vector.shape_cast %18 : vector<1x4x128xbf16> to vector<4x128xbf16>
    %20 = vector.shape_cast %17 : vector<4x128xbf16> to vector<1x4x128xbf16>
    tpu.vector_store %arg5[%c0_14, %c0_15, %c0_16], %20 {strides = array<i32>} : memref<1x4x128xbf16, #tpu.memory_space<vmem>>, vector<1x4x128xbf16>,
    return
  }
  func.func @transform_0(%arg0: i32) -> (i32, i32, i32, i32) {
    %c0_i32 = arith.constant 0 : i32
    %c0_i32_0 = arith.constant 0 : i32
    %c0_i32_1 = arith.constant 0 : i32
    %c0_i32_2 = arith.constant 0 : i32
    return %arg0, %c0_i32, %c0_i32_0, %c0_i32_1 : i32, i32, i32, i32
  }
  func.func @transform_1(%arg0: i32) -> (i32, i32, i32) {
    %c0_i32 = arith.constant 0 : i32
    %c0_i32_0 = arith.constant 0 : i32
    %c0_i32_1 = arith.constant 0 : i32
    %c0_i32_2 = arith.constant 0 : i32
    return %c0_i32, %c0_i32_0, %c0_i32_1 : i32, i32, i32
  }
  func.func @transform_2(%arg0: i32) -> (i32, i32, i32) {
    %c0_i32 = arith.constant 0 : i32
    %c0_i32_0 = arith.constant 0 : i32
    %c0_i32_1 = arith.constant 0 : i32
    %c0_i32_2 = arith.constant 0 : i32
    return %c0_i32, %c0_i32_0, %c0_i32_1 : i32, i32, i32
  }
  func.func @transform_3(%arg0: i32) -> (i32, i32) {
    %c0_i32 = arith.constant 0 : i32
    %c0_i32_0 = arith.constant 0 : i32
    %c0_i32_1 = arith.constant 0 : i32
    return %c0_i32, %c0_i32_0 : i32, i32
  }
  func.func @transform_4(%arg0: i32) -> (i32, i32, i32) {
    %c0_i32 = arith.constant 0 : i32
    %c0_i32_0 = arith.constant 0 : i32
    %c0_i32_1 = arith.constant 0 : i32
    return %arg0, %c0_i32, %c0_i32_0 : i32, i32, i32
  }
}

module attributes {stable_mosaic.version = 11 : i64} {
  func.func @_conv3x3_res_kernel(%arg0: i32, %arg1: memref<1x40x128xbf16, #tpu.memory_space<vmem>>, %arg2: memref<1x4x128xbf16, #tpu.memory_space<vmem>>, %arg3: memref<9x128x128xbf16, #tpu.memory_space<vmem>>, %arg4: memref<1x4x128xbf16, #tpu.memory_space<vmem>>) attributes {dimension_semantics = [#tpu.dimension_semantics<parallel>], iteration_bounds = array<i64: 2>, scalar_prefetch = 0 : i64, scratch_operands = 0 : i64, tpu.core_type = #tpu.core_type<tc>, window_params = [{transform_indices = @transform_0, window_bounds = array<i64: 1, 40, 128>}, {transform_indices = @transform_1, window_bounds = array<i64: 1, 4, 128>}, {pipeline_mode = #tpu.pipeline_mode<synchronous>, transform_indices = @transform_2, window_bounds = array<i64: 9, 128, 128>}, {transform_indices = @transform_3, window_bounds = array<i64: 1, 4, 128>}]} {
    %cst = arith.constant 0.000000e+00 : f32
    %0 = vector.broadcast %cst : f32 to vector<16x128xf32>
    %c0 = arith.constant 0 : index
    %c0_0 = arith.constant 0 : index
    %c0_1 = arith.constant 0 : index
    %1 = vector.load %arg1[%c0, %c0_0, %c0_1] : memref<1x40x128xbf16, #tpu.memory_space<vmem>>, vector<1x16x128xbf16>
    %2 = vector.shape_cast %1 : vector<1x16x128xbf16> to vector<16x128xbf16>
    %c0_2 = arith.constant 0 : index
    %c0_3 = arith.constant 0 : index
    %c0_4 = arith.constant 0 : index
    %3 = vector.load %arg3[%c0_2, %c0_3, %c0_4] : memref<9x128x128xbf16, #tpu.memory_space<vmem>>, vector<1x128x128xbf16>
    %4 = vector.shape_cast %3 : vector<1x128x128xbf16> to vector<128x128xbf16>
    %cst_5 = arith.constant dense<0.000000e+00> : vector<16x128xf32>
    %5 = tpu.matmul %2, %4, %cst_5 {dimension_numbers = #tpu.dot_dimension_numbers<[1], [0], [0], [1], [0, 0, 1, 1], [], []>} : vector<16x128xbf16>, vector<128x128xbf16>, vector<16x128xf32> -> vector<16x128xf32>
    %6 = arith.addf %0, %5 : vector<16x128xf32>
    %c0_6 = arith.constant 0 : index
    %c1 = arith.constant 1 : index
    %c0_7 = arith.constant 0 : index
    %7 = vector.load %arg1[%c0_6, %c1, %c0_7] : memref<1x40x128xbf16, #tpu.memory_space<vmem>>, vector<1x16x128xbf16>
    %8 = vector.shape_cast %7 : vector<1x16x128xbf16> to vector<16x128xbf16>
    %c1_8 = arith.constant 1 : index
    %c0_9 = arith.constant 0 : index
    %c0_10 = arith.constant 0 : index
    %9 = vector.load %arg3[%c1_8, %c0_9, %c0_10] : memref<9x128x128xbf16, #tpu.memory_space<vmem>>, vector<1x128x128xbf16>
    %10 = vector.shape_cast %9 : vector<1x128x128xbf16> to vector<128x128xbf16>
    %cst_11 = arith.constant dense<0.000000e+00> : vector<16x128xf32>
    %11 = tpu.matmul %8, %10, %cst_11 {dimension_numbers = #tpu.dot_dimension_numbers<[1], [0], [0], [1], [0, 0, 1, 1], [], []>} : vector<16x128xbf16>, vector<128x128xbf16>, vector<16x128xf32> -> vector<16x128xf32>
    %12 = arith.addf %6, %11 : vector<16x128xf32>
    %c0_12 = arith.constant 0 : index
    %c2 = arith.constant 2 : index
    %c0_13 = arith.constant 0 : index
    %13 = vector.load %arg1[%c0_12, %c2, %c0_13] : memref<1x40x128xbf16, #tpu.memory_space<vmem>>, vector<1x16x128xbf16>
    %14 = vector.shape_cast %13 : vector<1x16x128xbf16> to vector<16x128xbf16>
    %c2_14 = arith.constant 2 : index
    %c0_15 = arith.constant 0 : index
    %c0_16 = arith.constant 0 : index
    %15 = vector.load %arg3[%c2_14, %c0_15, %c0_16] : memref<9x128x128xbf16, #tpu.memory_space<vmem>>, vector<1x128x128xbf16>
    %16 = vector.shape_cast %15 : vector<1x128x128xbf16> to vector<128x128xbf16>
    %cst_17 = arith.constant dense<0.000000e+00> : vector<16x128xf32>
    %17 = tpu.matmul %14, %16, %cst_17 {dimension_numbers = #tpu.dot_dimension_numbers<[1], [0], [0], [1], [0, 0, 1, 1], [], []>} : vector<16x128xbf16>, vector<128x128xbf16>, vector<16x128xf32> -> vector<16x128xf32>
    %18 = arith.addf %12, %17 : vector<16x128xf32>
    %c0_18 = arith.constant 0 : index
    %c8 = arith.constant 8 : index
    %c0_19 = arith.constant 0 : index
    %19 = vector.load %arg1[%c0_18, %c8, %c0_19] : memref<1x40x128xbf16, #tpu.memory_space<vmem>>, vector<1x16x128xbf16>
    %20 = vector.shape_cast %19 : vector<1x16x128xbf16> to vector<16x128xbf16>
    %c3 = arith.constant 3 : index
    %c0_20 = arith.constant 0 : index
    %c0_21 = arith.constant 0 : index
    %21 = vector.load %arg3[%c3, %c0_20, %c0_21] : memref<9x128x128xbf16, #tpu.memory_space<vmem>>, vector<1x128x128xbf16>
    %22 = vector.shape_cast %21 : vector<1x128x128xbf16> to vector<128x128xbf16>
    %cst_22 = arith.constant dense<0.000000e+00> : vector<16x128xf32>
    %23 = tpu.matmul %20, %22, %cst_22 {dimension_numbers = #tpu.dot_dimension_numbers<[1], [0], [0], [1], [0, 0, 1, 1], [], []>} : vector<16x128xbf16>, vector<128x128xbf16>, vector<16x128xf32> -> vector<16x128xf32>
    %24 = arith.addf %18, %23 : vector<16x128xf32>
    %c0_23 = arith.constant 0 : index
    %c9 = arith.constant 9 : index
    %c0_24 = arith.constant 0 : index
    %25 = vector.load %arg1[%c0_23, %c9, %c0_24] : memref<1x40x128xbf16, #tpu.memory_space<vmem>>, vector<1x16x128xbf16>
    %26 = vector.shape_cast %25 : vector<1x16x128xbf16> to vector<16x128xbf16>
    %c4 = arith.constant 4 : index
    %c0_25 = arith.constant 0 : index
    %c0_26 = arith.constant 0 : index
    %27 = vector.load %arg3[%c4, %c0_25, %c0_26] : memref<9x128x128xbf16, #tpu.memory_space<vmem>>, vector<1x128x128xbf16>
    %28 = vector.shape_cast %27 : vector<1x128x128xbf16> to vector<128x128xbf16>
    %cst_27 = arith.constant dense<0.000000e+00> : vector<16x128xf32>
    %29 = tpu.matmul %26, %28, %cst_27 {dimension_numbers = #tpu.dot_dimension_numbers<[1], [0], [0], [1], [0, 0, 1, 1], [], []>} : vector<16x128xbf16>, vector<128x128xbf16>, vector<16x128xf32> -> vector<16x128xf32>
    %30 = arith.addf %24, %29 : vector<16x128xf32>
    %c0_28 = arith.constant 0 : index
    %c10 = arith.constant 10 : index
    %c0_29 = arith.constant 0 : index
    %31 = vector.load %arg1[%c0_28, %c10, %c0_29] : memref<1x40x128xbf16, #tpu.memory_space<vmem>>, vector<1x16x128xbf16>
    %32 = vector.shape_cast %31 : vector<1x16x128xbf16> to vector<16x128xbf16>
    %c5 = arith.constant 5 : index
    %c0_30 = arith.constant 0 : index
    %c0_31 = arith.constant 0 : index
    %33 = vector.load %arg3[%c5, %c0_30, %c0_31] : memref<9x128x128xbf16, #tpu.memory_space<vmem>>, vector<1x128x128xbf16>
    %34 = vector.shape_cast %33 : vector<1x128x128xbf16> to vector<128x128xbf16>
    %cst_32 = arith.constant dense<0.000000e+00> : vector<16x128xf32>
    %35 = tpu.matmul %32, %34, %cst_32 {dimension_numbers = #tpu.dot_dimension_numbers<[1], [0], [0], [1], [0, 0, 1, 1], [], []>} : vector<16x128xbf16>, vector<128x128xbf16>, vector<16x128xf32> -> vector<16x128xf32>
    %36 = arith.addf %30, %35 : vector<16x128xf32>
    %c0_33 = arith.constant 0 : index
    %c16 = arith.constant 16 : index
    %c0_34 = arith.constant 0 : index
    %37 = vector.load %arg1[%c0_33, %c16, %c0_34] : memref<1x40x128xbf16, #tpu.memory_space<vmem>>, vector<1x16x128xbf16>
    %38 = vector.shape_cast %37 : vector<1x16x128xbf16> to vector<16x128xbf16>
    %c6 = arith.constant 6 : index
    %c0_35 = arith.constant 0 : index
    %c0_36 = arith.constant 0 : index
    %39 = vector.load %arg3[%c6, %c0_35, %c0_36] : memref<9x128x128xbf16, #tpu.memory_space<vmem>>, vector<1x128x128xbf16>
    %40 = vector.shape_cast %39 : vector<1x128x128xbf16> to vector<128x128xbf16>
    %cst_37 = arith.constant dense<0.000000e+00> : vector<16x128xf32>
    %41 = tpu.matmul %38, %40, %cst_37 {dimension_numbers = #tpu.dot_dimension_numbers<[1], [0], [0], [1], [0, 0, 1, 1], [], []>} : vector<16x128xbf16>, vector<128x128xbf16>, vector<16x128xf32> -> vector<16x128xf32>
    %42 = arith.addf %36, %41 : vector<16x128xf32>
    %c0_38 = arith.constant 0 : index
    %c17 = arith.constant 17 : index
    %c0_39 = arith.constant 0 : index
    %43 = vector.load %arg1[%c0_38, %c17, %c0_39] : memref<1x40x128xbf16, #tpu.memory_space<vmem>>, vector<1x16x128xbf16>
    %44 = vector.shape_cast %43 : vector<1x16x128xbf16> to vector<16x128xbf16>
    %c7 = arith.constant 7 : index
    %c0_40 = arith.constant 0 : index
    %c0_41 = arith.constant 0 : index
    %45 = vector.load %arg3[%c7, %c0_40, %c0_41] : memref<9x128x128xbf16, #tpu.memory_space<vmem>>, vector<1x128x128xbf16>
    %46 = vector.shape_cast %45 : vector<1x128x128xbf16> to vector<128x128xbf16>
    %cst_42 = arith.constant dense<0.000000e+00> : vector<16x128xf32>
    %47 = tpu.matmul %44, %46, %cst_42 {dimension_numbers = #tpu.dot_dimension_numbers<[1], [0], [0], [1], [0, 0, 1, 1], [], []>} : vector<16x128xbf16>, vector<128x128xbf16>, vector<16x128xf32> -> vector<16x128xf32>
    %48 = arith.addf %42, %47 : vector<16x128xf32>
    %c0_43 = arith.constant 0 : index
    %c18 = arith.constant 18 : index
    %c0_44 = arith.constant 0 : index
    %49 = vector.load %arg1[%c0_43, %c18, %c0_44] : memref<1x40x128xbf16, #tpu.memory_space<vmem>>, vector<1x16x128xbf16>
    %50 = vector.shape_cast %49 : vector<1x16x128xbf16> to vector<16x128xbf16>
    %c8_45 = arith.constant 8 : index
    %c0_46 = arith.constant 0 : index
    %c0_47 = arith.constant 0 : index
    %51 = vector.load %arg3[%c8_45, %c0_46, %c0_47] : memref<9x128x128xbf16, #tpu.memory_space<vmem>>, vector<1x128x128xbf16>
    %52 = vector.shape_cast %51 : vector<1x128x128xbf16> to vector<128x128xbf16>
    %cst_48 = arith.constant dense<0.000000e+00> : vector<16x128xf32>
    %53 = tpu.matmul %50, %52, %cst_48 {dimension_numbers = #tpu.dot_dimension_numbers<[1], [0], [0], [1], [0, 0, 1, 1], [], []>} : vector<16x128xbf16>, vector<128x128xbf16>, vector<16x128xf32> -> vector<16x128xf32>
    %54 = arith.addf %48, %53 : vector<16x128xf32>
    %c0_49 = arith.constant 0 : index
    %c0_50 = arith.constant 0 : index
    %c0_51 = arith.constant 0 : index
    %55 = vector.load %arg2[%c0_49, %c0_50, %c0_51] : memref<1x4x128xbf16, #tpu.memory_space<vmem>>, vector<1x2x128xbf16>
    %56 = vector.shape_cast %55 : vector<1x2x128xbf16> to vector<2x128xbf16>
    %57 = arith.extf %56 : vector<2x128xbf16> to vector<2x128xf32>
    %58 = vector.extract_strided_slice %54 {offsets = [0, 0], sizes = [2, 128], strides = [1, 1]} : vector<16x128xf32> to vector<2x128xf32>
    %59 = arith.addf %58, %57 : vector<2x128xf32>
    %60 = arith.truncf %59 : vector<2x128xf32> to vector<2x128xbf16>
    %c0_52 = arith.constant 0 : index
    %c0_53 = arith.constant 0 : index
    %c0_54 = arith.constant 0 : index
    %61 = vector.load %arg4[%c0_52, %c0_53, %c0_54] : memref<1x4x128xbf16, #tpu.memory_space<vmem>>, vector<1x2x128xbf16>
    %62 = vector.shape_cast %61 : vector<1x2x128xbf16> to vector<2x128xbf16>
    %63 = vector.shape_cast %60 : vector<2x128xbf16> to vector<1x2x128xbf16>
    tpu.vector_store %arg4[%c0_52, %c0_53, %c0_54], %63 {strides = array<i32>} : memref<1x4x128xbf16, #tpu.memory_space<vmem>>, vector<1x2x128xbf16>,
    %c0_55 = arith.constant 0 : index
    %c2_56 = arith.constant 2 : index
    %c0_57 = arith.constant 0 : index
    %64 = vector.load %arg2[%c0_55, %c2_56, %c0_57] : memref<1x4x128xbf16, #tpu.memory_space<vmem>>, vector<1x2x128xbf16>
    %65 = vector.shape_cast %64 : vector<1x2x128xbf16> to vector<2x128xbf16>
    %66 = arith.extf %65 : vector<2x128xbf16> to vector<2x128xf32>
    %67 = vector.extract_strided_slice %54 {offsets = [8, 0], sizes = [2, 128], strides = [1, 1]} : vector<16x128xf32> to vector<2x128xf32>
    %68 = arith.addf %67, %66 : vector<2x128xf32>
    %69 = arith.truncf %68 : vector<2x128xf32> to vector<2x128xbf16>
    %c0_58 = arith.constant 0 : index
    %c2_59 = arith.constant 2 : index
    %c0_60 = arith.constant 0 : index
    %70 = vector.load %arg4[%c0_58, %c2_59, %c0_60] : memref<1x4x128xbf16, #tpu.memory_space<vmem>>, vector<1x2x128xbf16>
    %71 = vector.shape_cast %70 : vector<1x2x128xbf16> to vector<2x128xbf16>
    %72 = vector.shape_cast %69 : vector<2x128xbf16> to vector<1x2x128xbf16>
    tpu.vector_store %arg4[%c0_58, %c2_59, %c0_60], %72 {strides = array<i32>} : memref<1x4x128xbf16, #tpu.memory_space<vmem>>, vector<1x2x128xbf16>,
    return
  }
  func.func @transform_0(%arg0: i32) -> (i32, i32, i32) {
    %c0_i32 = arith.constant 0 : i32
    %c0_i32_0 = arith.constant 0 : i32
    %c0_i32_1 = arith.constant 0 : i32
    return %arg0, %c0_i32, %c0_i32_0 : i32, i32, i32
  }
  func.func @transform_1(%arg0: i32) -> (i32, i32, i32) {
    %c0_i32 = arith.constant 0 : i32
    %c0_i32_0 = arith.constant 0 : i32
    %c0_i32_1 = arith.constant 0 : i32
    return %arg0, %c0_i32, %c0_i32_0 : i32, i32, i32
  }
  func.func @transform_2(%arg0: i32) -> (i32, i32, i32) {
    %c0_i32 = arith.constant 0 : i32
    %c0_i32_0 = arith.constant 0 : i32
    %c0_i32_1 = arith.constant 0 : i32
    %c0_i32_2 = arith.constant 0 : i32
    return %c0_i32, %c0_i32_0, %c0_i32_1 : i32, i32, i32
  }
  func.func @transform_3(%arg0: i32) -> (i32, i32, i32) {
    %c0_i32 = arith.constant 0 : i32
    %c0_i32_0 = arith.constant 0 : i32
    %c0_i32_1 = arith.constant 0 : i32
    return %arg0, %c0_i32, %c0_i32_0 : i32, i32, i32
  }
}

module attributes {stable_mosaic.version = 11 : i64} {
  func.func @_bn_relu_mm_bn_relu_kernel(%arg0: i32, %arg1: memref<8x128xbf16, #tpu.memory_space<vmem>>, %arg2: memref<1x128xf32, #tpu.memory_space<vmem>>, %arg3: memref<1x128xf32, #tpu.memory_space<vmem>>, %arg4: memref<128x128xbf16, #tpu.memory_space<vmem>>, %arg5: memref<1x128xf32, #tpu.memory_space<vmem>>, %arg6: memref<1x128xf32, #tpu.memory_space<vmem>>, %arg7: memref<8x128xbf16, #tpu.memory_space<vmem>>) attributes {dimension_semantics = [#tpu.dimension_semantics<parallel>], iteration_bounds = array<i64: 1>, scalar_prefetch = 0 : i64, scratch_operands = 0 : i64, tpu.core_type = #tpu.core_type<tc>, window_params = [{transform_indices = @transform_0, window_bounds = array<i64: 8, 128>}, {pipeline_mode = #tpu.pipeline_mode<synchronous>, transform_indices = @transform_1, window_bounds = array<i64: 1, 128>}, {pipeline_mode = #tpu.pipeline_mode<synchronous>, transform_indices = @transform_2, window_bounds = array<i64: 1, 128>}, {pipeline_mode = #tpu.pipeline_mode<synchronous>, transform_indices = @transform_3, window_bounds = array<i64: 128, 128>}, {pipeline_mode = #tpu.pipeline_mode<synchronous>, transform_indices = @transform_4, window_bounds = array<i64: 1, 128>}, {pipeline_mode = #tpu.pipeline_mode<synchronous>, transform_indices = @transform_5, window_bounds = array<i64: 1, 128>}, {transform_indices = @transform_6, window_bounds = array<i64: 8, 128>}]} {
    %c0 = arith.constant 0 : index
    %c0_0 = arith.constant 0 : index
    %0 = vector.load %arg1[%c0, %c0_0] : memref<8x128xbf16, #tpu.memory_space<vmem>>, vector<8x128xbf16>
    %1 = arith.extf %0 : vector<8x128xbf16> to vector<8x128xf32>
    %c0_1 = arith.constant 0 : index
    %c0_2 = arith.constant 0 : index
    %2 = vector.load %arg2[%c0_1, %c0_2] : memref<1x128xf32, #tpu.memory_space<vmem>>, vector<1x128xf32>
    %3 = vector.broadcast %2 : vector<1x128xf32> to vector<8x128xf32>
    %4 = arith.mulf %1, %3 : vector<8x128xf32>
    %c0_3 = arith.constant 0 : index
    %c0_4 = arith.constant 0 : index
    %5 = vector.load %arg3[%c0_3, %c0_4] : memref<1x128xf32, #tpu.memory_space<vmem>>, vector<1x128xf32>
    %6 = vector.broadcast %5 : vector<1x128xf32> to vector<8x128xf32>
    %7 = arith.addf %4, %6 : vector<8x128xf32>
    %cst = arith.constant 0.000000e+00 : f32
    %8 = vector.broadcast %cst : f32 to vector<8x128xf32>
    %9 = arith.maximumf %7, %8 : vector<8x128xf32>
    %10 = arith.truncf %9 : vector<8x128xf32> to vector<8x128xbf16>
    %c0_5 = arith.constant 0 : index
    %c0_6 = arith.constant 0 : index
    %11 = vector.load %arg4[%c0_5, %c0_6] : memref<128x128xbf16, #tpu.memory_space<vmem>>, vector<128x128xbf16>
    %cst_7 = arith.constant dense<0.000000e+00> : vector<8x128xf32>
    %12 = tpu.matmul %10, %11, %cst_7 {dimension_numbers = #tpu.dot_dimension_numbers<[1], [0], [0], [1], [0, 0, 1, 1], [], []>} : vector<8x128xbf16>, vector<128x128xbf16>, vector<8x128xf32> -> vector<8x128xf32>
    %c0_8 = arith.constant 0 : index
    %c0_9 = arith.constant 0 : index
    %13 = vector.load %arg5[%c0_8, %c0_9] : memref<1x128xf32, #tpu.memory_space<vmem>>, vector<1x128xf32>
    %14 = vector.broadcast %13 : vector<1x128xf32> to vector<8x128xf32>
    %15 = arith.mulf %12, %14 : vector<8x128xf32>
    %c0_10 = arith.constant 0 : index
    %c0_11 = arith.constant 0 : index
    %16 = vector.load %arg6[%c0_10, %c0_11] : memref<1x128xf32, #tpu.memory_space<vmem>>, vector<1x128xf32>
    %17 = vector.broadcast %16 : vector<1x128xf32> to vector<8x128xf32>
    %18 = arith.addf %15, %17 : vector<8x128xf32>
    %cst_12 = arith.constant 0.000000e+00 : f32
    %19 = vector.broadcast %cst_12 : f32 to vector<8x128xf32>
    %20 = arith.maximumf %18, %19 : vector<8x128xf32>
    %21 = arith.truncf %20 : vector<8x128xf32> to vector<8x128xbf16>
    %c0_13 = arith.constant 0 : index
    %c0_14 = arith.constant 0 : index
    %22 = vector.load %arg7[%c0_13, %c0_14] : memref<8x128xbf16, #tpu.memory_space<vmem>>, vector<8x128xbf16>
    tpu.vector_store %arg7[%c0_13, %c0_14], %21 {strides = array<i32>} : memref<8x128xbf16, #tpu.memory_space<vmem>>, vector<8x128xbf16>,
    return
  }
  func.func @transform_0(%arg0: i32) -> (i32, i32) {
    %c0_i32 = arith.constant 0 : i32
    %c0_i32_0 = arith.constant 0 : i32
    return %arg0, %c0_i32 : i32, i32
  }
  func.func @transform_1(%arg0: i32) -> (i32, i32) {
    %c0_i32 = arith.constant 0 : i32
    %c0_i32_0 = arith.constant 0 : i32
    %c0_i32_1 = arith.constant 0 : i32
    return %c0_i32, %c0_i32_0 : i32, i32
  }
  func.func @transform_2(%arg0: i32) -> (i32, i32) {
    %c0_i32 = arith.constant 0 : i32
    %c0_i32_0 = arith.constant 0 : i32
    %c0_i32_1 = arith.constant 0 : i32
    return %c0_i32, %c0_i32_0 : i32, i32
  }
  func.func @transform_3(%arg0: i32) -> (i32, i32) {
    %c0_i32 = arith.constant 0 : i32
    %c0_i32_0 = arith.constant 0 : i32
    %c0_i32_1 = arith.constant 0 : i32
    return %c0_i32, %c0_i32_0 : i32, i32
  }
  func.func @transform_4(%arg0: i32) -> (i32, i32) {
    %c0_i32 = arith.constant 0 : i32
    %c0_i32_0 = arith.constant 0 : i32
    %c0_i32_1 = arith.constant 0 : i32
    return %c0_i32, %c0_i32_0 : i32, i32
  }
  func.func @transform_5(%arg0: i32) -> (i32, i32) {
    %c0_i32 = arith.constant 0 : i32
    %c0_i32_0 = arith.constant 0 : i32
    %c0_i32_1 = arith.constant 0 : i32
    return %c0_i32, %c0_i32_0 : i32, i32
  }
  func.func @transform_6(%arg0: i32) -> (i32, i32) {
    %c0_i32 = arith.constant 0 : i32
    %c0_i32_0 = arith.constant 0 : i32
    return %arg0, %c0_i32 : i32, i32
  }
}

module attributes {stable_mosaic.version = 11 : i64} {
  func.func @_transition_kernel(%arg0: i32, %arg1: memref<1x4x1x128xbf16, #tpu.memory_space<vmem>>, %arg2: memref<1x1x128xf32, #tpu.memory_space<vmem>>, %arg3: memref<1x1x128xf32, #tpu.memory_space<vmem>>, %arg4: memref<128x128xbf16, #tpu.memory_space<vmem>>, %arg5: memref<1x1x128xbf16, #tpu.memory_space<vmem>>) attributes {dimension_semantics = [#tpu.dimension_semantics<parallel>], iteration_bounds = array<i64: 2>, scalar_prefetch = 0 : i64, scratch_operands = 0 : i64, tpu.core_type = #tpu.core_type<tc>, window_params = [{transform_indices = @transform_0, window_bounds = array<i64: 1, 4, 1, 128>}, {pipeline_mode = #tpu.pipeline_mode<synchronous>, transform_indices = @transform_1, window_bounds = array<i64: 1, 1, 128>}, {pipeline_mode = #tpu.pipeline_mode<synchronous>, transform_indices = @transform_2, window_bounds = array<i64: 1, 1, 128>}, {pipeline_mode = #tpu.pipeline_mode<synchronous>, transform_indices = @transform_3, window_bounds = array<i64: 128, 128>}, {transform_indices = @transform_4, window_bounds = array<i64: 1, 1, 128>}]} {
    %c0 = arith.constant 0 : index
    %c0_0 = arith.constant 0 : index
    %c0_1 = arith.constant 0 : index
    %c0_2 = arith.constant 0 : index
    %0 = vector.load %arg1[%c0, %c0_0, %c0_1, %c0_2] : memref<1x4x1x128xbf16, #tpu.memory_space<vmem>>, vector<1x4x1x128xbf16>
    %1 = vector.shape_cast %0 : vector<1x4x1x128xbf16> to vector<4x1x128xbf16>
    %2 = arith.extf %1 : vector<4x1x128xbf16> to vector<4x1x128xf32>
    %c0_3 = arith.constant 0 : index
    %c0_4 = arith.constant 0 : index
    %c0_5 = arith.constant 0 : index
    %3 = vector.load %arg2[%c0_3, %c0_4, %c0_5] : memref<1x1x128xf32, #tpu.memory_space<vmem>>, vector<1x1x128xf32>
    %4 = vector.broadcast %3 : vector<1x1x128xf32> to vector<4x1x128xf32>
    %5 = arith.mulf %2, %4 : vector<4x1x128xf32>
    %c0_6 = arith.constant 0 : index
    %c0_7 = arith.constant 0 : index
    %c0_8 = arith.constant 0 : index
    %6 = vector.load %arg3[%c0_6, %c0_7, %c0_8] : memref<1x1x128xf32, #tpu.memory_space<vmem>>, vector<1x1x128xf32>
    %7 = vector.broadcast %6 : vector<1x1x128xf32> to vector<4x1x128xf32>
    %8 = arith.addf %5, %7 : vector<4x1x128xf32>
    %cst = arith.constant 0.000000e+00 : f32
    %9 = vector.broadcast %cst : f32 to vector<4x1x128xf32>
    %10 = arith.maximumf %8, %9 : vector<4x1x128xf32>
    %cst_9 = arith.constant dense<0.000000e+00> : vector<1x128xf32>
    %11 = vector.multi_reduction <add>, %10, %cst_9 [0] : vector<4x1x128xf32> to vector<1x128xf32>
    %cst_10 = arith.constant 4.000000e+00 : f32
    %12 = vector.broadcast %cst_10 : f32 to vector<1x128xf32>
    %13 = arith.divf %11, %12 : vector<1x128xf32>
    %14 = arith.truncf %13 : vector<1x128xf32> to vector<1x128xbf16>
    %c0_11 = arith.constant 0 : index
    %c0_12 = arith.constant 0 : index
    %15 = vector.load %arg4[%c0_11, %c0_12] : memref<128x128xbf16, #tpu.memory_space<vmem>>, vector<128x128xbf16>
    %cst_13 = arith.constant dense<0.000000e+00> : vector<1x128xf32>
    %16 = tpu.matmul %14, %15, %cst_13 {dimension_numbers = #tpu.dot_dimension_numbers<[1], [0], [0], [1], [0, 0, 1, 1], [], []>} : vector<1x128xbf16>, vector<128x128xbf16>, vector<1x128xf32> -> vector<1x128xf32>
    %17 = arith.truncf %16 : vector<1x128xf32> to vector<1x128xbf16>
    %c0_14 = arith.constant 0 : index
    %c0_15 = arith.constant 0 : index
    %c0_16 = arith.constant 0 : index
    %18 = vector.load %arg5[%c0_14, %c0_15, %c0_16] : memref<1x1x128xbf16, #tpu.memory_space<vmem>>, vector<1x1x128xbf16>
    %19 = vector.shape_cast %18 : vector<1x1x128xbf16> to vector<1x128xbf16>
    %20 = vector.shape_cast %17 : vector<1x128xbf16> to vector<1x1x128xbf16>
    tpu.vector_store %arg5[%c0_14, %c0_15, %c0_16], %20 {strides = array<i32>} : memref<1x1x128xbf16, #tpu.memory_space<vmem>>, vector<1x1x128xbf16>,
    return
  }
  func.func @transform_0(%arg0: i32) -> (i32, i32, i32, i32) {
    %c0_i32 = arith.constant 0 : i32
    %c0_i32_0 = arith.constant 0 : i32
    %c0_i32_1 = arith.constant 0 : i32
    %c0_i32_2 = arith.constant 0 : i32
    return %arg0, %c0_i32, %c0_i32_0, %c0_i32_1 : i32, i32, i32, i32
  }
  func.func @transform_1(%arg0: i32) -> (i32, i32, i32) {
    %c0_i32 = arith.constant 0 : i32
    %c0_i32_0 = arith.constant 0 : i32
    %c0_i32_1 = arith.constant 0 : i32
    %c0_i32_2 = arith.constant 0 : i32
    return %c0_i32, %c0_i32_0, %c0_i32_1 : i32, i32, i32
  }
  func.func @transform_2(%arg0: i32) -> (i32, i32, i32) {
    %c0_i32 = arith.constant 0 : i32
    %c0_i32_0 = arith.constant 0 : i32
    %c0_i32_1 = arith.constant 0 : i32
    %c0_i32_2 = arith.constant 0 : i32
    return %c0_i32, %c0_i32_0, %c0_i32_1 : i32, i32, i32
  }
  func.func @transform_3(%arg0: i32) -> (i32, i32) {
    %c0_i32 = arith.constant 0 : i32
    %c0_i32_0 = arith.constant 0 : i32
    %c0_i32_1 = arith.constant 0 : i32
    return %c0_i32, %c0_i32_0 : i32, i32
  }
  func.func @transform_4(%arg0: i32) -> (i32, i32, i32) {
    %c0_i32 = arith.constant 0 : i32
    %c0_i32_0 = arith.constant 0 : i32
    %c0_i32_1 = arith.constant 0 : i32
    return %arg0, %c0_i32, %c0_i32_0 : i32, i32, i32
  }
}

module attributes {stable_mosaic.version = 11 : i64} {
  func.func @_bn_relu_mm_bn_relu_kernel(%arg0: i32, %arg1: memref<2x128xbf16, #tpu.memory_space<vmem>>, %arg2: memref<1x128xf32, #tpu.memory_space<vmem>>, %arg3: memref<1x128xf32, #tpu.memory_space<vmem>>, %arg4: memref<128x128xbf16, #tpu.memory_space<vmem>>, %arg5: memref<1x128xf32, #tpu.memory_space<vmem>>, %arg6: memref<1x128xf32, #tpu.memory_space<vmem>>, %arg7: memref<2x128xbf16, #tpu.memory_space<vmem>>) attributes {dimension_semantics = [#tpu.dimension_semantics<parallel>], iteration_bounds = array<i64: 1>, scalar_prefetch = 0 : i64, scratch_operands = 0 : i64, tpu.core_type = #tpu.core_type<tc>, window_params = [{transform_indices = @transform_0, window_bounds = array<i64: 2, 128>}, {pipeline_mode = #tpu.pipeline_mode<synchronous>, transform_indices = @transform_1, window_bounds = array<i64: 1, 128>}, {pipeline_mode = #tpu.pipeline_mode<synchronous>, transform_indices = @transform_2, window_bounds = array<i64: 1, 128>}, {pipeline_mode = #tpu.pipeline_mode<synchronous>, transform_indices = @transform_3, window_bounds = array<i64: 128, 128>}, {pipeline_mode = #tpu.pipeline_mode<synchronous>, transform_indices = @transform_4, window_bounds = array<i64: 1, 128>}, {pipeline_mode = #tpu.pipeline_mode<synchronous>, transform_indices = @transform_5, window_bounds = array<i64: 1, 128>}, {transform_indices = @transform_6, window_bounds = array<i64: 2, 128>}]} {
    %c0 = arith.constant 0 : index
    %c0_0 = arith.constant 0 : index
    %0 = vector.load %arg1[%c0, %c0_0] : memref<2x128xbf16, #tpu.memory_space<vmem>>, vector<2x128xbf16>
    %1 = arith.extf %0 : vector<2x128xbf16> to vector<2x128xf32>
    %c0_1 = arith.constant 0 : index
    %c0_2 = arith.constant 0 : index
    %2 = vector.load %arg2[%c0_1, %c0_2] : memref<1x128xf32, #tpu.memory_space<vmem>>, vector<1x128xf32>
    %3 = vector.broadcast %2 : vector<1x128xf32> to vector<2x128xf32>
    %4 = arith.mulf %1, %3 : vector<2x128xf32>
    %c0_3 = arith.constant 0 : index
    %c0_4 = arith.constant 0 : index
    %5 = vector.load %arg3[%c0_3, %c0_4] : memref<1x128xf32, #tpu.memory_space<vmem>>, vector<1x128xf32>
    %6 = vector.broadcast %5 : vector<1x128xf32> to vector<2x128xf32>
    %7 = arith.addf %4, %6 : vector<2x128xf32>
    %cst = arith.constant 0.000000e+00 : f32
    %8 = vector.broadcast %cst : f32 to vector<2x128xf32>
    %9 = arith.maximumf %7, %8 : vector<2x128xf32>
    %10 = arith.truncf %9 : vector<2x128xf32> to vector<2x128xbf16>
    %c0_5 = arith.constant 0 : index
    %c0_6 = arith.constant 0 : index
    %11 = vector.load %arg4[%c0_5, %c0_6] : memref<128x128xbf16, #tpu.memory_space<vmem>>, vector<128x128xbf16>
    %cst_7 = arith.constant dense<0.000000e+00> : vector<2x128xf32>
    %12 = tpu.matmul %10, %11, %cst_7 {dimension_numbers = #tpu.dot_dimension_numbers<[1], [0], [0], [1], [0, 0, 1, 1], [], []>} : vector<2x128xbf16>, vector<128x128xbf16>, vector<2x128xf32> -> vector<2x128xf32>
    %c0_8 = arith.constant 0 : index
    %c0_9 = arith.constant 0 : index
    %13 = vector.load %arg5[%c0_8, %c0_9] : memref<1x128xf32, #tpu.memory_space<vmem>>, vector<1x128xf32>
    %14 = vector.broadcast %13 : vector<1x128xf32> to vector<2x128xf32>
    %15 = arith.mulf %12, %14 : vector<2x128xf32>
    %c0_10 = arith.constant 0 : index
    %c0_11 = arith.constant 0 : index
    %16 = vector.load %arg6[%c0_10, %c0_11] : memref<1x128xf32, #tpu.memory_space<vmem>>, vector<1x128xf32>
    %17 = vector.broadcast %16 : vector<1x128xf32> to vector<2x128xf32>
    %18 = arith.addf %15, %17 : vector<2x128xf32>
    %cst_12 = arith.constant 0.000000e+00 : f32
    %19 = vector.broadcast %cst_12 : f32 to vector<2x128xf32>
    %20 = arith.maximumf %18, %19 : vector<2x128xf32>
    %21 = arith.truncf %20 : vector<2x128xf32> to vector<2x128xbf16>
    %c0_13 = arith.constant 0 : index
    %c0_14 = arith.constant 0 : index
    %22 = vector.load %arg7[%c0_13, %c0_14] : memref<2x128xbf16, #tpu.memory_space<vmem>>, vector<2x128xbf16>
    tpu.vector_store %arg7[%c0_13, %c0_14], %21 {strides = array<i32>} : memref<2x128xbf16, #tpu.memory_space<vmem>>, vector<2x128xbf16>,
    return
  }
  func.func @transform_0(%arg0: i32) -> (i32, i32) {
    %c0_i32 = arith.constant 0 : i32
    %c0_i32_0 = arith.constant 0 : i32
    return %arg0, %c0_i32 : i32, i32
  }
  func.func @transform_1(%arg0: i32) -> (i32, i32) {
    %c0_i32 = arith.constant 0 : i32
    %c0_i32_0 = arith.constant 0 : i32
    %c0_i32_1 = arith.constant 0 : i32
    return %c0_i32, %c0_i32_0 : i32, i32
  }
  func.func @transform_2(%arg0: i32) -> (i32, i32) {
    %c0_i32 = arith.constant 0 : i32
    %c0_i32_0 = arith.constant 0 : i32
    %c0_i32_1 = arith.constant 0 : i32
    return %c0_i32, %c0_i32_0 : i32, i32
  }
  func.func @transform_3(%arg0: i32) -> (i32, i32) {
    %c0_i32 = arith.constant 0 : i32
    %c0_i32_0 = arith.constant 0 : i32
    %c0_i32_1 = arith.constant 0 : i32
    return %c0_i32, %c0_i32_0 : i32, i32
  }
  func.func @transform_4(%arg0: i32) -> (i32, i32) {
    %c0_i32 = arith.constant 0 : i32
    %c0_i32_0 = arith.constant 0 : i32
    %c0_i32_1 = arith.constant 0 : i32
    return %c0_i32, %c0_i32_0 : i32, i32
  }
  func.func @transform_5(%arg0: i32) -> (i32, i32) {
    %c0_i32 = arith.constant 0 : i32
    %c0_i32_0 = arith.constant 0 : i32
    %c0_i32_1 = arith.constant 0 : i32
    return %c0_i32, %c0_i32_0 : i32, i32
  }
  func.func @transform_6(%arg0: i32) -> (i32, i32) {
    %c0_i32 = arith.constant 0 : i32
    %c0_i32_0 = arith.constant 0 : i32
    return %arg0, %c0_i32 : i32, i32
  }
}

module attributes {stable_mosaic.version = 11 : i64} {
  func.func @_conv3x3_res_kernel(%arg0: i32, %arg1: memref<1x32x128xbf16, #tpu.memory_space<vmem>>, %arg2: memref<1x1x128xbf16, #tpu.memory_space<vmem>>, %arg3: memref<9x128x128xbf16, #tpu.memory_space<vmem>>, %arg4: memref<1x1x128xbf16, #tpu.memory_space<vmem>>) attributes {dimension_semantics = [#tpu.dimension_semantics<parallel>], iteration_bounds = array<i64: 2>, scalar_prefetch = 0 : i64, scratch_operands = 0 : i64, tpu.core_type = #tpu.core_type<tc>, window_params = [{transform_indices = @transform_0, window_bounds = array<i64: 1, 32, 128>}, {transform_indices = @transform_1, window_bounds = array<i64: 1, 1, 128>}, {pipeline_mode = #tpu.pipeline_mode<synchronous>, transform_indices = @transform_2, window_bounds = array<i64: 9, 128, 128>}, {transform_indices = @transform_3, window_bounds = array<i64: 1, 1, 128>}]} {
    %cst = arith.constant 0.000000e+00 : f32
    %0 = vector.broadcast %cst : f32 to vector<8x128xf32>
    %c0 = arith.constant 0 : index
    %c0_0 = arith.constant 0 : index
    %c0_1 = arith.constant 0 : index
    %1 = vector.load %arg1[%c0, %c0_0, %c0_1] : memref<1x32x128xbf16, #tpu.memory_space<vmem>>, vector<1x8x128xbf16>
    %2 = vector.shape_cast %1 : vector<1x8x128xbf16> to vector<8x128xbf16>
    %c0_2 = arith.constant 0 : index
    %c0_3 = arith.constant 0 : index
    %c0_4 = arith.constant 0 : index
    %3 = vector.load %arg3[%c0_2, %c0_3, %c0_4] : memref<9x128x128xbf16, #tpu.memory_space<vmem>>, vector<1x128x128xbf16>
    %4 = vector.shape_cast %3 : vector<1x128x128xbf16> to vector<128x128xbf16>
    %cst_5 = arith.constant dense<0.000000e+00> : vector<8x128xf32>
    %5 = tpu.matmul %2, %4, %cst_5 {dimension_numbers = #tpu.dot_dimension_numbers<[1], [0], [0], [1], [0, 0, 1, 1], [], []>} : vector<8x128xbf16>, vector<128x128xbf16>, vector<8x128xf32> -> vector<8x128xf32>
    %6 = arith.addf %0, %5 : vector<8x128xf32>
    %c0_6 = arith.constant 0 : index
    %c1 = arith.constant 1 : index
    %c0_7 = arith.constant 0 : index
    %7 = vector.load %arg1[%c0_6, %c1, %c0_7] : memref<1x32x128xbf16, #tpu.memory_space<vmem>>, vector<1x8x128xbf16>
    %8 = vector.shape_cast %7 : vector<1x8x128xbf16> to vector<8x128xbf16>
    %c1_8 = arith.constant 1 : index
    %c0_9 = arith.constant 0 : index
    %c0_10 = arith.constant 0 : index
    %9 = vector.load %arg3[%c1_8, %c0_9, %c0_10] : memref<9x128x128xbf16, #tpu.memory_space<vmem>>, vector<1x128x128xbf16>
    %10 = vector.shape_cast %9 : vector<1x128x128xbf16> to vector<128x128xbf16>
    %cst_11 = arith.constant dense<0.000000e+00> : vector<8x128xf32>
    %11 = tpu.matmul %8, %10, %cst_11 {dimension_numbers = #tpu.dot_dimension_numbers<[1], [0], [0], [1], [0, 0, 1, 1], [], []>} : vector<8x128xbf16>, vector<128x128xbf16>, vector<8x128xf32> -> vector<8x128xf32>
    %12 = arith.addf %6, %11 : vector<8x128xf32>
    %c0_12 = arith.constant 0 : index
    %c2 = arith.constant 2 : index
    %c0_13 = arith.constant 0 : index
    %13 = vector.load %arg1[%c0_12, %c2, %c0_13] : memref<1x32x128xbf16, #tpu.memory_space<vmem>>, vector<1x8x128xbf16>
    %14 = vector.shape_cast %13 : vector<1x8x128xbf16> to vector<8x128xbf16>
    %c2_14 = arith.constant 2 : index
    %c0_15 = arith.constant 0 : index
    %c0_16 = arith.constant 0 : index
    %15 = vector.load %arg3[%c2_14, %c0_15, %c0_16] : memref<9x128x128xbf16, #tpu.memory_space<vmem>>, vector<1x128x128xbf16>
    %16 = vector.shape_cast %15 : vector<1x128x128xbf16> to vector<128x128xbf16>
    %cst_17 = arith.constant dense<0.000000e+00> : vector<8x128xf32>
    %17 = tpu.matmul %14, %16, %cst_17 {dimension_numbers = #tpu.dot_dimension_numbers<[1], [0], [0], [1], [0, 0, 1, 1], [], []>} : vector<8x128xbf16>, vector<128x128xbf16>, vector<8x128xf32> -> vector<8x128xf32>
    %18 = arith.addf %12, %17 : vector<8x128xf32>
    %c0_18 = arith.constant 0 : index
    %c8 = arith.constant 8 : index
    %c0_19 = arith.constant 0 : index
    %19 = vector.load %arg1[%c0_18, %c8, %c0_19] : memref<1x32x128xbf16, #tpu.memory_space<vmem>>, vector<1x8x128xbf16>
    %20 = vector.shape_cast %19 : vector<1x8x128xbf16> to vector<8x128xbf16>
    %c3 = arith.constant 3 : index
    %c0_20 = arith.constant 0 : index
    %c0_21 = arith.constant 0 : index
    %21 = vector.load %arg3[%c3, %c0_20, %c0_21] : memref<9x128x128xbf16, #tpu.memory_space<vmem>>, vector<1x128x128xbf16>
    %22 = vector.shape_cast %21 : vector<1x128x128xbf16> to vector<128x128xbf16>
    %cst_22 = arith.constant dense<0.000000e+00> : vector<8x128xf32>
    %23 = tpu.matmul %20, %22, %cst_22 {dimension_numbers = #tpu.dot_dimension_numbers<[1], [0], [0], [1], [0, 0, 1, 1], [], []>} : vector<8x128xbf16>, vector<128x128xbf16>, vector<8x128xf32> -> vector<8x128xf32>
    %24 = arith.addf %18, %23 : vector<8x128xf32>
    %c0_23 = arith.constant 0 : index
    %c9 = arith.constant 9 : index
    %c0_24 = arith.constant 0 : index
    %25 = vector.load %arg1[%c0_23, %c9, %c0_24] : memref<1x32x128xbf16, #tpu.memory_space<vmem>>, vector<1x8x128xbf16>
    %26 = vector.shape_cast %25 : vector<1x8x128xbf16> to vector<8x128xbf16>
    %c4 = arith.constant 4 : index
    %c0_25 = arith.constant 0 : index
    %c0_26 = arith.constant 0 : index
    %27 = vector.load %arg3[%c4, %c0_25, %c0_26] : memref<9x128x128xbf16, #tpu.memory_space<vmem>>, vector<1x128x128xbf16>
    %28 = vector.shape_cast %27 : vector<1x128x128xbf16> to vector<128x128xbf16>
    %cst_27 = arith.constant dense<0.000000e+00> : vector<8x128xf32>
    %29 = tpu.matmul %26, %28, %cst_27 {dimension_numbers = #tpu.dot_dimension_numbers<[1], [0], [0], [1], [0, 0, 1, 1], [], []>} : vector<8x128xbf16>, vector<128x128xbf16>, vector<8x128xf32> -> vector<8x128xf32>
    %30 = arith.addf %24, %29 : vector<8x128xf32>
    %c0_28 = arith.constant 0 : index
    %c10 = arith.constant 10 : index
    %c0_29 = arith.constant 0 : index
    %31 = vector.load %arg1[%c0_28, %c10, %c0_29] : memref<1x32x128xbf16, #tpu.memory_space<vmem>>, vector<1x8x128xbf16>
    %32 = vector.shape_cast %31 : vector<1x8x128xbf16> to vector<8x128xbf16>
    %c5 = arith.constant 5 : index
    %c0_30 = arith.constant 0 : index
    %c0_31 = arith.constant 0 : index
    %33 = vector.load %arg3[%c5, %c0_30, %c0_31] : memref<9x128x128xbf16, #tpu.memory_space<vmem>>, vector<1x128x128xbf16>
    %34 = vector.shape_cast %33 : vector<1x128x128xbf16> to vector<128x128xbf16>
    %cst_32 = arith.constant dense<0.000000e+00> : vector<8x128xf32>
    %35 = tpu.matmul %32, %34, %cst_32 {dimension_numbers = #tpu.dot_dimension_numbers<[1], [0], [0], [1], [0, 0, 1, 1], [], []>} : vector<8x128xbf16>, vector<128x128xbf16>, vector<8x128xf32> -> vector<8x128xf32>
    %36 = arith.addf %30, %35 : vector<8x128xf32>
    %c0_33 = arith.constant 0 : index
    %c16 = arith.constant 16 : index
    %c0_34 = arith.constant 0 : index
    %37 = vector.load %arg1[%c0_33, %c16, %c0_34] : memref<1x32x128xbf16, #tpu.memory_space<vmem>>, vector<1x8x128xbf16>
    %38 = vector.shape_cast %37 : vector<1x8x128xbf16> to vector<8x128xbf16>
    %c6 = arith.constant 6 : index
    %c0_35 = arith.constant 0 : index
    %c0_36 = arith.constant 0 : index
    %39 = vector.load %arg3[%c6, %c0_35, %c0_36] : memref<9x128x128xbf16, #tpu.memory_space<vmem>>, vector<1x128x128xbf16>
    %40 = vector.shape_cast %39 : vector<1x128x128xbf16> to vector<128x128xbf16>
    %cst_37 = arith.constant dense<0.000000e+00> : vector<8x128xf32>
    %41 = tpu.matmul %38, %40, %cst_37 {dimension_numbers = #tpu.dot_dimension_numbers<[1], [0], [0], [1], [0, 0, 1, 1], [], []>} : vector<8x128xbf16>, vector<128x128xbf16>, vector<8x128xf32> -> vector<8x128xf32>
    %42 = arith.addf %36, %41 : vector<8x128xf32>
    %c0_38 = arith.constant 0 : index
    %c17 = arith.constant 17 : index
    %c0_39 = arith.constant 0 : index
    %43 = vector.load %arg1[%c0_38, %c17, %c0_39] : memref<1x32x128xbf16, #tpu.memory_space<vmem>>, vector<1x8x128xbf16>
    %44 = vector.shape_cast %43 : vector<1x8x128xbf16> to vector<8x128xbf16>
    %c7 = arith.constant 7 : index
    %c0_40 = arith.constant 0 : index
    %c0_41 = arith.constant 0 : index
    %45 = vector.load %arg3[%c7, %c0_40, %c0_41] : memref<9x128x128xbf16, #tpu.memory_space<vmem>>, vector<1x128x128xbf16>
    %46 = vector.shape_cast %45 : vector<1x128x128xbf16> to vector<128x128xbf16>
    %cst_42 = arith.constant dense<0.000000e+00> : vector<8x128xf32>
    %47 = tpu.matmul %44, %46, %cst_42 {dimension_numbers = #tpu.dot_dimension_numbers<[1], [0], [0], [1], [0, 0, 1, 1], [], []>} : vector<8x128xbf16>, vector<128x128xbf16>, vector<8x128xf32> -> vector<8x128xf32>
    %48 = arith.addf %42, %47 : vector<8x128xf32>
    %c0_43 = arith.constant 0 : index
    %c18 = arith.constant 18 : index
    %c0_44 = arith.constant 0 : index
    %49 = vector.load %arg1[%c0_43, %c18, %c0_44] : memref<1x32x128xbf16, #tpu.memory_space<vmem>>, vector<1x8x128xbf16>
    %50 = vector.shape_cast %49 : vector<1x8x128xbf16> to vector<8x128xbf16>
    %c8_45 = arith.constant 8 : index
    %c0_46 = arith.constant 0 : index
    %c0_47 = arith.constant 0 : index
    %51 = vector.load %arg3[%c8_45, %c0_46, %c0_47] : memref<9x128x128xbf16, #tpu.memory_space<vmem>>, vector<1x128x128xbf16>
    %52 = vector.shape_cast %51 : vector<1x128x128xbf16> to vector<128x128xbf16>
    %cst_48 = arith.constant dense<0.000000e+00> : vector<8x128xf32>
    %53 = tpu.matmul %50, %52, %cst_48 {dimension_numbers = #tpu.dot_dimension_numbers<[1], [0], [0], [1], [0, 0, 1, 1], [], []>} : vector<8x128xbf16>, vector<128x128xbf16>, vector<8x128xf32> -> vector<8x128xf32>
    %54 = arith.addf %48, %53 : vector<8x128xf32>
    %c0_49 = arith.constant 0 : index
    %c0_50 = arith.constant 0 : index
    %c0_51 = arith.constant 0 : index
    %55 = vector.load %arg2[%c0_49, %c0_50, %c0_51] : memref<1x1x128xbf16, #tpu.memory_space<vmem>>, vector<1x1x128xbf16>
    %56 = vector.shape_cast %55 : vector<1x1x128xbf16> to vector<1x128xbf16>
    %57 = arith.extf %56 : vector<1x128xbf16> to vector<1x128xf32>
    %58 = vector.extract_strided_slice %54 {offsets = [0, 0], sizes = [1, 128], strides = [1, 1]} : vector<8x128xf32> to vector<1x128xf32>
    %59 = arith.addf %58, %57 : vector<1x128xf32>
    %60 = arith.truncf %59 : vector<1x128xf32> to vector<1x128xbf16>
    %c0_52 = arith.constant 0 : index
    %c0_53 = arith.constant 0 : index
    %c0_54 = arith.constant 0 : index
    %61 = vector.load %arg4[%c0_52, %c0_53, %c0_54] : memref<1x1x128xbf16, #tpu.memory_space<vmem>>, vector<1x1x128xbf16>
    %62 = vector.shape_cast %61 : vector<1x1x128xbf16> to vector<1x128xbf16>
    %63 = vector.shape_cast %60 : vector<1x128xbf16> to vector<1x1x128xbf16>
    tpu.vector_store %arg4[%c0_52, %c0_53, %c0_54], %63 {strides = array<i32>} : memref<1x1x128xbf16, #tpu.memory_space<vmem>>, vector<1x1x128xbf16>,
    return
  }
  func.func @transform_0(%arg0: i32) -> (i32, i32, i32) {
    %c0_i32 = arith.constant 0 : i32
    %c0_i32_0 = arith.constant 0 : i32
    %c0_i32_1 = arith.constant 0 : i32
    return %arg0, %c0_i32, %c0_i32_0 : i32, i32, i32
  }
  func.func @transform_1(%arg0: i32) -> (i32, i32, i32) {
    %c0_i32 = arith.constant 0 : i32
    %c0_i32_0 = arith.constant 0 : i32
    %c0_i32_1 = arith.constant 0 : i32
    return %arg0, %c0_i32, %c0_i32_0 : i32, i32, i32
  }
  func.func @transform_2(%arg0: i32) -> (i32, i32, i32) {
    %c0_i32 = arith.constant 0 : i32
    %c0_i32_0 = arith.constant 0 : i32
    %c0_i32_1 = arith.constant 0 : i32
    %c0_i32_2 = arith.constant 0 : i32
    return %c0_i32, %c0_i32_0, %c0_i32_1 : i32, i32, i32
  }
  func.func @transform_3(%arg0: i32) -> (i32, i32, i32) {
    %c0_i32 = arith.constant 0 : i32
    %c0_i32_0 = arith.constant 0 : i32
    %c0_i32_1 = arith.constant 0 : i32
    return %arg0, %c0_i32, %c0_i32_0 : i32, i32, i32
  }
}

module attributes {stable_mosaic.version = 11 : i64} {
  func.func @_head_kernel(%arg0: memref<2x1x128xbf16, #tpu.memory_space<vmem>>, %arg1: memref<1x1x128xf32, #tpu.memory_space<vmem>>, %arg2: memref<1x1x128xf32, #tpu.memory_space<vmem>>, %arg3: memref<128x10xf32, #tpu.memory_space<vmem>>, %arg4: memref<1x10xf32, #tpu.memory_space<vmem>>, %arg5: memref<2x10xf32, #tpu.memory_space<vmem>>) attributes {dimension_semantics = [], scalar_prefetch = 0 : i64, scratch_operands = 0 : i64, tpu.core_type = #tpu.core_type<tc>} {
    %c0 = arith.constant 0 : index
    %c0_0 = arith.constant 0 : index
    %c0_1 = arith.constant 0 : index
    %0 = vector.load %arg0[%c0, %c0_0, %c0_1] : memref<2x1x128xbf16, #tpu.memory_space<vmem>>, vector<2x1x128xbf16>
    %1 = arith.extf %0 : vector<2x1x128xbf16> to vector<2x1x128xf32>
    %c0_2 = arith.constant 0 : index
    %c0_3 = arith.constant 0 : index
    %c0_4 = arith.constant 0 : index
    %2 = vector.load %arg1[%c0_2, %c0_3, %c0_4] : memref<1x1x128xf32, #tpu.memory_space<vmem>>, vector<1x1x128xf32>
    %3 = vector.broadcast %2 : vector<1x1x128xf32> to vector<2x1x128xf32>
    %4 = arith.mulf %1, %3 : vector<2x1x128xf32>
    %c0_5 = arith.constant 0 : index
    %c0_6 = arith.constant 0 : index
    %c0_7 = arith.constant 0 : index
    %5 = vector.load %arg2[%c0_5, %c0_6, %c0_7] : memref<1x1x128xf32, #tpu.memory_space<vmem>>, vector<1x1x128xf32>
    %6 = vector.broadcast %5 : vector<1x1x128xf32> to vector<2x1x128xf32>
    %7 = arith.addf %4, %6 : vector<2x1x128xf32>
    %cst = arith.constant 0.000000e+00 : f32
    %8 = vector.broadcast %cst : f32 to vector<2x1x128xf32>
    %9 = arith.maximumf %7, %8 : vector<2x1x128xf32>
    %cst_8 = arith.constant dense<0.000000e+00> : vector<2x128xf32>
    %10 = vector.multi_reduction <add>, %9, %cst_8 [1] : vector<2x1x128xf32> to vector<2x128xf32>
    %cst_9 = arith.constant 1.000000e+00 : f32
    %11 = vector.broadcast %cst_9 : f32 to vector<2x128xf32>
    %12 = arith.divf %10, %11 : vector<2x128xf32>
    %c0_10 = arith.constant 0 : index
    %c0_11 = arith.constant 0 : index
    %13 = vector.load %arg3[%c0_10, %c0_11] : memref<128x10xf32, #tpu.memory_space<vmem>>, vector<128x10xf32>
    %cst_12 = arith.constant dense<0.000000e+00> : vector<2x10xf32>
    %14 = tpu.matmul %12, %13, %cst_12 {dimension_numbers = #tpu.dot_dimension_numbers<[1], [0], [0], [1], [0, 0, 1, 1], [], []>} : vector<2x128xf32>, vector<128x10xf32>, vector<2x10xf32> -> vector<2x10xf32>
    %c0_13 = arith.constant 0 : index
    %c0_14 = arith.constant 0 : index
    %15 = vector.load %arg4[%c0_13, %c0_14] : memref<1x10xf32, #tpu.memory_space<vmem>>, vector<1x10xf32>
    %16 = vector.broadcast %15 : vector<1x10xf32> to vector<2x10xf32>
    %17 = arith.addf %14, %16 : vector<2x10xf32>
    %c0_15 = arith.constant 0 : index
    %c0_16 = arith.constant 0 : index
    %18 = vector.load %arg5[%c0_15, %c0_16] : memref<2x10xf32, #tpu.memory_space<vmem>>, vector<2x10xf32>
    tpu.vector_store %arg5[%c0_15, %c0_16], %17 {strides = array<i32>} : memref<2x10xf32, #tpu.memory_space<vmem>>, vector<2x10xf32>,
    return
  }
}

</mosaic_0001>

<bundles_post_ra>
// kernel: densenet_forward.22
= control target key start
LH: loop header
LB: loop body
LE: loop exit
PB: predicated region body
PF: predicated region fallthrough
CT: control target
= control target key end

     0   :  { %s1355_s15 = smov 0   ;;  %s1548_s0 = inlined_call_operand.vmem [shape: bf16[512,147], index: 0, kind: input, shape index: {}]   ;;  %s1549_s1 = inlined_call_operand.vmem [shape: bf16[147,128], index: 1, kind: input, shape index: {}]   ;;  %s1550_s2 = inlined_call_operand.vmem [shape: f32[1,128], index: 2, kind: input, shape index: {}]   ;;  %s1551_s3 = inlined_call_operand.vmem [shape: f32[1,128], index: 3, kind: input, shape index: {}]   ;;  %s1552_s4 = inlined_call_operand.vmem [shape: bf16[512,128], index: 4, kind: output, shape index: {}]  }
   0x1 LB: > { %s1000_s16 = sadd.s32 4294967295, %s1326_s15   ;;  %p1004_p0 = scmp.ge.s32.totalorder %s1326_s15, 1  ;;  %s1326_s15 = sphi %s1355_s15, %s14_s15  }
   0x2   : > { %p164_p1 = scmp.lt.s32.totalorder %s1326_s15, 3 }
   0x4   : > { %p165_p2 = pnand %p1004_p0, %p164_p1 }
   0x5   : > { %s1005_s23 = sshll.u32 (!%p165_p2), %s1000_s16, 5 }
   0x6   : > { %168 = sbr.rel (%p165_p2) target bundleno = 314 (0x13a), region = 36  ;;  %p192_p3 = scmp.lt.s32.totalorder (!%p165_p2), %s1005_s23, 63 }
   0xb   : > { %v1262_v0 = vld [vmem:[%s1549_s1 + $0x38] sm:$0xff]   ;;  %v1328_v1 = vmov 0   ;;  %v1263_v2 = vld [vmem:[%s1549_s1 + $0x30] sm:$0xff]   ;;  %v1264_v3 = vld [vmem:[%s1549_s1 + $0x28] sm:$0xff]   ;;  %s1554_s23 = smov (!%p192_p3, %s1005_s23), 63  ;;  %vm457_vm0 = vcmask 154624  }
   0xc   : > { %513 = vmatprep.subr.bf16.mxu0 %v1328_v1  ;;  %1232 = vmatprep.subr.bf16.mxu1 %v1328_v1  ;;  %v1265_v4 = vld [vmem:[%s1549_s1 + $0x20] sm:$0xff]   ;;  %s1104_s26 = sshll.u32 %s1554_s23, 3  ;;  %v1266_v5 = vld [vmem:[%s1549_s1 + $0x18] sm:$0xff]   ;;  %v1267_v8 = vld [vmem:[%s1549_s1 + $0x10] sm:$0xff]   ;;  %vm506_vm1 = vcmask 1040384   ;;  %vm507_vm2 = vcmask 1041408  }
   0xd   : > { %514 = vmatpush1.bf16.msra.mxu0 %v1262_v0  ;;  %1242 = vmatpush1.bf16.msra.mxu1 %v1262_v0  ;;  %s1381_s29 = scalar_lea.vmem %s1548_s0, %s1104_s26  ;;  %v1268_v9 = vld [vmem:[%s1549_s1 + $0x8] sm:$0xff]   ;;  %v1329_v10 = vmov 65535   ;;  %v1269_v12 = vld [vmem:[%s1549_s1] sm:$0xff]   ;;  %s1009_s21 = sshll.u32 %s1554_s23, 2 }
   0xe   : > { %515 = vmatprep.subr.bf16.mxu0 %v1328_v1  ;;  %1233 = vmatprep.subr.bf16.mxu1 %v1328_v1  ;;  %v1274_v6 = vld [vmem:[%s1381_s29 + $0x4] ss:$8 sps:$4 sm:$0xff]   ;;  %v508_v11 = vsel %vm506_vm1, 4294967295, %v1329_v10  ;;  %v1270_v13 = vld [vmem:[%s1549_s1 + $0x48] ss:$0 sps:$4 sm:$0x33]   ;;  %s1473_s25 = scalar_lea.vmem %s1552_s4, %s1009_s21 }
   0xf   : > { %v1277_v7 = vld [vmem:[%s1381_s29 + $0x84] ss:$8 sps:$4 sm:$0xff]   ;;  %1052 = vmatprep.mubr.msk.bf16.mxu0 %vm457_vm0, %v1274_v6  ;;  %v509_v14 = vsel %vm507_vm2, %v508_v11, 0  ;;  %v1272_v17 = vld [vmem:[%s1381_s29] ss:$8 sps:$4 sm:$0xff]  }
  0x10   : > { %1060 = vmatprep.mubr.msk.bf16.mxu1 %vm457_vm0, %v1277_v7  ;;  %v511_v15 = vand.u32 %v1270_v13, %v509_v14  ;;  %v1271_v16 = vld [vmem:[%s1549_s1 + $0x40] sm:$0xff]   ;;  %v1278_v19 = vld [vmem:[%s1381_s29 + $0x14] ss:$8 sps:$4 sm:$0xff]   ;;  %v1282_v21 = vld [vmem:[%s1381_s29 + $0x10] ss:$8 sps:$4 sm:$0xff]  }
  0x11   : > { %516 = vmatpush1.bf16.msra.mxu0 %v1263_v2  ;;  %1243 = vmatpush1.bf16.msra.mxu1 %v1263_v2  ;;  %v1275_v18 = vld [vmem:[%s1381_s29 + $0x80] ss:$8 sps:$4 sm:$0xff]   ;;  %v1280_v20 = vld [vmem:[%s1381_s29 + $0x94] ss:$8 sps:$4 sm:$0xff]   ;;  %v1283_v22 = vld [vmem:[%s1381_s29 + $0x90] ss:$8 sps:$4 sm:$0xff]  }
  0x12   : > { %517 = vmatprep.subr.bf16.mxu0 %v1328_v1  ;;  %1234 = vmatprep.subr.bf16.mxu1 %v1328_v1  ;;  %v1284_v23 = vld [vmem:[%s1381_s29 + $0x24] ss:$8 sps:$4 sm:$0xff]   ;;  %v1288_v25 = vld [vmem:[%s1381_s29 + $0x20] ss:$8 sps:$4 sm:$0xff]   ;;  %v1290_v27 = vld [vmem:[%s1381_s29 + $0x34] ss:$8 sps:$4 sm:$0xff]  }
  0x13   : > { %v1286_v24 = vld [vmem:[%s1381_s29 + $0xa4] ss:$8 sps:$4 sm:$0xff]   ;;  %v1289_v26 = vld [vmem:[%s1381_s29 + $0xa0] ss:$8 sps:$4 sm:$0xff]   ;;  %v1292_v28 = vld [vmem:[%s1381_s29 + $0xb4] ss:$8 sps:$4 sm:$0xff]  }
  0x14   : > { %v1294_v29 = vld [vmem:[%s1381_s29 + $0x30] ss:$8 sps:$4 sm:$0xff]   ;;  %v1296_v31 = vld [vmem:[%s1381_s29 + $0x44] ss:$8 sps:$4 sm:$0xff]   ;;  %v1300_v33 = vld [vmem:[%s1381_s29 + $0x40] ss:$8 sps:$4 sm:$0xff]  }
  0x15   : > { %518 = vmatpush1.bf16.msra.mxu0 %v1264_v3  ;;  %1244 = vmatpush1.bf16.msra.mxu1 %v1264_v3  ;;  %v1295_v30 = vld [vmem:[%s1381_s29 + $0xb0] ss:$8 sps:$4 sm:$0xff]   ;;  %v1298_v32 = vld [vmem:[%s1381_s29 + $0xc4] ss:$8 sps:$4 sm:$0xff]   ;;  %v1301_v34 = vld [vmem:[%s1381_s29 + $0xc0] ss:$8 sps:$4 sm:$0xff]  }
  0x16   : > { %519 = vmatprep.subr.bf16.mxu0 %v1328_v1  ;;  %1235 = vmatprep.subr.bf16.mxu1 %v1328_v1  ;;  %v1302_v35 = vld [vmem:[%s1381_s29 + $0x54] ss:$8 sps:$4 sm:$0xff]   ;;  %v1306_v37 = vld [vmem:[%s1381_s29 + $0x50] ss:$8 sps:$4 sm:$0xff]   ;;  %v1308_v39 = vld [vmem:[%s1381_s29 + $0x64] ss:$8 sps:$4 sm:$0xff]  }
  0x17   : > { %v1304_v36 = vld [vmem:[%s1381_s29 + $0xd4] ss:$8 sps:$4 sm:$0xff]   ;;  %v1307_v38 = vld [vmem:[%s1381_s29 + $0xd0] ss:$8 sps:$4 sm:$0xff]   ;;  %v1310_v40 = vld [vmem:[%s1381_s29 + $0xe4] ss:$8 sps:$4 sm:$0xff]  }
  0x18   : > { %v1312_v41 = vld [vmem:[%s1381_s29 + $0x60] ss:$8 sps:$4 sm:$0xff]   ;;  %v1314_v43 = vld [vmem:[%s1381_s29 + $0x74] ss:$8 sps:$4 sm:$0xff]   ;;  %v1318_v45 = vld [vmem:[%s1381_s29 + $0x70] ss:$8 sps:$4 sm:$0xff]  }
  0x19   : > { %520 = vmatpush1.bf16.msra.mxu0 %v1265_v4  ;;  %1245 = vmatpush1.bf16.msra.mxu1 %v1265_v4  ;;  %v1313_v42 = vld [vmem:[%s1381_s29 + $0xe0] ss:$8 sps:$4 sm:$0xff]   ;;  %v1316_v44 = vld [vmem:[%s1381_s29 + $0xf4] ss:$8 sps:$4 sm:$0xff]   ;;  %v1319_v46 = vld [vmem:[%s1381_s29 + $0xf0] ss:$8 sps:$4 sm:$0xff]  }
  0x1a   : > { %521 = vmatprep.subr.bf16.mxu0 %v1328_v1  ;;  %1236 = vmatprep.subr.bf16.mxu1 %v1328_v1  ;;  %v1452_v47 = vld [vmem:[%s1550_s2] ss:$0 sm:$0xff] }
  0x1b   : > { %v1458_v51 = vld [vmem:[%s1551_s3] ss:$0 sm:$0xff] }
  0x1d   : > { %522 = vmatpush1.bf16.msra.mxu0 %v1266_v5  ;;  %1246 = vmatpush1.bf16.msra.mxu1 %v1266_v5 }
  0x1e   : > { %523 = vmatprep.subr.bf16.mxu0 %v1328_v1  ;;  %1237 = vmatprep.subr.bf16.mxu1 %v1328_v1 }
  0x21   : > { %524 = vmatpush1.bf16.msra.mxu0 %v1267_v8  ;;  %1247 = vmatpush1.bf16.msra.mxu1 %v1267_v8 }
  0x22   : > { %525 = vmatprep.subr.bf16.mxu0 %v1328_v1  ;;  %1238 = vmatprep.subr.bf16.mxu1 %v1328_v1 }
  0x25   : > { %526 = vmatpush1.bf16.msra.mxu0 %v1268_v9  ;;  %1248 = vmatpush1.bf16.msra.mxu1 %v1268_v9 }
  0x26   : > { %527 = vmatprep.subr.bf16.mxu0 %v1328_v1  ;;  %1239 = vmatprep.subr.bf16.mxu1 %v1328_v1 }
  0x29   : > { %528 = vmatpush1.bf16.msra.mxu0 %v1269_v12  ;;  %1249 = vmatpush1.bf16.msra.mxu1 %v1269_v12 }
  0x2a   : > { %541 = vmatprep.subr.bf16.mxu0 %v1328_v1  ;;  %1240 = vmatprep.subr.bf16.mxu1 %v1328_v1 }
  0x2d   : > { %542 = vmatpush2.bf16.msra.mxu0 %v511_v15  ;;  %1250 = vmatpush2.bf16.msra.mxu1 %v511_v15 }
  0x2e   : > { %543 = vmatprep.subr.bf16.mxu0 %v1328_v1  ;;  %1241 = vmatprep.subr.bf16.mxu1 %v1328_v1 }
  0x31   : > { %544 = vmatpush2.bf16.msra.mxu0 %v1271_v16  ;;  %1251 = vmatpush2.bf16.msra.mxu1 %v1271_v16 }
  0x34   : > { %546 = vmatmul.mubr.bf16.vlgmr.msra.gmra.mxu0 %v1272_v17  ;;  %610 = vmatmul.mubr.bf16.vlgmr.msra.gmra.mxu1 %v1275_v18 }
  0x35   : > { %1053 = vmatprep.mubr.msk.bf16.mxu0 %vm457_vm0, %v1278_v19  ;;  %1061 = vmatprep.mubr.msk.bf16.mxu1 %vm457_vm0, %v1280_v20 }
  0x3c   : > { %554 = vmatmul.mubr.bf16.gmra.mxu0 %v1282_v21  ;;  %618 = vmatmul.mubr.bf16.gmra.mxu1 %v1283_v22 }
  0x3d   : > { %1054 = vmatprep.mubr.msk.bf16.mxu0 %vm457_vm0, %v1284_v23  ;;  %1062 = vmatprep.mubr.msk.bf16.mxu1 %vm457_vm0, %v1286_v24 }
  0x44   : > { %562 = vmatmul.mubr.bf16.gmra.mxu0 %v1288_v25  ;;  %626 = vmatmul.mubr.bf16.gmra.mxu1 %v1289_v26 }
  0x45   : > { %1055 = vmatprep.mubr.msk.bf16.mxu0 %vm457_vm0, %v1290_v27  ;;  %1063 = vmatprep.mubr.msk.bf16.mxu1 %vm457_vm0, %v1292_v28 }
  0x4c   : > { %570 = vmatmul.mubr.bf16.gmra.mxu0 %v1294_v29  ;;  %634 = vmatmul.mubr.bf16.gmra.mxu1 %v1295_v30 }
  0x4d   : > { %1056 = vmatprep.mubr.msk.bf16.mxu0 %vm457_vm0, %v1296_v31  ;;  %1064 = vmatprep.mubr.msk.bf16.mxu1 %vm457_vm0, %v1298_v32 }
  0x54   : > { %578 = vmatmul.mubr.bf16.gmra.mxu0 %v1300_v33  ;;  %642 = vmatmul.mubr.bf16.gmra.mxu1 %v1301_v34 }
  0x55   : > { %1057 = vmatprep.mubr.msk.bf16.mxu0 %vm457_vm0, %v1302_v35  ;;  %1065 = vmatprep.mubr.msk.bf16.mxu1 %vm457_vm0, %v1304_v36 }
  0x5c   : > { %586 = vmatmul.mubr.bf16.gmra.mxu0 %v1306_v37  ;;  %650 = vmatmul.mubr.bf16.gmra.mxu1 %v1307_v38 }
  0x5d   : > { %1058 = vmatprep.mubr.msk.bf16.mxu0 %vm457_vm0, %v1308_v39  ;;  %1066 = vmatprep.mubr.msk.bf16.mxu1 %vm457_vm0, %v1310_v40 }
  0x64   : > { %594 = vmatmul.mubr.bf16.gmra.mxu0 %v1312_v41  ;;  %658 = vmatmul.mubr.bf16.gmra.mxu1 %v1313_v42 }
  0x65   : > { %1059 = vmatprep.mubr.msk.bf16.mxu0 %vm457_vm0, %v1314_v43  ;;  %1067 = vmatprep.mubr.msk.bf16.mxu1 %vm457_vm0, %v1316_v44 }
  0x6c   : > { %602 = vmatmul.mubr.bf16.gmra.mxu0 %v1318_v45  ;;  %666 = vmatmul.mubr.bf16.gmra.mxu1 %v1319_v46 }
  0xf4   : > { %v547_v48 = vpop.f32.mrf.mxu0  ;;  %v611_v49 = vpop.f32.mrf.mxu1 }
  0xf5   : > { %v681_v50 = vmul.f32 %v1452_v47, %v547_v48  ;;  %v697_v52 = vmul.f32 %v1452_v47, %v611_v49 }
  0xf6   : > { %v549_v53 = vpop.f32.mrf.mxu0  ;;  %v613_v54 = vpop.f32.mrf.mxu1 }
  0xf7   : > { %v720_v55 = vadd.f32 %v1458_v51, %v681_v50  ;;  %v736_v56 = vadd.f32 %v1458_v51, %v697_v52 }
  0xf8   : > { %v550_v57 = vpop.f32.mrf.mxu0  ;;  %v614_v58 = vpop.f32.mrf.mxu1 }
  0xf9   : > { %v682_v59 = vmul.f32 %v1452_v47, %v550_v57  ;;  %v698_v60 = vmul.f32 %v1452_v47, %v614_v58  ;;  %v752_v1 = vmax.f32 %v720_v55, 0.0  ;;  %v768_v2 = vmax.f32 %v736_v56, 0.0 }
  0xfa   : > { %v552_v61 = vpop.f32.mrf.mxu0  ;;  %v616_v62 = vpop.f32.mrf.mxu1 }
  0xfb   : > { %v721_v63 = vadd.f32 %v1458_v51, %v682_v59  ;;  %v737_v0 = vadd.f32 %v1458_v51, %v698_v60 }
  0xfc   : > { %v555_v3 = vpop.f32.mrf.mxu0  ;;  %v619_v4 = vpop.f32.mrf.mxu1 }
  0xfd   : > { %v753_v5 = vmax.f32 %v721_v63, 0.0  ;;  %v769_v6 = vmax.f32 %v737_v0, 0.0  ;;  %v683_v7 = vmul.f32 %v1452_v47, %v555_v3  ;;  %v699_v8 = vmul.f32 %v1452_v47, %v619_v4 }
  0xfe   : > { %v557_v9 = vpop.f32.mrf.mxu0  ;;  %v621_v10 = vpop.f32.mrf.mxu1 }
  0xff   : > { %v1140_v11 = vpack.c.bf16 %v753_v5, %v752_v1  ;;  %v1180_v12 = vpack.c.bf16 %v769_v6, %v768_v2  ;;  %v722_v13 = vadd.f32 %v1458_v51, %v683_v7  ;;  %v738_v14 = vadd.f32 %v1458_v51, %v699_v8 }
 0x100   : > { %v558_v15 = vpop.f32.mrf.mxu0  ;;  %v622_v16 = vpop.f32.mrf.mxu1 }
 0x101   : > { %1141 = vst [vmem:[%s1473_s25] sm:$0xff] %v1140_v11   ;;  %1224 = vst [vmem:[%s1473_s25 + $0x40] sm:$0xff] %v1180_v12   ;;  %v684_v17 = vmul.f32 %v1452_v47, %v558_v15  ;;  %v700_v18 = vmul.f32 %v1452_v47, %v622_v16  ;;  %v754_v23 = vmax.f32 %v722_v13, 0.0  ;;  %v770_v24 = vmax.f32 %v738_v14, 0.0 }
 0x102   : > { %v560_v19 = vpop.f32.mrf.mxu0  ;;  %v624_v20 = vpop.f32.mrf.mxu1 }
 0x103   : > { %v723_v21 = vadd.f32 %v1458_v51, %v684_v17  ;;  %v739_v22 = vadd.f32 %v1458_v51, %v700_v18 }
 0x104   : > { %v563_v25 = vpop.f32.mrf.mxu0  ;;  %v627_v26 = vpop.f32.mrf.mxu1 }
 0x105   : > { %v755_v27 = vmax.f32 %v723_v21, 0.0  ;;  %v771_v28 = vmax.f32 %v739_v22, 0.0  ;;  %v685_v29 = vmul.f32 %v1452_v47, %v563_v25  ;;  %v701_v30 = vmul.f32 %v1452_v47, %v627_v26 }
 0x106   : > { %v565_v31 = vpop.f32.mrf.mxu0  ;;  %v629_v32 = vpop.f32.mrf.mxu1 }
 0x107   : > { %v1145_v33 = vpack.c.bf16 %v755_v27, %v754_v23  ;;  %v1185_v34 = vpack.c.bf16 %v771_v28, %v770_v24  ;;  %v724_v35 = vadd.f32 %v1458_v51, %v685_v29  ;;  %v740_v36 = vadd.f32 %v1458_v51, %v701_v30 }
 0x108   : > { %v566_v37 = vpop.f32.mrf.mxu0  ;;  %v630_v38 = vpop.f32.mrf.mxu1 }
 0x109   : > { %1217 = vst [vmem:[%s1473_s25 + $0x8] sm:$0xff] %v1145_v33   ;;  %1225 = vst [vmem:[%s1473_s25 + $0x48] sm:$0xff] %v1185_v34   ;;  %v686_v39 = vmul.f32 %v1452_v47, %v566_v37  ;;  %v702_v40 = vmul.f32 %v1452_v47, %v630_v38  ;;  %v756_v45 = vmax.f32 %v724_v35, 0.0  ;;  %v772_v46 = vmax.f32 %v740_v36, 0.0 }
 0x10a   : > { %v568_v41 = vpop.f32.mrf.mxu0  ;;  %v632_v42 = vpop.f32.mrf.mxu1 }
 0x10b   : > { %v725_v43 = vadd.f32 %v1458_v51, %v686_v39  ;;  %v741_v44 = vadd.f32 %v1458_v51, %v702_v40 }
 0x10c   : > { %v571_v48 = vpop.f32.mrf.mxu0  ;;  %v635_v49 = vpop.f32.mrf.mxu1 }
 0x10d   : > { %v757_v50 = vmax.f32 %v725_v43, 0.0  ;;  %v773_v52 = vmax.f32 %v741_v44, 0.0  ;;  %v687_v53 = vmul.f32 %v1452_v47, %v571_v48  ;;  %v703_v54 = vmul.f32 %v1452_v47, %v635_v49 }
 0x10e   : > { %v573_v55 = vpop.f32.mrf.mxu0  ;;  %v637_v56 = vpop.f32.mrf.mxu1 }
 0x10f   : > { %v1150_v57 = vpack.c.bf16 %v757_v50, %v756_v45  ;;  %v1190_v58 = vpack.c.bf16 %v773_v52, %v772_v46  ;;  %v726_v59 = vadd.f32 %v1458_v51, %v687_v53  ;;  %v742_v60 = vadd.f32 %v1458_v51, %v703_v54 }
 0x110   : > { %v574_v61 = vpop.f32.mrf.mxu0  ;;  %v638_v62 = vpop.f32.mrf.mxu1 }
 0x111   : > { %1218 = vst [vmem:[%s1473_s25 + $0x10] sm:$0xff] %v1150_v57   ;;  %1226 = vst [vmem:[%s1473_s25 + $0x50] sm:$0xff] %v1190_v58   ;;  %v688_v63 = vmul.f32 %v1452_v47, %v574_v61  ;;  %v704_v0 = vmul.f32 %v1452_v47, %v638_v62  ;;  %v758_v5 = vmax.f32 %v726_v59, 0.0  ;;  %v774_v6 = vmax.f32 %v742_v60, 0.0 }
 0x112   : > { %v576_v1 = vpop.f32.mrf.mxu0  ;;  %v640_v2 = vpop.f32.mrf.mxu1 }
 0x113   : > { %v727_v3 = vadd.f32 %v1458_v51, %v688_v63  ;;  %v743_v4 = vadd.f32 %v1458_v51, %v704_v0 }
 0x114   : > { %v579_v7 = vpop.f32.mrf.mxu0  ;;  %v643_v8 = vpop.f32.mrf.mxu1 }
 0x115   : > { %v759_v9 = vmax.f32 %v727_v3, 0.0  ;;  %v775_v10 = vmax.f32 %v743_v4, 0.0  ;;  %v689_v11 = vmul.f32 %v1452_v47, %v579_v7  ;;  %v705_v12 = vmul.f32 %v1452_v47, %v643_v8 }
 0x116   : > { %v581_v13 = vpop.f32.mrf.mxu0  ;;  %v645_v14 = vpop.f32.mrf.mxu1 }
 0x117   : > { %v1155_v15 = vpack.c.bf16 %v759_v9, %v758_v5  ;;  %v1195_v16 = vpack.c.bf16 %v775_v10, %v774_v6  ;;  %v728_v17 = vadd.f32 %v1458_v51, %v689_v11  ;;  %v744_v18 = vadd.f32 %v1458_v51, %v705_v12 }
 0x118   : > { %v582_v19 = vpop.f32.mrf.mxu0  ;;  %v646_v20 = vpop.f32.mrf.mxu1 }
 0x119   : > { %1219 = vst [vmem:[%s1473_s25 + $0x18] sm:$0xff] %v1155_v15   ;;  %1227 = vst [vmem:[%s1473_s25 + $0x58] sm:$0xff] %v1195_v16   ;;  %v690_v21 = vmul.f32 %v1452_v47, %v582_v19  ;;  %v706_v22 = vmul.f32 %v1452_v47, %v646_v20  ;;  %v760_v27 = vmax.f32 %v728_v17, 0.0  ;;  %v776_v28 = vmax.f32 %v744_v18, 0.0 }
 0x11a   : > { %v584_v23 = vpop.f32.mrf.mxu0  ;;  %v648_v24 = vpop.f32.mrf.mxu1 }
 0x11b   : > { %v729_v25 = vadd.f32 %v1458_v51, %v690_v21  ;;  %v745_v26 = vadd.f32 %v1458_v51, %v706_v22 }
 0x11c   : > { %v587_v29 = vpop.f32.mrf.mxu0  ;;  %v651_v30 = vpop.f32.mrf.mxu1 }
 0x11d   : > { %v761_v31 = vmax.f32 %v729_v25, 0.0  ;;  %v777_v32 = vmax.f32 %v745_v26, 0.0  ;;  %v691_v33 = vmul.f32 %v1452_v47, %v587_v29  ;;  %v707_v34 = vmul.f32 %v1452_v47, %v651_v30 }
 0x11e   : > { %v589_v35 = vpop.f32.mrf.mxu0  ;;  %v653_v36 = vpop.f32.mrf.mxu1 }
 0x11f   : > { %v1160_v37 = vpack.c.bf16 %v761_v31, %v760_v27  ;;  %v1200_v38 = vpack.c.bf16 %v777_v32, %v776_v28  ;;  %v730_v39 = vadd.f32 %v1458_v51, %v691_v33  ;;  %v746_v40 = vadd.f32 %v1458_v51, %v707_v34 }
 0x120   : > { %v590_v41 = vpop.f32.mrf.mxu0  ;;  %v654_v42 = vpop.f32.mrf.mxu1 }
 0x121   : > { %1220 = vst [vmem:[%s1473_s25 + $0x20] sm:$0xff] %v1160_v37   ;;  %1228 = vst [vmem:[%s1473_s25 + $0x60] sm:$0xff] %v1200_v38   ;;  %v692_v43 = vmul.f32 %v1452_v47, %v590_v41  ;;  %v708_v44 = vmul.f32 %v1452_v47, %v654_v42  ;;  %v762_v50 = vmax.f32 %v730_v39, 0.0  ;;  %v778_v52 = vmax.f32 %v746_v40, 0.0 }
 0x122   : > { %v592_v45 = vpop.f32.mrf.mxu0  ;;  %v656_v46 = vpop.f32.mrf.mxu1 }
 0x123   : > { %v731_v48 = vadd.f32 %v1458_v51, %v692_v43  ;;  %v747_v49 = vadd.f32 %v1458_v51, %v708_v44 }
 0x124   : > { %v595_v53 = vpop.f32.mrf.mxu0  ;;  %v659_v54 = vpop.f32.mrf.mxu1 }
 0x125   : > { %v763_v55 = vmax.f32 %v731_v48, 0.0  ;;  %v779_v56 = vmax.f32 %v747_v49, 0.0  ;;  %v693_v57 = vmul.f32 %v1452_v47, %v595_v53  ;;  %v709_v58 = vmul.f32 %v1452_v47, %v659_v54 }
 0x126   : > { %v597_v59 = vpop.f32.mrf.mxu0  ;;  %v661_v60 = vpop.f32.mrf.mxu1 }
 0x127   : > { %v1165_v61 = vpack.c.bf16 %v763_v55, %v762_v50  ;;  %v1205_v62 = vpack.c.bf16 %v779_v56, %v778_v52  ;;  %v732_v63 = vadd.f32 %v1458_v51, %v693_v57  ;;  %v748_v0 = vadd.f32 %v1458_v51, %v709_v58 }
 0x128   : > { %v598_v1 = vpop.f32.mrf.mxu0  ;;  %v662_v2 = vpop.f32.mrf.mxu1 }
 0x129   : > { %1221 = vst [vmem:[%s1473_s25 + $0x28] sm:$0xff] %v1165_v61   ;;  %1229 = vst [vmem:[%s1473_s25 + $0x68] sm:$0xff] %v1205_v62   ;;  %v694_v3 = vmul.f32 %v1452_v47, %v598_v1  ;;  %v710_v4 = vmul.f32 %v1452_v47, %v662_v2  ;;  %v764_v9 = vmax.f32 %v732_v63, 0.0  ;;  %v780_v10 = vmax.f32 %v748_v0, 0.0 }
 0x12a   : > { %v600_v5 = vpop.f32.mrf.mxu0  ;;  %v664_v6 = vpop.f32.mrf.mxu1 }
 0x12b   : > { %v733_v7 = vadd.f32 %v1458_v51, %v694_v3  ;;  %v749_v8 = vadd.f32 %v1458_v51, %v710_v4 }
 0x12c   : > { %v603_v11 = vpop.f32.mrf.mxu0  ;;  %v667_v12 = vpop.f32.mrf.mxu1 }
 0x12d   : > { %v765_v13 = vmax.f32 %v733_v7, 0.0  ;;  %v781_v14 = vmax.f32 %v749_v8, 0.0  ;;  %v695_v15 = vmul.f32 %v1452_v47, %v603_v11  ;;  %v711_v16 = vmul.f32 %v1452_v47, %v667_v12 }
 0x12e   : > { %v605_v17 = vpop.f32.mrf.mxu0  ;;  %v669_v18 = vpop.f32.mrf.mxu1 }
 0x12f   : > { %v1170_v19 = vpack.c.bf16 %v765_v13, %v764_v9  ;;  %v1210_v20 = vpack.c.bf16 %v781_v14, %v780_v10  ;;  %v734_v23 = vadd.f32 %v1458_v51, %v695_v15  ;;  %v750_v24 = vadd.f32 %v1458_v51, %v711_v16 }
 0x130   : > { %v606_v21 = vpop.f32.mrf.mxu0  ;;  %v670_v22 = vpop.f32.mrf.mxu1 }
 0x131   : > { %1222 = vst [vmem:[%s1473_s25 + $0x30] sm:$0xff] %v1170_v19   ;;  %1230 = vst [vmem:[%s1473_s25 + $0x70] sm:$0xff] %v1210_v20   ;;  %v696_v25 = vmul.f32 %v1452_v47, %v606_v21  ;;  %v712_v26 = vmul.f32 %v1452_v47, %v670_v22  ;;  %v766_v31 = vmax.f32 %v734_v23, 0.0  ;;  %v782_v32 = vmax.f32 %v750_v24, 0.0 }
 0x132   : > { %v608_v27 = vpop.f32.mrf.mxu0  ;;  %v672_v28 = vpop.f32.mrf.mxu1 }
 0x133   : > { %v735_v29 = vadd.f32 %v1458_v51, %v696_v25  ;;  %v751_v30 = vadd.f32 %v1458_v51, %v712_v26 }
 0x135   : > { %v767_v33 = vmax.f32 %v735_v29, 0.0  ;;  %v783_v34 = vmax.f32 %v751_v30, 0.0 }
 0x137   : > { %v1175_v35 = vpack.c.bf16 %v767_v33, %v766_v31  ;;  %v1215_v36 = vpack.c.bf16 %v783_v34, %v782_v32 }
 0x139   : > { %1223 = vst [vmem:[%s1473_s25 + $0x38] sm:$0xff] %v1175_v35   ;;  %1231 = vst [vmem:[%s1473_s25 + $0x78] sm:$0xff] %v1215_v36  }
 0x13a PF: > { %s14_s15 = sadd.s32 1, %s1326_s15  }
 0x13b   : > { %p11_p4 = scmp.ge.s32.totalorder %s14_s15, 4  }
 0x13d   :  { %13 = sbr.rel (!%p11_p4) target bundleno = 1 (0x1), region = 66 }

// kernel: densenet_forward.23
= control target key start
LH: loop header
LB: loop body
LE: loop exit
PB: predicated region body
PF: predicated region fallthrough
CT: control target
= control target key end

     0   :  { %s805_s6 = smov 0   ;;  %s1156_s0 = inlined_call_operand.vmem [shape: bf16[2,4,9,9,128], index: 0, kind: input, shape index: {}]   ;;  %s1157_s1 = inlined_call_operand.vmem [shape: bf16[2,8,8,128], index: 1, kind: output, shape index: {}]  }
   0x1 LB: > { %s684_s7 = sadd.s32 4294967295, %s793_s6   ;;  %p688_p0 = scmp.ge.s32.totalorder %s793_s6, 1  ;;  %s793_s6 = sphi %s805_s6, %s11_s6  }
   0x2   : > { %p87_p1 = scmp.lt.s32.totalorder %s793_s6, 3 }
   0x4   : > { %p88_p2 = pnand %p688_p0, %p87_p1 }
   0x5   : > { %p107_p3 = scmp.lt.s32.totalorder (!%p88_p2), %s684_s7, 1 }
   0x6   : > { %91 = sbr.rel (%p88_p2) target bundleno = 97 (0x61), region = 24 }
   0xb   : > { %s1161_s7 = smov (!%p107_p3, %s684_s7), 1  ;;  %vm150_vm0 = vsmask.f32 3328  ;;  %vm151_vm1 = vsmask.f32 7440 }
   0xc   : > { %s778_s8 = smul.u32 288, %s1161_s7  ;;  %vm900_vm2 = vmor %vm150_vm0, %vm151_vm1  ;;  %s750_s12 = sshll.u32 %s1161_s7, 5 }
   0xd   : > { %s116_s15 = scalar_lea.vmem %s1157_s1, %s750_s12 }
   0xe   : > { %s819_s11 = scalar_lea.vmem %s1156_s0, %s778_s8 }
   0xf   : > { %v822_v0 = vld [vmem:[%s819_s11 + $0x48] sm:$0xf]  ;;  %v825_v1 = vld [vmem:[%s819_s11] sm:$0xf]  ;;  %v831_v3 = vld [vmem:[%s819_s11 + $0x10] sm:$0xf] }
  0x10   : > { %v828_v2 = vld [vmem:[%s819_s11 + $0x8] sm:$0xf]  ;;  %v834_v4 = vld [vmem:[%s819_s11 + $0x18] sm:$0xf]  ;;  %v837_v5 = vld [vmem:[%s819_s11 + $0x50] sm:$0xf]  ;;  %v134_v17 = vmax.bf16 %v822_v0, %v825_v1 }
  0x11   : > { %v840_v6 = vld [vmem:[%s819_s11 + $0x58] sm:$0xf]  ;;  %v843_v7 = vld [vmem:[%s819_s11 + $0x60] sm:$0xf]  ;;  %v849_v9 = vld [vmem:[%s819_s11 + $0x68] sm:$0xf]  ;;  %v135_v18 = vmax.bf16 %v837_v5, %v828_v2 }
  0x12   : > { %v846_v8 = vld [vmem:[%s819_s11 + $0x20] sm:$0xf]  ;;  %v852_v10 = vld [vmem:[%s819_s11 + $0x70] sm:$0xf]  ;;  %v855_v11 = vld [vmem:[%s819_s11 + $0x78] sm:$0xf]  ;;  %v136_v19 = vmax.bf16 %v840_v6, %v831_v3  ;;  %v137_v20 = vmax.bf16 %v843_v7, %v834_v4 }
  0x13   : > { %v858_v12 = vld [vmem:[%s819_s11 + $0x28] sm:$0xf]  ;;  %v861_v13 = vld [vmem:[%s819_s11 + $0x80] sm:$0xf]  ;;  %v142_v14 = vld [vmem:[%s819_s11 + $0x4] sm:$0x1]  ;;  %v138_v22 = vmax.bf16 %v849_v9, %v846_v8 }
  0x14   : > { %v865_v15 = vld [vmem:[%s819_s11 + $0x30] sm:$0xf]  ;;  %v868_v16 = vld [vmem:[%s819_s11 + $0x38] sm:$0xf]  ;;  %v143_v21 = vld [vmem:[%s819_s11 + $0xc] sm:$0x1]  ;;  %v139_v23 = vmax.bf16 %v852_v10, %v858_v12 }
  0x15   : > { %v140_v24 = vmax.bf16 %v855_v11, %v865_v15  ;;  %v141_v25 = vmax.bf16 %v861_v13, %v868_v16  ;;  %v154_v26 = vshrl.u32 %v825_v1, 16  ;;  %v157_v27 = vshll.u32 %v825_v1, 16  ;;  %v144_v30 = vld [vmem:[%s819_s11 + $0x14] sm:$0x1]  ;;  %v145_v35 = vld [vmem:[%s819_s11 + $0x1c] sm:$0x1] }
  0x16   : > { %v163_v28 = vshll.u32 %v142_v14, 16  ;;  %v168_v29 = vshrl.u32 %v828_v2, 16  ;;  %v171_v31 = vshll.u32 %v828_v2, 16  ;;  %v177_v32 = vshll.u32 %v143_v21, 16  ;;  %v146_v48 = vld [vmem:[%s819_s11 + $0x24] sm:$0x1] }
  0x17   : > { %v182_v33 = vshrl.u32 %v831_v3, 16  ;;  %v185_v34 = vshll.u32 %v831_v3, 16  ;;  %v156_v36 = vrot.slane %v154_v26, 4  ;;  %v159_v37 = vrot.slane %v157_v27, 5  ;;  %v147_v58 = vld [vmem:[%s819_s11 + $0x2c] sm:$0x1] }
  0x18   : > { %v165_v38 = vrot.slane %v163_v28, 5  ;;  %v170_v39 = vrot.slane %v168_v29, 4  ;;  %v173_v40 = vrot.slane %v171_v31, 5  ;;  %v179_v41 = vrot.slane %v177_v32, 5  ;;  %v148_v27 = vld [vmem:[%s819_s11 + $0x34] sm:$0x1] }
  0x19   : > { %v184_v42 = vrot.slane %v182_v33, 4  ;;  %v187_v43 = vrot.slane %v185_v34, 5  ;;  %v160_v44 = vor.u32 %v159_v37, %v156_v36  ;;  %v191_v45 = vshll.u32 %v144_v30, 16  ;;  %v149_v36 = vld [vmem:[%s819_s11 + $0x3c] sm:$0x1] }
  0x1a   : > { %v196_v46 = vshrl.u32 %v834_v4, 16  ;;  %v199_v47 = vshll.u32 %v834_v4, 16  ;;  %v174_v50 = vor.u32 %v173_v40, %v170_v39  ;;  %v205_v52 = vshll.u32 %v145_v35, 16  ;;  %v948_v5 = vld [vmem:[%s819_s11 + $0xb0] sm:$0xf] }
  0x1b   : > { %v188_v51 = vor.u32 %v187_v43, %v184_v42  ;;  %v210_v53 = vshrl.u32 %v846_v8, 16  ;;  %v161_v54 = vrot.slane %v160_v44, 4  ;;  %v193_v55 = vrot.slane %v191_v45, 5  ;;  %v709_v6 = vld [vmem:[%s819_s11 + $0xe0] sm:$0xf] }
  0x1c   : > { %v198_v56 = vrot.slane %v196_v46, 4  ;;  %v201_v57 = vrot.slane %v199_v47, 5  ;;  %v175_v59 = vrot.slane %v174_v50, 4  ;;  %v207_v61 = vrot.slane %v205_v52, 5  ;;  %v710_v4 = vld [vmem:[%s819_s11 + $0xe8] sm:$0xf] }
  0x1d   : > { %v189_v60 = vrot.slane %v188_v51, 4  ;;  %v212_v62 = vrot.slane %v210_v53, 4  ;;  %v166_v63 = vsel %vm900_vm2, %v161_v54, %v165_v38  ;;  %v213_v21 = vshll.u32 %v846_v8, 16  ;;  %v711_v7 = vld [vmem:[%s819_s11 + $0xf0] sm:$0xf] }
  0x1e   : > { %v202_v14 = vor.u32 %v201_v57, %v198_v56  ;;  %v219_v26 = vshll.u32 %v146_v48, 16  ;;  %v180_v28 = vsel %vm900_vm2, %v175_v59, %v179_v41  ;;  %v224_v30 = vshrl.u32 %v858_v12, 16  ;;  %v712_v10 = vld [vmem:[%s819_s11 + $0xf8] sm:$0xf]  ;;  %v717_v11 = vld [vmem:[%s819_s11 + $0x9c] sm:$0x1] }
  0x1f   : > { %v194_v29 = vsel %vm900_vm2, %v189_v60, %v193_v55  ;;  %v227_v31 = vshll.u32 %v858_v12, 16  ;;  %v215_v33 = vrot.slane %v213_v21, 5  ;;  %v233_v35 = vshll.u32 %v147_v58, 16  ;;  %v700_v58 = vld [vmem:[%s819_s11 + $0x90] sm:$0xf] }
  0x20   : > { %v203_v32 = vrot.slane %v202_v14, 4  ;;  %v221_v34 = vrot.slane %v219_v26, 5  ;;  %v226_v37 = vrot.slane %v224_v30, 4  ;;  %v238_v39 = vshrl.u32 %v865_v15, 16  ;;  %v701_v14 = vld [vmem:[%s819_s11 + $0x98] sm:$0xf] }
  0x21   : > { %v229_v38 = vrot.slane %v227_v31, 5  ;;  %v241_v40 = vshll.u32 %v865_v15, 16  ;;  %v216_v42 = vor.u32 %v215_v33, %v212_v62  ;;  %v235_v43 = vrot.slane %v233_v35, 5  ;;  %v934_v21 = vld [vmem:[%s819_s11 + $0xa0] sm:$0xf] }
  0x22   : > { %v208_v41 = vsel %vm900_vm2, %v203_v32, %v207_v61  ;;  %v247_v44 = vshll.u32 %v148_v27, 16  ;;  %v240_v46 = vrot.slane %v238_v39, 4  ;;  %v252_v48 = vshrl.u32 %v868_v16, 16  ;;  %v937_v26 = vld [vmem:[%s819_s11 + $0xa8] sm:$0xf] }
  0x23   : > { %v230_v45 = vor.u32 %v229_v38, %v226_v37  ;;  %v243_v47 = vrot.slane %v241_v40, 5  ;;  %v217_v50 = vrot.slane %v216_v42, 4  ;;  %v255_v52 = vshll.u32 %v868_v16, 16  ;;  %v713_v12 = vld [vmem:[%s819_s11 + $0x100] sm:$0xf] }
  0x24   : > { %v249_v51 = vrot.slane %v247_v44, 5  ;;  %v261_v53 = vshll.u32 %v149_v36, 16  ;;  %v254_v56 = vrot.slane %v252_v48, 4  ;;  %v273_v57 = vmax.bf16 %v166_v63, %v134_v17  ;;  %v716_v32 = vld [vmem:[%s819_s11 + $0x94] sm:$0x1] }
  0x25   : > { %v231_v54 = vrot.slane %v230_v45, 4  ;;  %v244_v55 = vor.u32 %v243_v47, %v240_v46  ;;  %v222_v59 = vsel %vm900_vm2, %v217_v50, %v221_v34  ;;  %v257_v60 = vrot.slane %v255_v52, 5  ;;  %v976_v33 = vld [vmem:[%s819_s11 + $0xc0] sm:$0xf]  ;;  %v714_v34 = vld [vmem:[%s819_s11 + $0x108] sm:$0xf] }
  0x26   : > { %v263_v61 = vrot.slane %v261_v53, 5  ;;  %v274_v62 = vmax.bf16 %v180_v28, %v135_v18  ;;  %v275_v17 = vmax.bf16 %v194_v29, %v136_v19  ;;  %v276_v2 = vmax.bf16 %v208_v41, %v137_v20  ;;  %v708_v18 = vld [vmem:[%s819_s11 + $0xd8] sm:$0xf]  ;;  %v718_v48 = vld [vmem:[%s819_s11 + $0xa4] sm:$0x1] }
  0x27   : > { %v236_v0 = vsel %vm900_vm2, %v231_v54, %v235_v43  ;;  %v245_v1 = vrot.slane %v244_v55, 4  ;;  %v258_v63 = vor.u32 %v257_v60, %v254_v56  ;;  %v277_v27 = vmax.bf16 %v222_v59, %v138_v22  ;;  %v963_v20 = vld [vmem:[%s819_s11 + $0xb8] sm:$0xf]  ;;  %v715_v43 = vld [vmem:[%s819_s11 + $0x110] sm:$0xf] }
  0x28   : > { %v278_v28 = vmax.bf16 %v236_v0, %v139_v23  ;;  %v290_v3 = vmax.bf16 %v700_v58, %v273_v57  ;;  %v291_v29 = vmax.bf16 %v701_v14, %v274_v62  ;;  %v292_v8 = vmax.bf16 %v934_v21, %v275_v17  ;;  %v719_v57 = vld [vmem:[%s819_s11 + $0xac] sm:$0x1] }
  0x29   : > { %v250_v19 = vsel %vm900_vm2, %v245_v1, %v249_v51  ;;  %v293_v9 = vmax.bf16 %v937_v26, %v276_v2  ;;  %v259_v22 = vrot.slane %v258_v63, 4  ;;  %v294_v30 = vmax.bf16 %v948_v5, %v277_v27  ;;  %v720_v2 = vld [vmem:[%s819_s11 + $0xb4] sm:$0x1] }
  0x2a   : > { %v279_v23 = vmax.bf16 %v250_v19, %v140_v24  ;;  %v295_v31 = vmax.bf16 %v963_v20, %v278_v28  ;;  %v979_v35 = vmax.bf16 %v708_v18, %v290_v3  ;;  %v981_v36 = vmax.bf16 %v709_v6, %v291_v29  ;;  %v991_v24 = vld [vmem:[%s819_s11 + $0xc8] sm:$0xf]  ;;  %v721_v19 = vld [vmem:[%s819_s11 + $0xbc] sm:$0x1] }
  0x2b   : > { %v983_v37 = vmax.bf16 %v710_v4, %v292_v8  ;;  %v985_v38 = vmax.bf16 %v711_v7, %v293_v9  ;;  %v264_v15 = vsel %vm900_vm2, %v259_v22, %v263_v61  ;;  %v994_v40 = vmax.bf16 %v712_v10, %v294_v30 }
  0x2c   : > { %v296_v39 = vmax.bf16 %v976_v33, %v279_v23  ;;  %v996_v41 = vmax.bf16 %v713_v12, %v295_v31  ;;  %v280_v42 = vmax.bf16 %v264_v15, %v141_v25  ;;  %v324_v44 = vshrl.u32 %v700_v58, 16 }
  0x2d   : > { %v327_v45 = vshll.u32 %v700_v58, 16  ;;  %v333_v46 = vshll.u32 %v716_v32, 16  ;;  %v338_v50 = vshrl.u32 %v701_v14, 16  ;;  %v341_v51 = vshll.u32 %v701_v14, 16 }
  0x2e   : > { %v1002_v47 = vmax.bf16 %v714_v34, %v296_v39  ;;  %v347_v52 = vshll.u32 %v717_v11, 16  ;;  %v297_v53 = vmax.bf16 %v991_v24, %v280_v42  ;;  %v326_v54 = vrot.slane %v324_v44, 4  ;;  %v722_v34 = vld [vmem:[%s819_s11 + $0xc4] sm:$0x1] }
  0x2f   : > { %v329_v55 = vrot.slane %v327_v45, 5  ;;  %v335_v56 = vrot.slane %v333_v46, 5  ;;  %v340_v59 = vrot.slane %v338_v50, 4  ;;  %v343_v13 = vrot.slane %v341_v51, 5 }
  0x30   : > { %v1007_v16 = vrot.slane %v347_v52, 5  ;;  %v352_v25 = vshrl.u32 %v934_v21, 16  ;;  %v1010_v58 = vmax.bf16 %v715_v43, %v297_v53  ;;  %v355_v61 = vshll.u32 %v934_v21, 16 }
  0x31   : > { %v330_v60 = vor.u32 %v329_v55, %v326_v54  ;;  %v361_v62 = vshll.u32 %v718_v48, 16  ;;  %v344_v14 = vor.u32 %v343_v13, %v340_v59  ;;  %v366_v1 = vshrl.u32 %v937_v26, 16 }
  0x32   : > { %v354_v0 = vrot.slane %v352_v25, 4  ;;  %v369_v17 = vshll.u32 %v937_v26, 16  ;;  %v357_v63 = vrot.slane %v355_v61, 5  ;;  %v375_v28 = vshll.u32 %v719_v57, 16  ;;  %v724_v61 = vld [vmem:[%s819_s11 + $0x8] sm:$0xf] }
  0x33   : > { %v331_v18 = vrot.slane %v330_v60, 4  ;;  %v363_v27 = vrot.slane %v361_v62, 5  ;;  %v345_v3 = vrot.slane %v344_v14, 4  ;;  %v368_v6 = vrot.slane %v366_v1, 4  ;;  %v725_v1 = vld [vmem:[%s819_s11 + $0x10] sm:$0xf] }
  0x34   : > { %v371_v4 = vrot.slane %v369_v17, 5  ;;  %v380_v7 = vshrl.u32 %v948_v5, 16  ;;  %v358_v29 = vor.u32 %v357_v63, %v354_v0  ;;  %v377_v8 = vrot.slane %v375_v28, 5  ;;  %v1054_v28 = vld [vmem:[%s819_s11 + $0x28] sm:$0xf] }
  0x35   : > { %v336_v21 = vsel %vm900_vm2, %v331_v18, %v335_v56  ;;  %v383_v26 = vshll.u32 %v948_v5, 16  ;;  %v350_v9 = vsel %vm900_vm2, %v345_v3, %v1007_v16  ;;  %v389_v22 = vshll.u32 %v720_v2, 16  ;;  %v723_v5 = vld [vmem:[%s819_s11 + $0xcc] sm:$0x1] }
  0x36   : > { %v372_v10 = vor.u32 %v371_v4, %v368_v6  ;;  %v382_v12 = vrot.slane %v380_v7, 4  ;;  %v359_v23 = vrot.slane %v358_v29, 4  ;;  %v394_v31 = vshrl.u32 %v963_v20, 16 }
  0x37   : > { %v385_v30 = vrot.slane %v383_v26, 5  ;;  %v397_v32 = vshll.u32 %v963_v20, 16  ;;  %v391_v15 = vrot.slane %v389_v22, 5  ;;  %v403_v39 = vshll.u32 %v721_v19, 16  ;;  %v733_v19 = vld [vmem:[%s819_s11 + $0x58] sm:$0xf] }
  0x38   : > { %v373_v11 = vrot.slane %v372_v10, 4  ;;  %v408_v42 = vshrl.u32 %v976_v33, 16  ;;  %v364_v43 = vsel %vm900_vm2, %v359_v23, %v363_v27  ;;  %v396_v45 = vrot.slane %v394_v31, 4  ;;  %v1051_v27 = vld [vmem:[%s819_s11 + $0x20] sm:$0xf] }
  0x39   : > { %v386_v44 = vor.u32 %v385_v30, %v382_v12  ;;  %v399_v46 = vrot.slane %v397_v32, 5  ;;  %v405_v50 = vrot.slane %v403_v39, 5  ;;  %v411_v20 = vshll.u32 %v976_v33, 16  ;;  %v735_v26 = vld [vmem:[%s819_s11 + $0x68] sm:$0xf] }
  0x3a   : > { %v378_v48 = vsel %vm900_vm2, %v373_v11, %v377_v8  ;;  %v410_v51 = vrot.slane %v408_v42, 4  ;;  %v417_v54 = vshll.u32 %v722_v34, 16  ;;  %v422_v55 = vshrl.u32 %v991_v24, 16  ;;  %v740_v22 = vld [vmem:[%s819_s11 + $0xc] sm:$0x1] }
  0x3b   : > { %v387_v52 = vrot.slane %v386_v44, 4  ;;  %v400_v53 = vor.u32 %v399_v46, %v396_v45  ;;  %v413_v56 = vrot.slane %v411_v20, 5  ;;  %v425_v57 = vshll.u32 %v991_v24, 16  ;;  %v1074_v30 = vld [vmem:[%s819_s11 + $0x38] sm:$0xf] }
  0x3c   : > { %v431_v59 = vshll.u32 %v723_v5, 16  ;;  %v443_v13 = vmax.bf16 %v336_v21, %v979_v35  ;;  %v419_v33 = vrot.slane %v417_v54, 5  ;;  %v424_v60 = vrot.slane %v422_v55, 4  ;;  %v1043_v35 = vld [vmem:[%s819_s11 + $0x18] sm:$0xf] }
  0x3d   : > { %v392_v16 = vsel %vm900_vm2, %v387_v52, %v391_v15  ;;  %v401_v25 = vrot.slane %v400_v53, 4  ;;  %v414_v62 = vor.u32 %v413_v56, %v410_v51  ;;  %v427_v14 = vrot.slane %v425_v57, 5  ;;  %v1061_v21 = vld [vmem:[%s819_s11 + $0x30] sm:$0xf]  ;;  %v741_v11 = vld [vmem:[%s819_s11 + $0x14] sm:$0x1] }
  0x3e   : > { %v433_v0 = vrot.slane %v431_v59, 5  ;;  %v444_v24 = vmax.bf16 %v350_v9, %v981_v36  ;;  %v445_v2 = vmax.bf16 %v364_v43, %v983_v37  ;;  %v446_v18 = vmax.bf16 %v378_v48, %v985_v38  ;;  %v732_v36 = vld [vmem:[%s819_s11 + $0x50] sm:$0xf]  ;;  %v734_v37 = vld [vmem:[%s819_s11 + $0x60] sm:$0xf] }
  0x3f   : > { %v406_v17 = vsel %vm900_vm2, %v401_v25, %v405_v50  ;;  %v447_v63 = vmax.bf16 %v392_v16, %v994_v40  ;;  %v415_v3 = vrot.slane %v414_v62, 4  ;;  %v428_v6 = vor.u32 %v427_v14, %v424_v60  ;;  %v736_v9 = vld [vmem:[%s819_s11 + $0x70] sm:$0xf]  ;;  %v737_v39 = vld [vmem:[%s819_s11 + $0x78] sm:$0xf] }
  0x40   : > { %v448_v4 = vmax.bf16 %v406_v17, %v996_v41  ;;  %v460_v7 = vmax.bf16 %v724_v61, %v443_v13  ;;  %v461_v38 = vmax.bf16 %v725_v1, %v444_v24  ;;  %v462_v40 = vmax.bf16 %v1043_v35, %v445_v2  ;;  %v738_v42 = vld [vmem:[%s819_s11 + $0x80] sm:$0xf]  ;;  %v742_v51 = vld [vmem:[%s819_s11 + $0x1c] sm:$0x1]  ;;  %v743_v59 = vld [vmem:[%s819_s11 + $0x24] sm:$0x1] }
  0x41   : > { %v463_v29 = vmax.bf16 %v1051_v27, %v446_v18  ;;  %v464_v8 = vmax.bf16 %v1054_v28, %v447_v63  ;;  %v420_v41 = vsel %vm900_vm2, %v415_v3, %v419_v33  ;;  %v429_v10 = vrot.slane %v428_v6, 4  ;;  %v1095_v45 = vld [vmem:[%s819_s11 + $0x40] sm:$0xf]  ;;  %v744_v2 = vld [vmem:[%s819_s11 + $0x2c] sm:$0x1] }
  0x42   : > { %v465_v12 = vmax.bf16 %v1061_v21, %v448_v4  ;;  %v449_v23 = vmax.bf16 %v420_v41, %v1002_v47  ;;  %v1076_v31 = vmax.bf16 %v732_v36, %v460_v7  ;;  %v1078_v32 = vmax.bf16 %v733_v19, %v461_v38 }
  0x43   : > { %v1080_v34 = vmax.bf16 %v734_v37, %v462_v40  ;;  %v434_v15 = vsel %vm900_vm2, %v429_v10, %v433_v0  ;;  %v1087_v5 = vmax.bf16 %v735_v26, %v463_v29  ;;  %v1089_v43 = vmax.bf16 %v736_v9, %v464_v8  ;;  %v745_v37 = vld [vmem:[%s819_s11 + $0x34] sm:$0x1] }
  0x44   : > { %v494_v47 = vshrl.u32 %v724_v61, 16  ;;  %v1092_v44 = vmax.bf16 %v434_v15, %v1010_v58  ;;  %v466_v46 = vmax.bf16 %v1074_v30, %v449_v23  ;;  %v497_v48 = vshll.u32 %v724_v61, 16  ;;  %v746_v23 = vld [vmem:[%s819_s11 + $0x3c] sm:$0x1] }
  0x45   : > { %v503_v50 = vshll.u32 %v740_v22, 16  ;;  %v508_v52 = vshrl.u32 %v725_v1, 16  ;;  %v511_v53 = vshll.u32 %v725_v1, 16  ;;  %v517_v54 = vshll.u32 %v741_v11, 16 }
  0x46   : > { %v496_v20 = vrot.slane %v494_v47, 4  ;;  %v467_v55 = vmax.bf16 %v1095_v45, %v1092_v44  ;;  %v1101_v56 = vmax.bf16 %v737_v39, %v465_v12  ;;  %v1103_v57 = vmax.bf16 %v738_v42, %v466_v46 }
  0x47   : > { %v499_v58 = vrot.slane %v497_v48, 5  ;;  %v505_v13 = vrot.slane %v503_v50, 5  ;;  %v510_v16 = vrot.slane %v508_v52, 4  ;;  %v513_v25 = vrot.slane %v511_v53, 5 }
  0x48   : > { %v522_v33 = vshrl.u32 %v1043_v35, 16  ;;  %v519_v61 = vrot.slane %v517_v54, 5  ;;  %v525_v62 = vshll.u32 %v1043_v35, 16  ;;  %v531_v14 = vshll.u32 %v742_v51, 16 }
  0x49   : > { %v500_v60 = vor.u32 %v499_v58, %v496_v20  ;;  %v514_v0 = vor.u32 %v513_v25, %v510_v16  ;;  %v536_v1 = vshrl.u32 %v1051_v27, 16  ;;  %v539_v17 = vshll.u32 %v1051_v27, 16 }
  0x4a   : > { %v524_v24 = vrot.slane %v522_v33, 4  ;;  %v527_v63 = vrot.slane %v525_v62, 5  ;;  %v533_v36 = vrot.slane %v531_v14, 5  ;;  %v545_v3 = vshll.u32 %v743_v59, 16 }
  0x4b   : > { %v501_v18 = vrot.slane %v500_v60, 4  ;;  %v515_v6 = vrot.slane %v514_v0, 4  ;;  %v538_v4 = vrot.slane %v536_v1, 4  ;;  %v541_v7 = vrot.slane %v539_v17, 5  ;;  %v739_v0 = vld [vmem:[%s819_s11 + $0x88] sm:$0xf] }
  0x4c   : > { %v550_v19 = vshrl.u32 %v1054_v28, 16  ;;  %v528_v38 = vor.u32 %v527_v63, %v524_v24  ;;  %v547_v40 = vrot.slane %v545_v3, 5  ;;  %v553_v27 = vshll.u32 %v1054_v28, 16  ;;  %v747_v28 = vld [vmem:[%s819_s11 + $0x44] sm:$0x1] }
  0x4d   : > { %v506_v35 = vsel %vm900_vm2, %v501_v18, %v505_v13  ;;  %v520_v29 = vsel %vm900_vm2, %v515_v6, %v519_v61  ;;  %v542_v8 = vor.u32 %v541_v7, %v538_v4  ;;  %v559_v9 = vshll.u32 %v744_v2, 16 }
  0x4e   : > { %v552_v26 = vrot.slane %v550_v19, 4  ;;  %v529_v41 = vrot.slane %v528_v38, 4  ;;  %v555_v10 = vrot.slane %v553_v27, 5  ;;  %v564_v12 = vshrl.u32 %v1061_v21, 16 }
  0x4f   : > { %v567_v22 = vshll.u32 %v1061_v21, 16  ;;  %v543_v11 = vrot.slane %v542_v8, 4  ;;  %v561_v15 = vrot.slane %v559_v9, 5  ;;  %v573_v39 = vshll.u32 %v745_v37, 16 }
  0x50   : > { %v578_v42 = vshrl.u32 %v1074_v30, 16  ;;  %v534_v47 = vsel %vm900_vm2, %v529_v41, %v533_v36  ;;  %v556_v46 = vor.u32 %v555_v10, %v552_v26  ;;  %v566_v48 = vrot.slane %v564_v12, 4 }
  0x51   : > { %v569_v50 = vrot.slane %v567_v22, 5  ;;  %v548_v51 = vsel %vm900_vm2, %v543_v11, %v547_v40  ;;  %v575_v20 = vrot.slane %v573_v39, 5  ;;  %v581_v52 = vshll.u32 %v1074_v30, 16 }
  0x52   : > { %v580_v21 = vrot.slane %v578_v42, 4  ;;  %v557_v53 = vrot.slane %v556_v46, 4  ;;  %v587_v58 = vshll.u32 %v746_v23, 16  ;;  %v592_v59 = vshrl.u32 %v1095_v45, 16 }
  0x53   : > { %v570_v54 = vor.u32 %v569_v50, %v566_v48  ;;  %v583_v13 = vrot.slane %v581_v52, 5  ;;  %v595_v16 = vshll.u32 %v1095_v45, 16  ;;  %v601_v25 = vshll.u32 %v747_v28, 16 }
  0x54   : > { %v613_v33 = vmax.bf16 %v506_v35, %v1076_v31  ;;  %v562_v60 = vsel %vm900_vm2, %v557_v53, %v561_v15  ;;  %v589_v62 = vrot.slane %v587_v58, 5  ;;  %v594_v14 = vrot.slane %v592_v59, 4 }
  0x55   : > { %v571_v61 = vrot.slane %v570_v54, 4  ;;  %v584_v30 = vor.u32 %v583_v13, %v580_v21  ;;  %v597_v24 = vrot.slane %v595_v16, 5  ;;  %v603_v1 = vrot.slane %v601_v25, 5 }
  0x56   : > { %v614_v17 = vmax.bf16 %v520_v29, %v1078_v32  ;;  %v615_v31 = vmax.bf16 %v534_v47, %v1080_v34  ;;  %v616_v18 = vmax.bf16 %v548_v51, %v1087_v5  ;;  %v617_v63 = vmax.bf16 %v562_v60, %v1089_v43 }
  0x57   : > { %v576_v2 = vsel %vm900_vm2, %v571_v61, %v575_v20  ;;  %v585_v36 = vrot.slane %v584_v30, 4  ;;  %v598_v3 = vor.u32 %v597_v24, %v594_v14  ;;  %v484_v32 = vmax.bf16 %v739_v0, %v467_v55 }
  0x58   : > { %v618_v6 = vmax.bf16 %v576_v2, %v1101_v56  ;;  %v771_v4 = vcombine.low %v613_v33, %v614_v17  ;;  %v772_v7 = vcombine.low %v615_v31, %v616_v18 }
  0x59   : > { %v590_v19 = vsel %vm900_vm2, %v585_v36, %v589_v62  ;;  %v599_v37 = vrot.slane %v598_v3, 4 }
  0x5a   : > { %755 = vst [vmem:[%s116_s15] sm:$0xff] %v771_v4   ;;  %v774_v34 = vcombine.low %v617_v63, %v618_v6  ;;  %v619_v5 = vmax.bf16 %v590_v19, %v1103_v57  ;;  %773 = vst [vmem:[%s116_s15 + $0x8] sm:$0xff] %v772_v7  }
  0x5b   : > { %v604_v43 = vsel %vm900_vm2, %v599_v37, %v603_v1 }
  0x5c   : > { %775 = vst [vmem:[%s116_s15 + $0x10] sm:$0xff] %v774_v34   ;;  %v620_v56 = vmax.bf16 %v604_v43, %v484_v32 }
  0x5e   : > { %v776_v35 = vcombine.low %v619_v5, %v620_v56 }
  0x60   : > { %777 = vst [vmem:[%s116_s15 + $0x18] sm:$0xff] %v776_v35  }
  0x61 PF: > { %s11_s6 = sadd.s32 1, %s793_s6  }
  0x62   : > { %p8_p4 = scmp.ge.s32.totalorder %s11_s6, 4  }
  0x64   :  { %10 = sbr.rel (!%p8_p4) target bundleno = 1 (0x1), region = 59 }

// kernel: densenet_forward.24
= control target key start
LH: loop header
LB: loop body
LE: loop exit
PB: predicated region body
PF: predicated region fallthrough
CT: control target
= control target key end

     0   :  { %s808_s3 = inlined_call_operand.vmem [shape: bf16[128,128], index: 3, kind: input, shape index: {}]   ;;  %s809_s0 = inlined_call_operand.vmem [shape: bf16[128,128], index: 0, kind: input, shape index: {}]   ;;  %s810_s1 = inlined_call_operand.vmem [shape: f32[1,128], index: 1, kind: input, shape index: {}]   ;;  %s811_s2 = inlined_call_operand.vmem [shape: f32[1,128], index: 2, kind: input, shape index: {}]   ;;  %s812_s4 = inlined_call_operand.vmem [shape: f32[1,128], index: 4, kind: input, shape index: {}]   ;;  %s813_s5 = inlined_call_operand.vmem [shape: f32[1,128], index: 5, kind: input, shape index: {}]   ;;  %s814_s6 = inlined_call_operand.vmem [shape: bf16[128,128], index: 6, kind: output, shape index: {}]  }
   0x1   :  { %v627_v0 = vld [vmem:[%s808_s3 + $0x38] sm:$0xff]   ;;  %v628_v1 = vld [vmem:[%s808_s3 + $0x30] sm:$0xff]   ;;  %v629_v2 = vld [vmem:[%s808_s3 + $0x28] sm:$0xff]  }
   0x2   :  { %579 = vmatprep.subr.bf16.mxu0 %v627_v0  ;;  %611 = vmatprep.subr.bf16.mxu1 %v627_v0  ;;  %v630_v3 = vld [vmem:[%s808_s3 + $0x20] sm:$0xff]   ;;  %v549_v9 = vld [vmem:[%s809_s0 + $0x8] sm:$0xff]   ;;  %v550_v16 = vld [vmem:[%s809_s0 + $0x10] sm:$0xff]  }
   0x3   :  { %580 = vmatpush3.bf16.msra.mxu0 %v627_v0  ;;  %619 = vmatpush3.bf16.msra.mxu1 %v627_v0  ;;  %v478_v4 = vld [vmem:[%s809_s0] sm:$0xff]   ;;  %v553_v13 = vld [vmem:[%s809_s0 + $0x28] sm:$0xff]   ;;  %v631_v17 = vld [vmem:[%s808_s3 + $0x18] sm:$0xff]   ;;  %v483_v20 = vunpack.c.l.bf16 %v549_v9  ;;  %v484_v21 = vunpack.c.h.bf16 %v549_v9  ;;  %v487_v28 = vunpack.c.l.bf16 %v550_v16  ;;  %v488_v40 = vunpack.c.h.bf16 %v550_v16 }
   0x4   :  { %581 = vmatprep.subr.bf16.mxu0 %v628_v1  ;;  %612 = vmatprep.subr.bf16.mxu1 %v628_v1  ;;  %v688_v5 = vld [vmem:[%s810_s1] ss:$0 sm:$0xff]  ;;  %v479_v6 = vunpack.c.l.bf16 %v478_v4  ;;  %v480_v7 = vunpack.c.h.bf16 %v478_v4  ;;  %v499_v24 = vunpack.c.l.bf16 %v553_v13  ;;  %v500_v25 = vunpack.c.h.bf16 %v553_v13  ;;  %v554_v31 = vld [vmem:[%s809_s0 + $0x30] sm:$0xff]   ;;  %v551_v44 = vld [vmem:[%s809_s0 + $0x18] sm:$0xff]  }
   0x5   :  { %v552_v8 = vld [vmem:[%s809_s0 + $0x20] sm:$0xff]   ;;  %v632_v32 = vld [vmem:[%s808_s3 + $0x10] sm:$0xff]   ;;  %v65_v35 = vmul.f32 %v483_v20, %v688_v5  ;;  %v66_v36 = vmul.f32 %v484_v21, %v688_v5  ;;  %v67_v42 = vmul.f32 %v487_v28, %v688_v5  ;;  %v503_v43 = vunpack.c.l.bf16 %v554_v31  ;;  %v555_v47 = vld [vmem:[%s809_s0 + $0x38] sm:$0xff]  }
   0x6   :  { %v699_v10 = vld [vmem:[%s811_s2] ss:$0 sm:$0xff]  ;;  %v495_v11 = vunpack.c.l.bf16 %v552_v8  ;;  %v496_v12 = vunpack.c.h.bf16 %v552_v8  ;;  %v63_v14 = vmul.f32 %v479_v6, %v688_v5  ;;  %v64_v15 = vmul.f32 %v480_v7, %v688_v5  ;;  %v633_v48 = vld [vmem:[%s808_s3 + $0x8] sm:$0xff]  }
   0x7   :  { %582 = vmatpush3.bf16.msra.mxu0 %v628_v1  ;;  %620 = vmatpush3.bf16.msra.mxu1 %v628_v1  ;;  %v73_v38 = vmul.f32 %v499_v24, %v688_v5  ;;  %v74_v39 = vmul.f32 %v500_v25, %v688_v5  ;;  %v68_v45 = vmul.f32 %v488_v40, %v688_v5  ;;  %v504_v46 = vunpack.c.h.bf16 %v554_v31  ;;  %v634_v63 = vld [vmem:[%s808_s3] sm:$0xff]  }
   0x8   :  { %583 = vmatprep.subr.bf16.mxu0 %v629_v2  ;;  %613 = vmatprep.subr.bf16.mxu1 %v629_v2  ;;  %v71_v18 = vmul.f32 %v495_v11, %v688_v5  ;;  %v72_v19 = vmul.f32 %v496_v12, %v688_v5  ;;  %v86_v22 = vadd.f32 %v699_v10, %v63_v14  ;;  %v491_v55 = vunpack.c.l.bf16 %v551_v44  ;;  %v444_v31 = vld [vmem:[%s813_s5] ss:$0 sm:$0xff] }
   0x9   :  { %v87_v23 = vadd.f32 %v699_v10, %v64_v15  ;;  %v88_v49 = vadd.f32 %v699_v10, %v65_v35  ;;  %v89_v50 = vadd.f32 %v699_v10, %v66_v36  ;;  %v75_v51 = vmul.f32 %v503_v43, %v688_v5 }
   0xa   :  { %v94_v26 = vadd.f32 %v699_v10, %v71_v18  ;;  %v95_v27 = vadd.f32 %v699_v10, %v72_v19  ;;  %v102_v29 = vmax.f32 %v86_v22, 0.0  ;;  %v96_v52 = vadd.f32 %v699_v10, %v73_v38 }
   0xb   :  { %584 = vmatpush3.bf16.msra.mxu0 %v629_v2  ;;  %621 = vmatpush3.bf16.msra.mxu1 %v629_v2  ;;  %v103_v30 = vmax.f32 %v87_v23, 0.0  ;;  %v97_v53 = vadd.f32 %v699_v10, %v74_v39  ;;  %v76_v54 = vmul.f32 %v504_v46, %v688_v5  ;;  %v90_v56 = vadd.f32 %v699_v10, %v67_v42 }
   0xc   :  { %585 = vmatprep.subr.bf16.mxu0 %v630_v3  ;;  %614 = vmatprep.subr.bf16.mxu1 %v630_v3  ;;  %v110_v33 = vmax.f32 %v94_v26, 0.0  ;;  %v111_v34 = vmax.f32 %v95_v27, 0.0  ;;  %v492_v57 = vunpack.c.h.bf16 %v551_v44  ;;  %v507_v58 = vunpack.c.l.bf16 %v555_v47 }
   0xd   :  { %v118_v37 = vpack.c.bf16 %v103_v30, %v102_v29  ;;  %v508_v59 = vunpack.c.h.bf16 %v555_v47  ;;  %v91_v60 = vadd.f32 %v699_v10, %v68_v45  ;;  %v98_v61 = vadd.f32 %v699_v10, %v75_v51 }
   0xe   :  { %v122_v41 = vpack.c.bf16 %v111_v34, %v110_v33  ;;  %v99_v62 = vadd.f32 %v699_v10, %v76_v54  ;;  %v104_v0 = vmax.f32 %v88_v49, 0.0  ;;  %v105_v1 = vmax.f32 %v89_v50, 0.0 }
   0xf   :  { %586 = vmatpush3.bf16.msra.mxu0 %v630_v3  ;;  %622 = vmatpush3.bf16.msra.mxu1 %v630_v3  ;;  %v112_v2 = vmax.f32 %v96_v52, 0.0  ;;  %v113_v3 = vmax.f32 %v97_v53, 0.0  ;;  %v69_v4 = vmul.f32 %v491_v55, %v688_v5  ;;  %v70_v6 = vmul.f32 %v492_v57, %v688_v5 }
  0x10   :  { %587 = vmatprep.subr.bf16.mxu0 %v631_v17  ;;  %615 = vmatprep.subr.bf16.mxu1 %v631_v17  ;;  %v77_v7 = vmul.f32 %v507_v58, %v688_v5  ;;  %v78_v8 = vmul.f32 %v508_v59, %v688_v5  ;;  %v106_v9 = vmax.f32 %v90_v56, 0.0  ;;  %v107_v11 = vmax.f32 %v91_v60, 0.0 }
  0x11   :  { %595 = vmatprep.mubr.bf16.mxu0 %v118_v37  ;;  %603 = vmatprep.mubr.bf16.mxu1 %v122_v41  ;;  %v114_v12 = vmax.f32 %v98_v61, 0.0  ;;  %v115_v13 = vmax.f32 %v99_v62, 0.0  ;;  %v119_v14 = vpack.c.bf16 %v105_v1, %v104_v0  ;;  %v123_v15 = vpack.c.bf16 %v113_v3, %v112_v2 }
  0x12   :  { %v92_v16 = vadd.f32 %v699_v10, %v69_v4  ;;  %v100_v18 = vadd.f32 %v699_v10, %v77_v7  ;;  %v101_v19 = vadd.f32 %v699_v10, %v78_v8  ;;  %v120_v5 = vpack.c.bf16 %v107_v11, %v106_v9 }
  0x13   :  { %588 = vmatpush3.bf16.msra.mxu0 %v631_v17  ;;  %623 = vmatpush3.bf16.msra.mxu1 %v631_v17  ;;  %v93_v17 = vadd.f32 %v699_v10, %v70_v6  ;;  %v124_v20 = vpack.c.bf16 %v115_v13, %v114_v12  ;;  %v763_v10 = vld [vmem:[%s812_s4] ss:$0 sm:$0xff] }
  0x14   :  { %589 = vmatprep.subr.bf16.mxu0 %v632_v32  ;;  %616 = vmatprep.subr.bf16.mxu1 %v632_v32  ;;  %v108_v21 = vmax.f32 %v92_v16, 0.0  ;;  %v116_v23 = vmax.f32 %v100_v18, 0.0  ;;  %v117_v24 = vmax.f32 %v101_v19, 0.0 }
  0x15   :  { %v109_v22 = vmax.f32 %v93_v17, 0.0 }
  0x16   :  { %v125_v26 = vpack.c.bf16 %v117_v24, %v116_v23 }
  0x17   :  { %590 = vmatpush3.bf16.msra.mxu0 %v632_v32  ;;  %624 = vmatpush3.bf16.msra.mxu1 %v632_v32  ;;  %v121_v25 = vpack.c.bf16 %v109_v22, %v108_v21 }
  0x18   :  { %591 = vmatprep.subr.bf16.mxu0 %v633_v48  ;;  %617 = vmatprep.subr.bf16.mxu1 %v633_v48 }
  0x1b   :  { %592 = vmatpush3.bf16.msra.mxu0 %v633_v48  ;;  %625 = vmatpush3.bf16.msra.mxu1 %v633_v48 }
  0x1c   :  { %593 = vmatprep.subr.bf16.mxu0 %v634_v63  ;;  %618 = vmatprep.subr.bf16.mxu1 %v634_v63 }
  0x1f   :  { %594 = vmatpush3.bf16.msra.mxu0 %v634_v63  ;;  %626 = vmatpush3.bf16.msra.mxu1 %v634_v63 }
  0x22   :  { %596 = vmatmul.mubr.bf16.vlgmr.msra.gmra.mxu0 %v119_v14  ;;  %604 = vmatmul.mubr.bf16.vlgmr.msra.gmra.mxu1 %v123_v15 }
  0x23   :  { %599 = vmatprep.mubr.bf16.mxu0 %v120_v5  ;;  %607 = vmatprep.mubr.bf16.mxu1 %v124_v20 }
  0x2a   :  { %600 = vmatmul.mubr.bf16.gmra.mxu0 %v121_v25  ;;  %608 = vmatmul.mubr.bf16.gmra.mxu1 %v125_v26 }
  0xe2   :  { %v597_v27 = vpop.f32.mrf.mxu0  ;;  %v605_v28 = vpop.f32.mrf.mxu1 }
  0xe3   :  { %v296_v29 = vmul.f32 %v597_v27, %v763_v10  ;;  %v304_v30 = vmul.f32 %v605_v28, %v763_v10 }
  0xe4   :  { %v224_v32 = vpop.f32.mrf.mxu0  ;;  %v256_v33 = vpop.f32.mrf.mxu1 }
  0xe5   :  { %v294_v34 = vmul.f32 %v763_v10, %v224_v32  ;;  %v302_v35 = vmul.f32 %v763_v10, %v256_v33  ;;  %v319_v38 = vadd.f32 %v444_v31, %v296_v29  ;;  %v327_v39 = vadd.f32 %v444_v31, %v304_v30 }
  0xe6   :  { %v598_v36 = vpop.f32.mrf.mxu0  ;;  %v606_v37 = vpop.f32.mrf.mxu1 }
  0xe7   :  { %v297_v40 = vmul.f32 %v598_v36, %v763_v10  ;;  %v305_v41 = vmul.f32 %v606_v37, %v763_v10  ;;  %v317_v44 = vadd.f32 %v444_v31, %v294_v34  ;;  %v325_v45 = vadd.f32 %v444_v31, %v302_v35 }
  0xe8   :  { %v227_v42 = vpop.f32.mrf.mxu0  ;;  %v259_v43 = vpop.f32.mrf.mxu1  ;;  %v335_v52 = vmax.f32 %v319_v38, 0.0  ;;  %v343_v53 = vmax.f32 %v327_v39, 0.0 }
  0xe9   :  { %v295_v46 = vmul.f32 %v763_v10, %v227_v42  ;;  %v303_v47 = vmul.f32 %v763_v10, %v259_v43  ;;  %v320_v48 = vadd.f32 %v444_v31, %v297_v40  ;;  %v328_v49 = vadd.f32 %v444_v31, %v305_v41 }
  0xea   :  { %v601_v50 = vpop.f32.mrf.mxu0  ;;  %v609_v51 = vpop.f32.mrf.mxu1  ;;  %v333_v62 = vmax.f32 %v317_v44, 0.0  ;;  %v341_v63 = vmax.f32 %v325_v45, 0.0 }
  0xeb   :  { %v318_v54 = vadd.f32 %v444_v31, %v295_v46  ;;  %v326_v55 = vadd.f32 %v444_v31, %v303_v47  ;;  %v336_v56 = vmax.f32 %v320_v48, 0.0  ;;  %v344_v57 = vmax.f32 %v328_v49, 0.0 }
  0xec   :  { %v300_v58 = vmul.f32 %v601_v50, %v763_v10  ;;  %v308_v59 = vmul.f32 %v609_v51, %v763_v10  ;;  %v240_v60 = vpop.f32.mrf.mxu0  ;;  %v272_v61 = vpop.f32.mrf.mxu1 }
  0xed   :  { %v334_v0 = vmax.f32 %v318_v54, 0.0  ;;  %v342_v1 = vmax.f32 %v326_v55, 0.0  ;;  %v517_v2 = vpack.c.bf16 %v336_v56, %v335_v52  ;;  %v537_v3 = vpack.c.bf16 %v344_v57, %v343_v53 }
  0xee   :  { %v298_v4 = vmul.f32 %v763_v10, %v240_v60  ;;  %v306_v6 = vmul.f32 %v763_v10, %v272_v61  ;;  %v602_v7 = vpop.f32.mrf.mxu0  ;;  %v610_v8 = vpop.f32.mrf.mxu1  ;;  %v323_v12 = vadd.f32 %v444_v31, %v300_v58  ;;  %v331_v13 = vadd.f32 %v444_v31, %v308_v59 }
  0xef   :  { %v512_v9 = vpack.c.bf16 %v334_v0, %v333_v62  ;;  %v532_v11 = vpack.c.bf16 %v342_v1, %v341_v63  ;;  %556 = vst [vmem:[%s814_s6 + $0x8] sm:$0xff] %v517_v2   ;;  %560 = vst [vmem:[%s814_s6 + $0x28] sm:$0xff] %v537_v3   ;;  %v301_v14 = vmul.f32 %v602_v7, %v763_v10 }
  0xf0   :  { %v309_v15 = vmul.f32 %v610_v8, %v763_v10  ;;  %v243_v16 = vpop.f32.mrf.mxu0  ;;  %v275_v17 = vpop.f32.mrf.mxu1  ;;  %v321_v18 = vadd.f32 %v444_v31, %v298_v4  ;;  %v329_v19 = vadd.f32 %v444_v31, %v306_v6  ;;  %v339_v25 = vmax.f32 %v323_v12, 0.0 }
  0xf1   :  { %513 = vst [vmem:[%s814_s6] sm:$0xff] %v512_v9   ;;  %559 = vst [vmem:[%s814_s6 + $0x20] sm:$0xff] %v532_v11   ;;  %v299_v5 = vmul.f32 %v763_v10, %v243_v16  ;;  %v307_v20 = vmul.f32 %v763_v10, %v275_v17  ;;  %v324_v21 = vadd.f32 %v444_v31, %v301_v14  ;;  %v347_v26 = vmax.f32 %v331_v13, 0.0 }
  0xf2   :  { %v332_v22 = vadd.f32 %v444_v31, %v309_v15  ;;  %v337_v29 = vmax.f32 %v321_v18, 0.0  ;;  %v345_v30 = vmax.f32 %v329_v19, 0.0 }
  0xf3   :  { %v322_v23 = vadd.f32 %v444_v31, %v299_v5  ;;  %v330_v24 = vadd.f32 %v444_v31, %v307_v20  ;;  %v340_v27 = vmax.f32 %v324_v21, 0.0 }
  0xf4   :  { %v348_v28 = vmax.f32 %v332_v22, 0.0 }
  0xf5   :  { %v338_v32 = vmax.f32 %v322_v23, 0.0  ;;  %v346_v33 = vmax.f32 %v330_v24, 0.0  ;;  %v527_v34 = vpack.c.bf16 %v340_v27, %v339_v25 }
  0xf6   :  { %v547_v35 = vpack.c.bf16 %v348_v28, %v347_v26 }
  0xf7   :  { %v522_v36 = vpack.c.bf16 %v338_v32, %v337_v29  ;;  %v542_v37 = vpack.c.bf16 %v346_v33, %v345_v30  ;;  %558 = vst [vmem:[%s814_s6 + $0x18] sm:$0xff] %v527_v34  }
  0xf8   :  { %562 = vst [vmem:[%s814_s6 + $0x38] sm:$0xff] %v547_v35  }
  0xf9   :  { %557 = vst [vmem:[%s814_s6 + $0x10] sm:$0xff] %v522_v36   ;;  %561 = vst [vmem:[%s814_s6 + $0x30] sm:$0xff] %v542_v37  }

// kernel: densenet_forward.28
= control target key start
LH: loop header
LB: loop body
LE: loop exit
PB: predicated region body
PF: predicated region fallthrough
CT: control target
= control target key end

     0   :  { %s566_s15 = smov 0   ;;  %s626_s0 = inlined_call_operand.vmem [shape: bf16[2,4,16,128], index: 0, kind: input, shape index: {}]   ;;  %s627_s1 = inlined_call_operand.vmem [shape: f32[1,1,128], index: 1, kind: input, shape index: {}]   ;;  %s628_s2 = inlined_call_operand.vmem [shape: f32[1,1,128], index: 2, kind: input, shape index: {}]   ;;  %s629_s3 = inlined_call_operand.vmem [shape: bf16[128,128], index: 3, kind: input, shape index: {}]   ;;  %s630_s4 = inlined_call_operand.vmem [shape: bf16[2,16,128], index: 4, kind: output, shape index: {}]  }
   0x1 LB: > { %s433_s16 = sadd.s32 4294967295, %s537_s15   ;;  %p437_p0 = scmp.ge.s32.totalorder %s537_s15, 1  ;;  %s537_s15 = sphi %s566_s15, %s14_s15  }
   0x2   : > { %p162_p1 = scmp.lt.s32.totalorder %s537_s15, 3 }
   0x4   : > { %p163_p2 = pnand %p437_p0, %p162_p1 }
   0x5   : > { %p188_p3 = scmp.lt.s32.totalorder (!%p163_p2), %s433_s16, 1 }
   0x6   : > { %166 = sbr.rel (%p163_p2) target bundleno = 244 (0xf4), region = 36 }
   0xb   : > { %v523_v0 = vld [vmem:[%s629_s3 + $0x38] sm:$0xff]   ;;  %v539_v1 = vmov 0.0   ;;  %v524_v2 = vld [vmem:[%s629_s3 + $0x30] sm:$0xff]   ;;  %vm540_vm0 = vmmov 0   ;;  %s632_s16 = smov (!%p188_p3, %s433_s16), 1  ;;  %v525_v3 = vld [vmem:[%s629_s3 + $0x28] sm:$0xff]  }
   0xc   : > { %493 = vmatprep.subr.bf16.mxu0 %v539_v1  ;;  %509 = vmatprep.mubr.msk.bf16.mxu0 %vm540_vm0, %v539_v1  ;;  %s456_s23 = sshll.u32 %s632_s16, 5  ;;  %v442_v12 = vld [vmem:[%s627_s1] ss:$0 sm:$0xff]  ;;  %v527_v31 = vld [vmem:[%s629_s3 + $0x18] sm:$0xff]   ;;  %v528_v46 = vld [vmem:[%s629_s3 + $0x10] sm:$0xff]   ;;  %s457_s17 = sshll.u32 %s632_s16, 3 }
   0xd   : > { %494 = vmatpush3.bf16.msra.mxu0 %v523_v0  ;;  %s192_s26 = scalar_lea.vmem %s626_s0, %s456_s23  ;;  %v526_v13 = vld [vmem:[%s629_s3 + $0x20] sm:$0xff]   ;;  %v529_v51 = vld [vmem:[%s629_s3 + $0x8] sm:$0xff]   ;;  %s197_s20 = scalar_lea.vmem %s630_s4, %s457_s17 }
   0xe   : > { %495 = vmatprep.subr.bf16.mxu0 %v539_v1  ;;  %v461_v4 = vld [vmem:[%s192_s26] sm:$0xff]   ;;  %v481_v5 = vld [vmem:[%s192_s26 + $0x8] sm:$0xff]   ;;  %v482_v6 = vld [vmem:[%s192_s26 + $0x10] sm:$0xff]  }
   0xf   : > { %v462_v7 = vunpack.c.l.bf16 %v461_v4  ;;  %v463_v8 = vunpack.c.h.bf16 %v461_v4  ;;  %v466_v9 = vunpack.c.l.bf16 %v481_v5  ;;  %v467_v10 = vunpack.c.h.bf16 %v481_v5  ;;  %v483_v11 = vld [vmem:[%s192_s26 + $0x18] sm:$0xff]   ;;  %v443_v18 = vld [vmem:[%s628_s2] ss:$0 sm:$0xff] }
  0x10   : > { %v470_v14 = vunpack.c.l.bf16 %v482_v6  ;;  %v471_v15 = vunpack.c.h.bf16 %v482_v6  ;;  %v474_v16 = vunpack.c.l.bf16 %v483_v11  ;;  %v475_v17 = vunpack.c.h.bf16 %v483_v11  ;;  %v530_v54 = vld [vmem:[%s629_s3] sm:$0xff]  }
  0x11   : > { %496 = vmatpush3.bf16.msra.mxu0 %v524_v2  ;;  %v222_v19 = vmul.f32 %v462_v7, %v442_v12  ;;  %v223_v20 = vmul.f32 %v463_v8, %v442_v12  ;;  %v224_v21 = vmul.f32 %v466_v9, %v442_v12  ;;  %v225_v22 = vmul.f32 %v467_v10, %v442_v12 }
  0x12   : > { %497 = vmatprep.subr.bf16.mxu0 %v539_v1  ;;  %v226_v23 = vmul.f32 %v470_v14, %v442_v12  ;;  %v227_v24 = vmul.f32 %v471_v15, %v442_v12  ;;  %v228_v25 = vmul.f32 %v474_v16, %v442_v12  ;;  %v229_v26 = vmul.f32 %v475_v17, %v442_v12 }
  0x13   : > { %v237_v27 = vadd.f32 %v443_v18, %v222_v19  ;;  %v238_v28 = vadd.f32 %v443_v18, %v223_v20  ;;  %v239_v29 = vadd.f32 %v443_v18, %v224_v21  ;;  %v240_v30 = vadd.f32 %v443_v18, %v225_v22 }
  0x14   : > { %v241_v32 = vadd.f32 %v443_v18, %v226_v23  ;;  %v242_v33 = vadd.f32 %v443_v18, %v227_v24  ;;  %v243_v34 = vadd.f32 %v443_v18, %v228_v25  ;;  %v244_v35 = vadd.f32 %v443_v18, %v229_v26 }
  0x15   : > { %498 = vmatpush3.bf16.msra.mxu0 %v525_v3  ;;  %v245_v36 = vmax.f32 %v237_v27, 0.0  ;;  %v246_v37 = vmax.f32 %v238_v28, 0.0  ;;  %v247_v38 = vmax.f32 %v239_v29, 0.0  ;;  %v248_v39 = vmax.f32 %v240_v30, 0.0 }
  0x16   : > { %499 = vmatprep.subr.bf16.mxu0 %v539_v1  ;;  %v249_v40 = vmax.f32 %v241_v32, 0.0  ;;  %v250_v41 = vmax.f32 %v242_v33, 0.0  ;;  %v251_v42 = vmax.f32 %v243_v34, 0.0  ;;  %v252_v43 = vmax.f32 %v244_v35, 0.0 }
  0x17   : > { %v253_v44 = vadd.f32 %v247_v38, %v245_v36  ;;  %v256_v45 = vadd.f32 %v248_v39, %v246_v37 }
  0x19   : > { %500 = vmatpush3.bf16.msra.mxu0 %v526_v13  ;;  %v254_v47 = vadd.f32 %v253_v44, %v249_v40  ;;  %v257_v48 = vadd.f32 %v256_v45, %v250_v41 }
  0x1a   : > { %501 = vmatprep.subr.bf16.mxu0 %v539_v1 }
  0x1b   : > { %v255_v49 = vadd.f32 %v254_v47, %v251_v42  ;;  %v258_v50 = vadd.f32 %v257_v48, %v252_v43 }
  0x1d   : > { %502 = vmatpush3.bf16.msra.mxu0 %v527_v31  ;;  %v260_v52 = vmul.f32 0.25, %v255_v49  ;;  %v261_v53 = vmul.f32 0.25, %v258_v50 }
  0x1e   : > { %503 = vmatprep.subr.bf16.mxu0 %v539_v1 }
  0x1f   : > { %v262_v55 = vpack.c.bf16 %v261_v53, %v260_v52 }
  0x21   : > { %504 = vmatpush3.bf16.msra.mxu0 %v528_v46 }
  0x22   : > { %505 = vmatprep.subr.bf16.mxu0 %v539_v1 }
  0x25   : > { %506 = vmatpush3.bf16.msra.mxu0 %v529_v51 }
  0x26   : > { %507 = vmatprep.subr.bf16.mxu0 %v539_v1 }
  0x29   : > { %508 = vmatpush3.bf16.msra.mxu0 %v530_v54 }
  0x2c   : > { %510 = vmatmul.mubr.bf16.vlgmr.msra.gmra.mxu0 %v262_v55 }
  0xec   : > { %v361_v56 = vpop.f32.mrf.mxu0 }
  0xee   : > { %v511_v57 = vpop.f32.mrf.mxu0 }
  0xf0   : > { %v364_v58 = vpop.f32.mrf.mxu0 }
  0xf1   : > { %v479_v59 = vpack.c.bf16 %v364_v58, %v361_v56 }
  0xf2   : > { %v512_v60 = vpop.f32.mrf.mxu0 }
  0xf3   : > { %480 = vst [vmem:[%s197_s20] sm:$0xff] %v479_v59  }
  0xf4 PF: > { %s14_s15 = sadd.s32 1, %s537_s15  }
  0xf5   : > { %p11_p4 = scmp.ge.s32.totalorder %s14_s15, 4  }
  0xf7   :  { %13 = sbr.rel (!%p11_p4) target bundleno = 1 (0x1), region = 66 }

// kernel: densenet_forward.29
= control target key start
LH: loop header
LB: loop body
LE: loop exit
PB: predicated region body
PF: predicated region fallthrough
CT: control target
= control target key end

     0   :  { %11 = vsyncpa [#allocation3], 0  ;;  %s458_s0 = inlined_call_operand.vmem [shape: bf16[32,128], index: 0, kind: input, shape index: {}]   ;;  %s459_s1 = inlined_call_operand.vmem [shape: f32[1,128], index: 1, kind: input, shape index: {}]   ;;  %s460_s2 = inlined_call_operand.vmem [shape: f32[1,128], index: 2, kind: input, shape index: {}]   ;;  %s461_s3 = inlined_call_operand.vmem [shape: bf16[128,128], index: 3, kind: input, shape index: {}]   ;;  %s462_s4 = inlined_call_operand.hbm [shape: f32[1,128], index: 4, kind: input, shape index: {}]   ;;  %s463_s5 = inlined_call_operand.hbm [shape: f32[1,128], index: 5, kind: input, shape index: {}]   ;;  %s464_s6 = inlined_call_operand.vmem [shape: bf16[32,128], index: 6, kind: output, shape index: {}]  }
   0x1   :  { %12 = vsyncpa [#allocation5], 0  ;;  %s373_s21 = smov [#allocation2]   ;;  %s374_s23 = smov [#allocation4]  }
   0x2   :  { %s27_s22 = sshll.u32 %s373_s21, 4  ;;  %s37_s24 = sshll.u32 %s374_s23, 4  ;;  %s28_s22 = int_to_ptr.vmem [resolvable:$true] %s27_s22  ;;  %s38_s24 = int_to_ptr.vmem [resolvable:$true] %s37_s24 }
   0x3   :  { %s337_s25 = scalar_lea.vmem %s28_s22, 16  ;;  %s341_s26 = scalar_lea.vmem %s28_s22, 32 }
   0x4   :  { %p338_p0 = scmp.ne.s32.totalorder %s28_s22, %s337_s25  ;;  %p342_p1 = scmp.lt.s32.totalorder %s28_s22, %s28_s22 }
   0x5   :  { %p343_p2 = scmp.lt.s32.totalorder %s341_s26, %s337_s25 }
   0x7   :  { %p344_p3 = por %p343_p2, %p342_p1 }
   0x9   :  { %p345_p4 = pnand %p344_p3, %p338_p0 }
   0xb   :  { %348 = shalt.err (!%p345_p4)
}
   0xc   :  { %30 = dma.hbm_to_vmem [thread:$0]  %s462_s4, 16, %s28_s22, [#allocation3]  }
   0xd   :  { %s357_s29 = scalar_lea.vmem %s38_s24, 16  ;;  %s361_s30 = scalar_lea.vmem %s38_s24, 32 }
   0xe   :  { %p358_p5 = scmp.ne.s32.totalorder %s38_s24, %s357_s29  ;;  %p362_p6 = scmp.lt.s32.totalorder %s38_s24, %s38_s24 }
   0xf   :  { %p363_p7 = scmp.lt.s32.totalorder %s361_s30, %s357_s29 }
  0x11   :  { %p364_p8 = por %p363_p7, %p362_p6 }
  0x13   :  { %p365_p9 = pnand %p364_p8, %p358_p5 }
  0x15   :  { %368 = shalt.err (!%p365_p9)
}
  0x16   :  { %40 = dma.hbm_to_vmem [thread:$0]  %s463_s5, 16, %s38_s24, [#allocation5]  }
  0x17   :  { %369 = dma.done.wait [#allocation3], 16  }
  0x18   :  { %370 = vsyncadd [#allocation3], 4294967280 }
  0x19   :  { %371 = dma.done.wait [#allocation5], 16  }
  0x1a   :  { %372 = vsyncadd [#allocation5], 4294967280  ;;  %v321_v0 = vld [vmem:[%s461_s3 + $0x38] sm:$0xff]   ;;  %v322_v1 = vld [vmem:[%s461_s3 + $0x30] sm:$0xff]  }
  0x1b   :  { %299 = vmatprep.subr.bf16.mxu0 %v321_v0  ;;  %v323_v2 = vld [vmem:[%s461_s3 + $0x28] sm:$0xff]   ;;  %v324_v3 = vld [vmem:[%s461_s3 + $0x20] sm:$0xff]   ;;  %v325_v12 = vld [vmem:[%s461_s3 + $0x18] sm:$0xff]  }
  0x1c   :  { %300 = vmatpush3.bf16.msra.mxu0 %v321_v0  ;;  %v270_v4 = vld [vmem:[%s458_s0] sm:$0xff]   ;;  %v287_v11 = vld [vmem:[%s458_s0 + $0x8] sm:$0xff]   ;;  %v326_v19 = vld [vmem:[%s461_s3 + $0x10] sm:$0xff]  }
  0x1d   :  { %301 = vmatprep.subr.bf16.mxu0 %v322_v1  ;;  %v249_v5 = vld [vmem:[%s459_s1] ss:$0 sm:$0xff]  ;;  %v271_v6 = vunpack.c.l.bf16 %v270_v4  ;;  %v272_v7 = vunpack.c.h.bf16 %v270_v4  ;;  %v275_v15 = vunpack.c.l.bf16 %v287_v11  ;;  %v276_v16 = vunpack.c.h.bf16 %v287_v11  ;;  %v327_v23 = vld [vmem:[%s461_s3 + $0x8] sm:$0xff]   ;;  %v260_v33 = vld [vmem:[#allocation4] ss:$0 sm:$0xff] }
  0x1e   :  { %v250_v8 = vld [vmem:[%s460_s2] ss:$0 sm:$0xff] }
  0x1f   :  { %v63_v9 = vmul.f32 %v271_v6, %v249_v5  ;;  %v64_v10 = vmul.f32 %v272_v7, %v249_v5  ;;  %v65_v21 = vmul.f32 %v275_v15, %v249_v5  ;;  %v66_v22 = vmul.f32 %v276_v16, %v249_v5  ;;  %v328_v26 = vld [vmem:[%s461_s3] sm:$0xff]  }
  0x20   :  { %302 = vmatpush3.bf16.msra.mxu0 %v322_v1  ;;  %v259_v30 = vld [vmem:[#allocation2] ss:$0 sm:$0xff] }
  0x21   :  { %303 = vmatprep.subr.bf16.mxu0 %v323_v2  ;;  %v74_v13 = vadd.f32 %v250_v8, %v63_v9  ;;  %v75_v14 = vadd.f32 %v250_v8, %v64_v10  ;;  %v76_v24 = vadd.f32 %v250_v8, %v65_v21  ;;  %v77_v25 = vadd.f32 %v250_v8, %v66_v22 }
  0x23   :  { %v78_v17 = vmax.f32 %v74_v13, 0.0  ;;  %v79_v18 = vmax.f32 %v75_v14, 0.0  ;;  %v80_v27 = vmax.f32 %v76_v24, 0.0  ;;  %v81_v28 = vmax.f32 %v77_v25, 0.0 }
  0x24   :  { %304 = vmatpush3.bf16.msra.mxu0 %v323_v2 }
  0x25   :  { %305 = vmatprep.subr.bf16.mxu0 %v324_v3  ;;  %v82_v20 = vpack.c.bf16 %v79_v18, %v78_v17  ;;  %v83_v29 = vpack.c.bf16 %v81_v28, %v80_v27 }
  0x27   :  { %315 = vmatprep.mubr.bf16.mxu0 %v82_v20 }
  0x28   :  { %306 = vmatpush3.bf16.msra.mxu0 %v324_v3 }
  0x29   :  { %307 = vmatprep.subr.bf16.mxu0 %v325_v12 }
  0x2c   :  { %308 = vmatpush3.bf16.msra.mxu0 %v325_v12 }
  0x2d   :  { %309 = vmatprep.subr.bf16.mxu0 %v326_v19 }
  0x30   :  { %310 = vmatpush3.bf16.msra.mxu0 %v326_v19 }
  0x31   :  { %311 = vmatprep.subr.bf16.mxu0 %v327_v23 }
  0x34   :  { %312 = vmatpush3.bf16.msra.mxu0 %v327_v23 }
  0x35   :  { %313 = vmatprep.subr.bf16.mxu0 %v328_v26 }
  0x38   :  { %314 = vmatpush3.bf16.msra.mxu0 %v328_v26 }
  0x3b   :  { %316 = vmatmul.mubr.bf16.vlgmr.msra.gmra.mxu0 %v83_v29 }
  0xfb   :  { %v317_v31 = vpop.f32.mrf.mxu0 }
  0xfc   :  { %v206_v32 = vmul.f32 %v317_v31, %v259_v30 }
  0xfd   :  { %v182_v34 = vpop.f32.mrf.mxu0 }
  0xfe   :  { %v204_v35 = vmul.f32 %v259_v30, %v182_v34  ;;  %v217_v37 = vadd.f32 %v260_v33, %v206_v32 }
  0xff   :  { %v318_v36 = vpop.f32.mrf.mxu0 }
 0x100   :  { %v207_v38 = vmul.f32 %v318_v36, %v259_v30  ;;  %v215_v40 = vadd.f32 %v260_v33, %v204_v35  ;;  %v221_v43 = vmax.f32 %v217_v37, 0.0 }
 0x101   :  { %v185_v39 = vpop.f32.mrf.mxu0 }
 0x102   :  { %v218_v41 = vadd.f32 %v260_v33, %v207_v38  ;;  %v205_v42 = vmul.f32 %v259_v30, %v185_v39  ;;  %v219_v46 = vmax.f32 %v215_v40, 0.0 }
 0x104   :  { %v222_v44 = vmax.f32 %v218_v41, 0.0  ;;  %v216_v45 = vadd.f32 %v260_v33, %v205_v42 }
 0x106   :  { %v285_v47 = vpack.c.bf16 %v222_v44, %v221_v43  ;;  %v220_v48 = vmax.f32 %v216_v45, 0.0 }
 0x108   :  { %288 = vst [vmem:[%s464_s6 + $0x8] sm:$0xff] %v285_v47   ;;  %v280_v49 = vpack.c.bf16 %v220_v48, %v219_v46 }
 0x10a   :  { %281 = vst [vmem:[%s464_s6] sm:$0xff] %v280_v49  }
 0x10b   :  { %247 = vsyncpa [#allocation3], 1 }
 0x10c   :  { %248 = vsyncpa [#allocation5], 1 }

// kernel: densenet_forward.25
= control target key start
LH: loop header
LB: loop body
LE: loop exit
PB: predicated region body
PF: predicated region fallthrough
CT: control target
= control target key end

     0   :  { %s3236_s12 = smov 0   ;;  %s3790_s0 = inlined_call_operand.vmem [shape: bf16[2,176,128], index: 0, kind: input, shape index: {}]   ;;  %s3791_s1 = inlined_call_operand.vmem [shape: bf16[2,64,128], index: 1, kind: input, shape index: {}]   ;;  %s3792_s2 = inlined_call_operand.vmem [shape: bf16[9,128,128], index: 2, kind: input, shape index: {}]   ;;  %s3793_s3 = inlined_call_operand.vmem [shape: bf16[2,64,128], index: 3, kind: output, shape index: {}]  }
   0x1 LB: > { %s2373_s13 = sadd.s32 4294967295, %s3214_s12   ;;  %p2377_p0 = scmp.ge.s32.totalorder %s3214_s12, 1  ;;  %s3214_s12 = sphi %s3236_s12, %s13_s12  }
   0x2   : > { %p147_p1 = scmp.lt.s32.totalorder %s3214_s12, 3 }
   0x4   : > { %p148_p2 = pnand %p2377_p0, %p147_p1 }
   0x5   : > { %p176_p3 = scmp.lt.s32.totalorder (!%p148_p2), %s2373_s13, 1 }
   0x6   : > { %151 = sbr.rel (%p148_p2) target bundleno = 383 (0x17f), region = 32 }
   0xb   : > { %v3090_v0 = vld [vmem:[%s3792_s2 + $0x78] sm:$0xff]   ;;  %v3092_v2 = vld [vmem:[%s3792_s2 + $0x70] sm:$0xff]   ;;  %v3094_v4 = vld [vmem:[%s3792_s2 + $0x68] sm:$0xff]   ;;  %s3795_s13 = smov (!%p176_p3, %s2373_s13), 1  ;;  %vm285_vm0 = vsmask.f32 7424 }
   0xc   : > { %v3091_v1 = vld [vmem:[%s3792_s2 + $0x38] sm:$0xff]   ;;  %2777 = vmatprep.subr.bf16.mxu0 %v3090_v0  ;;  %v3093_v3 = vld [vmem:[%s3792_s2 + $0x30] sm:$0xff]   ;;  %v3095_v5 = vld [vmem:[%s3792_s2 + $0x28] sm:$0xff]   ;;  %s3081_s30 = smul.u32 88, %s3795_s13  ;;  %vm665_vm1 = vcmask 1046528  }
   0xd   : > { %2809 = vmatprep.subr.bf16.mxu1 %v3091_v1  ;;  %2778 = vmatpush3.bf16.msra.mxu0 %v3090_v0  ;;  %v3096_v6 = vld [vmem:[%s3792_s2 + $0x60] sm:$0xff]   ;;  %v3098_v8 = vld [vmem:[%s3792_s2 + $0x58] sm:$0xff]   ;;  %v3100_v10 = vld [vmem:[%s3792_s2 + $0x50] sm:$0xff]  }
   0xe   : > { %2810 = vmatpush3.bf16.msra.mxu1 %v3091_v1  ;;  %2779 = vmatprep.subr.bf16.mxu0 %v3092_v2  ;;  %v3097_v7 = vld [vmem:[%s3792_s2 + $0x20] sm:$0xff]   ;;  %v3099_v9 = vld [vmem:[%s3792_s2 + $0x18] sm:$0xff]   ;;  %s3280_s10 = scalar_lea.vmem %s3790_s0, %s3081_s30  ;;  %v3101_v11 = vld [vmem:[%s3792_s2 + $0x10] sm:$0xff]  }
   0xf   : > { %2811 = vmatprep.subr.bf16.mxu1 %v3093_v3  ;;  %v192_v12 = vld [vmem:[%s3280_s10] sm:$0xf]  ;;  %v3290_v13 = vld [vmem:[%s3280_s10 + $0x4] sm:$0xf]  ;;  %v3294_v15 = vld [vmem:[%s3280_s10 + $0x8] sm:$0xff]  }
  0x10   : > { %v2399_v14 = vcombine.low %v192_v12, %v3290_v13  ;;  %v3297_v16 = vld [vmem:[%s3280_s10 + $0x10] sm:$0xff]   ;;  %v3102_v17 = vld [vmem:[%s3792_s2 + $0x48] sm:$0xff]   ;;  %v294_v20 = vshll.u32 %v3294_v15, 16  ;;  %v3104_v24 = vld [vmem:[%s3792_s2 + $0x40] sm:$0xff]   ;;  %v298_v25 = vshrl.u32 %v3294_v15, 16 }
  0x11   : > { %2780 = vmatpush3.bf16.msra.mxu0 %v3092_v2  ;;  %v3103_v21 = vld [vmem:[%s3792_s2 + $0x8] sm:$0xff]   ;;  %v302_v26 = vshll.u32 %v3297_v16, 16  ;;  %v3312_v28 = vld [vmem:[%s3280_s10 + $0x18] sm:$0xff]   ;;  %v3105_v29 = vld [vmem:[%s3792_s2] sm:$0xff]   ;;  %v306_v31 = vshrl.u32 %v3297_v16, 16 }
  0x12   : > { %2812 = vmatpush3.bf16.msra.mxu1 %v3093_v3  ;;  %2781 = vmatprep.subr.bf16.mxu0 %v3094_v4  ;;  %v287_v18 = vshrl.u32 %v2399_v14, 16  ;;  %v289_v19 = vshll.u32 %v2399_v14, 16  ;;  %v296_v23 = vrot.slane %v294_v20, 1  ;;  %v310_v32 = vshll.u32 %v3312_v28, 16  ;;  %v3321_v35 = vld [vmem:[%s3280_s10 + $0x20] sm:$0xff]   ;;  %v3109_v36 = vld [vmem:[%s3792_s2 + $0xb8] sm:$0xff]  }
  0x13   : > { %2813 = vmatprep.subr.bf16.mxu1 %v3095_v5  ;;  %2825 = vmatprep.mubr.bf16.mxu1 %v2399_v14  ;;  %v304_v34 = vrot.slane %v302_v26, 1  ;;  %v3110_v37 = vld [vmem:[%s3792_s2 + $0xf8] sm:$0xff]   ;;  %v3330_v40 = vld [vmem:[%s3280_s10 + $0x28] sm:$0xff]   ;;  %v314_v42 = vshrl.u32 %v3312_v28, 16  ;;  %v318_v43 = vshll.u32 %v3321_v35, 16  ;;  %v3111_v44 = vld [vmem:[%s3792_s2 + $0xb0] sm:$0xff]  }
  0x14   : > { %v291_v22 = vrot.slane %v289_v19, 1  ;;  %v300_v33 = vor.u32 %v298_v25, %v296_v23  ;;  %v312_v39 = vrot.slane %v310_v32, 1  ;;  %v3112_v45 = vld [vmem:[%s3792_s2 + $0xf0] sm:$0xff]   ;;  %v322_v47 = vshrl.u32 %v3321_v35, 16  ;;  %v3115_v52 = vld [vmem:[%s3792_s2 + $0xa8] sm:$0xff]   ;;  %v3356_v56 = vld [vmem:[%s3280_s10 + $0x38] sm:$0xff]  }
  0x15   : > { %2782 = vmatpush3.bf16.msra.mxu0 %v3094_v4  ;;  %v308_v38 = vor.u32 %v306_v31, %v304_v34  ;;  %v326_v48 = vshll.u32 %v3330_v40, 16  ;;  %v320_v50 = vrot.slane %v318_v43, 1  ;;  %v3346_v51 = vld [vmem:[%s3280_s10 + $0x30] sm:$0xff]   ;;  %v3116_v53 = vld [vmem:[%s3792_s2 + $0xe8] sm:$0xff]   ;;  %v330_v58 = vshrl.u32 %v3330_v40, 16  ;;  %v3117_v60 = vld [vmem:[%s3792_s2 + $0xa0] sm:$0xff]  }
  0x16   : > { %2814 = vmatpush3.bf16.msra.mxu1 %v3095_v5  ;;  %2783 = vmatprep.subr.bf16.mxu0 %v3096_v6  ;;  %v292_v27 = vor.u32 %v291_v22, %v287_v18  ;;  %v305_v41 = vsel %vm285_vm0, %v300_v33, %v304_v34  ;;  %v316_v49 = vor.u32 %v314_v42, %v312_v39  ;;  %v334_v59 = vshll.u32 %v3346_v51, 16  ;;  %v3118_v61 = vld [vmem:[%s3792_s2 + $0xe0] sm:$0xff]   ;;  %v3121_v4 = vld [vmem:[%s3792_s2 + $0x98] sm:$0xff]   ;;  %v3123_v12 = vld [vmem:[%s3792_s2 + $0x90] sm:$0xff]  }
  0x17   : > { %2815 = vmatprep.subr.bf16.mxu1 %v3097_v7  ;;  %v313_v46 = vsel %vm285_vm0, %v308_v38, %v312_v39  ;;  %v324_v54 = vor.u32 %v322_v47, %v320_v50  ;;  %v328_v55 = vrot.slane %v326_v48, 1  ;;  %v3368_v62 = vld [vmem:[%s3280_s10 + $0x40] ss:$0 sps:$4 sm:$0x11]   ;;  %v338_v0 = vshrl.u32 %v3346_v51, 16  ;;  %v3122_v5 = vld [vmem:[%s3792_s2 + $0xd8] sm:$0xff]  }
  0x18   : > { %v297_v30 = vsel %vm285_vm0, %v292_v27, %v296_v23  ;;  %v321_v57 = vsel %vm285_vm0, %v316_v49, %v320_v50  ;;  %v342_v1 = vshll.u32 %v3356_v56, 16  ;;  %v336_v3 = vrot.slane %v334_v59, 1  ;;  %v3124_v14 = vld [vmem:[%s3792_s2 + $0xd0] sm:$0xff]   ;;  %v3128_v22 = vld [vmem:[%s3792_s2 + $0xc8] sm:$0xff]   ;;  %v3129_v25 = vld [vmem:[%s3792_s2 + $0x80] sm:$0xff]  }
  0x19   : > { %2784 = vmatpush3.bf16.msra.mxu0 %v3096_v6  ;;  %2793 = vmatprep.mubr.bf16.mxu0 %v297_v30  ;;  %v329_v63 = vsel %vm285_vm0, %v324_v54, %v328_v55  ;;  %v332_v2 = vor.u32 %v330_v58, %v328_v55  ;;  %v346_v6 = vshrl.u32 %v3356_v56, 16  ;;  %v667_v23 = vrot.slane %v3294_v15, 1  ;;  %v3130_v26 = vld [vmem:[%s3792_s2 + $0xc0] sm:$0xff]   ;;  %v3134_v30 = vld [vmem:[%s3792_s2 + $0x138] sm:$0xff]   ;;  %v3136_v34 = vld [vmem:[%s3792_s2 + $0x130] sm:$0xff]  }
  0x1a   : > { %2816 = vmatpush3.bf16.msra.mxu1 %v3097_v7  ;;  %2785 = vmatprep.subr.bf16.mxu0 %v3098_v8  ;;  %v340_v7 = vor.u32 %v338_v0, %v336_v3  ;;  %v3135_v31 = vld [vmem:[%s3792_s2 + $0x178] sm:$0xff]   ;;  %v671_v32 = vrot.slane %v3312_v28, 1  ;;  %v673_v38 = vrot.slane %v3321_v35, 1  ;;  %v3140_v39 = vld [vmem:[%s3792_s2 + $0x128] sm:$0xff]   ;;  %v3139_v42 = vld [vmem:[%s3280_s10 + $0x20] sm:$0xff]   ;;  %v677_v50 = vrot.slane %v3346_v51, 1 }
  0x1b   : > { %2817 = vmatprep.subr.bf16.mxu1 %v3099_v9  ;;  %v3142_v43 = vld [vmem:[%s3792_s2 + $0x120] sm:$0xff]   ;;  %v3144_v49 = vld [vmem:[%s3280_s10 + $0x28] sm:$0xff]   ;;  %v3458_v54 = vld [vmem:[%s3280_s10 + $0x10] sm:$0xff]  }
  0x1c   : > { %v3143_v47 = vld [vmem:[%s3792_s2 + $0x160] sm:$0xff]   ;;  %v1360_v55 = vld [vmem:[%s3280_s10 + $0x8] sm:$0xe]  ;;  %v3150_v0 = vld [vmem:[%s3280_s10 + $0x38] sm:$0xff]  }
  0x1d   : > { %2786 = vmatpush3.bf16.msra.mxu0 %v3098_v8  ;;  %v344_v8 = vrot.slane %v342_v1, 1 }
  0x1e   : > { %2818 = vmatpush3.bf16.msra.mxu1 %v3099_v9  ;;  %2787 = vmatprep.subr.bf16.mxu0 %v3100_v10  ;;  %v350_v9 = vshll.u32 %v3368_v62, 16 }
  0x1f   : > { %2819 = vmatprep.subr.bf16.mxu1 %v3101_v11  ;;  %v348_v19 = vor.u32 %v346_v6, %v344_v8  ;;  %v3152_v6 = vld [vmem:[%s3792_s2 + $0x108] sm:$0xff]  }
  0x20   : > { %v352_v20 = vrot.slane %v350_v9, 1 }
  0x21   : > { %2788 = vmatpush3.bf16.msra.mxu0 %v3100_v10  ;;  %v337_v10 = vsel %vm285_vm0, %v332_v2, %v336_v3 }
  0x22   : > { %2820 = vmatpush3.bf16.msra.mxu1 %v3101_v11  ;;  %2789 = vmatprep.subr.bf16.mxu0 %v3102_v17  ;;  %v644_v11 = vld [vmem:[%s3280_s10] sm:$0xe] }
  0x23   : > { %2821 = vmatprep.subr.bf16.mxu1 %v3103_v21  ;;  %v2440_v18 = vcombine.low %v644_v11, %v3290_v13 }
  0x25   : > { %2790 = vmatpush3.bf16.msra.mxu0 %v3102_v17  ;;  %v345_v17 = vsel %vm285_vm0, %v340_v7, %v344_v8  ;;  %v666_v13 = vrot.slane %v2440_v18, 1  ;;  %v3153_v7 = vld [vmem:[%s3792_s2 + $0x148] sm:$0xff]   ;;  %v1151_v8 = vshrl.u32 %v3458_v54, 16 }
  0x26   : > { %2822 = vmatpush3.bf16.msra.mxu1 %v3103_v21  ;;  %2791 = vmatprep.subr.bf16.mxu0 %v3104_v24  ;;  %v3127_v21 = vld [vmem:[%s3792_s2 + $0x88] sm:$0xff]  }
  0x27   : > { %2823 = vmatprep.subr.bf16.mxu1 %v3105_v29  ;;  %v668_v27 = vsel %vm665_vm1, %v666_v13, %v667_v23 }
  0x29   : > { %2792 = vmatpush3.bf16.msra.mxu0 %v3104_v24  ;;  %v353_v24 = vsel %vm285_vm0, %v348_v19, %v352_v20  ;;  %v3154_v19 = vld [vmem:[%s3792_s2 + $0x100] sm:$0xff]  }
  0x2a   : > { %2824 = vmatpush3.bf16.msra.mxu1 %v3105_v29  ;;  %2841 = vmatprep.subr.bf16.mxu0 %v3109_v36  ;;  %v669_v29 = vrot.slane %v3297_v16, 1  ;;  %v3155_v20 = vld [vmem:[%s3792_s2 + $0x140] sm:$0xff]  }
  0x2b   : > { %2873 = vmatprep.subr.bf16.mxu1 %v3110_v37 }
  0x2c   : > { %2794 = vmatmul.mubr.bf16.vlgmr.msra.gmra.mxu0 %v305_v41  ;;  %v670_v33 = vsel %vm665_vm1, %v667_v23, %v669_v29  ;;  %v3141_v41 = vld [vmem:[%s3792_s2 + $0x168] sm:$0xff]  }
  0x2d   : > { %2826 = vmatmul.mubr.bf16.vlgmr.msra.gmra.mxu1 %v3294_v15  ;;  %2842 = vmatpush3.bf16.msra.mxu0 %v3109_v36  ;;  %v3132_v15 = vld [vmem:[%s3280_s10 + $0x8] sm:$0xff]   ;;  %v3137_v36 = vld [vmem:[%s3792_s2 + $0x170] sm:$0xff]  }
  0x2e   : > { %2874 = vmatpush3.bf16.msra.mxu1 %v3110_v37  ;;  %2843 = vmatprep.subr.bf16.mxu0 %v3111_v44  ;;  %v672_v37 = vsel %vm665_vm1, %v669_v29, %v671_v32  ;;  %v3501_v23 = vld [vmem:[%s3280_s10 + $0x28] sm:$0xff]   ;;  %v3161_v29 = vld [vmem:[%s3792_s2 + $0x1f8] sm:$0xff]  }
  0x2f   : > { %2875 = vmatprep.subr.bf16.mxu1 %v3112_v45  ;;  %2797 = vmatprep.mubr.bf16.mxu0 %v313_v46  ;;  %v1063_v46 = vld [vmem:[%s3280_s10 + $0xc] sm:$0xf] }
  0x30   : > { %2829 = vmatprep.mubr.bf16.mxu1 %v3297_v16  ;;  %v3133_v16 = vld [vmem:[%s3280_s10 + $0x10] sm:$0xff]  }
  0x31   : > { %2844 = vmatpush3.bf16.msra.mxu0 %v3111_v44  ;;  %v674_v44 = vsel %vm665_vm1, %v671_v32, %v673_v38 }
  0x32   : > { %2876 = vmatpush3.bf16.msra.mxu1 %v3112_v45  ;;  %2845 = vmatprep.subr.bf16.mxu0 %v3115_v52  ;;  %v1062_v45 = vld [vmem:[%s3280_s10 + $0x8] sm:$0xf] }
  0x33   : > { %2877 = vmatprep.subr.bf16.mxu1 %v3116_v53 }
  0x34   : > { %2798 = vmatmul.mubr.bf16.gmra.mxu0 %v321_v57  ;;  %v3145_v57 = vld [vmem:[%s3280_s10 + $0x30] sm:$0xff]  }
  0x35   : > { %2830 = vmatmul.mubr.bf16.gmra.mxu1 %v3312_v28  ;;  %2846 = vmatpush3.bf16.msra.mxu0 %v3115_v52  ;;  %v3138_v28 = vld [vmem:[%s3280_s10 + $0x18] sm:$0xff]  }
  0x36   : > { %2878 = vmatpush3.bf16.msra.mxu1 %v3116_v53  ;;  %2847 = vmatprep.subr.bf16.mxu0 %v3117_v60  ;;  %v3146_v52 = vld [vmem:[%s3792_s2 + $0x118] sm:$0xff]  }
  0x37   : > { %2879 = vmatprep.subr.bf16.mxu1 %v3118_v61  ;;  %2801 = vmatprep.mubr.bf16.mxu0 %v329_v63  ;;  %v3147_v53 = vld [vmem:[%s3792_s2 + $0x158] sm:$0xff]   ;;  %v2530_v63 = vcombine.low %v1360_v55, %v1063_v46  ;;  %v3546_v55 = vld [vmem:[%s3280_s10 + $0x40] sm:$0xff]  }
  0x38   : > { %2833 = vmatprep.mubr.bf16.mxu1 %v3321_v35  ;;  %v675_v35 = vrot.slane %v3330_v40, 1 }
  0x39   : > { %2848 = vmatpush3.bf16.msra.mxu0 %v3117_v60  ;;  %v3148_v60 = vld [vmem:[%s3792_s2 + $0x110] sm:$0xff]   ;;  %v1381_v9 = vrot.slane %v2530_v63, 1 }
  0x3a   : > { %2880 = vmatpush3.bf16.msra.mxu1 %v3118_v61  ;;  %2849 = vmatprep.subr.bf16.mxu0 %v3121_v4  ;;  %v676_v48 = vsel %vm665_vm1, %v673_v38, %v675_v35  ;;  %v678_v59 = vsel %vm665_vm1, %v675_v35, %v677_v50  ;;  %v3149_v61 = vld [vmem:[%s3792_s2 + $0x150] sm:$0xff]  }
  0x3b   : > { %2881 = vmatprep.subr.bf16.mxu1 %v3122_v5  ;;  %v3163_v38 = vld [vmem:[%s3792_s2 + $0x1f0] sm:$0xff]  }
  0x3c   : > { %2802 = vmatmul.mubr.bf16.gmra.mxu0 %v337_v10  ;;  %v3151_v10 = vld [vmem:[%s3280_s10 + $0x40] sm:$0xff]  }
  0x3d   : > { %2834 = vmatmul.mubr.bf16.gmra.mxu1 %v3330_v40  ;;  %2850 = vmatpush3.bf16.msra.mxu0 %v3121_v4  ;;  %v2497_v40 = vcombine.low %v1062_v45, %v1063_v46  ;;  %v681_v4 = vrot.slane %v3368_v62, 1  ;;  %v3486_v62 = vld [vmem:[%s3280_s10 + $0x20] sm:$0xff]   ;;  %v1388_v46 = vrot.slane %v3501_v23, 1 }
  0x3e   : > { %2882 = vmatpush3.bf16.msra.mxu1 %v3122_v5  ;;  %2851 = vmatprep.subr.bf16.mxu0 %v3123_v12  ;;  %v3475_v5 = vld [vmem:[%s3280_s10 + $0x18] sm:$0xff]   ;;  %v1163_v13 = vshll.u32 %v3486_v62, 16 }
  0x3f   : > { %2883 = vmatprep.subr.bf16.mxu1 %v3124_v14  ;;  %2805 = vmatprep.mubr.bf16.mxu0 %v345_v17  ;;  %v1142_v58 = vshll.u32 %v2497_v40, 16  ;;  %v1140_v2 = vshrl.u32 %v2497_v40, 16  ;;  %v1382_v17 = vrot.slane %v3458_v54, 1  ;;  %v1155_v18 = vshll.u32 %v3475_v5, 16 }
  0x40   : > { %2837 = vmatprep.mubr.bf16.mxu1 %v3346_v51  ;;  %v679_v51 = vrot.slane %v3356_v56, 1  ;;  %v1165_v32 = vrot.slane %v1163_v13, 1 }
  0x41   : > { %2852 = vmatpush3.bf16.msra.mxu0 %v3123_v12  ;;  %v1144_v3 = vrot.slane %v1142_v58, 1  ;;  %v1777_v58 = vld [vmem:[%s3280_s10 + $0x10] sm:$0xf] }
  0x42   : > { %2884 = vmatpush3.bf16.msra.mxu1 %v3124_v14  ;;  %2853 = vmatprep.subr.bf16.mxu0 %v3127_v21  ;;  %v680_v1 = vsel %vm665_vm1, %v677_v50, %v679_v51  ;;  %v682_v14 = vsel %vm665_vm1, %v679_v51, %v681_v4  ;;  %v3550_v51 = vld [vmem:[%s3280_s10 + $0x48] ss:$0 sps:$4 sm:$0x11]  }
  0x43   : > { %2885 = vmatprep.subr.bf16.mxu1 %v3128_v22  ;;  %v1145_v12 = vor.u32 %v1144_v3, %v1140_v2 }
  0x44   : > { %2806 = vmatmul.mubr.bf16.gmra.mxu0 %v353_v24 }
  0x45   : > { %2838 = vmatmul.mubr.bf16.gmra.mxu1 %v3356_v56  ;;  %2854 = vmatpush3.bf16.msra.mxu0 %v3127_v21  ;;  %v1147_v56 = vshll.u32 %v3458_v54, 16 }
  0x46   : > { %2886 = vmatpush3.bf16.msra.mxu1 %v3128_v22  ;;  %2855 = vmatprep.subr.bf16.mxu0 %v3129_v25  ;;  %v1159_v22 = vshrl.u32 %v3475_v5, 16 }
  0x47   : > { %2887 = vmatprep.subr.bf16.mxu1 %v3130_v26  ;;  %2857 = vmatprep.mubr.bf16.mxu0 %v668_v27  ;;  %v1149_v11 = vrot.slane %v1147_v56, 1  ;;  %v1384_v27 = vrot.slane %v3475_v5, 1  ;;  %v1195_v56 = vshll.u32 %v3546_v55, 16 }
  0x48   : > { %2889 = vmatprep.mubr.bf16.mxu1 %v3132_v15  ;;  %v3160_v15 = vld [vmem:[%s3792_s2 + $0x1b8] sm:$0xff]  }
  0x49   : > { %2856 = vmatpush3.bf16.msra.mxu0 %v3129_v25  ;;  %v1150_v21 = vsel %vm285_vm0, %v1145_v12, %v1149_v11  ;;  %v1153_v24 = vor.u32 %v1151_v8, %v1149_v11  ;;  %v1383_v25 = vsel %vm665_vm1, %v1381_v9, %v1382_v17  ;;  %v1203_v8 = vshll.u32 %v3550_v51, 16  ;;  %v3174_v12 = vld [vmem:[%s3792_s2 + $0x190] sm:$0xff]  }
  0x4a   : > { %2888 = vmatpush3.bf16.msra.mxu1 %v3130_v26  ;;  %2905 = vmatprep.subr.bf16.mxu0 %v3134_v30  ;;  %v1157_v26 = vrot.slane %v1155_v18, 1  ;;  %v1394_v11 = vrot.slane %v3546_v55, 1 }
  0x4b   : > { %2937 = vmatprep.subr.bf16.mxu1 %v3135_v31 }
  0x4c   : > { %2858 = vmatmul.mubr.bf16.vlgmr.msra.gmra.mxu0 %v670_v33  ;;  %v1171_v33 = vshll.u32 %v3501_v23, 16 }
  0x4d   : > { %2890 = vmatmul.mubr.bf16.vlgmr.msra.gmra.mxu1 %v3133_v16  ;;  %2906 = vmatpush3.bf16.msra.mxu0 %v3134_v30  ;;  %v3162_v30 = vld [vmem:[%s3792_s2 + $0x1b0] sm:$0xff]  }
  0x4e   : > { %2938 = vmatpush3.bf16.msra.mxu1 %v3135_v31  ;;  %2907 = vmatprep.subr.bf16.mxu0 %v3136_v34  ;;  %v1161_v31 = vor.u32 %v1159_v22, %v1157_v26  ;;  %v3516_v16 = vld [vmem:[%s3280_s10 + $0x30] sm:$0xff]   ;;  %v1396_v22 = vrot.slane %v3550_v51, 1 }
  0x4f   : > { %2939 = vmatprep.subr.bf16.mxu1 %v3137_v36  ;;  %2861 = vmatprep.mubr.bf16.mxu0 %v672_v37  ;;  %v1167_v37 = vshrl.u32 %v3486_v62, 16  ;;  %v1179_v35 = vshll.u32 %v3516_v16, 16  ;;  %v1183_v40 = vshrl.u32 %v3516_v16, 16 }
  0x50   : > { %2893 = vmatprep.mubr.bf16.mxu1 %v3138_v28  ;;  %v1385_v28 = vsel %vm665_vm1, %v1382_v17, %v1384_v27  ;;  %v3580_v17 = vld [vmem:[%s3280_s10 + $0x18] sm:$0xff]  }
  0x51   : > { %2908 = vmatpush3.bf16.msra.mxu0 %v3136_v34  ;;  %v1158_v34 = vsel %vm285_vm0, %v1153_v24, %v1157_v26  ;;  %v1169_v45 = vor.u32 %v1167_v37, %v1165_v32  ;;  %v1181_v54 = vrot.slane %v1179_v35, 1  ;;  %v3178_v24 = vld [vmem:[%s3792_s2 + $0x188] sm:$0xff]   ;;  %v1866_v37 = vshrl.u32 %v3580_v17, 16 }
  0x52   : > { %2940 = vmatpush3.bf16.msra.mxu1 %v3137_v36  ;;  %2909 = vmatprep.subr.bf16.mxu0 %v3140_v39  ;;  %v1386_v36 = vrot.slane %v3486_v62, 1 }
  0x53   : > { %2941 = vmatprep.subr.bf16.mxu1 %v3141_v41  ;;  %v1185_v2 = vor.u32 %v1183_v40, %v1181_v54  ;;  %v3624_v40 = vld [vmem:[%s3280_s10 + $0x38] sm:$0xff]  }
  0x54   : > { %2862 = vmatmul.mubr.bf16.gmra.mxu0 %v674_v44  ;;  %v1387_v44 = vsel %vm665_vm1, %v1384_v27, %v1386_v36 }
  0x55   : > { %2894 = vmatmul.mubr.bf16.gmra.mxu1 %v3139_v42  ;;  %2910 = vmatpush3.bf16.msra.mxu0 %v3140_v39  ;;  %v3526_v39 = vld [vmem:[%s3280_s10 + $0x38] sm:$0xff]   ;;  %v1173_v42 = vrot.slane %v1171_v33, 1 }
  0x56   : > { %2942 = vmatpush3.bf16.msra.mxu1 %v3141_v41  ;;  %2911 = vmatprep.subr.bf16.mxu0 %v3142_v43  ;;  %v1166_v41 = vsel %vm285_vm0, %v1161_v31, %v1165_v32  ;;  %v1187_v50 = vshll.u32 %v3526_v39, 16  ;;  %v1392_v5 = vrot.slane %v3526_v39, 1 }
  0x57   : > { %2943 = vmatprep.subr.bf16.mxu1 %v3143_v47  ;;  %2865 = vmatprep.mubr.bf16.mxu0 %v676_v48  ;;  %v3167_v48 = vld [vmem:[%s3792_s2 + $0x1e8] sm:$0xff]  }
  0x58   : > { %2897 = vmatprep.mubr.bf16.mxu1 %v3144_v49  ;;  %v1390_v49 = vrot.slane %v3516_v16, 1  ;;  %v1189_v3 = vrot.slane %v1187_v50, 1  ;;  %v3601_v16 = vld [vmem:[%s3280_s10 + $0x28] sm:$0xff]  }
  0x59   : > { %2912 = vmatpush3.bf16.msra.mxu0 %v3142_v43  ;;  %v1175_v43 = vshrl.u32 %v3501_v23, 16  ;;  %v1395_v23 = vsel %vm665_vm1, %v1392_v5, %v1394_v11 }
  0x5a   : > { %2944 = vmatpush3.bf16.msra.mxu1 %v3143_v47  ;;  %2913 = vmatprep.subr.bf16.mxu0 %v3146_v52  ;;  %v3166_v47 = vld [vmem:[%s3792_s2 + $0x1a8] sm:$0xff]   ;;  %v1190_v62 = vsel %vm285_vm0, %v1185_v2, %v1189_v3 }
  0x5b   : > { %2945 = vmatprep.subr.bf16.mxu1 %v3147_v53 }
  0x5c   : > { %2866 = vmatmul.mubr.bf16.gmra.mxu0 %v678_v59  ;;  %v1389_v59 = vsel %vm665_vm1, %v1386_v36, %v1388_v46  ;;  %v3180_v36 = vld [vmem:[%s3792_s2 + $0x180] sm:$0xff]  }
  0x5d   : > { %2898 = vmatmul.mubr.bf16.gmra.mxu1 %v3145_v57  ;;  %2914 = vmatpush3.bf16.msra.mxu0 %v3146_v52  ;;  %v3168_v52 = vld [vmem:[%s3792_s2 + $0x1a0] sm:$0xff]   ;;  %v1174_v57 = vsel %vm285_vm0, %v1169_v45, %v1173_v42  ;;  %v3187_v45 = vld [vmem:[%s3792_s2 + $0x238] sm:$0xff]  }
  0x5e   : > { %2946 = vmatpush3.bf16.msra.mxu1 %v3147_v53  ;;  %2915 = vmatprep.subr.bf16.mxu0 %v3148_v60  ;;  %v1177_v53 = vor.u32 %v1175_v43, %v1173_v42  ;;  %v1878_v43 = vshll.u32 %v3601_v16, 16 }
  0x5f   : > { %2947 = vmatprep.subr.bf16.mxu1 %v3149_v61  ;;  %2869 = vmatprep.mubr.bf16.mxu0 %v680_v1  ;;  %v1391_v1 = vsel %vm665_vm1, %v1388_v46, %v1390_v49  ;;  %v3620_v46 = vld [vmem:[%s3280_s10 + $0x30] sm:$0xff]  }
  0x60   : > { %2901 = vmatprep.mubr.bf16.mxu1 %v3150_v0  ;;  %v1182_v63 = vsel %vm285_vm0, %v1177_v53, %v1181_v54  ;;  %v1191_v0 = vshrl.u32 %v3526_v39, 16  ;;  %v3182_v39 = vld [vmem:[%s3280_s10 + $0x10] sm:$0xff]   ;;  %v1882_v53 = vshrl.u32 %v3601_v16, 16  ;;  %v1886_v54 = vshll.u32 %v3620_v46, 16 }
  0x61   : > { %2916 = vmatpush3.bf16.msra.mxu0 %v3148_v60  ;;  %v3555_v60 = vld [vmem:[%s3280_s10 + $0x14] sm:$0xf]  ;;  %v1890_v51 = vshrl.u32 %v3620_v46, 16 }
  0x62   : > { %2948 = vmatpush3.bf16.msra.mxu1 %v3149_v61  ;;  %2917 = vmatprep.subr.bf16.mxu0 %v3152_v6  ;;  %v3169_v61 = vld [vmem:[%s3792_s2 + $0x1e0] sm:$0xff]   ;;  %v2587_v4 = vcombine.low %v1777_v58, %v3555_v60  ;;  %v1193_v9 = vor.u32 %v1191_v0, %v1189_v3  ;;  %v1894_v58 = vshll.u32 %v3624_v40, 16  ;;  %v3644_v3 = vld [vmem:[%s3280_s10 + $0x48] sm:$0xff]  }
  0x63   : > { %2949 = vmatprep.subr.bf16.mxu1 %v3153_v7  ;;  %v3640_v0 = vld [vmem:[%s3280_s10 + $0x40] sm:$0xff]  }
  0x64   : > { %2870 = vmatmul.mubr.bf16.gmra.mxu0 %v682_v14  ;;  %v1199_v14 = vshrl.u32 %v3546_v55, 16  ;;  %v1857_v18 = vshll.u32 %v2587_v4, 16  ;;  %v1855_v26 = vshrl.u32 %v2587_v4, 16  ;;  %v3189_v55 = vld [vmem:[%s3280_s10 + $0x20] sm:$0xff]   ;;  %v1896_v2 = vrot.slane %v1894_v58, 1 }
  0x65   : > { %2902 = vmatmul.mubr.bf16.gmra.mxu1 %v3151_v10  ;;  %2918 = vmatpush3.bf16.msra.mxu0 %v3152_v6  ;;  %v3172_v6 = vld [vmem:[%s3792_s2 + $0x198] sm:$0xff]   ;;  %v1197_v10 = vrot.slane %v1195_v56, 1  ;;  %v3191_v56 = vld [vmem:[%s3280_s10 + $0x28] sm:$0xff]  }
  0x66   : > { %2950 = vmatpush3.bf16.msra.mxu1 %v3153_v7  ;;  %2919 = vmatprep.subr.bf16.mxu0 %v3154_v19  ;;  %v3173_v7 = vld [vmem:[%s3792_s2 + $0x1d8] sm:$0xff]   ;;  %v1859_v27 = vrot.slane %v1857_v18, 1  ;;  %v3660_v18 = vld [vmem:[%s3280_s10 + $0x50] ss:$0 sps:$4 sm:$0x11]  }
  0x67   : > { %2951 = vmatprep.subr.bf16.mxu1 %v3155_v20  ;;  %2921 = vmatprep.mubr.bf16.mxu0 %v1150_v21  ;;  %v1205_v21 = vrot.slane %v1203_v8, 1  ;;  %v1198_v13 = vsel %vm285_vm0, %v1193_v9, %v1197_v10  ;;  %v3195_v8 = vld [vmem:[%s3280_s10 + $0x30] sm:$0xff]  }
  0x68   : > { %2953 = vmatprep.mubr.bf16.mxu1 %v1383_v25  ;;  %v1201_v25 = vor.u32 %v1199_v14, %v1197_v10  ;;  %v1860_v32 = vor.u32 %v1859_v27, %v1855_v26  ;;  %v1906_v10 = vshrl.u32 %v3640_v0, 16  ;;  %v3199_v14 = vld [vmem:[%s3792_s2 + $0x218] sm:$0xff]   ;;  %v3201_v26 = vld [vmem:[%s3280_s10 + $0x40] sm:$0xff]  }
  0x69   : > { %2920 = vmatpush3.bf16.msra.mxu0 %v3154_v19  ;;  %v1393_v19 = vsel %vm665_vm1, %v1390_v49, %v1392_v5  ;;  %v1880_v49 = vrot.slane %v1878_v43, 1  ;;  %v3194_v5 = vld [vmem:[%s3792_s2 + $0x220] sm:$0xff]   ;;  %v2101_v43 = vrot.slane %v3601_v16, 1  ;;  %v2111_v16 = vrot.slane %v3660_v18, 1 }
  0x6a   : > { %2952 = vmatpush3.bf16.msra.mxu1 %v3155_v20  ;;  %2969 = vmatprep.subr.bf16.mxu0 %v3160_v15  ;;  %v3175_v20 = vld [vmem:[%s3792_s2 + $0x1d0] sm:$0xff]   ;;  %v1206_v31 = vsel %vm285_vm0, %v1201_v25, %v1205_v21  ;;  %v1918_v25 = vshll.u32 %v3660_v18, 16 }
  0x6b   : > { %3001 = vmatprep.subr.bf16.mxu1 %v3161_v29 }
  0x6c   : > { %2922 = vmatmul.mubr.bf16.vlgmr.msra.gmra.mxu0 %v1158_v34  ;;  %v1397_v34 = vsel %vm665_vm1, %v1394_v11, %v1396_v22  ;;  %v1910_v11 = vshll.u32 %v3644_v3, 16  ;;  %v2075_v22 = vld [vmem:[%s3280_s10 + $0x10] sm:$0xe] }
  0x6d   : > { %2954 = vmatmul.mubr.bf16.vlgmr.msra.gmra.mxu1 %v1385_v28  ;;  %2970 = vmatpush3.bf16.msra.mxu0 %v3160_v15  ;;  %v1862_v15 = vshll.u32 %v3580_v17, 16  ;;  %v2620_v27 = vcombine.low %v2075_v22, %v3555_v60  ;;  %v2103_v60 = vrot.slane %v3620_v46, 1 }
  0x6e   : > { %3002 = vmatpush3.bf16.msra.mxu1 %v3161_v29  ;;  %2971 = vmatprep.subr.bf16.mxu0 %v3162_v30  ;;  %v3594_v29 = vld [vmem:[%s3280_s10 + $0x20] sm:$0xff]   ;;  %v1912_v21 = vrot.slane %v1910_v11, 1 }
  0x6f   : > { %3003 = vmatprep.subr.bf16.mxu1 %v3163_v38  ;;  %2925 = vmatprep.mubr.bf16.mxu0 %v1166_v41  ;;  %v1864_v33 = vrot.slane %v1862_v15, 1  ;;  %v1870_v28 = vshll.u32 %v3594_v29, 16  ;;  %v1874_v42 = vshrl.u32 %v3594_v29, 16 }
  0x70   : > { %2957 = vmatprep.mubr.bf16.mxu1 %v1387_v44 }
  0x71   : > { %2972 = vmatpush3.bf16.msra.mxu0 %v3162_v30  ;;  %v3179_v30 = vld [vmem:[%s3792_s2 + $0x1c8] sm:$0xff]   ;;  %v1865_v41 = vsel %vm285_vm0, %v1860_v32, %v1864_v33  ;;  %v1868_v35 = vor.u32 %v1866_v37, %v1864_v33  ;;  %v1872_v44 = vrot.slane %v1870_v28, 1  ;;  %v2105_v37 = vrot.slane %v3624_v40, 1 }
  0x72   : > { %3004 = vmatpush3.bf16.msra.mxu1 %v3163_v38  ;;  %2973 = vmatprep.subr.bf16.mxu0 %v3166_v47  ;;  %v3181_v38 = vld [vmem:[%s3792_s2 + $0x1c0] sm:$0xff]   ;;  %v3205_v32 = vld [vmem:[%s3792_s2 + $0x208] sm:$0xff]  }
  0x73   : > { %3005 = vmatprep.subr.bf16.mxu1 %v3167_v48  ;;  %v1873_v50 = vsel %vm285_vm0, %v1868_v35, %v1872_v44  ;;  %v3203_v33 = vld [vmem:[%s3280_s10 + $0x48] sm:$0xff]   ;;  %v2109_v35 = vrot.slane %v3644_v3, 1 }
  0x74   : > { %2926 = vmatmul.mubr.bf16.gmra.mxu0 %v1174_v57 }
  0x75   : > { %2958 = vmatmul.mubr.bf16.gmra.mxu1 %v1389_v59  ;;  %2974 = vmatpush3.bf16.msra.mxu0 %v3166_v47  ;;  %v3185_v47 = vld [vmem:[%s3280_s10 + $0x18] sm:$0xff]   ;;  %v1884_v59 = vor.u32 %v1882_v53, %v1880_v49 }
  0x76   : > { %3006 = vmatpush3.bf16.msra.mxu1 %v3167_v48  ;;  %2975 = vmatprep.subr.bf16.mxu0 %v3168_v52  ;;  %v1876_v48 = vor.u32 %v1874_v42, %v1872_v44  ;;  %v2107_v42 = vrot.slane %v3640_v0, 1 }
  0x77   : > { %3007 = vmatprep.subr.bf16.mxu1 %v3169_v61  ;;  %2929 = vmatprep.mubr.bf16.mxu0 %v1182_v63  ;;  %v3193_v63 = vld [vmem:[%s3792_s2 + $0x228] sm:$0xff]  }
  0x78   : > { %2961 = vmatprep.mubr.bf16.mxu1 %v1391_v1  ;;  %v1881_v57 = vsel %vm285_vm0, %v1876_v48, %v1880_v49  ;;  %v2112_v48 = vsel %vm665_vm1, %v2109_v35, %v2111_v16 }
  0x79   : > { %2976 = vmatpush3.bf16.msra.mxu0 %v3168_v52  ;;  %v3188_v52 = vld [vmem:[%s3792_s2 + $0x230] sm:$0xff]  }
  0x7a   : > { %3008 = vmatpush3.bf16.msra.mxu1 %v3169_v61  ;;  %2977 = vmatprep.subr.bf16.mxu0 %v3172_v6  ;;  %v1888_v61 = vrot.slane %v1886_v54, 1 }
  0x7b   : > { %3009 = vmatprep.subr.bf16.mxu1 %v3173_v7 }
  0x7c   : > { %2930 = vmatmul.mubr.bf16.gmra.mxu0 %v1190_v62  ;;  %v1892_v1 = vor.u32 %v1890_v51, %v1888_v61  ;;  %v1889_v4 = vsel %vm285_vm0, %v1884_v59, %v1888_v61 }
  0x7d   : > { %2962 = vmatmul.mubr.bf16.gmra.mxu1 %v1393_v19  ;;  %2978 = vmatpush3.bf16.msra.mxu0 %v3172_v6  ;;  %v1898_v6 = vshrl.u32 %v3624_v40, 16  ;;  %v3197_v19 = vld [vmem:[%s3280_s10 + $0x38] sm:$0xff]   ;;  %s2631_s10 = sshll.u32 %s3795_s13, 5 }
  0x7e   : > { %3010 = vmatpush3.bf16.msra.mxu1 %v3173_v7  ;;  %2979 = vmatprep.subr.bf16.mxu0 %v3174_v12  ;;  %v1902_v7 = vshll.u32 %v3640_v0, 16  ;;  %v1897_v9 = vsel %vm285_vm0, %v1892_v1, %v1896_v2  ;;  %s185_s19 = scalar_lea.vmem %s3791_s1, %s2631_s10  ;;  %s3770_s22 = scalar_lea.vmem %s3793_s3, %s2631_s10 }
  0x7f   : > { %3011 = vmatprep.subr.bf16.mxu1 %v3175_v20  ;;  %2933 = vmatprep.mubr.bf16.mxu0 %v1198_v13  ;;  %v1900_v62 = vor.u32 %v1898_v6, %v1896_v2 }
  0x80   : > { %2965 = vmatprep.mubr.bf16.mxu1 %v1395_v23  ;;  %v3200_v23 = vld [vmem:[%s3792_s2 + $0x210] sm:$0xff]  }
  0x81   : > { %2980 = vmatpush3.bf16.msra.mxu0 %v3174_v12  ;;  %v1904_v12 = vrot.slane %v1902_v7, 1 }
  0x82   : > { %3012 = vmatpush3.bf16.msra.mxu1 %v3175_v20  ;;  %2981 = vmatprep.subr.bf16.mxu0 %v3178_v24 }
  0x83   : > { %3013 = vmatprep.subr.bf16.mxu1 %v3179_v30  ;;  %v1908_v20 = vor.u32 %v1906_v10, %v1904_v12  ;;  %v1905_v13 = vsel %vm285_vm0, %v1900_v62, %v1904_v12 }
  0x84   : > { %2934 = vmatmul.mubr.bf16.gmra.mxu0 %v1206_v31  ;;  %v1920_v31 = vrot.slane %v1918_v25, 1 }
  0x85   : > { %2966 = vmatmul.mubr.bf16.gmra.mxu1 %v1397_v34  ;;  %2982 = vmatpush3.bf16.msra.mxu0 %v3178_v24  ;;  %v1914_v24 = vshrl.u32 %v3644_v3, 16  ;;  %v1913_v15 = vsel %vm285_vm0, %v1908_v20, %v1912_v21  ;;  %v2096_v34 = vrot.slane %v2620_v27, 1 }
  0x86   : > { %3014 = vmatpush3.bf16.msra.mxu1 %v3179_v30  ;;  %2983 = vmatprep.subr.bf16.mxu0 %v3180_v36 }
  0x87   : > { %3015 = vmatprep.subr.bf16.mxu1 %v3181_v38  ;;  %2985 = vmatprep.mubr.bf16.mxu0 %v3182_v39  ;;  %v1916_v30 = vor.u32 %v1914_v24, %v1912_v21 }
  0x88   : > { %3017 = vmatprep.mubr.bf16.mxu1 %v1865_v41  ;;  %v2099_v41 = vrot.slane %v3594_v29, 1  ;;  %v2110_v29 = vsel %vm665_vm1, %v2107_v42, %v2109_v35 }
  0x89   : > { %2984 = vmatpush3.bf16.msra.mxu0 %v3180_v36  ;;  %v2097_v36 = vrot.slane %v3580_v17, 1  ;;  %v1921_v28 = vsel %vm285_vm0, %v1916_v30, %v1920_v31  ;;  %v2106_v17 = vsel %vm665_vm1, %v2103_v60, %v2105_v37 }
  0x8a   : > { %3016 = vmatpush3.bf16.msra.mxu1 %v3181_v38  ;;  %3033 = vmatprep.subr.bf16.mxu0 %v3187_v45  ;;  %v3206_v38 = vld [vmem:[%s3792_s2 + $0x200] sm:$0xff]   ;;  %v2102_v46 = vsel %vm665_vm1, %v2099_v41, %v2101_v43 }
  0x8b   : > { %3065 = vmatprep.subr.bf16.mxu1 %v3187_v45  ;;  %v2098_v39 = vsel %vm665_vm1, %v2096_v34, %v2097_v36  ;;  %v2100_v44 = vsel %vm665_vm1, %v2097_v36, %v2099_v41 }
  0x8c   : > { %2986 = vmatmul.mubr.bf16.vlgmr.msra.gmra.mxu0 %v3185_v47  ;;  %v2104_v47 = vsel %vm665_vm1, %v2101_v43, %v2103_v60 }
  0x8d   : > { %3018 = vmatmul.mubr.bf16.vlgmr.msra.gmra.mxu1 %v1873_v50  ;;  %3034 = vmatpush3.bf16.msra.mxu0 %v3187_v45 }
  0x8e   : > { %3073 = vmatpush3.bf16.msra.mxu1 %v3187_v45  ;;  %3035 = vmatprep.subr.bf16.mxu0 %v3188_v52  ;;  %v2108_v45 = vsel %vm665_vm1, %v2105_v37, %v2107_v42 }
  0x8f   : > { %3066 = vmatprep.subr.bf16.mxu1 %v3188_v52  ;;  %2989 = vmatprep.mubr.bf16.mxu0 %v3189_v55 }
  0x90   : > { %3021 = vmatprep.mubr.bf16.mxu1 %v1881_v57 }
  0x91   : > { %3036 = vmatpush3.bf16.msra.mxu0 %v3188_v52 }
  0x92   : > { %3074 = vmatpush3.bf16.msra.mxu1 %v3188_v52  ;;  %3037 = vmatprep.subr.bf16.mxu0 %v3193_v63 }
  0x93   : > { %3067 = vmatprep.subr.bf16.mxu1 %v3193_v63 }
  0x94   : > { %2990 = vmatmul.mubr.bf16.gmra.mxu0 %v3191_v56 }
  0x95   : > { %3022 = vmatmul.mubr.bf16.gmra.mxu1 %v1889_v4  ;;  %3038 = vmatpush3.bf16.msra.mxu0 %v3193_v63 }
  0x96   : > { %3075 = vmatpush3.bf16.msra.mxu1 %v3193_v63  ;;  %3039 = vmatprep.subr.bf16.mxu0 %v3194_v5 }
  0x97   : > { %3068 = vmatprep.subr.bf16.mxu1 %v3194_v5  ;;  %2993 = vmatprep.mubr.bf16.mxu0 %v3195_v8 }
  0x98   : > { %3025 = vmatprep.mubr.bf16.mxu1 %v1897_v9 }
  0x99   : > { %3040 = vmatpush3.bf16.msra.mxu0 %v3194_v5 }
  0x9a   : > { %3076 = vmatpush3.bf16.msra.mxu1 %v3194_v5  ;;  %3041 = vmatprep.subr.bf16.mxu0 %v3199_v14 }
  0x9b   : > { %3069 = vmatprep.subr.bf16.mxu1 %v3199_v14 }
  0x9c   : > { %2994 = vmatmul.mubr.bf16.gmra.mxu0 %v3197_v19 }
  0x9d   : > { %3026 = vmatmul.mubr.bf16.gmra.mxu1 %v1905_v13  ;;  %3042 = vmatpush3.bf16.msra.mxu0 %v3199_v14 }
  0x9e   : > { %3077 = vmatpush3.bf16.msra.mxu1 %v3199_v14  ;;  %3043 = vmatprep.subr.bf16.mxu0 %v3200_v23 }
  0x9f   : > { %3070 = vmatprep.subr.bf16.mxu1 %v3200_v23  ;;  %2997 = vmatprep.mubr.bf16.mxu0 %v3201_v26 }
  0xa0   : > { %3029 = vmatprep.mubr.bf16.mxu1 %v1913_v15 }
  0xa1   : > { %3044 = vmatpush3.bf16.msra.mxu0 %v3200_v23 }
  0xa2   : > { %3078 = vmatpush3.bf16.msra.mxu1 %v3200_v23  ;;  %3045 = vmatprep.subr.bf16.mxu0 %v3205_v32 }
  0xa3   : > { %3071 = vmatprep.subr.bf16.mxu1 %v3205_v32 }
  0xa4   : > { %2998 = vmatmul.mubr.bf16.gmra.mxu0 %v3203_v33 }
  0xa5   : > { %3030 = vmatmul.mubr.bf16.gmra.mxu1 %v1921_v28  ;;  %3046 = vmatpush3.bf16.msra.mxu0 %v3205_v32 }
  0xa6   : > { %3079 = vmatpush3.bf16.msra.mxu1 %v3205_v32  ;;  %3047 = vmatprep.subr.bf16.mxu0 %v3206_v38 }
  0xa7   : > { %3072 = vmatprep.subr.bf16.mxu1 %v3206_v38  ;;  %3049 = vmatprep.mubr.bf16.mxu0 %v2098_v39 }
  0xa8   : > { %3057 = vmatprep.mubr.bf16.mxu1 %v2106_v17 }
  0xa9   : > { %3048 = vmatpush3.bf16.msra.mxu0 %v3206_v38 }
  0xaa   : > { %3080 = vmatpush3.bf16.msra.mxu1 %v3206_v38 }
  0xac   : > { %3050 = vmatmul.mubr.bf16.vlgmr.msra.gmra.mxu0 %v2100_v44 }
  0xad   : > { %3058 = vmatmul.mubr.bf16.vlgmr.msra.gmra.mxu1 %v2108_v45  ;;  %3053 = vmatprep.mubr.bf16.mxu0 %v2102_v46 }
  0xae   : > { %3061 = vmatprep.mubr.bf16.mxu1 %v2110_v29 }
  0xb4   : > { %3054 = vmatmul.mubr.bf16.gmra.mxu0 %v2104_v47 }
  0xb5   : > { %3062 = vmatmul.mubr.bf16.gmra.mxu1 %v2112_v48 }
  0xec   : > { %v2795_v49 = vpop.f32.mrf.mxu0 }
  0xed   : > { %v2827_v40 = vpop.f32.mrf.mxu1 }
  0xee   : > { %v597_v50 = vadd.f32 %v2827_v40, %v2795_v49  ;;  %v444_v52 = vpop.f32.mrf.mxu0 }
  0xef   : > { %v589_v53 = vpop.f32.mrf.mxu1 }
  0xf0   : > { %v590_v54 = vadd.f32 %v589_v53, %v444_v52  ;;  %v2796_v55 = vpop.f32.mrf.mxu0 }
  0xf1   : > { %v2828_v57 = vpop.f32.mrf.mxu1 }
  0xf2   : > { %v447_v51 = vpop.f32.mrf.mxu0 }
  0xf3   : > { %v592_v58 = vpop.f32.mrf.mxu1 }
  0xf4   : > { %v2799_v59 = vpop.f32.mrf.mxu0 }
  0xf5   : > { %v2831_v61 = vpop.f32.mrf.mxu1 }
  0xf6   : > { %v611_v63 = vadd.f32 %v2831_v61, %v2799_v59  ;;  %v458_v0 = vpop.f32.mrf.mxu0 }
  0xf7   : > { %v603_v56 = vpop.f32.mrf.mxu1 }
  0xf8   : > { %v604_v1 = vadd.f32 %v603_v56, %v458_v0  ;;  %v2800_v2 = vpop.f32.mrf.mxu0 }
  0xf9   : > { %v2832_v3 = vpop.f32.mrf.mxu1 }
  0xfa   : > { %v461_v4 = vpop.f32.mrf.mxu0 }
  0xfb   : > { %v606_v5 = vpop.f32.mrf.mxu1 }
  0xfc   : > { %v2803_v6 = vpop.f32.mrf.mxu0 }
  0xfd   : > { %v2835_v7 = vpop.f32.mrf.mxu1 }
  0xfe   : > { %v625_v8 = vadd.f32 %v2835_v7, %v2803_v6  ;;  %v472_v9 = vpop.f32.mrf.mxu0 }
  0xff   : > { %v617_v10 = vpop.f32.mrf.mxu1 }
 0x100   : > { %v618_v11 = vadd.f32 %v617_v10, %v472_v9  ;;  %v2804_v62 = vpop.f32.mrf.mxu0 }
 0x101   : > { %v2836_v12 = vpop.f32.mrf.mxu1 }
 0x102   : > { %v475_v14 = vpop.f32.mrf.mxu0 }
 0x103   : > { %v620_v18 = vpop.f32.mrf.mxu1 }
 0x104   : > { %v2807_v19 = vpop.f32.mrf.mxu0 }
 0x105   : > { %v2839_v20 = vpop.f32.mrf.mxu1 }
 0x106   : > { %v639_v21 = vadd.f32 %v2839_v20, %v2807_v19  ;;  %v486_v22 = vpop.f32.mrf.mxu0 }
 0x107   : > { %v631_v13 = vpop.f32.mrf.mxu1 }
 0x108   : > { %v632_v23 = vadd.f32 %v631_v13, %v486_v22  ;;  %v2808_v24 = vpop.f32.mrf.mxu0 }
 0x109   : > { %v2840_v25 = vpop.f32.mrf.mxu1 }
 0x10a   : > { %v489_v26 = vpop.f32.mrf.mxu0 }
 0x10b   : > { %v634_v27 = vpop.f32.mrf.mxu1 }
 0x10c   : > { %v2859_v15 = vpop.f32.mrf.mxu0 }
 0x10d   : > { %v829_v30 = vadd.f32 %v2859_v15, %v597_v50  ;;  %v2891_v31 = vpop.f32.mrf.mxu1 }
 0x10e   : > { %v773_v32 = vpop.f32.mrf.mxu0 }
 0x10f   : > { %v3697_v33 = vadd.f32 %v2891_v31, %v829_v30  ;;  %v828_v34 = vadd.f32 %v773_v32, %v590_v54  ;;  %v999_v36 = vpop.f32.mrf.mxu1 }
 0x110   : > { %v2860_v60 = vpop.f32.mrf.mxu0 }
 0x111   : > { %v3699_v37 = vadd.f32 %v999_v36, %v828_v34  ;;  %v2892_v28 = vpop.f32.mrf.mxu1 }
 0x112   : > { %v776_v38 = vpop.f32.mrf.mxu0 }
 0x113   : > { %v1002_v39 = vpop.f32.mrf.mxu1 }
 0x114   : > { %v2863_v17 = vpop.f32.mrf.mxu0 }
 0x115   : > { %v831_v41 = vadd.f32 %v2863_v17, %v611_v63  ;;  %v2895_v42 = vpop.f32.mrf.mxu1 }
 0x116   : > { %v787_v43 = vpop.f32.mrf.mxu0 }
 0x117   : > { %v3701_v35 = vadd.f32 %v2895_v42, %v831_v41  ;;  %v830_v44 = vadd.f32 %v787_v43, %v604_v1  ;;  %v1013_v45 = vpop.f32.mrf.mxu1 }
 0x118   : > { %v2864_v46 = vpop.f32.mrf.mxu0 }
 0x119   : > { %v3703_v29 = vadd.f32 %v1013_v45, %v830_v44  ;;  %v2896_v16 = vpop.f32.mrf.mxu1 }
 0x11a   : > { %v790_v47 = vpop.f32.mrf.mxu0 }
 0x11b   : > { %v1016_v48 = vpop.f32.mrf.mxu1 }
 0x11c   : > { %v2867_v49 = vpop.f32.mrf.mxu0 }
 0x11d   : > { %v833_v40 = vadd.f32 %v2867_v49, %v625_v8  ;;  %v2899_v50 = vpop.f32.mrf.mxu1 }
 0x11e   : > { %v801_v52 = vpop.f32.mrf.mxu0 }
 0x11f   : > { %v3705_v53 = vadd.f32 %v2899_v50, %v833_v40  ;;  %v832_v54 = vadd.f32 %v801_v52, %v618_v11  ;;  %v1027_v55 = vpop.f32.mrf.mxu1 }
 0x120   : > { %v2868_v57 = vpop.f32.mrf.mxu0 }
 0x121   : > { %v3707_v51 = vadd.f32 %v1027_v55, %v832_v54  ;;  %v2900_v58 = vpop.f32.mrf.mxu1 }
 0x122   : > { %v804_v59 = vpop.f32.mrf.mxu0 }
 0x123   : > { %v1030_v61 = vpop.f32.mrf.mxu1 }
 0x124   : > { %v2871_v63 = vpop.f32.mrf.mxu0 }
 0x125   : > { %v835_v0 = vadd.f32 %v2871_v63, %v639_v21  ;;  %v2903_v56 = vpop.f32.mrf.mxu1 }
 0x126   : > { %v815_v1 = vpop.f32.mrf.mxu0 }
 0x127   : > { %v3709_v2 = vadd.f32 %v2903_v56, %v835_v0  ;;  %v834_v3 = vadd.f32 %v815_v1, %v632_v23  ;;  %v1041_v4 = vpop.f32.mrf.mxu1 }
 0x128   : > { %v2872_v5 = vpop.f32.mrf.mxu0 }
 0x129   : > { %v3711_v6 = vadd.f32 %v1041_v4, %v834_v3  ;;  %v2904_v7 = vpop.f32.mrf.mxu1 }
 0x12a   : > { %v818_v8 = vpop.f32.mrf.mxu0 }
 0x12b   : > { %v1044_v9 = vpop.f32.mrf.mxu1 }
 0x12c   : > { %v2923_v10 = vpop.f32.mrf.mxu0 }
 0x12d   : > { %v2955_v11 = vpop.f32.mrf.mxu1  ;;  %v1353_v7 = vadd.f32 %v2923_v10, %v3697_v33 }
 0x12e   : > { %v1297_v62 = vpop.f32.mrf.mxu0 }
 0x12f   : > { %v3713_v12 = vpop.f32.mrf.mxu1 }
 0x130   : > { %v2924_v14 = vpop.f32.mrf.mxu0 }
 0x131   : > { %v2956_v18 = vpop.f32.mrf.mxu1 }
 0x132   : > { %v1300_v19 = vpop.f32.mrf.mxu0  ;;  %v1352_v18 = vadd.f32 %v1297_v62, %v3699_v37 }
 0x133   : > { %v1491_v20 = vpop.f32.mrf.mxu1 }
 0x134   : > { %v3715_v21 = vpop.f32.mrf.mxu0  ;;  %v1543_v10 = vadd.f32 %v3713_v12, %v1352_v18  ;;  %v3753_v12 = vld [vmem:[%s185_s19] ss:$28 sps:$4 sm:$0xff]  }
 0x135   : > { %v3717_v22 = vpop.f32.mrf.mxu1 }
 0x136   : > { %v3719_v13 = vpop.f32.mrf.mxu0 }
 0x137   : > { %v3721_v23 = vpop.f32.mrf.mxu1 }
 0x138   : > { %v2928_v24 = vpop.f32.mrf.mxu0 }
 0x139   : > { %v2960_v25 = vpop.f32.mrf.mxu1 }
 0x13a   : > { %v1314_v26 = vpop.f32.mrf.mxu0  ;;  %v1544_v25 = vadd.f32 %v2955_v11, %v1353_v7 }
 0x13b   : > { %v1505_v27 = vpop.f32.mrf.mxu1 }
 0x13c   : > { %v2931_v15 = vpop.f32.mrf.mxu0 }
 0x13d   : > { %v2963_v30 = vpop.f32.mrf.mxu1  ;;  %v1357_v9 = vadd.f32 %v2931_v15, %v3705_v53 }
 0x13e   : > { %v1325_v31 = vpop.f32.mrf.mxu0 }
 0x13f   : > { %v1516_v32 = vpop.f32.mrf.mxu1  ;;  %v1356_v20 = vadd.f32 %v1325_v31, %v3707_v51  ;;  %v1548_v27 = vadd.f32 %v2963_v30, %v1357_v9  ;;  %v1355_v51 = vadd.f32 %v3715_v21, %v3701_v35 }
 0x140   : > { %v2932_v34 = vpop.f32.mrf.mxu0 }
 0x141   : > { %v2964_v36 = vpop.f32.mrf.mxu1  ;;  %v1547_v34 = vadd.f32 %v1516_v32, %v1356_v20  ;;  %v1354_v32 = vadd.f32 %v3719_v13, %v3703_v29 }
 0x142   : > { %v1328_v60 = vpop.f32.mrf.mxu0  ;;  %v3746_v36 = vld [vmem:[%s185_s19 + $0x4] sm:$0xff]  }
 0x143   : > { %v1519_v28 = vpop.f32.mrf.mxu1  ;;  %v3750_v60 = vld [vmem:[%s185_s19 + $0x14] sm:$0xff]  }
 0x144   : > { %v2935_v38 = vpop.f32.mrf.mxu0 }
 0x145   : > { %v3723_v39 = vpop.f32.mrf.mxu1  ;;  %v1359_v30 = vadd.f32 %v2935_v38, %v3709_v2  ;;  %v1546_v2 = vadd.f32 %v3717_v22, %v1355_v51 }
 0x146   : > { %v1339_v17 = vpop.f32.mrf.mxu0 }
 0x147   : > { %v3725_v41 = vpop.f32.mrf.mxu1  ;;  %v1358_v35 = vadd.f32 %v1339_v17, %v3711_v6  ;;  %v1550_v29 = vadd.f32 %v3723_v39, %v1359_v30  ;;  %v1545_v6 = vadd.f32 %v3721_v23, %v1354_v32 }
 0x148   : > { %v2936_v42 = vpop.f32.mrf.mxu0 }
 0x149   : > { %v2968_v43 = vpop.f32.mrf.mxu1  ;;  %v1549_v22 = vadd.f32 %v3725_v41, %v1358_v35 }
 0x14a   : > { %v1342_v44 = vpop.f32.mrf.mxu0 }
 0x14b   : > { %v1533_v45 = vpop.f32.mrf.mxu1 }
 0x14c   : > { %v2987_v46 = vpop.f32.mrf.mxu0  ;;  %v2272_v45 = vunpack.c.l.bf16 %v3746_v36 }
 0x14d   : > { %v3019_v16 = vpop.f32.mrf.mxu1  ;;  %v1770_v53 = vadd.f32 %v2987_v46, %v1544_v25  ;;  %v2286_v46 = vld [vmem:[%s185_s19 + $0xc] sm:$0xff]  }
 0x14e   : > { %v1714_v47 = vpop.f32.mrf.mxu0  ;;  %v2282_v20 = vunpack.c.l.bf16 %v2286_v46 }
 0x14f   : > { %v2012_v48 = vpop.f32.mrf.mxu1  ;;  %v1769_v11 = vadd.f32 %v1714_v47, %v1543_v10  ;;  %v2068_v43 = vadd.f32 %v3019_v16, %v1770_v53 }
 0x150   : > { %v2988_v49 = vpop.f32.mrf.mxu0 }
 0x151   : > { %v3020_v40 = vpop.f32.mrf.mxu1  ;;  %v2292_v49 = vunpack.c.l.bf16 %v3750_v60  ;;  %v2067_v38 = vadd.f32 %v2012_v48, %v1769_v11 }
 0x152   : > { %v1717_v50 = vpop.f32.mrf.mxu0 }
 0x153   : > { %v2015_v52 = vpop.f32.mrf.mxu1 }
 0x154   : > { %v2991_v54 = vpop.f32.mrf.mxu0  ;;  %v2267_v52 = vunpack.c.l.bf16 %v3753_v12 }
 0x155   : > { %v3727_v55 = vpop.f32.mrf.mxu1  ;;  %v1772_v17 = vadd.f32 %v2991_v54, %v1546_v2 }
 0x156   : > { %v3729_v57 = vpop.f32.mrf.mxu0 }
 0x157   : > { %v3731_v58 = vpop.f32.mrf.mxu1  ;;  %v1771_v23 = vadd.f32 %v3729_v57, %v1545_v6  ;;  %v2302_v57 = vunpack.c.h.bf16 %v3753_v12 }
 0x158   : > { %v2992_v59 = vpop.f32.mrf.mxu0 }
 0x159   : > { %v3024_v61 = vpop.f32.mrf.mxu1  ;;  %v2069_v10 = vadd.f32 %v3731_v58, %v1771_v23 }
 0x15a   : > { %v1731_v63 = vpop.f32.mrf.mxu0  ;;  %v2287_v61 = vunpack.c.h.bf16 %v2286_v46 }
 0x15b   : > { %v2029_v0 = vpop.f32.mrf.mxu1 }
 0x15c   : > { %v2995_v56 = vpop.f32.mrf.mxu0 }
 0x15d   : > { %v3027_v1 = vpop.f32.mrf.mxu1  ;;  %v1774_v37 = vadd.f32 %v2995_v56, %v1548_v27 }
 0x15e   : > { %v1742_v3 = vpop.f32.mrf.mxu0 }
 0x15f   : > { %v2040_v4 = vpop.f32.mrf.mxu1  ;;  %v1773_v28 = vadd.f32 %v1742_v3, %v1547_v34  ;;  %v2072_v21 = vadd.f32 %v3027_v1, %v1774_v37  ;;  %v2277_v34 = vunpack.c.h.bf16 %v3746_v36 }
 0x160   : > { %v2996_v5 = vpop.f32.mrf.mxu0 }
 0x161   : > { %v3028_v8 = vpop.f32.mrf.mxu1  ;;  %v2071_v13 = vadd.f32 %v2040_v4, %v1773_v28 }
 0x162   : > { %v1745_v14 = vpop.f32.mrf.mxu0 }
 0x163   : > { %v2043_v19 = vpop.f32.mrf.mxu1  ;;  %v2070_v14 = vadd.f32 %v3727_v55, %v1772_v17 }
 0x164   : > { %v2999_v24 = vpop.f32.mrf.mxu0 }
 0x165   : > { %v3031_v26 = vpop.f32.mrf.mxu1  ;;  %v1776_v48 = vadd.f32 %v2999_v24, %v1550_v29 }
 0x166   : > { %v1756_v33 = vpop.f32.mrf.mxu0 }
 0x167   : > { %v3744_v15 = vpop.f32.mrf.mxu1  ;;  %v1775_v7 = vadd.f32 %v1756_v33, %v1549_v22  ;;  %v2074_v24 = vadd.f32 %v3031_v26, %v1776_v48  ;;  %v2297_v26 = vunpack.c.h.bf16 %v3750_v60 }
 0x168   : > { %v3000_v62 = vpop.f32.mrf.mxu0 }
 0x169   : > { %v3032_v31 = vpop.f32.mrf.mxu1  ;;  %v2073_v55 = vadd.f32 %v3744_v15, %v1775_v7 }
 0x16a   : > { %v1759_v42 = vpop.f32.mrf.mxu0 }
 0x16b   : > { %v2057_v44 = vpop.f32.mrf.mxu1 }
 0x16c   : > { %v3051_v47 = vpop.f32.mrf.mxu0 }
 0x16d   : > { %v2259_v40 = vadd.f32 %v3051_v47, %v2068_v43  ;;  %v3059_v50 = vpop.f32.mrf.mxu1 }
 0x16e   : > { %v2263_v16 = vadd.f32 %v3059_v50, %v2072_v21  ;;  %v2203_v59 = vpop.f32.mrf.mxu0 }
 0x16f   : > { %v2273_v63 = vadd.f32 %v2272_v45, %v2259_v40  ;;  %v2258_v0 = vadd.f32 %v2203_v59, %v2067_v38  ;;  %v2231_v56 = vpop.f32.mrf.mxu1 }
 0x170   : > { %v2293_v39 = vadd.f32 %v2292_v49, %v2263_v16  ;;  %v2262_v1 = vadd.f32 %v2231_v56, %v2071_v13  ;;  %v3052_v3 = vpop.f32.mrf.mxu0 }
 0x171   : > { %v2274_v54 = vpack.c.bf16 %v2273_v63, %v2273_v63  ;;  %v2268_v4 = vadd.f32 %v2267_v52, %v2258_v0  ;;  %v3060_v5 = vpop.f32.mrf.mxu1 }
 0x172   : > { %v2294_v41 = vpack.c.bf16 %v2293_v39, %v2293_v39  ;;  %v2288_v8 = vadd.f32 %v2287_v61, %v2262_v1  ;;  %v2206_v9 = vpop.f32.mrf.mxu0 }
 0x173   : > { %2275 = vst [vmem:[%s3770_s22 + $0x4] sm:$0xf] %v2274_v54  ;;  %v2269_v18 = vpack.c.bf16 %v2268_v4, %v2268_v4  ;;  %v2234_v19 = vpop.f32.mrf.mxu1 }
 0x174   : > { %2295 = vst [vmem:[%s3770_s22 + $0x14] sm:$0xf] %v2294_v41  ;;  %v2289_v25 = vpack.c.bf16 %v2288_v8, %v2288_v8  ;;  %v3055_v27 = vpop.f32.mrf.mxu0 }
 0x175   : > { %2270 = vst [vmem:[%s3770_s22] sm:$0xf] %v2269_v18  ;;  %v2261_v33 = vadd.f32 %v3055_v27, %v2070_v14  ;;  %v3063_v53 = vpop.f32.mrf.mxu1 }
 0x176   : > { %2290 = vst [vmem:[%s3770_s22 + $0x10] sm:$0xf] %v2289_v25  ;;  %v2265_v37 = vadd.f32 %v3063_v53, %v2074_v24  ;;  %v2217_v62 = vpop.f32.mrf.mxu0 }
 0x177   : > { %v2283_v51 = vadd.f32 %v2282_v20, %v2261_v33  ;;  %v2260_v11 = vadd.f32 %v2217_v62, %v2069_v10  ;;  %v2245_v31 = vpop.f32.mrf.mxu1 }
 0x178   : > { %v2303_v58 = vadd.f32 %v2302_v57, %v2265_v37  ;;  %v2264_v30 = vadd.f32 %v2245_v31, %v2073_v55  ;;  %v3056_v28 = vpop.f32.mrf.mxu0 }
 0x179   : > { %v2284_v42 = vpack.c.bf16 %v2283_v51, %v2283_v51  ;;  %v2278_v12 = vadd.f32 %v2277_v34, %v2260_v11  ;;  %v3064_v36 = vpop.f32.mrf.mxu1 }
 0x17a   : > { %v2304_v32 = vpack.c.bf16 %v2303_v58, %v2303_v58  ;;  %v2298_v15 = vadd.f32 %v2297_v26, %v2264_v30  ;;  %v2220_v43 = vpop.f32.mrf.mxu0 }
 0x17b   : > { %2285 = vst [vmem:[%s3770_s22 + $0xc] sm:$0xf] %v2284_v42  ;;  %v2279_v44 = vpack.c.bf16 %v2278_v12, %v2278_v12  ;;  %v2248_v45 = vpop.f32.mrf.mxu1 }
 0x17c   : > { %2305 = vst [vmem:[%s3770_s22 + $0x1c] sm:$0xf] %v2304_v32  ;;  %v2299_v60 = vpack.c.bf16 %v2298_v15, %v2298_v15 }
 0x17d   : > { %2280 = vst [vmem:[%s3770_s22 + $0x8] sm:$0xf] %v2279_v44 }
 0x17e   : > { %2300 = vst [vmem:[%s3770_s22 + $0x18] sm:$0xf] %v2299_v60 }
 0x17f PF: > { %s13_s12 = sadd.s32 1, %s3214_s12  }
 0x180   : > { %p10_p4 = scmp.ge.s32.totalorder %s13_s12, 4  }
 0x182   :  { %12 = sbr.rel (!%p10_p4) target bundleno = 1 (0x1), region = 73 }

// kernel: densenet_forward.31
= control target key start
LH: loop header
LB: loop body
LE: loop exit
PB: predicated region body
PF: predicated region fallthrough
CT: control target
= control target key end

     0   :  { %11 = vsyncpa [#allocation3], 0  ;;  %s528_s0 = inlined_call_operand.vmem [shape: bf16[32,128], index: 0, kind: input, shape index: {}]   ;;  %s529_s1 = inlined_call_operand.hbm [shape: f32[1,128], index: 1, kind: input, shape index: {}]   ;;  %s530_s2 = inlined_call_operand.hbm [shape: f32[1,128], index: 2, kind: input, shape index: {}]   ;;  %s531_s3 = inlined_call_operand.vmem [shape: bf16[128,128], index: 3, kind: input, shape index: {}]   ;;  %s532_s4 = inlined_call_operand.hbm [shape: f32[1,128], index: 4, kind: input, shape index: {}]   ;;  %s533_s5 = inlined_call_operand.hbm [shape: f32[1,128], index: 5, kind: input, shape index: {}]   ;;  %s534_s6 = inlined_call_operand.vmem [shape: bf16[32,128], index: 6, kind: output, shape index: {}]  }
   0x1   :  { %12 = vsyncpa [#allocation5], 0 }
   0x2   :  { %13 = vsyncpa [#allocation8], 0  ;;  %s441_s21 = smov [#allocation4]   ;;  %s442_s23 = smov [#allocation2]  }
   0x3   :  { %s32_s22 = sshll.u32 %s441_s21, 4  ;;  %s22_s24 = sshll.u32 %s442_s23, 4  ;;  %s33_s22 = int_to_ptr.vmem [resolvable:$true] %s32_s22  ;;  %s23_s24 = int_to_ptr.vmem [resolvable:$true] %s22_s24 }
   0x4   :  { %s363_s25 = scalar_lea.vmem %s33_s22, 16  ;;  %s367_s26 = scalar_lea.vmem %s33_s22, 32 }
   0x5   :  { %p364_p0 = scmp.ne.s32.totalorder %s33_s22, %s363_s25  ;;  %p368_p1 = scmp.lt.s32.totalorder %s33_s22, %s33_s22 }
   0x6   :  { %p369_p2 = scmp.lt.s32.totalorder %s367_s26, %s363_s25 }
   0x8   :  { %p370_p3 = por %p369_p2, %p368_p1 }
   0xa   :  { %p371_p4 = pnand %p370_p3, %p364_p0 }
   0xc   :  { %374 = shalt.err (!%p371_p4)
}
   0xd   :  { %35 = dma.hbm_to_vmem [thread:$0]  %s530_s2, 16, %s33_s22, [#allocation5]  }
   0xe   :  { %s383_s29 = scalar_lea.vmem %s23_s24, 16  ;;  %s387_s30 = scalar_lea.vmem %s23_s24, 32 }
   0xf   :  { %p384_p5 = scmp.ne.s32.totalorder %s23_s24, %s383_s29  ;;  %p388_p6 = scmp.lt.s32.totalorder %s23_s24, %s23_s24 }
  0x10   :  { %p389_p7 = scmp.lt.s32.totalorder %s387_s30, %s383_s29 }
  0x12   :  { %p390_p8 = por %p389_p7, %p388_p6 }
  0x14   :  { %p391_p9 = pnand %p390_p8, %p384_p5 }
  0x16   :  { %394 = shalt.err (!%p391_p9)
}
  0x17   :  { %25 = dma.hbm_to_vmem [thread:$0]  %s529_s1, 16, %s23_s24, [#allocation3]  }
  0x18   :  { %s443_s9 = smov [#allocation6]   ;;  %s444_s11 = smov [#allocation7]  }
  0x19   :  { %s44_s10 = sshll.u32 %s443_s9, 4  ;;  %s54_s12 = sshll.u32 %s444_s11, 4  ;;  %s45_s10 = int_to_ptr.vmem [resolvable:$true] %s44_s10  ;;  %s55_s12 = int_to_ptr.vmem [resolvable:$true] %s54_s12 }
  0x1a   :  { %s403_s13 = scalar_lea.vmem %s45_s10, 16  ;;  %s407_s2 = scalar_lea.vmem %s45_s10, 32 }
  0x1b   :  { %p404_p10 = scmp.ne.s32.totalorder %s45_s10, %s403_s13  ;;  %p408_p11 = scmp.lt.s32.totalorder %s45_s10, %s45_s10 }
  0x1c   :  { %p409_p12 = scmp.lt.s32.totalorder %s407_s2, %s403_s13 }
  0x1e   :  { %p410_p13 = por %p409_p12, %p408_p11 }
  0x20   :  { %p411_p0 = pnand %p410_p13, %p404_p10 }
  0x22   :  { %414 = shalt.err (!%p411_p0)
}
  0x23   :  { %47 = dma.hbm_to_vmem [thread:$0]  %s532_s4, 16, %s45_s10, [#allocation5]  }
  0x24   :  { %s423_s16 = scalar_lea.vmem %s55_s12, 16  ;;  %s427_s1 = scalar_lea.vmem %s55_s12, 32 }
  0x25   :  { %p424_p1 = scmp.ne.s32.totalorder %s55_s12, %s423_s16  ;;  %p428_p2 = scmp.lt.s32.totalorder %s55_s12, %s55_s12 }
  0x26   :  { %p429_p3 = scmp.lt.s32.totalorder %s427_s1, %s423_s16 }
  0x28   :  { %p430_p4 = por %p429_p3, %p428_p2 }
  0x2a   :  { %p431_p5 = pnand %p430_p4, %p424_p1 }
  0x2c   :  { %434 = shalt.err (!%p431_p5)
}
  0x2d   :  { %57 = dma.hbm_to_vmem [thread:$0]  %s533_s5, 16, %s55_s12, [#allocation8]  }
  0x2e   :  { %435 = dma.done.wait [#allocation3], 16  }
  0x2f   :  { %436 = vsyncadd [#allocation3], 4294967280 }
  0x30   :  { %437 = dma.done.wait [#allocation5], 32  }
  0x31   :  { %438 = vsyncadd [#allocation5], 4294967264 }
  0x32   :  { %439 = dma.done.wait [#allocation8], 16  }
  0x33   :  { %440 = vsyncadd [#allocation8], 4294967280  ;;  %v347_v0 = vld [vmem:[%s531_s3 + $0x38] sm:$0xff]   ;;  %v348_v1 = vld [vmem:[%s531_s3 + $0x30] sm:$0xff]  }
  0x34   :  { %323 = vmatprep.subr.bf16.mxu0 %v347_v0  ;;  %v349_v2 = vld [vmem:[%s531_s3 + $0x28] sm:$0xff]   ;;  %v350_v3 = vld [vmem:[%s531_s3 + $0x20] sm:$0xff]   ;;  %v351_v12 = vld [vmem:[%s531_s3 + $0x18] sm:$0xff]  }
  0x35   :  { %324 = vmatpush3.bf16.msra.mxu0 %v347_v0  ;;  %v294_v4 = vld [vmem:[%s528_s0] sm:$0xff]   ;;  %v311_v11 = vld [vmem:[%s528_s0 + $0x8] sm:$0xff]   ;;  %v352_v19 = vld [vmem:[%s531_s3 + $0x10] sm:$0xff]  }
  0x36   :  { %325 = vmatprep.subr.bf16.mxu0 %v348_v1  ;;  %v273_v5 = vld [vmem:[#allocation2] ss:$0 sm:$0xff]  ;;  %v295_v6 = vunpack.c.l.bf16 %v294_v4  ;;  %v296_v7 = vunpack.c.h.bf16 %v294_v4  ;;  %v274_v8 = vld [vmem:[#allocation4] ss:$0 sm:$0xff]  ;;  %v299_v15 = vunpack.c.l.bf16 %v311_v11  ;;  %v300_v16 = vunpack.c.h.bf16 %v311_v11  ;;  %v353_v23 = vld [vmem:[%s531_s3 + $0x8] sm:$0xff]  }
  0x37   :  { %v354_v26 = vld [vmem:[%s531_s3] sm:$0xff]  }
  0x38   :  { %v86_v9 = vmul.f32 %v295_v6, %v273_v5  ;;  %v87_v10 = vmul.f32 %v296_v7, %v273_v5  ;;  %v88_v21 = vmul.f32 %v299_v15, %v273_v5  ;;  %v89_v22 = vmul.f32 %v300_v16, %v273_v5  ;;  %v283_v30 = vld [vmem:[#allocation6] ss:$0 sm:$0xff]  ;;  %v284_v33 = vld [vmem:[#allocation7] ss:$0 sm:$0xff] }
  0x39   :  { %326 = vmatpush3.bf16.msra.mxu0 %v348_v1 }
  0x3a   :  { %327 = vmatprep.subr.bf16.mxu0 %v349_v2  ;;  %v97_v13 = vadd.f32 %v274_v8, %v86_v9  ;;  %v98_v14 = vadd.f32 %v274_v8, %v87_v10  ;;  %v99_v24 = vadd.f32 %v274_v8, %v88_v21  ;;  %v100_v25 = vadd.f32 %v274_v8, %v89_v22 }
  0x3c   :  { %v101_v17 = vmax.f32 %v97_v13, 0.0  ;;  %v102_v18 = vmax.f32 %v98_v14, 0.0  ;;  %v103_v27 = vmax.f32 %v99_v24, 0.0  ;;  %v104_v28 = vmax.f32 %v100_v25, 0.0 }
  0x3d   :  { %328 = vmatpush3.bf16.msra.mxu0 %v349_v2 }
  0x3e   :  { %329 = vmatprep.subr.bf16.mxu0 %v350_v3  ;;  %v105_v20 = vpack.c.bf16 %v102_v18, %v101_v17  ;;  %v106_v29 = vpack.c.bf16 %v104_v28, %v103_v27 }
  0x40   :  { %339 = vmatprep.mubr.bf16.mxu0 %v105_v20 }
  0x41   :  { %330 = vmatpush3.bf16.msra.mxu0 %v350_v3 }
  0x42   :  { %331 = vmatprep.subr.bf16.mxu0 %v351_v12 }
  0x45   :  { %332 = vmatpush3.bf16.msra.mxu0 %v351_v12 }
  0x46   :  { %333 = vmatprep.subr.bf16.mxu0 %v352_v19 }
  0x49   :  { %334 = vmatpush3.bf16.msra.mxu0 %v352_v19 }
  0x4a   :  { %335 = vmatprep.subr.bf16.mxu0 %v353_v23 }
  0x4d   :  { %336 = vmatpush3.bf16.msra.mxu0 %v353_v23 }
  0x4e   :  { %337 = vmatprep.subr.bf16.mxu0 %v354_v26 }
  0x51   :  { %338 = vmatpush3.bf16.msra.mxu0 %v354_v26 }
  0x54   :  { %340 = vmatmul.mubr.bf16.vlgmr.msra.gmra.mxu0 %v106_v29 }
 0x114   :  { %v341_v31 = vpop.f32.mrf.mxu0 }
 0x115   :  { %v229_v32 = vmul.f32 %v341_v31, %v283_v30 }
 0x116   :  { %v205_v34 = vpop.f32.mrf.mxu0 }
 0x117   :  { %v227_v35 = vmul.f32 %v283_v30, %v205_v34  ;;  %v240_v37 = vadd.f32 %v284_v33, %v229_v32 }
 0x118   :  { %v342_v36 = vpop.f32.mrf.mxu0 }
 0x119   :  { %v230_v38 = vmul.f32 %v342_v36, %v283_v30  ;;  %v238_v40 = vadd.f32 %v284_v33, %v227_v35  ;;  %v244_v43 = vmax.f32 %v240_v37, 0.0 }
 0x11a   :  { %v208_v39 = vpop.f32.mrf.mxu0 }
 0x11b   :  { %v241_v41 = vadd.f32 %v284_v33, %v230_v38  ;;  %v228_v42 = vmul.f32 %v283_v30, %v208_v39  ;;  %v242_v46 = vmax.f32 %v238_v40, 0.0 }
 0x11d   :  { %v245_v44 = vmax.f32 %v241_v41, 0.0  ;;  %v239_v45 = vadd.f32 %v284_v33, %v228_v42 }
 0x11f   :  { %v309_v47 = vpack.c.bf16 %v245_v44, %v244_v43  ;;  %v243_v48 = vmax.f32 %v239_v45, 0.0 }
 0x121   :  { %312 = vst [vmem:[%s534_s6 + $0x8] sm:$0xff] %v309_v47   ;;  %v304_v49 = vpack.c.bf16 %v243_v48, %v242_v46 }
 0x123   :  { %305 = vst [vmem:[%s534_s6] sm:$0xff] %v304_v49  }
 0x124   :  { %270 = vsyncpa [#allocation3], 1 }
 0x125   :  { %271 = vsyncpa [#allocation5], 1 }
 0x126   :  { %272 = vsyncpa [#allocation8], 1 }

// kernel: densenet_forward.34
= control target key start
LH: loop header
LB: loop body
LE: loop exit
PB: predicated region body
PF: predicated region fallthrough
CT: control target
= control target key end

     0   :  { %11 = vsyncpa [#allocation3], 0  ;;  %s375_s0 = inlined_call_operand.vmem [shape: bf16[8,128], index: 0, kind: input, shape index: {}]   ;;  %s376_s1 = inlined_call_operand.vmem [shape: f32[1,128], index: 1, kind: input, shape index: {}]   ;;  %s377_s2 = inlined_call_operand.vmem [shape: f32[1,128], index: 2, kind: input, shape index: {}]   ;;  %s378_s3 = inlined_call_operand.vmem [shape: bf16[128,128], index: 3, kind: input, shape index: {}]   ;;  %s379_s4 = inlined_call_operand.hbm [shape: f32[1,128], index: 4, kind: input, shape index: {}]   ;;  %s380_s5 = inlined_call_operand.hbm [shape: f32[1,128], index: 5, kind: input, shape index: {}]   ;;  %s381_s6 = inlined_call_operand.vmem [shape: bf16[8,128], index: 6, kind: output, shape index: {}]  }
   0x1   :  { %12 = vsyncpa [#allocation5], 0  ;;  %s294_s21 = smov [#allocation2]   ;;  %s295_s23 = smov [#allocation4]  }
   0x2   :  { %s27_s22 = sshll.u32 %s294_s21, 4  ;;  %s37_s24 = sshll.u32 %s295_s23, 4  ;;  %s28_s22 = int_to_ptr.vmem [resolvable:$true] %s27_s22  ;;  %s38_s24 = int_to_ptr.vmem [resolvable:$true] %s37_s24 }
   0x3   :  { %s258_s25 = scalar_lea.vmem %s28_s22, 16  ;;  %s262_s26 = scalar_lea.vmem %s28_s22, 32 }
   0x4   :  { %p259_p0 = scmp.ne.s32.totalorder %s28_s22, %s258_s25  ;;  %p263_p1 = scmp.lt.s32.totalorder %s28_s22, %s28_s22 }
   0x5   :  { %p264_p2 = scmp.lt.s32.totalorder %s262_s26, %s258_s25 }
   0x7   :  { %p265_p3 = por %p264_p2, %p263_p1 }
   0x9   :  { %p266_p4 = pnand %p265_p3, %p259_p0 }
   0xb   :  { %269 = shalt.err (!%p266_p4)
}
   0xc   :  { %30 = dma.hbm_to_vmem [thread:$0]  %s379_s4, 16, %s28_s22, [#allocation3]  }
   0xd   :  { %s278_s29 = scalar_lea.vmem %s38_s24, 16  ;;  %s282_s30 = scalar_lea.vmem %s38_s24, 32 }
   0xe   :  { %p279_p5 = scmp.ne.s32.totalorder %s38_s24, %s278_s29  ;;  %p283_p6 = scmp.lt.s32.totalorder %s38_s24, %s38_s24 }
   0xf   :  { %p284_p7 = scmp.lt.s32.totalorder %s282_s30, %s278_s29 }
  0x11   :  { %p285_p8 = por %p284_p7, %p283_p6 }
  0x13   :  { %p286_p9 = pnand %p285_p8, %p279_p5 }
  0x15   :  { %289 = shalt.err (!%p286_p9)
}
  0x16   :  { %40 = dma.hbm_to_vmem [thread:$0]  %s380_s5, 16, %s38_s24, [#allocation5]  }
  0x17   :  { %290 = dma.done.wait [#allocation3], 16  }
  0x18   :  { %291 = vsyncadd [#allocation3], 4294967280 }
  0x19   :  { %292 = dma.done.wait [#allocation5], 16  }
  0x1a   :  { %293 = vsyncadd [#allocation5], 4294967280  ;;  %v296_v0 = vmov 0.0   ;;  %vm297_vm0 = vmmov 0   ;;  %v242_v1 = vld [vmem:[%s378_s3 + $0x38] sm:$0xff]   ;;  %v243_v2 = vld [vmem:[%s378_s3 + $0x30] sm:$0xff]  }
  0x1b   :  { %218 = vmatprep.subr.bf16.mxu0 %v296_v0  ;;  %234 = vmatprep.mubr.msk.bf16.mxu0 %vm297_vm0, %v296_v0  ;;  %v244_v3 = vld [vmem:[%s378_s3 + $0x28] sm:$0xff]   ;;  %v245_v4 = vld [vmem:[%s378_s3 + $0x20] sm:$0xff]   ;;  %v246_v7 = vld [vmem:[%s378_s3 + $0x18] sm:$0xff]  }
  0x1c   :  { %219 = vmatpush3.bf16.msra.mxu0 %v242_v1  ;;  %v48_v5 = vld [vmem:[%s375_s0] sm:$0xf]  ;;  %v247_v10 = vld [vmem:[%s378_s3 + $0x10] sm:$0xff]   ;;  %v248_v13 = vld [vmem:[%s378_s3 + $0x8] sm:$0xff]  }
  0x1d   :  { %220 = vmatprep.subr.bf16.mxu0 %v296_v0  ;;  %v49_v6 = vunpack.c.l.bf16 %v48_v5  ;;  %v197_v8 = vld [vmem:[%s376_s1] ss:$0 sm:$0xff]  ;;  %v208_v19 = vld [vmem:[#allocation4] ss:$0 sm:$0xff] }
  0x1e   :  { %v198_v11 = vld [vmem:[%s377_s2] ss:$0 sm:$0xff] }
  0x1f   :  { %v57_v9 = vmul.f32 %v197_v8, %v49_v6  ;;  %v249_v15 = vld [vmem:[%s378_s3] sm:$0xff]  }
  0x20   :  { %221 = vmatpush3.bf16.msra.mxu0 %v243_v2  ;;  %v207_v17 = vld [vmem:[#allocation2] ss:$0 sm:$0xff] }
  0x21   :  { %222 = vmatprep.subr.bf16.mxu0 %v296_v0  ;;  %v65_v12 = vadd.f32 %v198_v11, %v57_v9 }
  0x23   :  { %v66_v14 = vmax.f32 %v65_v12, 0.0 }
  0x24   :  { %223 = vmatpush3.bf16.msra.mxu0 %v244_v3 }
  0x25   :  { %224 = vmatprep.subr.bf16.mxu0 %v296_v0  ;;  %v67_v16 = vpack.c.bf16 %v66_v14, %v66_v14 }
  0x28   :  { %225 = vmatpush3.bf16.msra.mxu0 %v245_v4 }
  0x29   :  { %226 = vmatprep.subr.bf16.mxu0 %v296_v0 }
  0x2c   :  { %227 = vmatpush3.bf16.msra.mxu0 %v246_v7 }
  0x2d   :  { %228 = vmatprep.subr.bf16.mxu0 %v296_v0 }
  0x30   :  { %229 = vmatpush3.bf16.msra.mxu0 %v247_v10 }
  0x31   :  { %230 = vmatprep.subr.bf16.mxu0 %v296_v0 }
  0x34   :  { %231 = vmatpush3.bf16.msra.mxu0 %v248_v13 }
  0x35   :  { %232 = vmatprep.subr.bf16.mxu0 %v296_v0 }
  0x38   :  { %233 = vmatpush3.bf16.msra.mxu0 %v249_v15 }
  0x3b   :  { %235 = vmatmul.mubr.bf16.vlgmr.msra.gmra.mxu0 %v67_v16 }
  0xfb   :  { %v166_v18 = vpop.f32.mrf.mxu0 }
  0xfc   :  { %v179_v20 = vmul.f32 %v207_v17, %v166_v18 }
  0xfd   :  { %v236_v21 = vpop.f32.mrf.mxu0 }
  0xfe   :  { %v187_v22 = vadd.f32 %v208_v19, %v179_v20 }
  0xff   :  { %v169_v23 = vpop.f32.mrf.mxu0 }
 0x100   :  { %v188_v24 = vmax.f32 %v187_v22, 0.0 }
 0x101   :  { %v237_v25 = vpop.f32.mrf.mxu0 }
 0x102   :  { %v189_v26 = vpack.c.bf16 %v188_v24, %v188_v24 }
 0x104   :  { %190 = vst [vmem:[%s381_s6] sm:$0xf] %v189_v26 }
 0x105   :  { %195 = vsyncpa [#allocation3], 1 }
 0x106   :  { %196 = vsyncpa [#allocation5], 1 }

// kernel: densenet_forward.30
= control target key start
LH: loop header
LB: loop body
LE: loop exit
PB: predicated region body
PF: predicated region fallthrough
CT: control target
= control target key end

     0   :  { %s2148_s12 = smov 0   ;;  %s2474_s0 = inlined_call_operand.vmem [shape: bf16[2,56,128], index: 0, kind: input, shape index: {}]   ;;  %s2475_s1 = inlined_call_operand.vmem [shape: bf16[2,16,128], index: 1, kind: input, shape index: {}]   ;;  %s2476_s2 = inlined_call_operand.vmem [shape: bf16[9,128,128], index: 2, kind: input, shape index: {}]   ;;  %s2477_s3 = inlined_call_operand.vmem [shape: bf16[2,16,128], index: 3, kind: output, shape index: {}]  }
   0x1 LB: > { %s1519_s13 = sadd.s32 4294967295, %s2126_s12   ;;  %p1523_p0 = scmp.ge.s32.totalorder %s2126_s12, 1  ;;  %s2126_s12 = sphi %s2148_s12, %s13_s12  }
   0x2   : > { %p147_p1 = scmp.lt.s32.totalorder %s2126_s12, 3 }
   0x4   : > { %p148_p2 = pnand %p1523_p0, %p147_p1 }
   0x5   : > { %p176_p3 = scmp.lt.s32.totalorder (!%p148_p2), %s1519_s13, 1 }
   0x6   : > { %151 = sbr.rel (%p148_p2) target bundleno = 380 (0x17c), region = 32 }
   0xb   : > { %v2032_v0 = vld [vmem:[%s2476_s2 + $0x78] sm:$0xff]   ;;  %v2034_v2 = vld [vmem:[%s2476_s2 + $0x70] sm:$0xff]   ;;  %v2036_v4 = vld [vmem:[%s2476_s2 + $0x68] sm:$0xff]   ;;  %s2479_s13 = smov (!%p176_p3, %s1519_s13), 1  ;;  %vm243_vm0 = vsmask.f32 7424 }
   0xc   : > { %v2033_v1 = vld [vmem:[%s2476_s2 + $0x38] sm:$0xff]   ;;  %1843 = vmatprep.subr.bf16.mxu0 %v2032_v0  ;;  %v2035_v3 = vld [vmem:[%s2476_s2 + $0x30] sm:$0xff]   ;;  %v2037_v5 = vld [vmem:[%s2476_s2 + $0x28] sm:$0xff]   ;;  %s2023_s30 = smul.u32 28, %s2479_s13  ;;  %vm483_vm1 = vcmask 1046528   ;;  %s1749_s16 = sshll.u32 %s2479_s13, 3 }
   0xd   : > { %1863 = vmatprep.subr.bf16.mxu1 %v2033_v1  ;;  %1844 = vmatpush3.bf16.msra.mxu0 %v2032_v0  ;;  %v2038_v6 = vld [vmem:[%s2476_s2 + $0x60] sm:$0xff]   ;;  %v2040_v8 = vld [vmem:[%s2476_s2 + $0x58] sm:$0xff]   ;;  %v2042_v10 = vld [vmem:[%s2476_s2 + $0x50] sm:$0xff]   ;;  %s185_s19 = scalar_lea.vmem %s2475_s1, %s1749_s16  ;;  %s190_s22 = scalar_lea.vmem %s2477_s3, %s1749_s16 }
   0xe   : > { %1864 = vmatpush3.bf16.msra.mxu1 %v2033_v1  ;;  %1845 = vmatprep.subr.bf16.mxu0 %v2034_v2  ;;  %v2039_v7 = vld [vmem:[%s2476_s2 + $0x20] sm:$0xff]   ;;  %v2041_v9 = vld [vmem:[%s2476_s2 + $0x18] sm:$0xff]   ;;  %s2192_s10 = scalar_lea.vmem %s2474_s0, %s2023_s30  ;;  %v2043_v14 = vld [vmem:[%s2476_s2 + $0x10] sm:$0xff]  }
   0xf   : > { %1865 = vmatprep.subr.bf16.mxu1 %v2035_v3  ;;  %v192_v11 = vld [vmem:[%s2192_s10] sm:$0xf]  ;;  %v193_v12 = vld [vmem:[%s2192_s10 + $0x4] sm:$0xf]  ;;  %v194_v13 = vld [vmem:[%s2192_s10 + $0x8] sm:$0xf] }
  0x10   : > { %v2204_v15 = vld [vmem:[%s2192_s10 + $0xc] sm:$0xf]  ;;  %v1545_v16 = vcombine.low %v192_v11, %v193_v12  ;;  %v2210_v18 = vld [vmem:[%s2192_s10 + $0x10] ss:$0 sps:$4 sm:$0x11]   ;;  %v2046_v29 = vld [vmem:[%s2476_s2 + $0x40] sm:$0xff]   ;;  %v1605_v39 = vcombine.low %v193_v12, %v194_v13 }
  0x11   : > { %1846 = vmatpush3.bf16.msra.mxu0 %v2034_v2  ;;  %v2207_v17 = vcombine.low %v194_v13, %v2204_v15  ;;  %v2044_v21 = vld [vmem:[%s2476_s2 + $0x48] sm:$0xff]   ;;  %v260_v28 = vshll.u32 %v2210_v18, 16  ;;  %v2047_v30 = vld [vmem:[%s2476_s2] sm:$0xff]   ;;  %v2051_v34 = vld [vmem:[%s2476_s2 + $0xb8] sm:$0xff]   ;;  %v487_v1 = vrot.slane %v2210_v18, 1 }
  0x12   : > { %1866 = vmatpush3.bf16.msra.mxu1 %v2035_v3  ;;  %1847 = vmatprep.subr.bf16.mxu0 %v2036_v4  ;;  %v245_v19 = vshrl.u32 %v1545_v16, 16  ;;  %v247_v20 = vshll.u32 %v1545_v16, 16  ;;  %v2045_v23 = vld [vmem:[%s2476_s2 + $0x8] sm:$0xff]   ;;  %v2052_v35 = vld [vmem:[%s2476_s2 + $0xf8] sm:$0xff]   ;;  %v2053_v37 = vld [vmem:[%s2476_s2 + $0xb0] sm:$0xff]  }
  0x13   : > { %1867 = vmatprep.subr.bf16.mxu1 %v2037_v5  ;;  %1879 = vmatprep.mubr.bf16.mxu1 %v1545_v16  ;;  %v252_v22 = vshll.u32 %v2207_v17, 16  ;;  %v256_v27 = vshrl.u32 %v2207_v17, 16  ;;  %v262_v33 = vrot.slane %v260_v28, 1  ;;  %v2054_v38 = vld [vmem:[%s2476_s2 + $0xf0] sm:$0xff]   ;;  %v462_v40 = vld [vmem:[%s2192_s10] sm:$0xe] }
  0x14   : > { %v249_v24 = vrot.slane %v247_v20, 1  ;;  %v2055_v41 = vld [vmem:[%s2476_s2 + $0xa8] sm:$0xff]   ;;  %v1580_v42 = vcombine.low %v462_v40, %v193_v12  ;;  %v485_v43 = vrot.slane %v2207_v17, 1  ;;  %v2057_v46 = vld [vmem:[%s2476_s2 + $0xa0] sm:$0xff]   ;;  %v2059_v49 = vld [vmem:[%s2476_s2 + $0x98] sm:$0xff]  }
  0x15   : > { %1848 = vmatpush3.bf16.msra.mxu0 %v2036_v4  ;;  %v254_v25 = vrot.slane %v252_v22, 1  ;;  %v2056_v44 = vld [vmem:[%s2476_s2 + $0xe8] sm:$0xff]   ;;  %v2058_v48 = vld [vmem:[%s2476_s2 + $0xe0] sm:$0xff]   ;;  %v2060_v50 = vld [vmem:[%s2476_s2 + $0xd8] sm:$0xff]  }
  0x16   : > { %1868 = vmatpush3.bf16.msra.mxu1 %v2037_v5  ;;  %1849 = vmatprep.subr.bf16.mxu0 %v2038_v6  ;;  %v250_v26 = vor.u32 %v249_v24, %v245_v19  ;;  %v484_v45 = vrot.slane %v1580_v42, 1  ;;  %v2061_v51 = vld [vmem:[%s2476_s2 + $0x90] sm:$0xff]   ;;  %v2063_v53 = vld [vmem:[%s2476_s2 + $0x88] sm:$0xff]   ;;  %v717_v55 = vld [vmem:[%s2192_s10 + $0x4] sm:$0xf]  ;;  %v488_v11 = vsel %vm483_vm1, %v485_v43, %v487_v1 }
  0x17   : > { %1869 = vmatprep.subr.bf16.mxu1 %v2039_v7  ;;  %v258_v32 = vor.u32 %v256_v27, %v254_v25  ;;  %v2062_v52 = vld [vmem:[%s2476_s2 + $0xd0] sm:$0xff]   ;;  %v2064_v54 = vld [vmem:[%s2476_s2 + $0xc8] sm:$0xff]   ;;  %v2065_v62 = vld [vmem:[%s2476_s2 + $0x80] sm:$0xff]  }
  0x18   : > { %v255_v31 = vsel %vm243_vm0, %v250_v26, %v254_v25  ;;  %v486_v47 = vsel %vm483_vm1, %v484_v45, %v485_v43  ;;  %v2277_v56 = vld [vmem:[%s2192_s10 + $0x8] sm:$0xf]  ;;  %v2280_v57 = vld [vmem:[%s2192_s10 + $0xc] sm:$0xf]  ;;  %v2283_v58 = vld [vmem:[%s2192_s10 + $0x10] sm:$0xf] }
  0x19   : > { %1850 = vmatpush3.bf16.msra.mxu0 %v2038_v6  ;;  %1859 = vmatprep.mubr.bf16.mxu0 %v255_v31  ;;  %v263_v36 = vsel %vm243_vm0, %v258_v32, %v262_v33  ;;  %v1631_v59 = vcombine.low %v717_v55, %v2277_v56  ;;  %v2288_v60 = vcombine.low %v2280_v57, %v2283_v58  ;;  %v875_v63 = vld [vmem:[%s2192_s10 + $0x4] sm:$0xe]  ;;  %v2068_v2 = vld [vmem:[%s2476_s2 + $0x138] sm:$0xff]   ;;  %v2072_v16 = vld [vmem:[%s2476_s2 + $0x130] sm:$0xff]  }
  0x1a   : > { %1870 = vmatpush3.bf16.msra.mxu1 %v2039_v7  ;;  %1851 = vmatprep.subr.bf16.mxu0 %v2040_v8  ;;  %v2066_v0 = vld [vmem:[%s2476_s2 + $0xc0] sm:$0xff]   ;;  %v1658_v6 = vcombine.low %v875_v63, %v2277_v56  ;;  %v592_v7 = vld [vmem:[%s2192_s10 + $0x10] sm:$0xf]  ;;  %v2074_v19 = vld [vmem:[%s2476_s2 + $0x128] sm:$0xff]  }
  0x1b   : > { %1871 = vmatprep.subr.bf16.mxu1 %v2041_v9  ;;  %v755_v61 = vshll.u32 %v1631_v59, 16  ;;  %v753_v3 = vshrl.u32 %v1631_v59, 16  ;;  %v760_v5 = vshll.u32 %v2288_v60, 16  ;;  %v1606_v12 = vcombine.low %v2204_v15, %v592_v7  ;;  %v2075_v20 = vld [vmem:[%s2476_s2 + $0x168] sm:$0xff]   ;;  %v2077_v22 = vld [vmem:[%s2476_s2 + $0x160] sm:$0xff]   ;;  %v2079_v24 = vld [vmem:[%s2476_s2 + $0x158] sm:$0xff]  }
  0x1c   : > { %v896_v13 = vrot.slane %v1658_v6, 1  ;;  %v2080_v25 = vld [vmem:[%s2476_s2 + $0x110] sm:$0xff]   ;;  %v1129_v26 = vld [vmem:[%s2192_s10 + $0x8] sm:$0xf]  ;;  %v2347_v28 = vld [vmem:[%s2192_s10 + $0xc] sm:$0xf] }
  0x1d   : > { %1852 = vmatpush3.bf16.msra.mxu0 %v2040_v8  ;;  %v757_v4 = vrot.slane %v755_v61, 1  ;;  %v2071_v8 = vld [vmem:[%s2476_s2 + $0x178] sm:$0xff]   ;;  %v2088_v27 = vld [vmem:[%s2192_s10 + $0x14] ss:$0 sps:$4 sm:$0x11]   ;;  %v2082_v31 = vld [vmem:[%s2476_s2 + $0x108] sm:$0xff]  }
  0x1e   : > { %1872 = vmatpush3.bf16.msra.mxu1 %v2041_v9  ;;  %1853 = vmatprep.subr.bf16.mxu0 %v2042_v10  ;;  %v2083_v32 = vld [vmem:[%s2476_s2 + $0x148] sm:$0xff]   ;;  %v768_v33 = vshll.u32 %v2088_v27, 16  ;;  %v899_v45 = vrot.slane %v2088_v27, 1  ;;  %v2099_v61 = vld [vmem:[%s2476_s2 + $0x1d8] sm:$0xff]   ;;  %v2101_v63 = vld [vmem:[%s2476_s2 + $0x1d0] sm:$0xff]  }
  0x1f   : > { %1873 = vmatprep.subr.bf16.mxu1 %v2043_v14  ;;  %v758_v9 = vor.u32 %v757_v4, %v753_v3  ;;  %v2094_v55 = vld [vmem:[%s2476_s2 + $0x1a8] sm:$0xff]   ;;  %v2111_v1 = vld [vmem:[%s2192_s10 + $0x18] ss:$0 sps:$4 sm:$0x11]   ;;  %v2104_v4 = vld [vmem:[%s2476_s2 + $0x180] sm:$0xff]  }
  0x20   : > { %v2095_v59 = vld [vmem:[%s2476_s2 + $0x1e8] sm:$0xff]   ;;  %v1180_v6 = vshll.u32 %v2111_v1, 16  ;;  %v2105_v7 = vld [vmem:[%s2476_s2 + $0x1c0] sm:$0xff]  }
  0x21   : > { %1854 = vmatpush3.bf16.msra.mxu0 %v2042_v10  ;;  %v2307_v10 = vrot.slane %v760_v5, 1  ;;  %v1287_v3 = vld [vmem:[%s2192_s10 + $0x8] sm:$0xe] }
  0x22   : > { %1874 = vmatpush3.bf16.msra.mxu1 %v2043_v14  ;;  %1855 = vmatprep.subr.bf16.mxu0 %v2044_v21  ;;  %v897_v14 = vrot.slane %v2288_v60, 1 }
  0x23   : > { %1875 = vmatprep.subr.bf16.mxu1 %v2045_v23  ;;  %v763_v18 = vsel %vm243_vm0, %v758_v9, %v2307_v10  ;;  %v1004_v9 = vld [vmem:[%s2192_s10 + $0x14] sm:$0xf] }
  0x24   : > { %v898_v15 = vsel %vm483_vm1, %v896_v13, %v897_v14 }
  0x25   : > { %1856 = vmatpush3.bf16.msra.mxu0 %v2044_v21  ;;  %v2076_v21 = vld [vmem:[%s2476_s2 + $0x120] sm:$0xff]  }
  0x26   : > { %1876 = vmatpush3.bf16.msra.mxu1 %v2045_v23  ;;  %1857 = vmatprep.subr.bf16.mxu0 %v2046_v29  ;;  %v2078_v23 = vld [vmem:[%s2476_s2 + $0x118] sm:$0xff]  }
  0x27   : > { %1877 = vmatprep.subr.bf16.mxu1 %v2047_v30 }
  0x29   : > { %1858 = vmatpush3.bf16.msra.mxu0 %v2046_v29  ;;  %v2081_v29 = vld [vmem:[%s2476_s2 + $0x150] sm:$0xff]  }
  0x2a   : > { %1878 = vmatpush3.bf16.msra.mxu1 %v2047_v30  ;;  %1883 = vmatprep.subr.bf16.mxu0 %v2051_v34  ;;  %v1709_v30 = vcombine.low %v1129_v26, %v2347_v28 }
  0x2b   : > { %1903 = vmatprep.subr.bf16.mxu1 %v2052_v35 }
  0x2c   : > { %1860 = vmatmul.mubr.bf16.vlgmr.msra.gmra.mxu0 %v263_v36  ;;  %v1167_v36 = vshll.u32 %v1709_v30, 16 }
  0x2d   : > { %1880 = vmatmul.mubr.bf16.vlgmr.msra.gmra.mxu1 %v2207_v17  ;;  %1884 = vmatpush3.bf16.msra.mxu0 %v2051_v34  ;;  %v2073_v17 = vld [vmem:[%s2476_s2 + $0x170] sm:$0xff]   ;;  %v764_v34 = vshrl.u32 %v2288_v60, 16  ;;  %v2098_v60 = vld [vmem:[%s2476_s2 + $0x198] sm:$0xff]  }
  0x2e   : > { %1904 = vmatpush3.bf16.msra.mxu1 %v2052_v35  ;;  %1885 = vmatprep.subr.bf16.mxu0 %v2053_v37  ;;  %v2361_v35 = vld [vmem:[%s2192_s10 + $0x10] sm:$0xff]   ;;  %v1169_v42 = vrot.slane %v1167_v36, 1 }
  0x2f   : > { %1905 = vmatprep.subr.bf16.mxu1 %v2054_v38  ;;  %1919 = vmatprep.mubr.bf16.mxu1 %v1605_v39  ;;  %v770_v39 = vrot.slane %v768_v33, 1  ;;  %v766_v40 = vor.u32 %v764_v34, %v2307_v10  ;;  %v1172_v43 = vshll.u32 %v2361_v35, 16  ;;  %v1176_v5 = vshrl.u32 %v2361_v35, 16  ;;  %v2108_v10 = vld [vmem:[%s2476_s2 + $0x238] sm:$0xff]  }
  0x30   : > { %1899 = vmatprep.mubr.bf16.mxu0 %v486_v47 }
  0x31   : > { %1886 = vmatpush3.bf16.msra.mxu0 %v2053_v37  ;;  %v2084_v37 = vld [vmem:[%s2476_s2 + $0x100] sm:$0xff]   ;;  %v771_v47 = vsel %vm243_vm0, %v766_v40, %v770_v39 }
  0x32   : > { %1906 = vmatpush3.bf16.msra.mxu1 %v2054_v38  ;;  %1887 = vmatprep.subr.bf16.mxu0 %v2055_v41  ;;  %v2085_v38 = vld [vmem:[%s2476_s2 + $0x140] sm:$0xff]  }
  0x33   : > { %1907 = vmatprep.subr.bf16.mxu1 %v2056_v44 }
  0x35   : > { %1888 = vmatpush3.bf16.msra.mxu0 %v2055_v41  ;;  %v1165_v41 = vshrl.u32 %v1709_v30, 16 }
  0x36   : > { %1908 = vmatpush3.bf16.msra.mxu1 %v2056_v44  ;;  %1889 = vmatprep.subr.bf16.mxu0 %v2057_v46  ;;  %v2089_v44 = vld [vmem:[%s2476_s2 + $0x1b8] sm:$0xff]  }
  0x37   : > { %1909 = vmatprep.subr.bf16.mxu1 %v2058_v48 }
  0x39   : > { %1890 = vmatpush3.bf16.msra.mxu0 %v2057_v46  ;;  %v2091_v46 = vld [vmem:[%s2476_s2 + $0x1f8] sm:$0xff]  }
  0x3a   : > { %1910 = vmatpush3.bf16.msra.mxu1 %v2058_v48  ;;  %1891 = vmatprep.subr.bf16.mxu0 %v2059_v49  ;;  %v1170_v48 = vor.u32 %v1169_v42, %v1165_v41 }
  0x3b   : > { %1911 = vmatprep.subr.bf16.mxu1 %v2060_v50 }
  0x3d   : > { %1892 = vmatpush3.bf16.msra.mxu0 %v2059_v49  ;;  %v1174_v49 = vrot.slane %v1172_v43, 1 }
  0x3e   : > { %1912 = vmatpush3.bf16.msra.mxu1 %v2060_v50  ;;  %1893 = vmatprep.subr.bf16.mxu0 %v2061_v51  ;;  %v900_v50 = vsel %vm483_vm1, %v897_v14, %v899_v45  ;;  %v1309_v14 = vrot.slane %v2361_v35, 1 }
  0x3f   : > { %1913 = vmatprep.subr.bf16.mxu1 %v2062_v52 }
  0x41   : > { %1894 = vmatpush3.bf16.msra.mxu0 %v2061_v51  ;;  %v2092_v51 = vld [vmem:[%s2476_s2 + $0x1b0] sm:$0xff]  }
  0x42   : > { %1914 = vmatpush3.bf16.msra.mxu1 %v2062_v52  ;;  %1895 = vmatprep.subr.bf16.mxu0 %v2063_v53  ;;  %v2093_v52 = vld [vmem:[%s2476_s2 + $0x1f0] sm:$0xff]  }
  0x43   : > { %1915 = vmatprep.subr.bf16.mxu1 %v2064_v54 }
  0x45   : > { %1896 = vmatpush3.bf16.msra.mxu0 %v2063_v53  ;;  %v1683_v53 = vcombine.low %v2277_v56, %v2280_v57  ;;  %v2096_v56 = vld [vmem:[%s2476_s2 + $0x1a0] sm:$0xff]  }
  0x46   : > { %1916 = vmatpush3.bf16.msra.mxu1 %v2064_v54  ;;  %1897 = vmatprep.subr.bf16.mxu0 %v2065_v62  ;;  %v1175_v54 = vsel %vm243_vm0, %v1170_v48, %v1174_v49  ;;  %v2097_v57 = vld [vmem:[%s2476_s2 + $0x1e0] sm:$0xff]  }
  0x47   : > { %1917 = vmatprep.subr.bf16.mxu1 %v2066_v0 }
  0x49   : > { %1898 = vmatpush3.bf16.msra.mxu0 %v2065_v62  ;;  %v2100_v62 = vld [vmem:[%s2476_s2 + $0x190] sm:$0xff]  }
  0x4a   : > { %1918 = vmatpush3.bf16.msra.mxu1 %v2066_v0  ;;  %1923 = vmatprep.subr.bf16.mxu0 %v2068_v2  ;;  %v2102_v0 = vld [vmem:[%s2476_s2 + $0x188] sm:$0xff]  }
  0x4b   : > { %1943 = vmatprep.subr.bf16.mxu1 %v2071_v8 }
  0x4c   : > { %1900 = vmatmul.mubr.bf16.vlgmr.msra.gmra.mxu0 %v488_v11  ;;  %v1178_v11 = vor.u32 %v1176_v5, %v1174_v49 }
  0x4d   : > { %1924 = vmatpush3.bf16.msra.mxu0 %v2068_v2  ;;  %1920 = vmatmul.mubr.bf16.vlgmr.msra.gmra.mxu1 %v1606_v12  ;;  %v2103_v2 = vld [vmem:[%s2476_s2 + $0x1c8] sm:$0xff]   ;;  %v1182_v12 = vrot.slane %v1180_v6, 1 }
  0x4e   : > { %1944 = vmatpush3.bf16.msra.mxu1 %v2071_v8  ;;  %1925 = vmatprep.subr.bf16.mxu0 %v2072_v16  ;;  %v1736_v8 = vcombine.low %v1287_v3, %v2347_v28 }
  0x4f   : > { %1945 = vmatprep.subr.bf16.mxu1 %v2073_v17  ;;  %1939 = vmatprep.mubr.bf16.mxu0 %v763_v18  ;;  %v2112_v18 = vld [vmem:[%s2476_s2 + $0x230] sm:$0xff]  }
  0x50   : > { %1959 = vmatprep.mubr.bf16.mxu1 %v898_v15  ;;  %v1308_v13 = vrot.slane %v1736_v8, 1 }
  0x51   : > { %1926 = vmatpush3.bf16.msra.mxu0 %v2072_v16  ;;  %v1684_v16 = vcombine.low %v2283_v58, %v1004_v9  ;;  %v2114_v58 = vld [vmem:[%s2476_s2 + $0x220] sm:$0xff]  }
  0x52   : > { %1946 = vmatpush3.bf16.msra.mxu1 %v2073_v17  ;;  %1927 = vmatprep.subr.bf16.mxu0 %v2074_v19  ;;  %v1183_v17 = vsel %vm243_vm0, %v1178_v11, %v1182_v12  ;;  %v1310_v15 = vsel %vm483_vm1, %v1308_v13, %v1309_v14  ;;  %v1434_v11 = vld [vmem:[%s185_s19 + $0x4] sm:$0x3]  ;;  %v1439_v12 = vld [vmem:[%s185_s19 + $0x4] sm:$0xc] }
  0x53   : > { %1947 = vmatprep.subr.bf16.mxu1 %v2075_v20 }
  0x55   : > { %1928 = vmatpush3.bf16.msra.mxu0 %v2074_v19  ;;  %v2113_v19 = vld [vmem:[%s2476_s2 + $0x228] sm:$0xff]  }
  0x56   : > { %1948 = vmatpush3.bf16.msra.mxu1 %v2075_v20  ;;  %1929 = vmatprep.subr.bf16.mxu0 %v2076_v21  ;;  %v2115_v20 = vld [vmem:[%s2476_s2 + $0x218] sm:$0xff]  }
  0x57   : > { %1949 = vmatprep.subr.bf16.mxu1 %v2077_v22 }
  0x59   : > { %1930 = vmatpush3.bf16.msra.mxu0 %v2076_v21  ;;  %v2116_v21 = vld [vmem:[%s2476_s2 + $0x210] sm:$0xff]  }
  0x5a   : > { %1950 = vmatpush3.bf16.msra.mxu1 %v2077_v22  ;;  %1931 = vmatprep.subr.bf16.mxu0 %v2078_v23  ;;  %v2117_v22 = vld [vmem:[%s2476_s2 + $0x208] sm:$0xff]  }
  0x5b   : > { %1951 = vmatprep.subr.bf16.mxu1 %v2079_v24 }
  0x5d   : > { %1932 = vmatpush3.bf16.msra.mxu0 %v2078_v23  ;;  %v2118_v23 = vld [vmem:[%s2476_s2 + $0x200] sm:$0xff]  }
  0x5e   : > { %1952 = vmatpush3.bf16.msra.mxu1 %v2079_v24  ;;  %1933 = vmatprep.subr.bf16.mxu0 %v2080_v25  ;;  %v1311_v24 = vrot.slane %v2111_v1, 1 }
  0x5f   : > { %1953 = vmatprep.subr.bf16.mxu1 %v2081_v29 }
  0x61   : > { %1934 = vmatpush3.bf16.msra.mxu0 %v2080_v25  ;;  %v1312_v25 = vsel %vm483_vm1, %v1309_v14, %v1311_v24 }
  0x62   : > { %1954 = vmatpush3.bf16.msra.mxu1 %v2081_v29  ;;  %1935 = vmatprep.subr.bf16.mxu0 %v2082_v31 }
  0x63   : > { %1955 = vmatprep.subr.bf16.mxu1 %v2083_v32 }
  0x65   : > { %1936 = vmatpush3.bf16.msra.mxu0 %v2082_v31 }
  0x66   : > { %1956 = vmatpush3.bf16.msra.mxu1 %v2083_v32  ;;  %1937 = vmatprep.subr.bf16.mxu0 %v2084_v37 }
  0x67   : > { %1957 = vmatprep.subr.bf16.mxu1 %v2085_v38 }
  0x69   : > { %1938 = vmatpush3.bf16.msra.mxu0 %v2084_v37 }
  0x6a   : > { %1958 = vmatpush3.bf16.msra.mxu1 %v2085_v38  ;;  %1963 = vmatprep.subr.bf16.mxu0 %v2089_v44 }
  0x6b   : > { %1983 = vmatprep.subr.bf16.mxu1 %v2091_v46 }
  0x6c   : > { %1940 = vmatmul.mubr.bf16.vlgmr.msra.gmra.mxu0 %v771_v47 }
  0x6d   : > { %1964 = vmatpush3.bf16.msra.mxu0 %v2089_v44  ;;  %1960 = vmatmul.mubr.bf16.vlgmr.msra.gmra.mxu1 %v900_v50 }
  0x6e   : > { %1984 = vmatpush3.bf16.msra.mxu1 %v2091_v46  ;;  %1965 = vmatprep.subr.bf16.mxu0 %v2092_v51 }
  0x6f   : > { %1985 = vmatprep.subr.bf16.mxu1 %v2093_v52  ;;  %1979 = vmatprep.mubr.bf16.mxu0 %v1683_v53 }
  0x70   : > { %1999 = vmatprep.mubr.bf16.mxu1 %v1175_v54 }
  0x71   : > { %1966 = vmatpush3.bf16.msra.mxu0 %v2092_v51 }
  0x72   : > { %1986 = vmatpush3.bf16.msra.mxu1 %v2093_v52  ;;  %1967 = vmatprep.subr.bf16.mxu0 %v2094_v55 }
  0x73   : > { %1987 = vmatprep.subr.bf16.mxu1 %v2095_v59 }
  0x75   : > { %1968 = vmatpush3.bf16.msra.mxu0 %v2094_v55 }
  0x76   : > { %1988 = vmatpush3.bf16.msra.mxu1 %v2095_v59  ;;  %1969 = vmatprep.subr.bf16.mxu0 %v2096_v56 }
  0x77   : > { %1989 = vmatprep.subr.bf16.mxu1 %v2097_v57 }
  0x79   : > { %1970 = vmatpush3.bf16.msra.mxu0 %v2096_v56 }
  0x7a   : > { %1990 = vmatpush3.bf16.msra.mxu1 %v2097_v57  ;;  %1971 = vmatprep.subr.bf16.mxu0 %v2098_v60 }
  0x7b   : > { %1991 = vmatprep.subr.bf16.mxu1 %v2099_v61 }
  0x7d   : > { %1972 = vmatpush3.bf16.msra.mxu0 %v2098_v60 }
  0x7e   : > { %1992 = vmatpush3.bf16.msra.mxu1 %v2099_v61  ;;  %1973 = vmatprep.subr.bf16.mxu0 %v2100_v62 }
  0x7f   : > { %1993 = vmatprep.subr.bf16.mxu1 %v2101_v63 }
  0x81   : > { %1974 = vmatpush3.bf16.msra.mxu0 %v2100_v62 }
  0x82   : > { %1994 = vmatpush3.bf16.msra.mxu1 %v2101_v63  ;;  %1975 = vmatprep.subr.bf16.mxu0 %v2102_v0 }
  0x83   : > { %1995 = vmatprep.subr.bf16.mxu1 %v2103_v2 }
  0x85   : > { %1976 = vmatpush3.bf16.msra.mxu0 %v2102_v0 }
  0x86   : > { %1996 = vmatpush3.bf16.msra.mxu1 %v2103_v2  ;;  %1977 = vmatprep.subr.bf16.mxu0 %v2104_v4 }
  0x87   : > { %1997 = vmatprep.subr.bf16.mxu1 %v2105_v7 }
  0x89   : > { %1978 = vmatpush3.bf16.msra.mxu0 %v2104_v4 }
  0x8a   : > { %1998 = vmatpush3.bf16.msra.mxu1 %v2105_v7  ;;  %2003 = vmatprep.subr.bf16.mxu0 %v2108_v10 }
  0x8c   : > { %1980 = vmatmul.mubr.bf16.vlgmr.msra.gmra.mxu0 %v1684_v16  ;;  %v1421_v16 = vld [vmem:[%s185_s19] sm:$0xc] }
  0x8d   : > { %2004 = vmatpush3.bf16.msra.mxu0 %v2108_v10  ;;  %2000 = vmatmul.mubr.bf16.vlgmr.msra.gmra.mxu1 %v1183_v17  ;;  %v1422_v24 = vunpack.c.l.bf16 %v1421_v16 }
  0x8e   : > { %2005 = vmatprep.subr.bf16.mxu0 %v2112_v18  ;;  %2019 = vmatprep.mubr.bf16.mxu0 %v1310_v15  ;;  %v1435_v15 = vunpack.c.l.bf16 %v1434_v11 }
  0x91   : > { %2006 = vmatpush3.bf16.msra.mxu0 %v2112_v18 }
  0x92   : > { %2007 = vmatprep.subr.bf16.mxu0 %v2113_v19 }
  0x95   : > { %2008 = vmatpush3.bf16.msra.mxu0 %v2113_v19  ;;  %v1416_v19 = vld [vmem:[%s185_s19] sm:$0x3] }
  0x96   : > { %2009 = vmatprep.subr.bf16.mxu0 %v2114_v58 }
  0x99   : > { %2010 = vmatpush3.bf16.msra.mxu0 %v2114_v58 }
  0x9a   : > { %2011 = vmatprep.subr.bf16.mxu0 %v2115_v20 }
  0x9d   : > { %2012 = vmatpush3.bf16.msra.mxu0 %v2115_v20 }
  0x9e   : > { %2013 = vmatprep.subr.bf16.mxu0 %v2116_v21 }
  0xa1   : > { %2014 = vmatpush3.bf16.msra.mxu0 %v2116_v21 }
  0xa2   : > { %2015 = vmatprep.subr.bf16.mxu0 %v2117_v22 }
  0xa5   : > { %2016 = vmatpush3.bf16.msra.mxu0 %v2117_v22  ;;  %v1440_v22 = vunpack.c.l.bf16 %v1439_v12 }
  0xa6   : > { %2017 = vmatprep.subr.bf16.mxu0 %v2118_v23 }
  0xa9   : > { %2018 = vmatpush3.bf16.msra.mxu0 %v2118_v23 }
  0xac   : > { %2020 = vmatmul.mubr.bf16.vlgmr.msra.gmra.mxu0 %v1312_v25 }
  0xec   : > { %v1861_v26 = vpop.f32.mrf.mxu0 }
  0xed   : > { %v1881_v27 = vpop.f32.mrf.mxu1 }
  0xee   : > { %v348_v28 = vpop.f32.mrf.mxu0  ;;  %v456_v47 = vadd.f32 %v1881_v27, %v1861_v26 }
  0xef   : > { %v447_v29 = vpop.f32.mrf.mxu1 }
  0xf0   : > { %v1862_v30 = vpop.f32.mrf.mxu0  ;;  %v448_v48 = vadd.f32 %v447_v29, %v348_v28  ;;  %v1417_v28 = vunpack.c.l.bf16 %v1416_v19 }
  0xf1   : > { %v1882_v31 = vpop.f32.mrf.mxu1 }
  0xf2   : > { %v351_v32 = vpop.f32.mrf.mxu0  ;;  %v459_v52 = vadd.f32 %v1882_v31, %v1862_v30 }
  0xf3   : > { %v450_v34 = vpop.f32.mrf.mxu1 }
  0xf4   : > { %v451_v55 = vadd.f32 %v450_v34, %v351_v32  ;;  %v1442_v34 = vrot.slane %v1440_v22, 4 }
 0x10c   : > { %v1901_v33 = vpop.f32.mrf.mxu0 }
 0x10d   : > { %v1921_v36 = vpop.f32.mrf.mxu1  ;;  %v590_v49 = vadd.f32 %v1901_v33, %v456_v47 }
 0x10e   : > { %v573_v35 = vpop.f32.mrf.mxu0 }
 0x10f   : > { %v698_v38 = vpop.f32.mrf.mxu1  ;;  %v588_v53 = vadd.f32 %v573_v35, %v448_v48  ;;  %v715_v59 = vadd.f32 %v1921_v36, %v590_v49  ;;  %v1424_v36 = vrot.slane %v1422_v24, 4 }
 0x110   : > { %v1902_v37 = vpop.f32.mrf.mxu0 }
 0x111   : > { %v1922_v40 = vpop.f32.mrf.mxu1  ;;  %v591_v56 = vadd.f32 %v1902_v37, %v459_v52  ;;  %v713_v60 = vadd.f32 %v698_v38, %v588_v53 }
 0x112   : > { %v576_v39 = vpop.f32.mrf.mxu0 }
 0x113   : > { %v701_v42 = vpop.f32.mrf.mxu1  ;;  %v589_v61 = vadd.f32 %v576_v39, %v451_v55  ;;  %v716_v1 = vadd.f32 %v1922_v40, %v591_v56 }
 0x115   : > { %v714_v3 = vadd.f32 %v701_v42, %v589_v61 }
 0x12c   : > { %v1941_v41 = vpop.f32.mrf.mxu0 }
 0x12d   : > { %v1961_v44 = vpop.f32.mrf.mxu1  ;;  %v873_v62 = vadd.f32 %v1941_v41, %v715_v59 }
 0x12e   : > { %v856_v43 = vpop.f32.mrf.mxu0 }
 0x12f   : > { %v985_v46 = vpop.f32.mrf.mxu1  ;;  %v871_v2 = vadd.f32 %v856_v43, %v713_v60  ;;  %v1002_v4 = vadd.f32 %v1961_v44, %v873_v62 }
 0x130   : > { %v1942_v45 = vpop.f32.mrf.mxu0 }
 0x131   : > { %v1962_v51 = vpop.f32.mrf.mxu1  ;;  %v874_v5 = vadd.f32 %v1942_v45, %v716_v1  ;;  %v1000_v8 = vadd.f32 %v985_v46, %v871_v2 }
 0x132   : > { %v859_v50 = vpop.f32.mrf.mxu0 }
 0x133   : > { %v988_v57 = vpop.f32.mrf.mxu1  ;;  %v872_v9 = vadd.f32 %v859_v50, %v714_v3  ;;  %v1003_v13 = vadd.f32 %v1962_v51, %v874_v5 }
 0x135   : > { %v1001_v58 = vadd.f32 %v988_v57, %v872_v9 }
 0x14c   : > { %v1981_v54 = vpop.f32.mrf.mxu0 }
 0x14d   : > { %v2001_v0 = vpop.f32.mrf.mxu1  ;;  %v1127_v10 = vadd.f32 %v1981_v54, %v1002_v4 }
 0x14e   : > { %v1110_v63 = vpop.f32.mrf.mxu0 }
 0x14f   : > { %v1268_v7 = vpop.f32.mrf.mxu1  ;;  %v1125_v14 = vadd.f32 %v1110_v63, %v1000_v8  ;;  %v1285_v20 = vadd.f32 %v2001_v0, %v1127_v10 }
 0x150   : > { %v1982_v6 = vpop.f32.mrf.mxu0 }
 0x151   : > { %v2002_v18 = vpop.f32.mrf.mxu1  ;;  %v1128_v21 = vadd.f32 %v1982_v6, %v1003_v13  ;;  %v1283_v25 = vadd.f32 %v1268_v7, %v1125_v14 }
 0x152   : > { %v1113_v17 = vpop.f32.mrf.mxu0 }
 0x153   : > { %v1126_v26 = vadd.f32 %v1113_v17, %v1001_v58  ;;  %v1271_v29 = vpop.f32.mrf.mxu1  ;;  %v1286_v31 = vadd.f32 %v2002_v18, %v1128_v21 }
 0x155   : > { %v1284_v37 = vadd.f32 %v1271_v29, %v1126_v26 }
 0x16c   : > { %v2021_v23 = vpop.f32.mrf.mxu0 }
 0x16d   : > { %v1414_v27 = vadd.f32 %v2021_v23, %v1285_v20 }
 0x16e   : > { %v1397_v30 = vpop.f32.mrf.mxu0 }
 0x16f   : > { %v1436_v32 = vadd.f32 %v1435_v15, %v1414_v27  ;;  %v1412_v33 = vadd.f32 %v1397_v30, %v1283_v25 }
 0x170   : > { %v2022_v35 = vpop.f32.mrf.mxu0 }
 0x171   : > { %v1437_v38 = vpack.c.bf16 %v1436_v32, %v1436_v32  ;;  %v1418_v39 = vadd.f32 %v1417_v28, %v1412_v33  ;;  %v1415_v40 = vadd.f32 %v2022_v35, %v1286_v31 }
 0x172   : > { %v1400_v41 = vpop.f32.mrf.mxu0 }
 0x173   : > { %1438 = vst [vmem:[%s190_s22 + $0x4] sm:$0x3] %v1437_v38  ;;  %v1419_v42 = vpack.c.bf16 %v1418_v39, %v1418_v39  ;;  %v1444_v43 = vadd.f32 %v1442_v34, %v1415_v40  ;;  %v1413_v44 = vadd.f32 %v1400_v41, %v1284_v37 }
 0x175   : > { %1420 = vst [vmem:[%s190_s22] sm:$0x3] %v1419_v42  ;;  %v1752_v45 = vpack.c.bf16 %v1444_v43, %v1444_v43  ;;  %v1426_v46 = vadd.f32 %v1424_v36, %v1413_v44 }
 0x177   : > { %v1449_v47 = vrot.slane %v1752_v45, 6  ;;  %v1751_v48 = vpack.c.bf16 %v1426_v46, %v1426_v46 }
 0x179   : > { %1451 = vst [vmem:[%s190_s22 + $0x4] sm:$0xc] %v1449_v47  ;;  %v1431_v49 = vrot.slane %v1751_v48, 6 }
 0x17b   : > { %1433 = vst [vmem:[%s190_s22] sm:$0xc] %v1431_v49 }
 0x17c PF: > { %s13_s12 = sadd.s32 1, %s2126_s12  }
 0x17d   : > { %p10_p4 = scmp.ge.s32.totalorder %s13_s12, 4  }
 0x17f   :  { %12 = sbr.rel (!%p10_p4) target bundleno = 1 (0x1), region = 73 }

// kernel: densenet_forward.33
= control target key start
LH: loop header
LB: loop body
LE: loop exit
PB: predicated region body
PF: predicated region fallthrough
CT: control target
= control target key end

     0   :  { %s504_s15 = smov 0   ;;  %s555_s0 = inlined_call_operand.vmem [shape: bf16[2,4,4,128], index: 0, kind: input, shape index: {}]   ;;  %s556_s1 = inlined_call_operand.vmem [shape: f32[1,1,128], index: 1, kind: input, shape index: {}]   ;;  %s557_s2 = inlined_call_operand.vmem [shape: f32[1,1,128], index: 2, kind: input, shape index: {}]   ;;  %s558_s3 = inlined_call_operand.vmem [shape: bf16[128,128], index: 3, kind: input, shape index: {}]   ;;  %s559_s4 = inlined_call_operand.vmem [shape: bf16[2,4,128], index: 4, kind: output, shape index: {}]  }
   0x1 LB: > { %s401_s16 = sadd.s32 4294967295, %s475_s15   ;;  %p405_p0 = scmp.ge.s32.totalorder %s475_s15, 1  ;;  %s475_s15 = sphi %s504_s15, %s14_s15  }
   0x2   : > { %p162_p1 = scmp.lt.s32.totalorder %s475_s15, 3 }
   0x4   : > { %p163_p2 = pnand %p405_p0, %p162_p1 }
   0x5   : > { %p187_p3 = scmp.lt.s32.totalorder (!%p163_p2), %s401_s16, 1 }
   0x6   : > { %166 = sbr.rel (%p163_p2) target bundleno = 243 (0xf3), region = 36 }
   0xb   : > { %v461_v0 = vld [vmem:[%s558_s3 + $0x38] sm:$0xff]   ;;  %v477_v1 = vmov 0.0   ;;  %v462_v2 = vld [vmem:[%s558_s3 + $0x30] sm:$0xff]   ;;  %vm478_vm0 = vmmov 0   ;;  %s561_s16 = smov (!%p187_p3, %s401_s16), 1  ;;  %v463_v3 = vld [vmem:[%s558_s3 + $0x28] sm:$0xff]  }
   0xc   : > { %431 = vmatprep.subr.bf16.mxu0 %v477_v1  ;;  %447 = vmatprep.mubr.msk.bf16.mxu0 %vm478_vm0, %v477_v1  ;;  %s421_s23 = sshll.u32 %s561_s16, 3  ;;  %v409_v11 = vld [vmem:[%s556_s1] ss:$0 sm:$0xff]  ;;  %v465_v22 = vld [vmem:[%s558_s3 + $0x18] sm:$0xff]   ;;  %vm231_vm1 = vcmask 1043456   ;;  %v466_v31 = vld [vmem:[%s558_s3 + $0x10] sm:$0xff]  }
   0xd   : > { %432 = vmatpush3.bf16.msra.mxu0 %v461_v0  ;;  %s191_s26 = scalar_lea.vmem %s555_s0, %s421_s23  ;;  %v464_v12 = vld [vmem:[%s558_s3 + $0x20] sm:$0xff]   ;;  %v467_v35 = vld [vmem:[%s558_s3 + $0x8] sm:$0xff]   ;;  %s408_s17 = sshll.u32 %s561_s16, 1 }
   0xe   : > { %433 = vmatprep.subr.bf16.mxu0 %v477_v1  ;;  %v197_v4 = vld [vmem:[%s191_s26] sm:$0x3]  ;;  %v198_v5 = vld [vmem:[%s191_s26 + $0x2] sm:$0x3]  ;;  %v199_v6 = vld [vmem:[%s191_s26 + $0x4] sm:$0x3]  ;;  %s195_s20 = scalar_lea.vmem %s559_s4, %s408_s17 }
   0xf   : > { %v200_v7 = vld [vmem:[%s191_s26 + $0x6] sm:$0x3]  ;;  %v201_v8 = vunpack.c.l.bf16 %v197_v4  ;;  %v202_v9 = vunpack.c.l.bf16 %v198_v5  ;;  %v203_v10 = vunpack.c.l.bf16 %v199_v6  ;;  %v410_v14 = vld [vmem:[%s557_s2] ss:$0 sm:$0xff] }
  0x10   : > { %v204_v13 = vunpack.c.l.bf16 %v200_v7  ;;  %v468_v38 = vld [vmem:[%s558_s3] sm:$0xff]  }
  0x11   : > { %434 = vmatpush3.bf16.msra.mxu0 %v462_v2  ;;  %v212_v15 = vmul.f32 %v409_v11, %v201_v8  ;;  %v213_v16 = vmul.f32 %v409_v11, %v202_v9  ;;  %v214_v17 = vmul.f32 %v409_v11, %v203_v10 }
  0x12   : > { %435 = vmatprep.subr.bf16.mxu0 %v477_v1  ;;  %v215_v18 = vmul.f32 %v409_v11, %v204_v13 }
  0x13   : > { %v223_v19 = vadd.f32 %v410_v14, %v212_v15  ;;  %v224_v20 = vadd.f32 %v410_v14, %v213_v16  ;;  %v225_v21 = vadd.f32 %v410_v14, %v214_v17 }
  0x14   : > { %v226_v23 = vadd.f32 %v410_v14, %v215_v18 }
  0x15   : > { %436 = vmatpush3.bf16.msra.mxu0 %v463_v3  ;;  %v227_v24 = vmax.f32 %v223_v19, 0.0  ;;  %v228_v25 = vmax.f32 %v224_v20, 0.0  ;;  %v229_v26 = vmax.f32 %v225_v21, 0.0 }
  0x16   : > { %437 = vmatprep.subr.bf16.mxu0 %v477_v1  ;;  %v230_v27 = vmax.f32 %v226_v23, 0.0 }
  0x17   : > { %v232_v28 = vsel %vm231_vm1, %v227_v24, 0.0  ;;  %v233_v29 = vsel %vm231_vm1, %v228_v25, 0.0  ;;  %v235_v30 = vsel %vm231_vm1, %v229_v26, 0.0 }
  0x18   : > { %v234_v32 = vadd.f32 %v233_v29, %v232_v28  ;;  %v237_v33 = vsel %vm231_vm1, %v230_v27, 0.0 }
  0x19   : > { %438 = vmatpush3.bf16.msra.mxu0 %v464_v12 }
  0x1a   : > { %439 = vmatprep.subr.bf16.mxu0 %v477_v1  ;;  %v236_v34 = vadd.f32 %v235_v30, %v234_v32 }
  0x1c   : > { %v238_v36 = vadd.f32 %v237_v33, %v236_v34 }
  0x1d   : > { %440 = vmatpush3.bf16.msra.mxu0 %v465_v22 }
  0x1e   : > { %441 = vmatprep.subr.bf16.mxu0 %v477_v1  ;;  %v240_v37 = vmul.f32 0.25, %v238_v36 }
  0x20   : > { %v241_v39 = vpack.c.bf16 %v240_v37, %v240_v37 }
  0x21   : > { %442 = vmatpush3.bf16.msra.mxu0 %v466_v31 }
  0x22   : > { %443 = vmatprep.subr.bf16.mxu0 %v477_v1 }
  0x25   : > { %444 = vmatpush3.bf16.msra.mxu0 %v467_v35 }
  0x26   : > { %445 = vmatprep.subr.bf16.mxu0 %v477_v1 }
  0x29   : > { %446 = vmatpush3.bf16.msra.mxu0 %v468_v38 }
  0x2c   : > { %448 = vmatmul.mubr.bf16.vlgmr.msra.gmra.mxu0 %v241_v39 }
  0xec   : > { %v340_v40 = vpop.f32.mrf.mxu0 }
  0xed   : > { %v346_v41 = vpack.c.bf16 %v340_v40, %v340_v40 }
  0xee   : > { %v449_v42 = vpop.f32.mrf.mxu0 }
  0xef   : > { %347 = vst [vmem:[%s195_s20] sm:$0x3] %v346_v41 }
  0xf0   : > { %v343_v43 = vpop.f32.mrf.mxu0 }
  0xf2   : > { %v450_v44 = vpop.f32.mrf.mxu0 }
  0xf3 PF: > { %s14_s15 = sadd.s32 1, %s475_s15  }
  0xf4   : > { %p11_p4 = scmp.ge.s32.totalorder %s14_s15, 4  }
  0xf6   :  { %13 = sbr.rel (!%p11_p4) target bundleno = 1 (0x1), region = 66 }

// kernel: densenet_forward.36
= control target key start
LH: loop header
LB: loop body
LE: loop exit
PB: predicated region body
PF: predicated region fallthrough
CT: control target
= control target key end

     0   :  { %v222_v0 = vmov 0.0   ;;  %vm223_vm0 = vmmov 0   ;;  %s301_s3 = inlined_call_operand.vmem [shape: bf16[128,128], index: 3, kind: input, shape index: {}]   ;;  %s302_s0 = inlined_call_operand.vmem [shape: bf16[8,128], index: 0, kind: input, shape index: {}]   ;;  %s303_s1 = inlined_call_operand.vmem [shape: f32[1,128], index: 1, kind: input, shape index: {}]   ;;  %s304_s2 = inlined_call_operand.vmem [shape: f32[1,128], index: 2, kind: input, shape index: {}]   ;;  %s305_s4 = inlined_call_operand.vmem [shape: f32[1,128], index: 4, kind: input, shape index: {}]   ;;  %s306_s5 = inlined_call_operand.vmem [shape: f32[1,128], index: 5, kind: input, shape index: {}]   ;;  %s307_s6 = inlined_call_operand.vmem [shape: bf16[8,128], index: 6, kind: output, shape index: {}]  }
   0x1   :  { %192 = vmatprep.subr.bf16.mxu0 %v222_v0  ;;  %v214_v1 = vld [vmem:[%s301_s3 + $0x38] sm:$0xff]   ;;  %208 = vmatprep.mubr.msk.bf16.mxu0 %vm223_vm0, %v222_v0  ;;  %v215_v2 = vld [vmem:[%s301_s3 + $0x30] sm:$0xff]   ;;  %v216_v3 = vld [vmem:[%s301_s3 + $0x28] sm:$0xff]  }
   0x2   :  { %193 = vmatpush3.bf16.msra.mxu0 %v214_v1  ;;  %v217_v4 = vld [vmem:[%s301_s3 + $0x20] sm:$0xff]   ;;  %v218_v7 = vld [vmem:[%s301_s3 + $0x18] sm:$0xff]   ;;  %v219_v10 = vld [vmem:[%s301_s3 + $0x10] sm:$0xff]  }
   0x3   :  { %194 = vmatprep.subr.bf16.mxu0 %v222_v0  ;;  %v24_v5 = vld [vmem:[%s302_s0] sm:$0xf]  ;;  %v220_v13 = vld [vmem:[%s301_s3 + $0x8] sm:$0xff]  }
   0x4   :  { %v25_v6 = vunpack.c.l.bf16 %v24_v5  ;;  %v171_v8 = vld [vmem:[%s303_s1] ss:$0 sm:$0xff] }
   0x5   :  { %v172_v11 = vld [vmem:[%s304_s2] ss:$0 sm:$0xff] }
   0x6   :  { %195 = vmatpush3.bf16.msra.mxu0 %v215_v2  ;;  %v33_v9 = vmul.f32 %v171_v8, %v25_v6  ;;  %v221_v15 = vld [vmem:[%s301_s3] sm:$0xff]  }
   0x7   :  { %196 = vmatprep.subr.bf16.mxu0 %v222_v0  ;;  %v181_v17 = vld [vmem:[%s305_s4] ss:$0 sm:$0xff] }
   0x8   :  { %v41_v12 = vadd.f32 %v172_v11, %v33_v9  ;;  %v182_v19 = vld [vmem:[%s306_s5] ss:$0 sm:$0xff] }
   0xa   :  { %197 = vmatpush3.bf16.msra.mxu0 %v216_v3  ;;  %v42_v14 = vmax.f32 %v41_v12, 0.0 }
   0xb   :  { %198 = vmatprep.subr.bf16.mxu0 %v222_v0 }
   0xc   :  { %v43_v16 = vpack.c.bf16 %v42_v14, %v42_v14 }
   0xe   :  { %199 = vmatpush3.bf16.msra.mxu0 %v217_v4 }
   0xf   :  { %200 = vmatprep.subr.bf16.mxu0 %v222_v0 }
  0x12   :  { %201 = vmatpush3.bf16.msra.mxu0 %v218_v7 }
  0x13   :  { %202 = vmatprep.subr.bf16.mxu0 %v222_v0 }
  0x16   :  { %203 = vmatpush3.bf16.msra.mxu0 %v219_v10 }
  0x17   :  { %204 = vmatprep.subr.bf16.mxu0 %v222_v0 }
  0x1a   :  { %205 = vmatpush3.bf16.msra.mxu0 %v220_v13 }
  0x1b   :  { %206 = vmatprep.subr.bf16.mxu0 %v222_v0 }
  0x1e   :  { %207 = vmatpush3.bf16.msra.mxu0 %v221_v15 }
  0x21   :  { %209 = vmatmul.mubr.bf16.vlgmr.msra.gmra.mxu0 %v43_v16 }
  0xe1   :  { %v142_v18 = vpop.f32.mrf.mxu0 }
  0xe2   :  { %v155_v20 = vmul.f32 %v181_v17, %v142_v18 }
  0xe3   :  { %v210_v21 = vpop.f32.mrf.mxu0 }
  0xe4   :  { %v163_v22 = vadd.f32 %v182_v19, %v155_v20 }
  0xe5   :  { %v145_v23 = vpop.f32.mrf.mxu0 }
  0xe6   :  { %v164_v24 = vmax.f32 %v163_v22, 0.0 }
  0xe7   :  { %v211_v25 = vpop.f32.mrf.mxu0 }
  0xe8   :  { %v165_v26 = vpack.c.bf16 %v164_v24, %v164_v24 }
  0xea   :  { %166 = vst [vmem:[%s307_s6] sm:$0xf] %v165_v26 }

// kernel: densenet_forward.38
= control target key start
LH: loop header
LB: loop body
LE: loop exit
PB: predicated region body
PF: predicated region fallthrough
CT: control target
= control target key end

     0   :  { %s481_s15 = smov 0   ;;  %s537_s0 = inlined_call_operand.vmem [shape: bf16[2,4,1,128], index: 0, kind: input, shape index: {}]   ;;  %s538_s1 = inlined_call_operand.vmem [shape: f32[1,1,128], index: 1, kind: input, shape index: {}]   ;;  %s539_s2 = inlined_call_operand.vmem [shape: f32[1,1,128], index: 2, kind: input, shape index: {}]   ;;  %s540_s3 = inlined_call_operand.vmem [shape: bf16[128,128], index: 3, kind: input, shape index: {}]   ;;  %s541_s4 = inlined_call_operand.vmem [shape: bf16[2,1,128], index: 4, kind: output, shape index: {}]  }
   0x1 LB: > { %s383_s16 = sadd.s32 4294967295, %s452_s15   ;;  %p387_p0 = scmp.ge.s32.totalorder %s452_s15, 1  ;;  %s452_s15 = sphi %s481_s15, %s14_s15  }
   0x2   : > { %p161_p1 = scmp.lt.s32.totalorder %s452_s15, 3 }
   0x4   : > { %p162_p2 = pnand %p387_p0, %p161_p1 }
   0x5   : > { %p184_p3 = scmp.lt.s32.totalorder (!%p162_p2), %s383_s16, 1 }
   0x6   : > { %165 = sbr.rel (%p162_p2) target bundleno = 243 (0xf3), region = 36 }
   0xb   : > { %v438_v0 = vld [vmem:[%s540_s3 + $0x38] sm:$0xff]   ;;  %v454_v1 = vmov 0.0   ;;  %v439_v2 = vld [vmem:[%s540_s3 + $0x30] sm:$0xff]   ;;  %vm455_vm0 = vmmov 0   ;;  %s543_s16 = smov (!%p184_p3, %s383_s16), 1  ;;  %v440_v3 = vld [vmem:[%s540_s3 + $0x28] sm:$0xff]  }
   0xc   : > { %408 = vmatprep.subr.bf16.mxu0 %v454_v1  ;;  %424 = vmatprep.mubr.msk.bf16.mxu0 %vm455_vm0, %v454_v1  ;;  %s388_s23 = sshll.u32 %s543_s16, 2  ;;  %v200_v11 = vld [vmem:[%s538_s1] sm:$0x1]  ;;  %v442_v22 = vld [vmem:[%s540_s3 + $0x18] sm:$0xff]   ;;  %vm214_vm1 = vcmask 1040384   ;;  %v443_v31 = vld [vmem:[%s540_s3 + $0x10] sm:$0xff]   ;;  %s190_s19 = scalar_lea.vmem %s541_s4, %s543_s16 }
   0xd   : > { %409 = vmatpush3.bf16.msra.mxu0 %v438_v0  ;;  %s187_s26 = scalar_lea.vmem %s537_s0, %s388_s23  ;;  %v441_v12 = vld [vmem:[%s540_s3 + $0x20] sm:$0xff]   ;;  %v444_v35 = vld [vmem:[%s540_s3 + $0x8] sm:$0xff]   ;;  %vm331_vm2 = vsmask.f32 256 }
   0xe   : > { %410 = vmatprep.subr.bf16.mxu0 %v454_v1  ;;  %v192_v4 = vld [vmem:[%s187_s26] sm:$0x1]  ;;  %v193_v5 = vld [vmem:[%s187_s26 + $0x1] sm:$0x1]  ;;  %v194_v6 = vld [vmem:[%s187_s26 + $0x2] sm:$0x1] }
   0xf   : > { %v195_v7 = vld [vmem:[%s187_s26 + $0x3] sm:$0x1]  ;;  %v196_v8 = vunpack.c.l.bf16 %v192_v4  ;;  %v197_v9 = vunpack.c.l.bf16 %v193_v5  ;;  %v198_v10 = vunpack.c.l.bf16 %v194_v6  ;;  %v205_v14 = vld [vmem:[%s539_s2] sm:$0x1]  ;;  %vm332_vm3 = vmand %vm214_vm1, %vm331_vm2 }
  0x10   : > { %v199_v13 = vunpack.c.l.bf16 %v195_v7  ;;  %v445_v38 = vld [vmem:[%s540_s3] sm:$0xff]  }
  0x11   : > { %411 = vmatpush3.bf16.msra.mxu0 %v439_v2  ;;  %v201_v15 = vmul.f32 %v200_v11, %v196_v8  ;;  %v202_v16 = vmul.f32 %v200_v11, %v197_v9  ;;  %v203_v17 = vmul.f32 %v200_v11, %v198_v10  ;;  %v333_v41 = vld [vmem:[%s190_s19] sm:$0x1] }
  0x12   : > { %412 = vmatprep.subr.bf16.mxu0 %v454_v1  ;;  %v204_v18 = vmul.f32 %v200_v11, %v199_v13 }
  0x13   : > { %v206_v19 = vadd.f32 %v205_v14, %v201_v15  ;;  %v207_v20 = vadd.f32 %v205_v14, %v202_v16  ;;  %v208_v21 = vadd.f32 %v205_v14, %v203_v17 }
  0x14   : > { %v209_v23 = vadd.f32 %v205_v14, %v204_v18 }
  0x15   : > { %413 = vmatpush3.bf16.msra.mxu0 %v440_v3  ;;  %v210_v24 = vmax.f32 %v206_v19, 0.0  ;;  %v211_v25 = vmax.f32 %v207_v20, 0.0  ;;  %v212_v26 = vmax.f32 %v208_v21, 0.0 }
  0x16   : > { %414 = vmatprep.subr.bf16.mxu0 %v454_v1  ;;  %v213_v27 = vmax.f32 %v209_v23, 0.0 }
  0x17   : > { %v215_v28 = vsel %vm214_vm1, %v210_v24, 0.0  ;;  %v216_v29 = vsel %vm214_vm1, %v211_v25, 0.0  ;;  %v218_v30 = vsel %vm214_vm1, %v212_v26, 0.0 }
  0x18   : > { %v217_v32 = vadd.f32 %v216_v29, %v215_v28  ;;  %v220_v33 = vsel %vm214_vm1, %v213_v27, 0.0 }
  0x19   : > { %415 = vmatpush3.bf16.msra.mxu0 %v441_v12 }
  0x1a   : > { %416 = vmatprep.subr.bf16.mxu0 %v454_v1  ;;  %v219_v34 = vadd.f32 %v218_v30, %v217_v32 }
  0x1c   : > { %v221_v36 = vadd.f32 %v220_v33, %v219_v34 }
  0x1d   : > { %417 = vmatpush3.bf16.msra.mxu0 %v442_v22 }
  0x1e   : > { %418 = vmatprep.subr.bf16.mxu0 %v454_v1  ;;  %v223_v37 = vmul.f32 0.25, %v221_v36 }
  0x20   : > { %v224_v39 = vpack.c.bf16 %v223_v37, %v223_v37 }
  0x21   : > { %419 = vmatpush3.bf16.msra.mxu0 %v443_v31 }
  0x22   : > { %420 = vmatprep.subr.bf16.mxu0 %v454_v1 }
  0x25   : > { %421 = vmatpush3.bf16.msra.mxu0 %v444_v35 }
  0x26   : > { %422 = vmatprep.subr.bf16.mxu0 %v454_v1 }
  0x29   : > { %423 = vmatpush3.bf16.msra.mxu0 %v445_v38 }
  0x2c   : > { %425 = vmatmul.mubr.bf16.vlgmr.msra.gmra.mxu0 %v224_v39 }
  0xec   : > { %v323_v40 = vpop.f32.mrf.mxu0 }
  0xed   : > { %v329_v42 = vpack.c.bf16 %v323_v40, %v323_v40 }
  0xee   : > { %v426_v43 = vpop.f32.mrf.mxu0 }
  0xef   : > { %v334_v44 = vsel %vm332_vm3, %v329_v42, %v333_v41 }
  0xf0   : > { %335 = vst [vmem:[%s190_s19] sm:$0x1] %v334_v44  ;;  %v326_v45 = vpop.f32.mrf.mxu0 }
  0xf2   : > { %v427_v46 = vpop.f32.mrf.mxu0 }
  0xf3 PF: > { %s14_s15 = sadd.s32 1, %s452_s15  }
  0xf4   : > { %p11_p4 = scmp.ge.s32.totalorder %s14_s15, 4  }
  0xf6   :  { %13 = sbr.rel (!%p11_p4) target bundleno = 1 (0x1), region = 66 }

// kernel: densenet_forward.35
= control target key start
LH: loop header
LB: loop body
LE: loop exit
PB: predicated region body
PF: predicated region fallthrough
CT: control target
= control target key end

     0   :  { %s1959_s12 = smov 0   ;;  %s2338_s0 = inlined_call_operand.vmem [shape: bf16[2,40,128], index: 0, kind: input, shape index: {}]   ;;  %s2339_s1 = inlined_call_operand.vmem [shape: bf16[2,4,128], index: 1, kind: input, shape index: {}]   ;;  %s2340_s2 = inlined_call_operand.vmem [shape: bf16[9,128,128], index: 2, kind: input, shape index: {}]   ;;  %s2341_s3 = inlined_call_operand.vmem [shape: bf16[2,4,128], index: 3, kind: output, shape index: {}]  }
   0x1 LB: > { %s1351_s13 = sadd.s32 4294967295, %s1934_s12   ;;  %p1355_p0 = scmp.ge.s32.totalorder %s1934_s12, 1  ;;  %s1934_s12 = sphi %s1959_s12, %s13_s12  }
   0x2   : > { %p146_p1 = scmp.lt.s32.totalorder %s1934_s12, 3 }
   0x4   : > { %p147_p2 = pnand %p1355_p0, %p146_p1 }
   0x5   : > { %p173_p3 = scmp.lt.s32.totalorder (!%p147_p2), %s1351_s13, 1 }
   0x6   : > { %150 = sbr.rel (%p147_p2) target bundleno = 380 (0x17c), region = 32 }
   0xb   : > { %v1845_v0 = vld [vmem:[%s2340_s2 + $0x78] sm:$0xff]   ;;  %v1936_v1 = vmov 0.0   ;;  %v1847_v3 = vld [vmem:[%s2340_s2 + $0x70] sm:$0xff]   ;;  %vm1937_vm0 = vmmov 0   ;;  %s2343_s13 = smov (!%p173_p3, %s1351_s13), 1  ;;  %v1849_v5 = vld [vmem:[%s2340_s2 + $0x68] sm:$0xff]  }
   0xc   : > { %1653 = vmatprep.subr.bf16.mxu0 %v1936_v1  ;;  %1673 = vmatprep.subr.bf16.mxu1 %v1936_v1  ;;  %v1846_v2 = vld [vmem:[%s2340_s2 + $0x38] sm:$0xff]   ;;  %v1848_v4 = vld [vmem:[%s2340_s2 + $0x30] sm:$0xff]   ;;  %v1850_v6 = vld [vmem:[%s2340_s2 + $0x28] sm:$0xff]   ;;  %s1833_s26 = smul.u32 20, %s2343_s13  ;;  %vm231_vm1 = vsmask.f32 7424 }
   0xd   : > { %1654 = vmatpush3.bf16.msra.mxu0 %v1845_v0  ;;  %1669 = vmatprep.mubr.msk.bf16.mxu0 %vm1937_vm0, %v1936_v1  ;;  %v1851_v7 = vld [vmem:[%s2340_s2 + $0x60] sm:$0xff]   ;;  %v1853_v9 = vld [vmem:[%s2340_s2 + $0x58] sm:$0xff]   ;;  %v1855_v13 = vld [vmem:[%s2340_s2 + $0x50] sm:$0xff]   ;;  %vm445_vm2 = vcmask 1046528   ;;  %s1357_s16 = sshll.u32 %s2343_s13, 1 }
   0xe   : > { %1674 = vmatpush3.bf16.msra.mxu1 %v1846_v2  ;;  %1655 = vmatprep.subr.bf16.mxu0 %v1936_v1  ;;  %v1852_v8 = vld [vmem:[%s2340_s2 + $0x20] sm:$0xff]   ;;  %s2009_s6 = scalar_lea.vmem %s2338_s0, %s1833_s26  ;;  %v1854_v10 = vld [vmem:[%s2340_s2 + $0x18] sm:$0xff]   ;;  %v1856_v16 = vld [vmem:[%s2340_s2 + $0x10] sm:$0xff]   ;;  %s181_s19 = scalar_lea.vmem %s2339_s1, %s1357_s16 }
   0xf   : > { %1675 = vmatprep.subr.bf16.mxu1 %v1936_v1  ;;  %1689 = vmatprep.mubr.msk.bf16.mxu1 %vm1937_vm0, %v1936_v1  ;;  %v187_v11 = vld [vmem:[%s2009_s6] sm:$0xf]  ;;  %v2021_v12 = vld [vmem:[%s2009_s6 + $0x4] sm:$0xf]  ;;  %v1857_v18 = vld [vmem:[%s2340_s2 + $0x48] sm:$0xff]   ;;  %s185_s21 = scalar_lea.vmem %s2341_s3, %s1357_s16 }
  0x10   : > { %v1375_v14 = vcombine.low %v187_v11, %v2021_v12  ;;  %v2028_v15 = vld [vmem:[%s2009_s6 + $0x8] ss:$0 sps:$4 sm:$0x11]   ;;  %v1859_v23 = vld [vmem:[%s2340_s2 + $0x40] sm:$0xff]   ;;  %v1863_v28 = vld [vmem:[%s2340_s2 + $0xb8] sm:$0xff]  }
  0x11   : > { %1656 = vmatpush3.bf16.msra.mxu0 %v1847_v3  ;;  %v240_v21 = vshll.u32 %v2028_v15, 16  ;;  %v1858_v22 = vld [vmem:[%s2340_s2 + $0x8] sm:$0xff]   ;;  %v1860_v24 = vld [vmem:[%s2340_s2] sm:$0xff]   ;;  %v1864_v29 = vld [vmem:[%s2340_s2 + $0xf8] sm:$0xff]   ;;  %v447_v52 = vrot.slane %v2028_v15, 1 }
  0x12   : > { %1676 = vmatpush3.bf16.msra.mxu1 %v1848_v4  ;;  %1657 = vmatprep.subr.bf16.mxu0 %v1936_v1  ;;  %v235_v17 = vshll.u32 %v1375_v14, 16  ;;  %v233_v19 = vshrl.u32 %v1375_v14, 16  ;;  %v1865_v30 = vld [vmem:[%s2340_s2 + $0xb0] sm:$0xff]   ;;  %v1867_v32 = vld [vmem:[%s2340_s2 + $0xa8] sm:$0xff]   ;;  %v1869_v34 = vld [vmem:[%s2340_s2 + $0xa0] sm:$0xff]  }
  0x13   : > { %1677 = vmatprep.subr.bf16.mxu1 %v1936_v1  ;;  %v242_v26 = vrot.slane %v240_v21, 1  ;;  %v1866_v31 = vld [vmem:[%s2340_s2 + $0xf0] sm:$0xff]   ;;  %v1868_v33 = vld [vmem:[%s2340_s2 + $0xe8] sm:$0xff]   ;;  %v1870_v35 = vld [vmem:[%s2340_s2 + $0xe0] sm:$0xff]  }
  0x14   : > { %v237_v20 = vrot.slane %v235_v17, 1  ;;  %v1871_v36 = vld [vmem:[%s2340_s2 + $0x98] sm:$0xff]   ;;  %v1873_v38 = vld [vmem:[%s2340_s2 + $0x90] sm:$0xff]   ;;  %v424_v40 = vld [vmem:[%s2009_s6] sm:$0xe] }
  0x15   : > { %1658 = vmatpush3.bf16.msra.mxu0 %v1849_v5  ;;  %v1872_v37 = vld [vmem:[%s2340_s2 + $0xd8] sm:$0xff]   ;;  %v1874_v39 = vld [vmem:[%s2340_s2 + $0xd0] sm:$0xff]   ;;  %v654_v41 = vld [vmem:[%s2009_s6 + $0x4] sm:$0xf]  ;;  %v1409_v46 = vcombine.low %v424_v40, %v2021_v12 }
  0x16   : > { %1678 = vmatpush3.bf16.msra.mxu1 %v1850_v6  ;;  %1659 = vmatprep.subr.bf16.mxu0 %v1936_v1  ;;  %v238_v25 = vor.u32 %v237_v20, %v233_v19  ;;  %v2107_v42 = vld [vmem:[%s2009_s6 + $0x8] sm:$0xf]  ;;  %v2112_v44 = vld [vmem:[%s2009_s6 + $0xc] ss:$0 sps:$4 sm:$0x11]   ;;  %v1877_v51 = vld [vmem:[%s2340_s2 + $0x80] sm:$0xff]  }
  0x17   : > { %1679 = vmatprep.subr.bf16.mxu1 %v1936_v1  ;;  %v1459_v43 = vcombine.low %v654_v41, %v2107_v42  ;;  %v1875_v45 = vld [vmem:[%s2340_s2 + $0x88] sm:$0xff]   ;;  %v690_v49 = vshll.u32 %v2112_v44, 16  ;;  %v1878_v55 = vld [vmem:[%s2340_s2 + $0xc0] sm:$0xff]   ;;  %v446_v56 = vrot.slane %v1409_v46, 1  ;;  %v1880_v61 = vld [vmem:[%s2340_s2 + $0x138] sm:$0xff]  }
  0x18   : > { %v243_v27 = vsel %vm231_vm1, %v238_v25, %v242_v26  ;;  %v1876_v50 = vld [vmem:[%s2340_s2 + $0xc8] sm:$0xff]   ;;  %v1882_v63 = vld [vmem:[%s2340_s2 + $0x178] sm:$0xff]   ;;  %v1883_v0 = vld [vmem:[%s2340_s2 + $0x130] sm:$0xff]  }
  0x19   : > { %1660 = vmatpush3.bf16.msra.mxu0 %v1851_v7  ;;  %v683_v47 = vshrl.u32 %v1459_v43, 16  ;;  %v685_v48 = vshll.u32 %v1459_v43, 16  ;;  %v692_v54 = vrot.slane %v690_v49, 1  ;;  %v541_v58 = vld [vmem:[%s2009_s6 + $0x8] sm:$0xf]  ;;  %v448_v60 = vsel %vm445_vm2, %v446_v56, %v447_v52  ;;  %v1884_v2 = vld [vmem:[%s2340_s2 + $0x170] sm:$0xff]  }
  0x1a   : > { %1680 = vmatpush3.bf16.msra.mxu1 %v1852_v8  ;;  %1661 = vmatprep.subr.bf16.mxu0 %v1936_v1  ;;  %v1434_v62 = vcombine.low %v2021_v12, %v541_v58  ;;  %v1885_v3 = vld [vmem:[%s2340_s2 + $0x128] sm:$0xff]   ;;  %v1919_v8 = vld [vmem:[%s2009_s6 + $0x10] ss:$0 sps:$4 sm:$0x11]   ;;  %v786_v26 = vld [vmem:[%s2009_s6 + $0x4] sm:$0xe] }
  0x1b   : > { %1681 = vmatprep.subr.bf16.mxu1 %v1936_v1  ;;  %v687_v53 = vrot.slane %v685_v48, 1  ;;  %v1886_v4 = vld [vmem:[%s2340_s2 + $0x168] sm:$0xff]   ;;  %v1892_v25 = vld [vmem:[%s2340_s2 + $0x150] sm:$0xff]   ;;  %v1906_v43 = vld [vmem:[%s2340_s2 + $0x1a0] sm:$0xff]  }
  0x1c   : > { %v1015_v5 = vld [vmem:[%s2009_s6 + $0x8] sm:$0xf]  ;;  %v1016_v6 = vld [vmem:[%s2009_s6 + $0xc] sm:$0xf]  ;;  %v1909_v46 = vld [vmem:[%s2340_s2 + $0x1d8] sm:$0xff]  }
  0x1d   : > { %1662 = vmatpush3.bf16.msra.mxu0 %v1853_v9  ;;  %v688_v57 = vor.u32 %v687_v53, %v683_v47  ;;  %v1535_v7 = vcombine.low %v1015_v5, %v1016_v6  ;;  %v1887_v9 = vld [vmem:[%s2340_s2 + $0x120] sm:$0xff]   ;;  %v1147_v19 = vld [vmem:[%s2009_s6 + $0x8] sm:$0xe]  ;;  %v1910_v47 = vld [vmem:[%s2340_s2 + $0x190] sm:$0xff]  }
  0x1e   : > { %1682 = vmatpush3.bf16.msra.mxu1 %v1854_v10  ;;  %1663 = vmatprep.subr.bf16.mxu0 %v1936_v1  ;;  %v1888_v10 = vld [vmem:[%s2340_s2 + $0x160] sm:$0xff]   ;;  %v1561_v21 = vcombine.low %v1147_v19, %v1016_v6  ;;  %v1904_v40 = vld [vmem:[%s2340_s2 + $0x1a8] sm:$0xff]   ;;  %v1911_v48 = vld [vmem:[%s2340_s2 + $0x1d0] sm:$0xff]  }
  0x1f   : > { %1683 = vmatprep.subr.bf16.mxu1 %v1936_v1  ;;  %v2135_v59 = vsel %vm231_vm1, %v688_v57, %v692_v54  ;;  %v1044_v11 = vshrl.u32 %v1535_v7, 16  ;;  %v1046_v12 = vshll.u32 %v1535_v7, 16  ;;  %v1905_v41 = vld [vmem:[%s2340_s2 + $0x1e8] sm:$0xff]   ;;  %v1915_v53 = vld [vmem:[%s2340_s2 + $0x1c0] sm:$0xff]   ;;  %v1920_v56 = vld [vmem:[%s2340_s2 + $0x230] sm:$0xff]  }
  0x20   : > { %v1912_v49 = vld [vmem:[%s2340_s2 + $0x188] sm:$0xff]   ;;  %v1922_v57 = vld [vmem:[%s2340_s2 + $0x220] sm:$0xff]   ;;  %v1923_v58 = vld [vmem:[%s2340_s2 + $0x218] sm:$0xff]  }
  0x21   : > { %1664 = vmatpush3.bf16.msra.mxu0 %v1855_v13  ;;  %v1051_v13 = vshll.u32 %v1919_v8, 16  ;;  %v902_v52 = vld [vmem:[%s2009_s6 + $0xc] sm:$0xf] }
  0x22   : > { %1684 = vmatpush3.bf16.msra.mxu1 %v1856_v16  ;;  %1665 = vmatprep.subr.bf16.mxu0 %v1936_v1  ;;  %v1889_v16 = vld [vmem:[%s2340_s2 + $0x118] sm:$0xff]   ;;  %v1510_v54 = vcombine.low %v2107_v42, %v902_v52 }
  0x23   : > { %1685 = vmatprep.subr.bf16.mxu1 %v1936_v1  ;;  %v1053_v15 = vrot.slane %v1051_v13, 1 }
  0x25   : > { %1666 = vmatpush3.bf16.msra.mxu0 %v1857_v18  ;;  %v1890_v18 = vld [vmem:[%s2340_s2 + $0x158] sm:$0xff]  }
  0x26   : > { %1686 = vmatpush3.bf16.msra.mxu1 %v1858_v22  ;;  %1667 = vmatprep.subr.bf16.mxu0 %v1936_v1  ;;  %v1169_v22 = vrot.slane %v1919_v8, 1 }
  0x27   : > { %1687 = vmatprep.subr.bf16.mxu1 %v1936_v1 }
  0x29   : > { %1668 = vmatpush3.bf16.msra.mxu0 %v1859_v23  ;;  %v1891_v23 = vld [vmem:[%s2340_s2 + $0x110] sm:$0xff]  }
  0x2a   : > { %1688 = vmatpush3.bf16.msra.mxu1 %v1860_v24  ;;  %1693 = vmatprep.subr.bf16.mxu0 %v1936_v1  ;;  %v1168_v24 = vrot.slane %v1561_v21, 1 }
  0x2b   : > { %1713 = vmatprep.subr.bf16.mxu1 %v1936_v1 }
  0x2c   : > { %1670 = vmatmul.mubr.bf16.vlgmr.msra.gmra.mxu0 %v243_v27  ;;  %v2200_v27 = vsel %vm445_vm2, %v1168_v24, %v1169_v22 }
  0x2d   : > { %1690 = vmatmul.mubr.bf16.vlgmr.msra.gmra.mxu1 %v1375_v14  ;;  %1694 = vmatpush3.bf16.msra.mxu0 %v1863_v28  ;;  %v1048_v14 = vrot.slane %v1046_v12, 1  ;;  %v1893_v28 = vld [vmem:[%s2340_s2 + $0x108] sm:$0xff]  }
  0x2e   : > { %1714 = vmatpush3.bf16.msra.mxu1 %v1864_v29  ;;  %1695 = vmatprep.subr.bf16.mxu0 %v1936_v1  ;;  %v1894_v29 = vld [vmem:[%s2340_s2 + $0x148] sm:$0xff]  }
  0x2f   : > { %1715 = vmatprep.subr.bf16.mxu1 %v1936_v1  ;;  %1709 = vmatprep.mubr.msk.bf16.mxu0 %vm1937_vm0, %v1936_v1  ;;  %v1049_v17 = vor.u32 %v1048_v14, %v1044_v11 }
  0x30   : > { %1729 = vmatprep.mubr.msk.bf16.mxu1 %vm1937_vm0, %v1936_v1 }
  0x31   : > { %1696 = vmatpush3.bf16.msra.mxu0 %v1865_v30  ;;  %v2188_v20 = vsel %vm231_vm1, %v1049_v17, %v1053_v15  ;;  %v1485_v30 = vcombine.low %v786_v26, %v2107_v42  ;;  %v1921_v42 = vld [vmem:[%s2340_s2 + $0x228] sm:$0xff]  }
  0x32   : > { %1716 = vmatpush3.bf16.msra.mxu1 %v1866_v31  ;;  %1697 = vmatprep.subr.bf16.mxu0 %v1936_v1  ;;  %v1895_v31 = vld [vmem:[%s2340_s2 + $0x100] sm:$0xff]  }
  0x33   : > { %1717 = vmatprep.subr.bf16.mxu1 %v1936_v1 }
  0x35   : > { %1698 = vmatpush3.bf16.msra.mxu0 %v1867_v32  ;;  %v1896_v32 = vld [vmem:[%s2340_s2 + $0x140] sm:$0xff]  }
  0x36   : > { %1718 = vmatpush3.bf16.msra.mxu1 %v1868_v33  ;;  %1699 = vmatprep.subr.bf16.mxu0 %v1936_v1  ;;  %v807_v33 = vrot.slane %v1485_v30, 1 }
  0x37   : > { %1719 = vmatprep.subr.bf16.mxu1 %v1936_v1 }
  0x39   : > { %1700 = vmatpush3.bf16.msra.mxu0 %v1869_v34  ;;  %v808_v34 = vrot.slane %v2112_v44, 1  ;;  %v1907_v44 = vld [vmem:[%s2340_s2 + $0x1e0] sm:$0xff]  }
  0x3a   : > { %1720 = vmatpush3.bf16.msra.mxu1 %v1870_v35  ;;  %1701 = vmatprep.subr.bf16.mxu0 %v1936_v1  ;;  %v1899_v35 = vld [vmem:[%s2340_s2 + $0x1b8] sm:$0xff]  }
  0x3b   : > { %1721 = vmatprep.subr.bf16.mxu1 %v1936_v1 }
  0x3d   : > { %1702 = vmatpush3.bf16.msra.mxu0 %v1871_v36  ;;  %v809_v36 = vsel %vm445_vm2, %v807_v33, %v808_v34 }
  0x3e   : > { %1722 = vmatpush3.bf16.msra.mxu1 %v1872_v37  ;;  %1703 = vmatprep.subr.bf16.mxu0 %v1936_v1  ;;  %v1901_v37 = vld [vmem:[%s2340_s2 + $0x1f8] sm:$0xff]  }
  0x3f   : > { %1723 = vmatprep.subr.bf16.mxu1 %v1936_v1 }
  0x41   : > { %1704 = vmatpush3.bf16.msra.mxu0 %v1873_v38  ;;  %v1902_v38 = vld [vmem:[%s2340_s2 + $0x1b0] sm:$0xff]  }
  0x42   : > { %1724 = vmatpush3.bf16.msra.mxu1 %v1874_v39  ;;  %1705 = vmatprep.subr.bf16.mxu0 %v1936_v1  ;;  %v1903_v39 = vld [vmem:[%s2340_s2 + $0x1f0] sm:$0xff]  }
  0x43   : > { %1725 = vmatprep.subr.bf16.mxu1 %v1936_v1 }
  0x45   : > { %1706 = vmatpush3.bf16.msra.mxu0 %v1875_v45  ;;  %v1908_v45 = vld [vmem:[%s2340_s2 + $0x198] sm:$0xff]  }
  0x46   : > { %1726 = vmatpush3.bf16.msra.mxu1 %v1876_v50  ;;  %1707 = vmatprep.subr.bf16.mxu0 %v1936_v1  ;;  %v1913_v50 = vld [vmem:[%s2340_s2 + $0x1c8] sm:$0xff]  }
  0x47   : > { %1727 = vmatprep.subr.bf16.mxu1 %v1936_v1 }
  0x49   : > { %1708 = vmatpush3.bf16.msra.mxu0 %v1877_v51  ;;  %v1914_v51 = vld [vmem:[%s2340_s2 + $0x180] sm:$0xff]  }
  0x4a   : > { %1728 = vmatpush3.bf16.msra.mxu1 %v1878_v55  ;;  %1733 = vmatprep.subr.bf16.mxu0 %v1936_v1  ;;  %v1917_v55 = vld [vmem:[%s2340_s2 + $0x238] sm:$0xff]  }
  0x4b   : > { %1753 = vmatprep.subr.bf16.mxu1 %v1936_v1 }
  0x4c   : > { %1710 = vmatmul.mubr.bf16.vlgmr.msra.gmra.mxu0 %v448_v60  ;;  %v1925_v60 = vld [vmem:[%s2340_s2 + $0x208] sm:$0xff]  }
  0x4d   : > { %1734 = vmatpush3.bf16.msra.mxu0 %v1880_v61  ;;  %1730 = vmatmul.mubr.bf16.vlgmr.msra.gmra.mxu1 %v1434_v62  ;;  %v1926_v61 = vld [vmem:[%s2340_s2 + $0x200] sm:$0xff]  }
  0x4e   : > { %1754 = vmatpush3.bf16.msra.mxu1 %v1882_v63  ;;  %1735 = vmatprep.subr.bf16.mxu0 %v1936_v1 }
  0x4f   : > { %1755 = vmatprep.subr.bf16.mxu1 %v1936_v1  ;;  %1749 = vmatprep.mubr.msk.bf16.mxu0 %vm1937_vm0, %v1936_v1 }
  0x50   : > { %1769 = vmatprep.mubr.msk.bf16.mxu1 %vm1937_vm0, %v1936_v1 }
  0x51   : > { %1736 = vmatpush3.bf16.msra.mxu0 %v1883_v0 }
  0x52   : > { %1756 = vmatpush3.bf16.msra.mxu1 %v1884_v2  ;;  %1737 = vmatprep.subr.bf16.mxu0 %v1936_v1 }
  0x53   : > { %1757 = vmatprep.subr.bf16.mxu1 %v1936_v1 }
  0x55   : > { %1738 = vmatpush3.bf16.msra.mxu0 %v1885_v3 }
  0x56   : > { %1758 = vmatpush3.bf16.msra.mxu1 %v1886_v4  ;;  %1739 = vmatprep.subr.bf16.mxu0 %v1936_v1 }
  0x57   : > { %1759 = vmatprep.subr.bf16.mxu1 %v1936_v1 }
  0x59   : > { %1740 = vmatpush3.bf16.msra.mxu0 %v1887_v9 }
  0x5a   : > { %1760 = vmatpush3.bf16.msra.mxu1 %v1888_v10  ;;  %1741 = vmatprep.subr.bf16.mxu0 %v1936_v1 }
  0x5b   : > { %1761 = vmatprep.subr.bf16.mxu1 %v1936_v1 }
  0x5d   : > { %1742 = vmatpush3.bf16.msra.mxu0 %v1889_v16 }
  0x5e   : > { %1762 = vmatpush3.bf16.msra.mxu1 %v1890_v18  ;;  %1743 = vmatprep.subr.bf16.mxu0 %v1936_v1 }
  0x5f   : > { %1763 = vmatprep.subr.bf16.mxu1 %v1936_v1 }
  0x61   : > { %1744 = vmatpush3.bf16.msra.mxu0 %v1891_v23 }
  0x62   : > { %1764 = vmatpush3.bf16.msra.mxu1 %v1892_v25  ;;  %1745 = vmatprep.subr.bf16.mxu0 %v1936_v1 }
  0x63   : > { %1765 = vmatprep.subr.bf16.mxu1 %v1936_v1 }
  0x65   : > { %1746 = vmatpush3.bf16.msra.mxu0 %v1893_v28 }
  0x66   : > { %1766 = vmatpush3.bf16.msra.mxu1 %v1894_v29  ;;  %1747 = vmatprep.subr.bf16.mxu0 %v1936_v1 }
  0x67   : > { %1767 = vmatprep.subr.bf16.mxu1 %v1936_v1 }
  0x69   : > { %1748 = vmatpush3.bf16.msra.mxu0 %v1895_v31 }
  0x6a   : > { %1768 = vmatpush3.bf16.msra.mxu1 %v1896_v32  ;;  %1773 = vmatprep.subr.bf16.mxu0 %v1936_v1 }
  0x6b   : > { %1793 = vmatprep.subr.bf16.mxu1 %v1936_v1 }
  0x6c   : > { %1750 = vmatmul.mubr.bf16.vlgmr.msra.gmra.mxu0 %v2135_v59  ;;  %v1924_v59 = vld [vmem:[%s2340_s2 + $0x210] sm:$0xff]  }
  0x6d   : > { %1774 = vmatpush3.bf16.msra.mxu0 %v1899_v35  ;;  %1770 = vmatmul.mubr.bf16.vlgmr.msra.gmra.mxu1 %v809_v36 }
  0x6e   : > { %1794 = vmatpush3.bf16.msra.mxu1 %v1901_v37  ;;  %1775 = vmatprep.subr.bf16.mxu0 %v1936_v1 }
  0x6f   : > { %1795 = vmatprep.subr.bf16.mxu1 %v1936_v1  ;;  %1789 = vmatprep.mubr.msk.bf16.mxu0 %vm1937_vm0, %v1936_v1 }
  0x70   : > { %1809 = vmatprep.mubr.msk.bf16.mxu1 %vm1937_vm0, %v1936_v1 }
  0x71   : > { %1776 = vmatpush3.bf16.msra.mxu0 %v1902_v38 }
  0x72   : > { %1796 = vmatpush3.bf16.msra.mxu1 %v1903_v39  ;;  %1777 = vmatprep.subr.bf16.mxu0 %v1936_v1 }
  0x73   : > { %1797 = vmatprep.subr.bf16.mxu1 %v1936_v1 }
  0x75   : > { %1778 = vmatpush3.bf16.msra.mxu0 %v1904_v40  ;;  %v1263_v40 = vld [vmem:[%s181_s19] sm:$0x1] }
  0x76   : > { %1798 = vmatpush3.bf16.msra.mxu1 %v1905_v41  ;;  %1779 = vmatprep.subr.bf16.mxu0 %v1936_v1  ;;  %v1268_v41 = vld [vmem:[%s181_s19] sm:$0x2] }
  0x77   : > { %1799 = vmatprep.subr.bf16.mxu1 %v1936_v1 }
  0x79   : > { %1780 = vmatpush3.bf16.msra.mxu0 %v1906_v43 }
  0x7a   : > { %1800 = vmatpush3.bf16.msra.mxu1 %v1907_v44  ;;  %1781 = vmatprep.subr.bf16.mxu0 %v1936_v1  ;;  %v1264_v44 = vunpack.c.l.bf16 %v1263_v40 }
  0x7b   : > { %1801 = vmatprep.subr.bf16.mxu1 %v1936_v1 }
  0x7d   : > { %1782 = vmatpush3.bf16.msra.mxu0 %v1908_v45  ;;  %v1269_v45 = vunpack.c.l.bf16 %v1268_v41 }
  0x7e   : > { %1802 = vmatpush3.bf16.msra.mxu1 %v1909_v46  ;;  %1783 = vmatprep.subr.bf16.mxu0 %v1936_v1 }
  0x7f   : > { %1803 = vmatprep.subr.bf16.mxu1 %v1936_v1 }
  0x81   : > { %1784 = vmatpush3.bf16.msra.mxu0 %v1910_v47 }
  0x82   : > { %1804 = vmatpush3.bf16.msra.mxu1 %v1911_v48  ;;  %1785 = vmatprep.subr.bf16.mxu0 %v1936_v1  ;;  %v1938_v48 = vmov 1983009808  }
  0x83   : > { %1805 = vmatprep.subr.bf16.mxu1 %v1936_v1 }
  0x85   : > { %1786 = vmatpush3.bf16.msra.mxu0 %v1912_v49  ;;  %v1277_v49 = vunpack.c.l.s4 %v1938_v48 }
  0x86   : > { %1806 = vmatpush3.bf16.msra.mxu1 %v1913_v50  ;;  %1787 = vmatprep.subr.bf16.mxu0 %v1936_v1  ;;  %v1279_v50 = vlaneseq }
  0x87   : > { %1807 = vmatprep.subr.bf16.mxu1 %v1936_v1 }
  0x89   : > { %1788 = vmatpush3.bf16.msra.mxu0 %v1914_v51 }
  0x8a   : > { %1808 = vmatpush3.bf16.msra.mxu1 %v1915_v53  ;;  %1813 = vmatprep.subr.bf16.mxu0 %v1936_v1 }
  0x8c   : > { %1790 = vmatmul.mubr.bf16.vlgmr.msra.gmra.mxu0 %v1510_v54  ;;  %v1271_v54 = vrot.slane %v1269_v45, 2 }
  0x8d   : > { %1814 = vmatpush3.bf16.msra.mxu0 %v1917_v55  ;;  %1810 = vmatmul.mubr.bf16.vlgmr.msra.gmra.mxu1 %v2188_v20 }
  0x8e   : > { %1815 = vmatprep.subr.bf16.mxu0 %v1936_v1  ;;  %1829 = vmatprep.mubr.msk.bf16.mxu0 %vm1937_vm0, %v1936_v1 }
  0x91   : > { %1816 = vmatpush3.bf16.msra.mxu0 %v1920_v56 }
  0x92   : > { %1817 = vmatprep.subr.bf16.mxu0 %v1936_v1 }
  0x95   : > { %1818 = vmatpush3.bf16.msra.mxu0 %v1921_v42  ;;  %v1278_v42 = vunpack.c.0.s8 %v1277_v49 }
  0x96   : > { %1819 = vmatprep.subr.bf16.mxu0 %v1936_v1 }
  0x99   : > { %1820 = vmatpush3.bf16.msra.mxu0 %v1922_v57  ;;  %v1280_v57 = vshrl.u32 %v1279_v50, 7 }
  0x9a   : > { %1821 = vmatprep.subr.bf16.mxu0 %v1936_v1 }
  0x9d   : > { %1822 = vmatpush3.bf16.msra.mxu0 %v1923_v58 }
  0x9e   : > { %1823 = vmatprep.subr.bf16.mxu0 %v1936_v1 }
  0xa1   : > { %1824 = vmatpush3.bf16.msra.mxu0 %v1924_v59 }
  0xa2   : > { %1825 = vmatprep.subr.bf16.mxu0 %v1936_v1 }
  0xa5   : > { %1826 = vmatpush3.bf16.msra.mxu0 %v1925_v60 }
  0xa6   : > { %1827 = vmatprep.subr.bf16.mxu0 %v1936_v1 }
  0xa9   : > { %1828 = vmatpush3.bf16.msra.mxu0 %v1926_v61 }
  0xac   : > { %1830 = vmatmul.mubr.bf16.vlgmr.msra.gmra.mxu0 %v2200_v27 }
  0xec   : > { %v327_v62 = vpop.f32.mrf.mxu0 }
  0xed   : > { %v417_v63 = vpop.f32.mrf.mxu1 }
  0xee   : > { %v418_v0 = vadd.f32 %v417_v63, %v327_v62  ;;  %v1671_v2 = vpop.f32.mrf.mxu0  ;;  %v1281_v63 = vsub.s32 %v1278_v42, %v1280_v57 }
  0xef   : > { %v1691_v3 = vpop.f32.mrf.mxu1 }
  0xf0   : > { %v330_v4 = vpop.f32.mrf.mxu0 }
  0xf1   : > { %v420_v5 = vpop.f32.mrf.mxu1 }
  0xf2   : > { %v421_v6 = vadd.f32 %v420_v5, %v330_v4  ;;  %v1672_v7 = vpop.f32.mrf.mxu0 }
  0xf3   : > { %v1692_v8 = vpop.f32.mrf.mxu1 }
 0x10c   : > { %v532_v9 = vpop.f32.mrf.mxu0 }
 0x10d   : > { %v539_v10 = vadd.f32 %v532_v9, %v418_v0  ;;  %v645_v11 = vpop.f32.mrf.mxu1 }
 0x10e   : > { %v1711_v12 = vpop.f32.mrf.mxu0 }
 0x10f   : > { %v652_v13 = vadd.f32 %v645_v11, %v539_v10  ;;  %v1731_v14 = vpop.f32.mrf.mxu1 }
 0x110   : > { %v535_v1 = vpop.f32.mrf.mxu0 }
 0x111   : > { %v540_v15 = vadd.f32 %v535_v1, %v421_v6  ;;  %v648_v16 = vpop.f32.mrf.mxu1 }
 0x112   : > { %v1712_v17 = vpop.f32.mrf.mxu0 }
 0x113   : > { %v653_v18 = vadd.f32 %v648_v16, %v540_v15  ;;  %v1732_v19 = vpop.f32.mrf.mxu1 }
 0x12c   : > { %v777_v20 = vpop.f32.mrf.mxu0 }
 0x12d   : > { %v893_v21 = vpop.f32.mrf.mxu1  ;;  %v784_v36 = vadd.f32 %v777_v20, %v652_v13 }
 0x12e   : > { %v1751_v22 = vpop.f32.mrf.mxu0 }
 0x12f   : > { %v1771_v23 = vpop.f32.mrf.mxu1  ;;  %v900_v37 = vadd.f32 %v893_v21, %v784_v36 }
 0x130   : > { %v780_v24 = vpop.f32.mrf.mxu0 }
 0x131   : > { %v896_v25 = vpop.f32.mrf.mxu1  ;;  %v785_v38 = vadd.f32 %v780_v24, %v653_v18 }
 0x132   : > { %v1752_v26 = vpop.f32.mrf.mxu0 }
 0x133   : > { %v1772_v27 = vpop.f32.mrf.mxu1  ;;  %v901_v43 = vadd.f32 %v896_v25, %v785_v38 }
 0x14c   : > { %v1006_v28 = vpop.f32.mrf.mxu0 }
 0x14d   : > { %v1138_v29 = vpop.f32.mrf.mxu1  ;;  %v1013_v39 = vadd.f32 %v1006_v28, %v900_v37 }
 0x14e   : > { %v1791_v30 = vpop.f32.mrf.mxu0 }
 0x14f   : > { %v1811_v31 = vpop.f32.mrf.mxu1  ;;  %v1145_v46 = vadd.f32 %v1138_v29, %v1013_v39 }
 0x150   : > { %v1009_v32 = vpop.f32.mrf.mxu0 }
 0x151   : > { %v1141_v33 = vpop.f32.mrf.mxu1  ;;  %v1014_v47 = vadd.f32 %v1009_v32, %v901_v43 }
 0x152   : > { %v1792_v34 = vpop.f32.mrf.mxu0 }
 0x153   : > { %v1812_v35 = vpop.f32.mrf.mxu1  ;;  %v1146_v55 = vadd.f32 %v1141_v33, %v1014_v47 }
 0x16c   : > { %v1254_v51 = vpop.f32.mrf.mxu0 }
 0x16d   : > { %v1261_v52 = vadd.f32 %v1254_v51, %v1145_v46 }
 0x16e   : > { %v1831_v53 = vpop.f32.mrf.mxu0 }
 0x16f   : > { %v1265_v56 = vadd.f32 %v1264_v44, %v1261_v52 }
 0x170   : > { %v1257_v58 = vpop.f32.mrf.mxu0 }
 0x171   : > { %v1266_v59 = vpack.c.bf16 %v1265_v56, %v1265_v56  ;;  %v1262_v60 = vadd.f32 %v1257_v58, %v1146_v55 }
 0x172   : > { %v1832_v61 = vpop.f32.mrf.mxu0 }
 0x173   : > { %1267 = vst [vmem:[%s185_s21] sm:$0x1] %v1266_v59  ;;  %v1273_v62 = vadd.f32 %v1271_v54, %v1262_v60 }
 0x175   : > { %v1274_v0 = vpack.c.bf16 %v1273_v62, %v1273_v62 }
 0x177   : > { %v1282_v2 = vrot.slane %v1274_v0, %v1281_v63 }
 0x179   : > { %v1283_v3 = vrot.slane %v1282_v2, 7 }
 0x17b   : > { %1285 = vst [vmem:[%s185_s21] sm:$0x2] %v1283_v3 }
 0x17c PF: > { %s13_s12 = sadd.s32 1, %s1934_s12  }
 0x17d   : > { %p10_p4 = scmp.ge.s32.totalorder %s13_s12, 4  }
 0x17f   :  { %12 = sbr.rel (!%p10_p4) target bundleno = 1 (0x1), region = 73 }

// kernel: densenet_forward.39
= control target key start
LH: loop header
LB: loop body
LE: loop exit
PB: predicated region body
PF: predicated region fallthrough
CT: control target
= control target key end

     0   :  { %v222_v0 = vmov 0.0   ;;  %vm223_vm0 = vmmov 0   ;;  %s301_s3 = inlined_call_operand.vmem [shape: bf16[128,128], index: 3, kind: input, shape index: {}]   ;;  %s302_s0 = inlined_call_operand.vmem [shape: bf16[2,128], index: 0, kind: input, shape index: {}]   ;;  %s303_s1 = inlined_call_operand.vmem [shape: f32[1,128], index: 1, kind: input, shape index: {}]   ;;  %s304_s2 = inlined_call_operand.vmem [shape: f32[1,128], index: 2, kind: input, shape index: {}]   ;;  %s305_s4 = inlined_call_operand.vmem [shape: f32[1,128], index: 4, kind: input, shape index: {}]   ;;  %s306_s5 = inlined_call_operand.vmem [shape: f32[1,128], index: 5, kind: input, shape index: {}]   ;;  %s307_s6 = inlined_call_operand.vmem [shape: bf16[2,128], index: 6, kind: output, shape index: {}]  }
   0x1   :  { %192 = vmatprep.subr.bf16.mxu0 %v222_v0  ;;  %v214_v1 = vld [vmem:[%s301_s3 + $0x38] sm:$0xff]   ;;  %208 = vmatprep.mubr.msk.bf16.mxu0 %vm223_vm0, %v222_v0  ;;  %v215_v2 = vld [vmem:[%s301_s3 + $0x30] sm:$0xff]   ;;  %v216_v3 = vld [vmem:[%s301_s3 + $0x28] sm:$0xff]  }
   0x2   :  { %193 = vmatpush3.bf16.msra.mxu0 %v214_v1  ;;  %v217_v4 = vld [vmem:[%s301_s3 + $0x20] sm:$0xff]   ;;  %v218_v7 = vld [vmem:[%s301_s3 + $0x18] sm:$0xff]   ;;  %v219_v10 = vld [vmem:[%s301_s3 + $0x10] sm:$0xff]  }
   0x3   :  { %194 = vmatprep.subr.bf16.mxu0 %v222_v0  ;;  %v24_v5 = vld [vmem:[%s302_s0] sm:$0x1]  ;;  %v220_v13 = vld [vmem:[%s301_s3 + $0x8] sm:$0xff]  }
   0x4   :  { %v25_v6 = vunpack.c.l.bf16 %v24_v5  ;;  %v171_v8 = vld [vmem:[%s303_s1] ss:$0 sm:$0xff] }
   0x5   :  { %v172_v11 = vld [vmem:[%s304_s2] ss:$0 sm:$0xff] }
   0x6   :  { %195 = vmatpush3.bf16.msra.mxu0 %v215_v2  ;;  %v33_v9 = vmul.f32 %v171_v8, %v25_v6  ;;  %v221_v15 = vld [vmem:[%s301_s3] sm:$0xff]  }
   0x7   :  { %196 = vmatprep.subr.bf16.mxu0 %v222_v0  ;;  %v181_v17 = vld [vmem:[%s305_s4] ss:$0 sm:$0xff] }
   0x8   :  { %v41_v12 = vadd.f32 %v172_v11, %v33_v9  ;;  %v182_v19 = vld [vmem:[%s306_s5] ss:$0 sm:$0xff] }
   0xa   :  { %197 = vmatpush3.bf16.msra.mxu0 %v216_v3  ;;  %v42_v14 = vmax.f32 %v41_v12, 0.0 }
   0xb   :  { %198 = vmatprep.subr.bf16.mxu0 %v222_v0 }
   0xc   :  { %v43_v16 = vpack.c.bf16 %v42_v14, %v42_v14 }
   0xe   :  { %199 = vmatpush3.bf16.msra.mxu0 %v217_v4 }
   0xf   :  { %200 = vmatprep.subr.bf16.mxu0 %v222_v0 }
  0x12   :  { %201 = vmatpush3.bf16.msra.mxu0 %v218_v7 }
  0x13   :  { %202 = vmatprep.subr.bf16.mxu0 %v222_v0 }
  0x16   :  { %203 = vmatpush3.bf16.msra.mxu0 %v219_v10 }
  0x17   :  { %204 = vmatprep.subr.bf16.mxu0 %v222_v0 }
  0x1a   :  { %205 = vmatpush3.bf16.msra.mxu0 %v220_v13 }
  0x1b   :  { %206 = vmatprep.subr.bf16.mxu0 %v222_v0 }
  0x1e   :  { %207 = vmatpush3.bf16.msra.mxu0 %v221_v15 }
  0x21   :  { %209 = vmatmul.mubr.bf16.vlgmr.msra.gmra.mxu0 %v43_v16 }
  0xe1   :  { %v142_v18 = vpop.f32.mrf.mxu0 }
  0xe2   :  { %v155_v20 = vmul.f32 %v181_v17, %v142_v18 }
  0xe3   :  { %v210_v21 = vpop.f32.mrf.mxu0 }
  0xe4   :  { %v163_v22 = vadd.f32 %v182_v19, %v155_v20 }
  0xe5   :  { %v145_v23 = vpop.f32.mrf.mxu0 }
  0xe6   :  { %v164_v24 = vmax.f32 %v163_v22, 0.0 }
  0xe7   :  { %v211_v25 = vpop.f32.mrf.mxu0 }
  0xe8   :  { %v165_v26 = vpack.c.bf16 %v164_v24, %v164_v24 }
  0xea   :  { %166 = vst [vmem:[%s307_s6] sm:$0x1] %v165_v26 }

// kernel: densenet_forward.43
= control target key start
LH: loop header
LB: loop body
LE: loop exit
PB: predicated region body
PF: predicated region fallthrough
CT: control target
= control target key end

     0   :  { %v235_v1 = vmov 0.0   ;;  %vm236_vm0 = vmmov 0   ;;  %s351_s0 = inlined_call_operand.vmem [shape: bf16[2,1,128], index: 0, kind: input, shape index: {}]   ;;  %s352_s1 = inlined_call_operand.vmem [shape: f32[1,1,128], index: 1, kind: input, shape index: {}]   ;;  %s353_s2 = inlined_call_operand.vmem [shape: f32[1,1,128], index: 2, kind: input, shape index: {}]   ;;  %s354_s3 = inlined_call_operand.vmem [shape: f32[128,10], index: 3, kind: input, shape index: {}]   ;;  %s355_s4 = inlined_call_operand.vmem [shape: f32[1,10], index: 4, kind: input, shape index: {}]   ;;  %s356_s5 = inlined_call_operand.hbm [shape: f32[2,10], index: 5, kind: output, shape index: {}]  }
   0x1   :  { %v50_v0 = vld [vmem:[%s354_s3 + $0x78] sm:$0xff]  ;;  %175 = vmatprep.subr.mxu0 %v235_v1  ;;  %v49_v2 = vld [vmem:[%s354_s3 + $0x70] sm:$0xff]  ;;  %207 = vmatprep.mubr.msk.f32.mxu0 %vm236_vm0, %v235_v1  ;;  %v48_v3 = vld [vmem:[%s354_s3 + $0x68] sm:$0xff] }
   0x2   :  { %176 = vmatpush3.msra.mxu0 %v50_v0  ;;  %v47_v4 = vld [vmem:[%s354_s3 + $0x60] sm:$0xff]  ;;  %v46_v5 = vld [vmem:[%s354_s3 + $0x58] sm:$0xff] }
   0x3   :  { %177 = vmatprep.subr.mxu0 %v235_v1  ;;  %v21_v6 = vld [vmem:[%s351_s0] sm:$0x1]  ;;  %v22_v7 = vld [vmem:[%s351_s0 + $0x1] sm:$0x1] }
   0x4   :  { %178 = vmatpush3.msra.mxu0 %v49_v2 }
   0x5   :  { %179 = vmatprep.subr.mxu0 %v235_v1 }
   0x6   :  { %180 = vmatpush3.msra.mxu0 %v48_v3 }
   0x7   :  { %181 = vmatprep.subr.mxu0 %v235_v1 }
   0x8   :  { %10 = vsyncpa [#allocation3], 0  ;;  %182 = vmatpush3.msra.mxu0 %v47_v4  ;;  %v45_v8 = vld [vmem:[%s354_s3 + $0x50] sm:$0xff]  ;;  %v23_v9 = vunpack.c.l.bf16 %v21_v6  ;;  %v24_v10 = vunpack.c.l.bf16 %v22_v7  ;;  %v44_v11 = vld [vmem:[%s354_s3 + $0x48] sm:$0xff]  ;;  %v60_v16 = vlaneseq  ;;  %vm68_vm1 = vcmask 1041409   ;;  %s237_s7 = smov [#allocation2]  }
   0x9   :  { %183 = vmatprep.subr.mxu0 %v235_v1  ;;  %v25_v12 = vld [vmem:[%s352_s1] sm:$0x1]  ;;  %v42_v17 = vld [vmem:[%s354_s3 + $0x38] sm:$0xff]  ;;  %v41_v19 = vld [vmem:[%s354_s3 + $0x30] sm:$0xff]  ;;  %s149_s8 = sshll.u32 %s237_s7, 4  ;;  %vm141_vm2 = vcmask 74752   ;;  %s150_s8 = int_to_ptr.vmem [resolvable:$true] %s149_s8 }
   0xa   :  { %184 = vmatpush3.msra.mxu0 %v46_v5  ;;  %v43_v13 = vld [vmem:[%s354_s3 + $0x40] sm:$0xff]  ;;  %v26_v14 = vmul.f32 %v25_v12, %v23_v9  ;;  %v27_v15 = vmul.f32 %v25_v12, %v24_v10  ;;  %v61_v22 = vshrl.u32 %v60_v16, 7  ;;  %v40_v23 = vld [vmem:[%s354_s3 + $0x28] sm:$0xff]  ;;  %v38_v28 = vld [vmem:[%s354_s3 + $0x18] sm:$0xff]  ;;  %s213_s9 = scalar_lea.vmem %s150_s8, 32  ;;  %p218_p1 = scmp.lt.s32.totalorder %s150_s8, %s150_s8 }
   0xb   :  { %185 = vmatprep.subr.mxu0 %v235_v1  ;;  %v28_v18 = vld [vmem:[%s353_s2] sm:$0x1]  ;;  %v37_v29 = vld [vmem:[%s354_s3 + $0x10] sm:$0xff]  ;;  %v36_v32 = vld [vmem:[%s354_s3 + $0x8] sm:$0xff]  ;;  %p214_p0 = scmp.ne.s32.totalorder %s150_s8, %s213_s9  ;;  %p219_p2 = scmp.lt.s32.totalorder %s213_s9, %s213_s9 }
   0xc   :  { %186 = vmatpush3.msra.mxu0 %v45_v8  ;;  %v29_v20 = vadd.f32 %v28_v18, %v26_v14  ;;  %v30_v21 = vadd.f32 %v28_v18, %v27_v15  ;;  %v39_v24 = vld [vmem:[%s354_s3 + $0x20] sm:$0xff]  ;;  %v62_v27 = vsub.s32 0, %v61_v22 }
   0xd   :  { %187 = vmatprep.subr.mxu0 %v235_v1  ;;  %v35_v33 = vld [vmem:[%s354_s3] sm:$0xff]  ;;  %p220_p3 = por %p219_p2, %p218_p1 }
   0xe   :  { %188 = vmatpush3.msra.mxu0 %v44_v11  ;;  %v31_v25 = vmax.f32 %v29_v20, 0.0  ;;  %v32_v26 = vmax.f32 %v30_v21, 0.0  ;;  %v157_v35 = vld [vmem:[%s355_s4] ss:$0 sm:$0xff] }
   0xf   :  { %189 = vmatprep.subr.mxu0 %v235_v1  ;;  %p221_p4 = pnand %p220_p3, %p214_p0 }
  0x10   :  { %190 = vmatpush3.msra.mxu0 %v43_v13  ;;  %v63_v30 = vrot.slane %v31_v25, %v62_v27  ;;  %v67_v31 = vrot.slane %v32_v26, %v62_v27 }
  0x11   :  { %191 = vmatprep.subr.mxu0 %v235_v1 }
  0x12   :  { %192 = vmatpush3.msra.mxu0 %v42_v17  ;;  %v69_v34 = vsel %vm68_vm1, %v67_v31, %v63_v30 }
  0x13   :  { %193 = vmatprep.subr.mxu0 %v235_v1 }
  0x14   :  { %194 = vmatpush3.msra.mxu0 %v41_v19 }
  0x15   :  { %195 = vmatprep.subr.mxu0 %v235_v1 }
  0x16   :  { %196 = vmatpush3.msra.mxu0 %v40_v23 }
  0x17   :  { %197 = vmatprep.subr.mxu0 %v235_v1 }
  0x18   :  { %198 = vmatpush3.msra.mxu0 %v39_v24 }
  0x19   :  { %199 = vmatprep.subr.mxu0 %v235_v1 }
  0x1a   :  { %200 = vmatpush3.msra.mxu0 %v38_v28 }
  0x1b   :  { %201 = vmatprep.subr.mxu0 %v235_v1 }
  0x1c   :  { %202 = vmatpush3.msra.mxu0 %v37_v29 }
  0x1d   :  { %203 = vmatprep.subr.mxu0 %v235_v1 }
  0x1e   :  { %204 = vmatpush3.msra.mxu0 %v36_v32 }
  0x1f   :  { %205 = vmatprep.subr.mxu0 %v235_v1 }
  0x20   :  { %206 = vmatpush3.msra.mxu0 %v35_v33 }
  0x21   :  { %208 = vmatmul.mubr.f32.vlgmr.msra.gmra.mxu0 %v69_v34 }
  0xe1   :  { %v137_v36 = vpop.f32.mrf.mxu0 }
  0xe2   :  { %v138_v37 = vadd.f32 %v157_v35, %v137_v36 }
  0xe3   :  { %v209_v38 = vpop.f32.mrf.mxu0 }
  0xe4   :  { %142 = vst.msk [vmem:[#allocation2] sm:$0x3] %vm141_vm2, %v138_v37 }
  0xe5   :  { %224 = shalt.err (!%p221_p4)
}
  0xe6   :  { %152 = dma.vmem_to_hbm [thread:$0]  %s150_s8, 32, %s356_s5, [#allocation3]  }
  0xe7   :  { %233 = dma.done.wait [#allocation3], 32  }
  0xe8   :  { %234 = vsyncadd [#allocation3], 4294967264 }
  0xe9   :  { %156 = vsyncpa [#allocation3], 1 }

// kernel: densenet_forward.40
= control target key start
LH: loop header
LB: loop body
LE: loop exit
PB: predicated region body
PF: predicated region fallthrough
CT: control target
= control target key end

     0   :  { %s1859_s12 = smov 0   ;;  %s2207_s0 = inlined_call_operand.vmem [shape: bf16[2,32,128], index: 0, kind: input, shape index: {}]   ;;  %s2208_s1 = inlined_call_operand.vmem [shape: bf16[2,1,128], index: 1, kind: input, shape index: {}]   ;;  %s2209_s2 = inlined_call_operand.vmem [shape: bf16[9,128,128], index: 2, kind: input, shape index: {}]   ;;  %s2210_s3 = inlined_call_operand.vmem [shape: bf16[2,1,128], index: 3, kind: output, shape index: {}]  }
   0x1 LB: > { %s1264_s13 = sadd.s32 4294967295, %s1835_s12   ;;  %p1268_p0 = scmp.ge.s32.totalorder %s1835_s12, 1  ;;  %s1835_s12 = sphi %s1859_s12, %s13_s12  }
   0x2   : > { %p145_p1 = scmp.lt.s32.totalorder %s1835_s12, 3 }
   0x4   : > { %p146_p2 = pnand %p1268_p0, %p145_p1 }
   0x5   : > { %p170_p3 = scmp.lt.s32.totalorder (!%p146_p2), %s1264_s13, 1 }
   0x6   : > { %149 = sbr.rel (%p146_p2) target bundleno = 373 (0x175), region = 32 }
   0xb   : > { %v1751_v0 = vld [vmem:[%s2209_s2 + $0x78] sm:$0xff]   ;;  %v1837_v1 = vmov 0.0   ;;  %v1753_v3 = vld [vmem:[%s2209_s2 + $0x70] sm:$0xff]   ;;  %vm1838_vm0 = vmmov 0   ;;  %v1755_v5 = vld [vmem:[%s2209_s2 + $0x68] sm:$0xff]   ;;  %s2212_s13 = smov (!%p170_p3, %s1264_s13), 1 }
   0xc   : > { %1561 = vmatprep.subr.bf16.mxu0 %v1837_v1  ;;  %1581 = vmatprep.subr.bf16.mxu1 %v1837_v1  ;;  %v1752_v2 = vld [vmem:[%s2209_s2 + $0x38] sm:$0xff]   ;;  %v1754_v4 = vld [vmem:[%s2209_s2 + $0x30] sm:$0xff]   ;;  %v1756_v6 = vld [vmem:[%s2209_s2 + $0x28] sm:$0xff]   ;;  %s1479_s28 = sshll.u32 %s2212_s13, 4  ;;  %s177_s18 = scalar_lea.vmem %s2208_s1, %s2212_s13  ;;  %vm1202_vm1 = vcmask 1040384  }
   0xd   : > { %1562 = vmatpush3.bf16.msra.mxu0 %v1751_v0  ;;  %1577 = vmatprep.mubr.msk.bf16.mxu0 %vm1838_vm0, %v1837_v1  ;;  %v1757_v7 = vld [vmem:[%s2209_s2 + $0x60] sm:$0xff]   ;;  %s1909_s6 = scalar_lea.vmem %s2207_s0, %s1479_s28  ;;  %v1759_v9 = vld [vmem:[%s2209_s2 + $0x58] sm:$0xff]   ;;  %v1761_v14 = vld [vmem:[%s2209_s2 + $0x50] sm:$0xff]   ;;  %s180_s21 = scalar_lea.vmem %s2210_s3, %s2212_s13  ;;  %vm1203_vm2 = vsmask.f32 256 }
   0xe   : > { %1582 = vmatpush3.bf16.msra.mxu1 %v1752_v2  ;;  %1563 = vmatprep.subr.bf16.mxu0 %v1837_v1  ;;  %v1758_v8 = vld [vmem:[%s2209_s2 + $0x20] sm:$0xff]   ;;  %v1760_v10 = vld [vmem:[%s2209_s2 + $0x18] sm:$0xff]   ;;  %v1762_v15 = vld [vmem:[%s2209_s2 + $0x10] sm:$0xff]  }
   0xf   : > { %1583 = vmatprep.subr.bf16.mxu1 %v1837_v1  ;;  %1597 = vmatprep.mubr.msk.bf16.mxu1 %vm1838_vm0, %v1837_v1  ;;  %v182_v11 = vld [vmem:[%s1909_s6] sm:$0xf]  ;;  %v1921_v12 = vld [vmem:[%s1909_s6 + $0x4] sm:$0x1]  ;;  %v1763_v17 = vld [vmem:[%s2209_s2 + $0x48] sm:$0xff]  }
  0x10   : > { %v1287_v13 = vcombine.low %v182_v11, %v1921_v12  ;;  %v1764_v18 = vld [vmem:[%s2209_s2 + $0x8] sm:$0xff]   ;;  %v1765_v21 = vld [vmem:[%s2209_s2 + $0x40] sm:$0xff]   ;;  %v1768_v24 = vld [vmem:[%s2209_s2 + $0xb8] sm:$0xff]  }
  0x11   : > { %1564 = vmatpush3.bf16.msra.mxu0 %v1753_v3  ;;  %v1766_v22 = vld [vmem:[%s2209_s2] sm:$0xff]   ;;  %v1769_v25 = vld [vmem:[%s2209_s2 + $0xf8] sm:$0xff]   ;;  %v1770_v26 = vld [vmem:[%s2209_s2 + $0xb0] sm:$0xff]  }
  0x12   : > { %1584 = vmatpush3.bf16.msra.mxu1 %v1754_v4  ;;  %1565 = vmatprep.subr.bf16.mxu0 %v1837_v1  ;;  %v225_v16 = vshll.u32 %v1287_v13, 16  ;;  %v223_v19 = vshrl.u32 %v1287_v13, 16  ;;  %v1771_v27 = vld [vmem:[%s2209_s2 + $0xf0] sm:$0xff]   ;;  %v1772_v28 = vld [vmem:[%s2209_s2 + $0xa8] sm:$0xff]   ;;  %v1774_v30 = vld [vmem:[%s2209_s2 + $0xa0] sm:$0xff]  }
  0x13   : > { %1585 = vmatprep.subr.bf16.mxu1 %v1837_v1  ;;  %v1773_v29 = vld [vmem:[%s2209_s2 + $0xe8] sm:$0xff]   ;;  %v1775_v31 = vld [vmem:[%s2209_s2 + $0xe0] sm:$0xff]   ;;  %v1776_v32 = vld [vmem:[%s2209_s2 + $0x98] sm:$0xff]  }
  0x14   : > { %v227_v20 = vrot.slane %v225_v16, 1  ;;  %v1777_v33 = vld [vmem:[%s2209_s2 + $0xd8] sm:$0xff]   ;;  %v1778_v34 = vld [vmem:[%s2209_s2 + $0x90] sm:$0xff]   ;;  %v1780_v36 = vld [vmem:[%s2209_s2 + $0x88] sm:$0xff]  }
  0x15   : > { %1566 = vmatpush3.bf16.msra.mxu0 %v1755_v5  ;;  %v1779_v35 = vld [vmem:[%s2209_s2 + $0xd0] sm:$0xff]   ;;  %v1781_v37 = vld [vmem:[%s2209_s2 + $0xc8] sm:$0xff]   ;;  %v406_v38 = vld [vmem:[%s1909_s6] sm:$0xe] }
  0x16   : > { %1586 = vmatpush3.bf16.msra.mxu1 %v1756_v6  ;;  %1567 = vmatprep.subr.bf16.mxu0 %v1837_v1  ;;  %v228_v23 = vor.u32 %v227_v20, %v223_v19  ;;  %v1320_v39 = vcombine.low %v406_v38, %v1921_v12  ;;  %v1782_v40 = vld [vmem:[%s2209_s2 + $0x80] sm:$0xff]   ;;  %v1785_v43 = vld [vmem:[%s2209_s2 + $0x138] sm:$0xff]   ;;  %v1787_v46 = vld [vmem:[%s2209_s2 + $0x130] sm:$0xff]  }
  0x17   : > { %1587 = vmatprep.subr.bf16.mxu1 %v1837_v1  ;;  %v1783_v41 = vld [vmem:[%s2209_s2 + $0xc0] sm:$0xff]   ;;  %v1786_v45 = vld [vmem:[%s2209_s2 + $0x178] sm:$0xff]   ;;  %v1788_v47 = vld [vmem:[%s2209_s2 + $0x170] sm:$0xff]  }
  0x18   : > { %v427_v42 = vrot.slane %v1320_v39, 1  ;;  %v518_v44 = vld [vmem:[%s1909_s6 + $0x4] sm:$0xf]  ;;  %v1789_v48 = vld [vmem:[%s2209_s2 + $0x128] sm:$0xff]   ;;  %v1793_v52 = vld [vmem:[%s2209_s2 + $0x118] sm:$0xff]  }
  0x19   : > { %1568 = vmatpush3.bf16.msra.mxu0 %v1757_v7  ;;  %v1790_v49 = vld [vmem:[%s2209_s2 + $0x168] sm:$0xff]   ;;  %v1791_v50 = vld [vmem:[%s2209_s2 + $0x120] sm:$0xff]   ;;  %v1794_v55 = vld [vmem:[%s2209_s2 + $0x158] sm:$0xff]  }
  0x1a   : > { %1588 = vmatpush3.bf16.msra.mxu1 %v1758_v8  ;;  %1569 = vmatprep.subr.bf16.mxu0 %v1837_v1  ;;  %v1792_v51 = vld [vmem:[%s2209_s2 + $0x160] sm:$0xff]   ;;  %v626_v54 = vld [vmem:[%s1909_s6 + $0x8] sm:$0x1]  ;;  %v1795_v57 = vld [vmem:[%s2209_s2 + $0x110] sm:$0xff]  }
  0x1b   : > { %1589 = vmatprep.subr.bf16.mxu1 %v1837_v1  ;;  %v625_v53 = vld [vmem:[%s1909_s6 + $0x4] sm:$0xf]  ;;  %v1796_v58 = vld [vmem:[%s2209_s2 + $0x150] sm:$0xff]   ;;  %v1797_v60 = vld [vmem:[%s2209_s2 + $0x108] sm:$0xff]  }
  0x1c   : > { %v1369_v56 = vcombine.low %v625_v53, %v626_v54  ;;  %v1798_v61 = vld [vmem:[%s2209_s2 + $0x148] sm:$0xff]   ;;  %v746_v62 = vld [vmem:[%s1909_s6 + $0x4] sm:$0xe]  ;;  %v1802_v6 = vld [vmem:[%s2209_s2 + $0x1b8] sm:$0xff]  }
  0x1d   : > { %1570 = vmatpush3.bf16.msra.mxu0 %v1759_v9  ;;  %v1799_v2 = vld [vmem:[%s2209_s2 + $0x100] sm:$0xff]   ;;  %v1394_v3 = vcombine.low %v746_v62, %v626_v54  ;;  %v1804_v8 = vld [vmem:[%s2209_s2 + $0x1f8] sm:$0xff]   ;;  %v1805_v9 = vld [vmem:[%s2209_s2 + $0x1b0] sm:$0xff]  }
  0x1e   : > { %1590 = vmatpush3.bf16.msra.mxu1 %v1760_v10  ;;  %1571 = vmatprep.subr.bf16.mxu0 %v1837_v1  ;;  %v652_v59 = vshll.u32 %v1369_v56, 16  ;;  %v650_v63 = vshrl.u32 %v1369_v56, 16  ;;  %v1800_v4 = vld [vmem:[%s2209_s2 + $0x140] sm:$0xff]   ;;  %v1806_v10 = vld [vmem:[%s2209_s2 + $0x1f0] sm:$0xff]   ;;  %v1808_v12 = vld [vmem:[%s2209_s2 + $0x1e8] sm:$0xff]  }
  0x1f   : > { %1591 = vmatprep.subr.bf16.mxu1 %v1837_v1  ;;  %v767_v7 = vrot.slane %v1394_v3, 1  ;;  %v1809_v13 = vld [vmem:[%s2209_s2 + $0x1a0] sm:$0xff]   ;;  %v1812_v16 = vld [vmem:[%s2209_s2 + $0x1d8] sm:$0xff]   ;;  %v1813_v19 = vld [vmem:[%s2209_s2 + $0x190] sm:$0xff]  }
  0x20   : > { %v654_v0 = vrot.slane %v652_v59, 1  ;;  %v1086_v38 = vld [vmem:[%s1909_s6 + $0x8] sm:$0xe]  ;;  %vm1204_vm3 = vmand %vm1202_vm1, %vm1203_vm2 }
  0x21   : > { %1572 = vmatpush3.bf16.msra.mxu0 %v1761_v14  ;;  %v1810_v14 = vld [vmem:[%s2209_s2 + $0x1e0] sm:$0xff]  }
  0x22   : > { %1592 = vmatpush3.bf16.msra.mxu1 %v1762_v15  ;;  %1573 = vmatprep.subr.bf16.mxu0 %v1837_v1  ;;  %v655_v5 = vor.u32 %v654_v0, %v650_v63  ;;  %v1811_v15 = vld [vmem:[%s2209_s2 + $0x198] sm:$0xff]  }
  0x23   : > { %1593 = vmatprep.subr.bf16.mxu1 %v1837_v1 }
  0x25   : > { %1574 = vmatpush3.bf16.msra.mxu0 %v1763_v17  ;;  %v965_v17 = vld [vmem:[%s1909_s6 + $0x8] sm:$0xf] }
  0x26   : > { %1594 = vmatpush3.bf16.msra.mxu1 %v1764_v18  ;;  %1575 = vmatprep.subr.bf16.mxu0 %v1837_v1  ;;  %v966_v18 = vld [vmem:[%s1909_s6 + $0xc] sm:$0x1] }
  0x27   : > { %1595 = vmatprep.subr.bf16.mxu1 %v1837_v1  ;;  %v1443_v20 = vcombine.low %v965_v17, %v966_v18  ;;  %v1468_v39 = vcombine.low %v1086_v38, %v966_v18 }
  0x29   : > { %1576 = vmatpush3.bf16.msra.mxu0 %v1765_v21  ;;  %v1814_v21 = vld [vmem:[%s2209_s2 + $0x1d0] sm:$0xff]  }
  0x2a   : > { %1596 = vmatpush3.bf16.msra.mxu1 %v1766_v22  ;;  %1601 = vmatprep.subr.bf16.mxu0 %v1837_v1  ;;  %v1815_v22 = vld [vmem:[%s2209_s2 + $0x188] sm:$0xff]  }
  0x2b   : > { %1621 = vmatprep.subr.bf16.mxu1 %v1837_v1 }
  0x2c   : > { %1578 = vmatmul.mubr.bf16.vlgmr.msra.gmra.mxu0 %v228_v23  ;;  %v992_v23 = vshll.u32 %v1443_v20, 16 }
  0x2d   : > { %1598 = vmatmul.mubr.bf16.vlgmr.msra.gmra.mxu1 %v182_v11  ;;  %1602 = vmatpush3.bf16.msra.mxu0 %v1768_v24  ;;  %v1807_v11 = vld [vmem:[%s2209_s2 + $0x1a8] sm:$0xff]  }
  0x2e   : > { %1622 = vmatpush3.bf16.msra.mxu1 %v1769_v25  ;;  %1603 = vmatprep.subr.bf16.mxu0 %v1837_v1  ;;  %v1816_v24 = vld [vmem:[%s2209_s2 + $0x1c8] sm:$0xff]   ;;  %v1817_v25 = vld [vmem:[%s2209_s2 + $0x180] sm:$0xff]  }
  0x2f   : > { %1623 = vmatprep.subr.bf16.mxu1 %v1837_v1  ;;  %1617 = vmatprep.mubr.msk.bf16.mxu0 %vm1838_vm0, %v1837_v1 }
  0x30   : > { %1637 = vmatprep.mubr.msk.bf16.mxu1 %vm1838_vm0, %v1837_v1 }
  0x31   : > { %1604 = vmatpush3.bf16.msra.mxu0 %v1770_v26  ;;  %v990_v26 = vshrl.u32 %v1443_v20, 16 }
  0x32   : > { %1624 = vmatpush3.bf16.msra.mxu1 %v1771_v27  ;;  %1605 = vmatprep.subr.bf16.mxu0 %v1837_v1  ;;  %v994_v27 = vrot.slane %v992_v23, 1  ;;  %v1205_v23 = vld [vmem:[%s180_s21] sm:$0x1] }
  0x33   : > { %1625 = vmatprep.subr.bf16.mxu1 %v1837_v1 }
  0x35   : > { %1606 = vmatpush3.bf16.msra.mxu0 %v1772_v28  ;;  %v1818_v28 = vld [vmem:[%s2209_s2 + $0x1c0] sm:$0xff]  }
  0x36   : > { %1626 = vmatpush3.bf16.msra.mxu1 %v1773_v29  ;;  %1607 = vmatprep.subr.bf16.mxu0 %v1837_v1  ;;  %v858_v29 = vld [vmem:[%s1909_s6 + $0x8] sm:$0xf] }
  0x37   : > { %1627 = vmatprep.subr.bf16.mxu1 %v1837_v1 }
  0x39   : > { %1608 = vmatpush3.bf16.msra.mxu0 %v1774_v30  ;;  %v1819_v30 = vld [vmem:[%s2209_s2 + $0x238] sm:$0xff]  }
  0x3a   : > { %1628 = vmatpush3.bf16.msra.mxu1 %v1775_v31  ;;  %1609 = vmatprep.subr.bf16.mxu0 %v1837_v1  ;;  %v995_v31 = vor.u32 %v994_v27, %v990_v26 }
  0x3b   : > { %1629 = vmatprep.subr.bf16.mxu1 %v1837_v1 }
  0x3d   : > { %1610 = vmatpush3.bf16.msra.mxu0 %v1776_v32  ;;  %v1821_v32 = vld [vmem:[%s2209_s2 + $0x230] sm:$0xff]  }
  0x3e   : > { %1630 = vmatpush3.bf16.msra.mxu1 %v1777_v33  ;;  %1611 = vmatprep.subr.bf16.mxu0 %v1837_v1  ;;  %v1822_v33 = vld [vmem:[%s2209_s2 + $0x228] sm:$0xff]  }
  0x3f   : > { %1631 = vmatprep.subr.bf16.mxu1 %v1837_v1 }
  0x41   : > { %1612 = vmatpush3.bf16.msra.mxu0 %v1778_v34  ;;  %v1823_v34 = vld [vmem:[%s2209_s2 + $0x220] sm:$0xff]  }
  0x42   : > { %1632 = vmatpush3.bf16.msra.mxu1 %v1779_v35  ;;  %1613 = vmatprep.subr.bf16.mxu0 %v1837_v1  ;;  %v1824_v35 = vld [vmem:[%s2209_s2 + $0x218] sm:$0xff]  }
  0x43   : > { %1633 = vmatprep.subr.bf16.mxu1 %v1837_v1 }
  0x45   : > { %1614 = vmatpush3.bf16.msra.mxu0 %v1780_v36  ;;  %v1825_v36 = vld [vmem:[%s2209_s2 + $0x210] sm:$0xff]  }
  0x46   : > { %1634 = vmatpush3.bf16.msra.mxu1 %v1781_v37  ;;  %1615 = vmatprep.subr.bf16.mxu0 %v1837_v1  ;;  %v1826_v37 = vld [vmem:[%s2209_s2 + $0x208] sm:$0xff]  }
  0x47   : > { %1635 = vmatprep.subr.bf16.mxu1 %v1837_v1 }
  0x49   : > { %1616 = vmatpush3.bf16.msra.mxu0 %v1782_v40  ;;  %v1827_v40 = vld [vmem:[%s2209_s2 + $0x200] sm:$0xff]  }
  0x4a   : > { %1636 = vmatpush3.bf16.msra.mxu1 %v1783_v41  ;;  %1641 = vmatprep.subr.bf16.mxu0 %v1837_v1  ;;  %v1107_v41 = vrot.slane %v1468_v39, 1 }
  0x4b   : > { %1661 = vmatprep.subr.bf16.mxu1 %v1837_v1 }
  0x4c   : > { %1618 = vmatmul.mubr.bf16.vlgmr.msra.gmra.mxu0 %v427_v42 }
  0x4d   : > { %1642 = vmatpush3.bf16.msra.mxu0 %v1785_v43  ;;  %1638 = vmatmul.mubr.bf16.vlgmr.msra.gmra.mxu1 %v518_v44 }
  0x4e   : > { %1662 = vmatpush3.bf16.msra.mxu1 %v1786_v45  ;;  %1643 = vmatprep.subr.bf16.mxu0 %v1837_v1 }
  0x4f   : > { %1663 = vmatprep.subr.bf16.mxu1 %v1837_v1  ;;  %1657 = vmatprep.mubr.msk.bf16.mxu0 %vm1838_vm0, %v1837_v1 }
  0x50   : > { %1677 = vmatprep.mubr.msk.bf16.mxu1 %vm1838_vm0, %v1837_v1 }
  0x51   : > { %1644 = vmatpush3.bf16.msra.mxu0 %v1787_v46 }
  0x52   : > { %1664 = vmatpush3.bf16.msra.mxu1 %v1788_v47  ;;  %1645 = vmatprep.subr.bf16.mxu0 %v1837_v1 }
  0x53   : > { %1665 = vmatprep.subr.bf16.mxu1 %v1837_v1 }
  0x55   : > { %1646 = vmatpush3.bf16.msra.mxu0 %v1789_v48 }
  0x56   : > { %1666 = vmatpush3.bf16.msra.mxu1 %v1790_v49  ;;  %1647 = vmatprep.subr.bf16.mxu0 %v1837_v1 }
  0x57   : > { %1667 = vmatprep.subr.bf16.mxu1 %v1837_v1 }
  0x59   : > { %1648 = vmatpush3.bf16.msra.mxu0 %v1791_v50 }
  0x5a   : > { %1668 = vmatpush3.bf16.msra.mxu1 %v1792_v51  ;;  %1649 = vmatprep.subr.bf16.mxu0 %v1837_v1 }
  0x5b   : > { %1669 = vmatprep.subr.bf16.mxu1 %v1837_v1 }
  0x5d   : > { %1650 = vmatpush3.bf16.msra.mxu0 %v1793_v52 }
  0x5e   : > { %1670 = vmatpush3.bf16.msra.mxu1 %v1794_v55  ;;  %1651 = vmatprep.subr.bf16.mxu0 %v1837_v1 }
  0x5f   : > { %1671 = vmatprep.subr.bf16.mxu1 %v1837_v1 }
  0x61   : > { %1652 = vmatpush3.bf16.msra.mxu0 %v1795_v57 }
  0x62   : > { %1672 = vmatpush3.bf16.msra.mxu1 %v1796_v58  ;;  %1653 = vmatprep.subr.bf16.mxu0 %v1837_v1 }
  0x63   : > { %1673 = vmatprep.subr.bf16.mxu1 %v1837_v1 }
  0x65   : > { %1654 = vmatpush3.bf16.msra.mxu0 %v1797_v60 }
  0x66   : > { %1674 = vmatpush3.bf16.msra.mxu1 %v1798_v61  ;;  %1655 = vmatprep.subr.bf16.mxu0 %v1837_v1 }
  0x67   : > { %1675 = vmatprep.subr.bf16.mxu1 %v1837_v1 }
  0x69   : > { %1656 = vmatpush3.bf16.msra.mxu0 %v1799_v2 }
  0x6a   : > { %1676 = vmatpush3.bf16.msra.mxu1 %v1800_v4  ;;  %1681 = vmatprep.subr.bf16.mxu0 %v1837_v1 }
  0x6b   : > { %1701 = vmatprep.subr.bf16.mxu1 %v1837_v1 }
  0x6c   : > { %1658 = vmatmul.mubr.bf16.vlgmr.msra.gmra.mxu0 %v655_v5 }
  0x6d   : > { %1682 = vmatpush3.bf16.msra.mxu0 %v1802_v6  ;;  %1678 = vmatmul.mubr.bf16.vlgmr.msra.gmra.mxu1 %v767_v7 }
  0x6e   : > { %1702 = vmatpush3.bf16.msra.mxu1 %v1804_v8  ;;  %1683 = vmatprep.subr.bf16.mxu0 %v1837_v1 }
  0x6f   : > { %1703 = vmatprep.subr.bf16.mxu1 %v1837_v1  ;;  %1697 = vmatprep.mubr.msk.bf16.mxu0 %vm1838_vm0, %v1837_v1 }
  0x70   : > { %1717 = vmatprep.mubr.msk.bf16.mxu1 %vm1838_vm0, %v1837_v1 }
  0x71   : > { %1684 = vmatpush3.bf16.msra.mxu0 %v1805_v9 }
  0x72   : > { %1704 = vmatpush3.bf16.msra.mxu1 %v1806_v10  ;;  %1685 = vmatprep.subr.bf16.mxu0 %v1837_v1 }
  0x73   : > { %1705 = vmatprep.subr.bf16.mxu1 %v1837_v1 }
  0x75   : > { %1686 = vmatpush3.bf16.msra.mxu0 %v1807_v11 }
  0x76   : > { %1706 = vmatpush3.bf16.msra.mxu1 %v1808_v12  ;;  %1687 = vmatprep.subr.bf16.mxu0 %v1837_v1 }
  0x77   : > { %1707 = vmatprep.subr.bf16.mxu1 %v1837_v1 }
  0x79   : > { %1688 = vmatpush3.bf16.msra.mxu0 %v1809_v13 }
  0x7a   : > { %1708 = vmatpush3.bf16.msra.mxu1 %v1810_v14  ;;  %1689 = vmatprep.subr.bf16.mxu0 %v1837_v1 }
  0x7b   : > { %1709 = vmatprep.subr.bf16.mxu1 %v1837_v1 }
  0x7d   : > { %1690 = vmatpush3.bf16.msra.mxu0 %v1811_v15 }
  0x7e   : > { %1710 = vmatpush3.bf16.msra.mxu1 %v1812_v16  ;;  %1691 = vmatprep.subr.bf16.mxu0 %v1837_v1  ;;  %v1198_v16 = vld [vmem:[%s177_s18] sm:$0x1] }
  0x7f   : > { %1711 = vmatprep.subr.bf16.mxu1 %v1837_v1  ;;  %v1199_v18 = vunpack.c.l.bf16 %v1198_v16 }
  0x81   : > { %1692 = vmatpush3.bf16.msra.mxu0 %v1813_v19 }
  0x82   : > { %1712 = vmatpush3.bf16.msra.mxu1 %v1814_v21  ;;  %1693 = vmatprep.subr.bf16.mxu0 %v1837_v1 }
  0x83   : > { %1713 = vmatprep.subr.bf16.mxu1 %v1837_v1 }
  0x85   : > { %1694 = vmatpush3.bf16.msra.mxu0 %v1815_v22 }
  0x86   : > { %1714 = vmatpush3.bf16.msra.mxu1 %v1816_v24  ;;  %1695 = vmatprep.subr.bf16.mxu0 %v1837_v1 }
  0x87   : > { %1715 = vmatprep.subr.bf16.mxu1 %v1837_v1 }
  0x89   : > { %1696 = vmatpush3.bf16.msra.mxu0 %v1817_v25 }
  0x8a   : > { %1716 = vmatpush3.bf16.msra.mxu1 %v1818_v28  ;;  %1721 = vmatprep.subr.bf16.mxu0 %v1837_v1 }
  0x8c   : > { %1698 = vmatmul.mubr.bf16.vlgmr.msra.gmra.mxu0 %v858_v29 }
  0x8d   : > { %1722 = vmatpush3.bf16.msra.mxu0 %v1819_v30  ;;  %1718 = vmatmul.mubr.bf16.vlgmr.msra.gmra.mxu1 %v995_v31 }
  0x8e   : > { %1723 = vmatprep.subr.bf16.mxu0 %v1837_v1  ;;  %1737 = vmatprep.mubr.msk.bf16.mxu0 %vm1838_vm0, %v1837_v1 }
  0x91   : > { %1724 = vmatpush3.bf16.msra.mxu0 %v1821_v32 }
  0x92   : > { %1725 = vmatprep.subr.bf16.mxu0 %v1837_v1 }
  0x95   : > { %1726 = vmatpush3.bf16.msra.mxu0 %v1822_v33 }
  0x96   : > { %1727 = vmatprep.subr.bf16.mxu0 %v1837_v1 }
  0x99   : > { %1728 = vmatpush3.bf16.msra.mxu0 %v1823_v34 }
  0x9a   : > { %1729 = vmatprep.subr.bf16.mxu0 %v1837_v1 }
  0x9d   : > { %1730 = vmatpush3.bf16.msra.mxu0 %v1824_v35 }
  0x9e   : > { %1731 = vmatprep.subr.bf16.mxu0 %v1837_v1 }
  0xa1   : > { %1732 = vmatpush3.bf16.msra.mxu0 %v1825_v36 }
  0xa2   : > { %1733 = vmatprep.subr.bf16.mxu0 %v1837_v1 }
  0xa5   : > { %1734 = vmatpush3.bf16.msra.mxu0 %v1826_v37 }
  0xa6   : > { %1735 = vmatprep.subr.bf16.mxu0 %v1837_v1 }
  0xa9   : > { %1736 = vmatpush3.bf16.msra.mxu0 %v1827_v40 }
  0xac   : > { %1738 = vmatmul.mubr.bf16.vlgmr.msra.gmra.mxu0 %v1107_v41 }
  0xec   : > { %v312_v42 = vpop.f32.mrf.mxu0 }
  0xed   : > { %v400_v43 = vpop.f32.mrf.mxu1 }
  0xee   : > { %v401_v44 = vadd.f32 %v400_v43, %v312_v42  ;;  %v1579_v45 = vpop.f32.mrf.mxu0 }
  0xef   : > { %v1599_v46 = vpop.f32.mrf.mxu1 }
  0xf0   : > { %v315_v47 = vpop.f32.mrf.mxu0 }
  0xf1   : > { %v403_v48 = vpop.f32.mrf.mxu1 }
  0xf2   : > { %v1580_v49 = vpop.f32.mrf.mxu0 }
  0xf3   : > { %v1600_v50 = vpop.f32.mrf.mxu1 }
 0x10c   : > { %v511_v51 = vpop.f32.mrf.mxu0 }
 0x10d   : > { %v517_v52 = vadd.f32 %v511_v51, %v401_v44  ;;  %v618_v53 = vpop.f32.mrf.mxu1 }
 0x10e   : > { %v1619_v54 = vpop.f32.mrf.mxu0 }
 0x10f   : > { %v624_v55 = vadd.f32 %v618_v53, %v517_v52  ;;  %v1639_v56 = vpop.f32.mrf.mxu1 }
 0x110   : > { %v514_v57 = vpop.f32.mrf.mxu0 }
 0x111   : > { %v621_v1 = vpop.f32.mrf.mxu1 }
 0x112   : > { %v1620_v58 = vpop.f32.mrf.mxu0 }
 0x113   : > { %v1640_v59 = vpop.f32.mrf.mxu1 }
 0x12c   : > { %v739_v60 = vpop.f32.mrf.mxu0 }
 0x12d   : > { %v851_v61 = vpop.f32.mrf.mxu1  ;;  %v745_v13 = vadd.f32 %v739_v60, %v624_v55 }
 0x12e   : > { %v1659_v62 = vpop.f32.mrf.mxu0 }
 0x12f   : > { %v1679_v63 = vpop.f32.mrf.mxu1  ;;  %v857_v14 = vadd.f32 %v851_v61, %v745_v13 }
 0x130   : > { %v742_v0 = vpop.f32.mrf.mxu0 }
 0x131   : > { %v854_v2 = vpop.f32.mrf.mxu1 }
 0x132   : > { %v1660_v3 = vpop.f32.mrf.mxu0 }
 0x133   : > { %v1680_v4 = vpop.f32.mrf.mxu1 }
 0x14c   : > { %v958_v5 = vpop.f32.mrf.mxu0 }
 0x14d   : > { %v1079_v6 = vpop.f32.mrf.mxu1  ;;  %v964_v15 = vadd.f32 %v958_v5, %v857_v14 }
 0x14e   : > { %v1699_v7 = vpop.f32.mrf.mxu0 }
 0x14f   : > { %v1719_v8 = vpop.f32.mrf.mxu1  ;;  %v1085_v17 = vadd.f32 %v1079_v6, %v964_v15 }
 0x150   : > { %v961_v9 = vpop.f32.mrf.mxu0 }
 0x151   : > { %v1082_v10 = vpop.f32.mrf.mxu1 }
 0x152   : > { %v1700_v11 = vpop.f32.mrf.mxu0 }
 0x153   : > { %v1720_v12 = vpop.f32.mrf.mxu1 }
 0x16c   : > { %v1191_v19 = vpop.f32.mrf.mxu0 }
 0x16d   : > { %v1197_v20 = vadd.f32 %v1191_v19, %v1085_v17 }
 0x16e   : > { %v1739_v21 = vpop.f32.mrf.mxu0 }
 0x16f   : > { %v1200_v22 = vadd.f32 %v1199_v18, %v1197_v20 }
 0x170   : > { %v1194_v24 = vpop.f32.mrf.mxu0 }
 0x171   : > { %v1201_v25 = vpack.c.bf16 %v1200_v22, %v1200_v22 }
 0x172   : > { %v1740_v26 = vpop.f32.mrf.mxu0 }
 0x173   : > { %v1206_v27 = vsel %vm1204_vm3, %v1201_v25, %v1205_v23 }
 0x174   : > { %1207 = vst [vmem:[%s180_s21] sm:$0x1] %v1206_v27 }
 0x175 PF: > { %s13_s12 = sadd.s32 1, %s1835_s12  }
 0x176   : > { %p10_p4 = scmp.ge.s32.totalorder %s13_s12, 4  }
 0x178   :  { %12 = sbr.rel (!%p10_p4) target bundleno = 1 (0x1), region = 73 }

</bundles_post_ra>
